<compile_context>
chip_gen: v6e
topology: v6e:2x2x1
jax: 0.10.0
libtpu: 0.0.40
codegen_flags: <defaults>
</compile_context>

<pallas_src>
import numpy as np
import jax
import jax.numpy as jnp
from jax.experimental import pallas as pl
from jax.experimental.pallas import tpu as pltpu

K = 5                  # conv kernel size
H0 = W0 = 32           # LeNet-5 input spatial size
P = 32                 # per-image row pitch inside the kernel (= H0)
BT = 8                 # images per grid step
LANES = 128            # output lane padding
NUM_CLASSES = 10


# ----------------------------- fused Pallas kernel ---------------------------

def _lenet5_kernel(x_ref, r1_ref, r2_ref, r3_ref, wf1_ref, wf2_ref, b_ref, o_ref):
    """LeNet-5 forward for BT images; all activations stay in VMEM."""
    f32, bf16 = jnp.float32, jnp.bfloat16

    m1 = BT * P - 4     # conv1 rows: r = b*32 + oh    (valid for oh < 28)
    m2 = BT * P - 13    # conv2 rows: r = b*32 + 2*oh  (valid for oh < 10)
    m3 = BT * P - 31    # conv3 rows: r = b*32         (one valid row per image)

    # ---- conv1: taps folded into banded weights R1[i] (32, 6*28) -------------
    xb = x_ref[...].astype(bf16)                                    # (BT*32, 32)
    acc = jnp.dot(xb[0:m1, :], r1_ref[0], preferred_element_type=f32)
    for i in range(1, K):
        acc = acc + jnp.dot(xb[i:i + m1, :], r1_ref[i],
                            preferred_element_type=f32)
    c1 = jnp.maximum(acc + b_ref[0:1, 0:168], 0.0)                  # (m1, 168)

    # ---- pool1 (2x2): adjacent row/lane maxima; stride-2 selection is absorbed
    #      into the banded conv2 weights, so rows/lanes stay "dilated".
    e1 = jnp.maximum(c1[0:m1 - 1, :], c1[1:m1, :])
    d1 = jnp.maximum(e1[:, 0:167], e1[:, 1:168]).astype(bf16)       # (m1-1, 167)

    # ---- conv2: R2[i] (167, 16*10) ------------------------------------------
    acc = jnp.dot(d1[0:m2, :], r2_ref[0], preferred_element_type=f32)
    for i in range(1, K):
        acc = acc + jnp.dot(d1[2 * i:2 * i + m2, :], r2_ref[i],
                            preferred_element_type=f32)
    c2 = jnp.maximum(acc + b_ref[1:2, 0:160], 0.0)                  # (m2, 160)

    # ---- pool2 ---------------------------------------------------------------
    e2 = jnp.maximum(c2[0:m2 - 2, :], c2[2:m2, :])
    d2 = jnp.maximum(e2[:, 0:159], e2[:, 1:160]).astype(bf16)       # (m2-2, 159)

    # ---- conv3 (5x5 -> 1x1, 120 channels, no ReLU): R3[i] (159, 120) ---------
    acc = jnp.dot(d2[0:m3, :], r3_ref[0], preferred_element_type=f32)
    for i in range(1, K):
        acc = acc + jnp.dot(d2[4 * i:4 * i + m3, :], r3_ref[i],
                            preferred_element_type=f32)
    c3 = acc + b_ref[2:3, 0:120]                                    # (m3, 120)

    # ---- gather the single valid row per image -> (BT, 120) ------------------
    feat = jnp.concatenate([c3[b * P:b * P + 1, :] for b in range(BT)], axis=0)

    # ---- fc1 / fc2 ------------------------------------------------------------
    h = jnp.dot(feat.astype(bf16), wf1_ref[...], preferred_element_type=f32)
    h = jnp.maximum(h + b_ref[3:4, 0:84], 0.0)                      # (BT, 84)
    z = jnp.dot(h.astype(bf16), wf2_ref[...], preferred_element_type=f32)
    z = z + b_ref[4:5, 0:LANES]                                     # (BT, 128)

    # ---- masked log-softmax over the 10 real class lanes ---------------------
    lane = jax.lax.broadcasted_iota(jnp.int32, (BT, LANES), 1)
    valid = lane < NUM_CLASSES
    zm = jnp.where(valid, z, -jnp.inf)
    m = jnp.max(zm, axis=-1, keepdims=True)
    e = jnp.where(valid, jnp.exp(zm - m), 0.0)
    s = jnp.sum(e, axis=-1, keepdims=True)
    o_ref[...] = jnp.where(valid, zm - m - jnp.log(s), 0.0)


# ------------------------------ host wrapper ----------------------------------

@jax.jit
def lenet5_forward(packed, x):
    """x: (B, 1, 32, 32) f32 -> (B, 10) log-probabilities."""
    B = x.shape[0]
    Bp = ((B + BT - 1) // BT) * BT
    x2 = x.reshape(B, H0, W0).astype(jnp.float32)
    x2 = jnp.pad(x2, ((0, Bp - B), (0, 0), (0, 0)))
    x2 = x2.reshape(Bp * H0, W0)                      # compact: 4KB / image

    out = pl.pallas_call(
        _lenet5_kernel,
        out_shape=jax.ShapeDtypeStruct((Bp, LANES), jnp.float32),
        grid=(Bp // BT,),
        in_specs=[
            pl.BlockSpec((BT * P, W0), lambda g: (g, 0)),      # image block
            pl.BlockSpec((K, 32, 168), lambda g: (0, 0, 0)),   # conv1 banded W
            pl.BlockSpec((K, 167, 160), lambda g: (0, 0, 0)),  # conv2 banded W
            pl.BlockSpec((K, 159, 120), lambda g: (0, 0, 0)),  # conv3 banded W
            pl.BlockSpec((120, 84), lambda g: (0, 0)),         # fc1
            pl.BlockSpec((84, LANES), lambda g: (0, 0)),       # fc2 (padded)
            pl.BlockSpec((5, 168), lambda g: (0, 0)),          # biases
        ],
        out_specs=pl.BlockSpec((BT, LANES), lambda g: (g, 0)),
        compiler_params=pltpu.CompilerParams(
            dimension_semantics=("parallel",),
            vmem_limit_bytes=32 * 1024 * 1024,
        ),
    )(x2, packed["r1"], packed["r2"], packed["r3"],
      packed["wf1"], packed["wf2"], packed["bias"])

    return out[:B, :NUM_CLASSES]


# ------------------------- parameter init / packing ---------------------------

def init_params(key):
    """Deterministic synthetic init (PyTorch-style uniform(-1/sqrt(fan_in), +))."""
    def uniform(k, shape, fan_in):
        bound = 1.0 / float(fan_in) ** 0.5
        return jax.random.uniform(k, shape, jnp.float32, -bound, bound)

    ks = jax.random.split(key, 10)
    return {
        "c1_w": uniform(ks[0], (6, 1, 5, 5), 1 * 25),
        "c1_b": uniform(ks[1], (6,), 1 * 25),
        "c2_w": uniform(ks[2], (16, 6, 5, 5), 6 * 25),
        "c2_b": uniform(ks[3], (16,), 6 * 25),
        "c3_w": uniform(ks[4], (120, 16, 5, 5), 16 * 25),
        "c3_b": uniform(ks[5], (120,), 16 * 25),
        "fc1_w": uniform(ks[6], (120, 84), 120),   # stored as (in, out)
        "fc1_b": uniform(ks[7], (84,), 120),
        "fc2_w": uniform(ks[8], (84, 10), 84),
        "fc2_b": uniform(ks[9], (10,), 84),
    }


def pack_params(p):
    """One-time layout prep: build banded conv matrices, pad, cast to bf16.

    Kernel activation layouts (f32 values in VMEM):
      c1: row b*32 + oh,   lane co*28 + ow            (6*28 = 168 lanes)
      d1: row b*32 + 2*ph, lane ci*28 + 2*pw          (pool1, dilated)
      c2: row b*32 + 2*oh, lane co*10 + ow            (16*10 = 160 lanes)
      d2: row b*32 + 4*ph, lane ci*10 + 2*pw          (pool2, dilated)
    The banded weights below encode the (tap, channel) -> lane mapping so the
    kernel never has to gather.
    """
    w1 = np.asarray(p["c1_w"], np.float32)   # (6, 1, 5, 5)
    w2 = np.asarray(p["c2_w"], np.float32)   # (16, 6, 5, 5)
    w3 = np.asarray(p["c3_w"], np.float32)   # (120, 16, 5, 5)

    r1 = np.zeros((K, 32, 6 * 28), np.float32)
    ow = np.arange(28)
    for i in range(K):
        for j in range(K):
            for co in range(6):
                r1[i, ow + j, co * 28 + ow] = w1[co, 0, i, j]

    r2 = np.zeros((K, 167, 16 * 10), np.float32)
    ow = np.arange(10)
    for i in range(K):
        for j in range(K):
            for co in range(16):
                for ci in range(6):
                    r2[i, ci * 28 + 2 * (ow + j), co * 10 + ow] = w2[co, ci, i, j]

    r3 = np.zeros((K, 159, 120), np.float32)
    for i in range(K):
        for j in range(K):
            for ci in range(16):
                r3[i, ci * 10 + 2 * j, :] = w3[:, ci, i, j]

    wf2 = np.zeros((84, LANES), np.float32)
    wf2[:, :NUM_CLASSES] = np.asarray(p["fc2_w"], np.float32)

    bias = np.zeros((5, 6 * 28), np.float32)
    bias[0, :168] = np.repeat(np.asarray(p["c1_b"], np.float32), 28)
    bias[1, :160] = np.repeat(np.asarray(p["c2_b"], np.float32), 10)
    bias[2, :120] = np.asarray(p["c3_b"], np.float32)
    bias[3, :84] = np.asarray(p["fc1_b"], np.float32)
    bias[4, :NUM_CLASSES] = np.asarray(p["fc2_b"], np.float32)

    return {
        "r1": jnp.asarray(r1).astype(jnp.bfloat16),
        "r2": jnp.asarray(r2).astype(jnp.bfloat16),
        "r3": jnp.asarray(r3).astype(jnp.bfloat16),
        "wf1": jnp.asarray(np.asarray(p["fc1_w"], np.float32)).astype(jnp.bfloat16),
        "wf2": jnp.asarray(wf2).astype(jnp.bfloat16),
        "bias": jnp.asarray(bias, jnp.float32),
    }


# --------------------------- pure-JAX reference --------------------------------

def lenet5_reference(params, x):
    def conv(x, w, b):
        y = jax.lax.conv_general_dilated(
            x, w, (1, 1), "VALID", dimension_numbers=("NCHW", "OIHW", "NCHW"))
        return y + b.reshape(1, -1, 1, 1)

    def pool(x):
        return jax.lax.reduce_window(x, -jnp.inf, jax.lax.max,
                                     (1, 1, 2, 2), (1, 1, 2, 2), "VALID")

    y = pool(jax.nn.relu(conv(x, params["c1_w"], params["c1_b"])))
    y = pool(jax.nn.relu(conv(y, params["c2_w"], params["c2_b"])))
    y = conv(y, params["c3_w"], params["c3_b"])
    y = y.reshape(y.shape[0], -1)
    y = jax.nn.relu(y @ params["fc1_w"] + params["fc1_b"])
    y = y @ params["fc2_w"] + params["fc2_b"]
    return jax.nn.log_softmax(y, axis=-1)


# ------------------------------------ main --------------------------------------

if __name__ == "__main__":
    key = jax.random.PRNGKey(0)
    pkey, xkey = jax.random.split(key)
    params = init_params(pkey)
    packed = pack_params(params)

    # LeNet-5 requires 32x32 single-channel input so the conv stack ends at 1x1.
    # B=16 -> two grid steps of 8 images (keeps both v7x TensorCores busy).
    x = jax.random.normal(xkey, (16, 1, 32, 32), jnp.float32)

    out = jax.block_until_ready(lenet5_forward(packed, x))

    assert out.shape == (16, NUM_CLASSES), out.shape
    assert bool(jnp.all(jnp.isfinite(out)))
    row_sums = jnp.exp(out).sum(axis=-1)
    assert bool(jnp.all(jnp.abs(row_sums - 1.0) < 1e-4)), row_sums

    # Numerical check vs f32 reference (kernel uses bf16 MXU inputs, f32 accum).
    ref = lenet5_reference(params, x)
    max_err = float(jnp.max(jnp.abs(out - ref)))
    assert max_err < 1e-1, max_err

    print("KERNEL_OK")
</pallas_src>

<mosaic_0001>
module attributes {stable_mosaic.version = 11 : i64} {
  func.func @_lenet5_kernel(%arg0: i32, %arg1: memref<256x32xf32, #tpu.memory_space<vmem>>, %arg2: memref<5x32x168xbf16, #tpu.memory_space<vmem>>, %arg3: memref<5x167x160xbf16, #tpu.memory_space<vmem>>, %arg4: memref<5x159x120xbf16, #tpu.memory_space<vmem>>, %arg5: memref<120x84xbf16, #tpu.memory_space<vmem>>, %arg6: memref<84x128xbf16, #tpu.memory_space<vmem>>, %arg7: memref<5x168xf32, #tpu.memory_space<vmem>>, %arg8: memref<8x128xf32, #tpu.memory_space<vmem>>) attributes {dimension_semantics = [#tpu.dimension_semantics<parallel>], iteration_bounds = array<i64: 2>, scalar_prefetch = 0 : i64, scratch_operands = 0 : i64, tpu.core_type = #tpu.core_type<tc>, window_params = [{transform_indices = @transform_0, window_bounds = array<i64: 256, 32>}, {pipeline_mode = #tpu.pipeline_mode<synchronous>, transform_indices = @transform_1, window_bounds = array<i64: 5, 32, 168>}, {pipeline_mode = #tpu.pipeline_mode<synchronous>, transform_indices = @transform_2, window_bounds = array<i64: 5, 167, 160>}, {pipeline_mode = #tpu.pipeline_mode<synchronous>, transform_indices = @transform_3, window_bounds = array<i64: 5, 159, 120>}, {pipeline_mode = #tpu.pipeline_mode<synchronous>, transform_indices = @transform_4, window_bounds = array<i64: 120, 84>}, {pipeline_mode = #tpu.pipeline_mode<synchronous>, transform_indices = @transform_5, window_bounds = array<i64: 84, 128>}, {pipeline_mode = #tpu.pipeline_mode<synchronous>, transform_indices = @transform_6, window_bounds = array<i64: 5, 168>}, {transform_indices = @transform_7, window_bounds = array<i64: 8, 128>}]} {
    %c0 = arith.constant 0 : index
    %c0_0 = arith.constant 0 : index
    %0 = vector.load %arg1[%c0, %c0_0] : memref<256x32xf32, #tpu.memory_space<vmem>>, vector<256x32xf32>
    %1 = arith.truncf %0 : vector<256x32xf32> to vector<256x32xbf16>
    %2 = vector.extract_strided_slice %1 {offsets = [0, 0], sizes = [252, 32], strides = [1, 1]} : vector<256x32xbf16> to vector<252x32xbf16>
    %c0_1 = arith.constant 0 : index
    %c0_2 = arith.constant 0 : index
    %c0_3 = arith.constant 0 : index
    %3 = vector.load %arg2[%c0_1, %c0_2, %c0_3] : memref<5x32x168xbf16, #tpu.memory_space<vmem>>, vector<1x32x168xbf16>
    %4 = vector.shape_cast %3 : vector<1x32x168xbf16> to vector<32x168xbf16>
    %cst = arith.constant dense<0.000000e+00> : vector<252x168xf32>
    %5 = tpu.matmul %2, %4, %cst {dimension_numbers = #tpu.dot_dimension_numbers<[1], [0], [0], [1], [0, 0, 1, 1], [], []>} : vector<252x32xbf16>, vector<32x168xbf16>, vector<252x168xf32> -> vector<252x168xf32>
    %6 = vector.extract_strided_slice %1 {offsets = [1, 0], sizes = [252, 32], strides = [1, 1]} : vector<256x32xbf16> to vector<252x32xbf16>
    %c1 = arith.constant 1 : index
    %c0_4 = arith.constant 0 : index
    %c0_5 = arith.constant 0 : index
    %7 = vector.load %arg2[%c1, %c0_4, %c0_5] : memref<5x32x168xbf16, #tpu.memory_space<vmem>>, vector<1x32x168xbf16>
    %8 = vector.shape_cast %7 : vector<1x32x168xbf16> to vector<32x168xbf16>
    %cst_6 = arith.constant dense<0.000000e+00> : vector<252x168xf32>
    %9 = tpu.matmul %6, %8, %cst_6 {dimension_numbers = #tpu.dot_dimension_numbers<[1], [0], [0], [1], [0, 0, 1, 1], [], []>} : vector<252x32xbf16>, vector<32x168xbf16>, vector<252x168xf32> -> vector<252x168xf32>
    %10 = arith.addf %5, %9 : vector<252x168xf32>
    %11 = vector.extract_strided_slice %1 {offsets = [2, 0], sizes = [252, 32], strides = [1, 1]} : vector<256x32xbf16> to vector<252x32xbf16>
    %c2 = arith.constant 2 : index
    %c0_7 = arith.constant 0 : index
    %c0_8 = arith.constant 0 : index
    %12 = vector.load %arg2[%c2, %c0_7, %c0_8] : memref<5x32x168xbf16, #tpu.memory_space<vmem>>, vector<1x32x168xbf16>
    %13 = vector.shape_cast %12 : vector<1x32x168xbf16> to vector<32x168xbf16>
    %cst_9 = arith.constant dense<0.000000e+00> : vector<252x168xf32>
    %14 = tpu.matmul %11, %13, %cst_9 {dimension_numbers = #tpu.dot_dimension_numbers<[1], [0], [0], [1], [0, 0, 1, 1], [], []>} : vector<252x32xbf16>, vector<32x168xbf16>, vector<252x168xf32> -> vector<252x168xf32>
    %15 = arith.addf %10, %14 : vector<252x168xf32>
    %16 = vector.extract_strided_slice %1 {offsets = [3, 0], sizes = [252, 32], strides = [1, 1]} : vector<256x32xbf16> to vector<252x32xbf16>
    %c3 = arith.constant 3 : index
    %c0_10 = arith.constant 0 : index
    %c0_11 = arith.constant 0 : index
    %17 = vector.load %arg2[%c3, %c0_10, %c0_11] : memref<5x32x168xbf16, #tpu.memory_space<vmem>>, vector<1x32x168xbf16>
    %18 = vector.shape_cast %17 : vector<1x32x168xbf16> to vector<32x168xbf16>
    %cst_12 = arith.constant dense<0.000000e+00> : vector<252x168xf32>
    %19 = tpu.matmul %16, %18, %cst_12 {dimension_numbers = #tpu.dot_dimension_numbers<[1], [0], [0], [1], [0, 0, 1, 1], [], []>} : vector<252x32xbf16>, vector<32x168xbf16>, vector<252x168xf32> -> vector<252x168xf32>
    %20 = arith.addf %15, %19 : vector<252x168xf32>
    %21 = vector.extract_strided_slice %1 {offsets = [4, 0], sizes = [252, 32], strides = [1, 1]} : vector<256x32xbf16> to vector<252x32xbf16>
    %c4 = arith.constant 4 : index
    %c0_13 = arith.constant 0 : index
    %c0_14 = arith.constant 0 : index
    %22 = vector.load %arg2[%c4, %c0_13, %c0_14] : memref<5x32x168xbf16, #tpu.memory_space<vmem>>, vector<1x32x168xbf16>
    %23 = vector.shape_cast %22 : vector<1x32x168xbf16> to vector<32x168xbf16>
    %cst_15 = arith.constant dense<0.000000e+00> : vector<252x168xf32>
    %24 = tpu.matmul %21, %23, %cst_15 {dimension_numbers = #tpu.dot_dimension_numbers<[1], [0], [0], [1], [0, 0, 1, 1], [], []>} : vector<252x32xbf16>, vector<32x168xbf16>, vector<252x168xf32> -> vector<252x168xf32>
    %25 = arith.addf %20, %24 : vector<252x168xf32>
    %c0_16 = arith.constant 0 : index
    %c0_17 = arith.constant 0 : index
    %26 = vector.load %arg7[%c0_16, %c0_17] : memref<5x168xf32, #tpu.memory_space<vmem>>, vector<1x168xf32>
    %27 = vector.broadcast %26 : vector<1x168xf32> to vector<252x168xf32>
    %28 = arith.addf %25, %27 : vector<252x168xf32>
    %cst_18 = arith.constant 0.000000e+00 : f32
    %29 = vector.broadcast %cst_18 : f32 to vector<252x168xf32>
    %30 = arith.maximumf %28, %29 : vector<252x168xf32>
    %31 = vector.extract_strided_slice %30 {offsets = [0, 0], sizes = [251, 168], strides = [1, 1]} : vector<252x168xf32> to vector<251x168xf32>
    %32 = vector.extract_strided_slice %30 {offsets = [1, 0], sizes = [251, 168], strides = [1, 1]} : vector<252x168xf32> to vector<251x168xf32>
    %33 = arith.maximumf %31, %32 : vector<251x168xf32>
    %34 = vector.extract_strided_slice %33 {offsets = [0, 0], sizes = [251, 167], strides = [1, 1]} : vector<251x168xf32> to vector<251x167xf32>
    %35 = vector.extract_strided_slice %33 {offsets = [0, 1], sizes = [251, 167], strides = [1, 1]} : vector<251x168xf32> to vector<251x167xf32>
    %36 = arith.maximumf %34, %35 : vector<251x167xf32>
    %37 = arith.truncf %36 : vector<251x167xf32> to vector<251x167xbf16>
    %38 = vector.extract_strided_slice %37 {offsets = [0, 0], sizes = [243, 167], strides = [1, 1]} : vector<251x167xbf16> to vector<243x167xbf16>
    %c0_19 = arith.constant 0 : index
    %c0_20 = arith.constant 0 : index
    %c0_21 = arith.constant 0 : index
    %39 = vector.load %arg3[%c0_19, %c0_20, %c0_21] : memref<5x167x160xbf16, #tpu.memory_space<vmem>>, vector<1x167x160xbf16>
    %40 = vector.shape_cast %39 : vector<1x167x160xbf16> to vector<167x160xbf16>
    %cst_22 = arith.constant dense<0.000000e+00> : vector<243x160xf32>
    %41 = tpu.matmul %38, %40, %cst_22 {dimension_numbers = #tpu.dot_dimension_numbers<[1], [0], [0], [1], [0, 0, 1, 1], [], []>} : vector<243x167xbf16>, vector<167x160xbf16>, vector<243x160xf32> -> vector<243x160xf32>
    %42 = vector.extract_strided_slice %37 {offsets = [2, 0], sizes = [243, 167], strides = [1, 1]} : vector<251x167xbf16> to vector<243x167xbf16>
    %c1_23 = arith.constant 1 : index
    %c0_24 = arith.constant 0 : index
    %c0_25 = arith.constant 0 : index
    %43 = vector.load %arg3[%c1_23, %c0_24, %c0_25] : memref<5x167x160xbf16, #tpu.memory_space<vmem>>, vector<1x167x160xbf16>
    %44 = vector.shape_cast %43 : vector<1x167x160xbf16> to vector<167x160xbf16>
    %cst_26 = arith.constant dense<0.000000e+00> : vector<243x160xf32>
    %45 = tpu.matmul %42, %44, %cst_26 {dimension_numbers = #tpu.dot_dimension_numbers<[1], [0], [0], [1], [0, 0, 1, 1], [], []>} : vector<243x167xbf16>, vector<167x160xbf16>, vector<243x160xf32> -> vector<243x160xf32>
    %46 = arith.addf %41, %45 : vector<243x160xf32>
    %47 = vector.extract_strided_slice %37 {offsets = [4, 0], sizes = [243, 167], strides = [1, 1]} : vector<251x167xbf16> to vector<243x167xbf16>
    %c2_27 = arith.constant 2 : index
    %c0_28 = arith.constant 0 : index
    %c0_29 = arith.constant 0 : index
    %48 = vector.load %arg3[%c2_27, %c0_28, %c0_29] : memref<5x167x160xbf16, #tpu.memory_space<vmem>>, vector<1x167x160xbf16>
    %49 = vector.shape_cast %48 : vector<1x167x160xbf16> to vector<167x160xbf16>
    %cst_30 = arith.constant dense<0.000000e+00> : vector<243x160xf32>
    %50 = tpu.matmul %47, %49, %cst_30 {dimension_numbers = #tpu.dot_dimension_numbers<[1], [0], [0], [1], [0, 0, 1, 1], [], []>} : vector<243x167xbf16>, vector<167x160xbf16>, vector<243x160xf32> -> vector<243x160xf32>
    %51 = arith.addf %46, %50 : vector<243x160xf32>
    %52 = vector.extract_strided_slice %37 {offsets = [6, 0], sizes = [243, 167], strides = [1, 1]} : vector<251x167xbf16> to vector<243x167xbf16>
    %c3_31 = arith.constant 3 : index
    %c0_32 = arith.constant 0 : index
    %c0_33 = arith.constant 0 : index
    %53 = vector.load %arg3[%c3_31, %c0_32, %c0_33] : memref<5x167x160xbf16, #tpu.memory_space<vmem>>, vector<1x167x160xbf16>
    %54 = vector.shape_cast %53 : vector<1x167x160xbf16> to vector<167x160xbf16>
    %cst_34 = arith.constant dense<0.000000e+00> : vector<243x160xf32>
    %55 = tpu.matmul %52, %54, %cst_34 {dimension_numbers = #tpu.dot_dimension_numbers<[1], [0], [0], [1], [0, 0, 1, 1], [], []>} : vector<243x167xbf16>, vector<167x160xbf16>, vector<243x160xf32> -> vector<243x160xf32>
    %56 = arith.addf %51, %55 : vector<243x160xf32>
    %57 = vector.extract_strided_slice %37 {offsets = [8, 0], sizes = [243, 167], strides = [1, 1]} : vector<251x167xbf16> to vector<243x167xbf16>
    %c4_35 = arith.constant 4 : index
    %c0_36 = arith.constant 0 : index
    %c0_37 = arith.constant 0 : index
    %58 = vector.load %arg3[%c4_35, %c0_36, %c0_37] : memref<5x167x160xbf16, #tpu.memory_space<vmem>>, vector<1x167x160xbf16>
    %59 = vector.shape_cast %58 : vector<1x167x160xbf16> to vector<167x160xbf16>
    %cst_38 = arith.constant dense<0.000000e+00> : vector<243x160xf32>
    %60 = tpu.matmul %57, %59, %cst_38 {dimension_numbers = #tpu.dot_dimension_numbers<[1], [0], [0], [1], [0, 0, 1, 1], [], []>} : vector<243x167xbf16>, vector<167x160xbf16>, vector<243x160xf32> -> vector<243x160xf32>
    %61 = arith.addf %56, %60 : vector<243x160xf32>
    %c1_39 = arith.constant 1 : index
    %c0_40 = arith.constant 0 : index
    %62 = vector.load %arg7[%c1_39, %c0_40] : memref<5x168xf32, #tpu.memory_space<vmem>>, vector<1x160xf32>
    %63 = vector.broadcast %62 : vector<1x160xf32> to vector<243x160xf32>
    %64 = arith.addf %61, %63 : vector<243x160xf32>
    %cst_41 = arith.constant 0.000000e+00 : f32
    %65 = vector.broadcast %cst_41 : f32 to vector<243x160xf32>
    %66 = arith.maximumf %64, %65 : vector<243x160xf32>
    %67 = vector.extract_strided_slice %66 {offsets = [0, 0], sizes = [241, 160], strides = [1, 1]} : vector<243x160xf32> to vector<241x160xf32>
    %68 = vector.extract_strided_slice %66 {offsets = [2, 0], sizes = [241, 160], strides = [1, 1]} : vector<243x160xf32> to vector<241x160xf32>
    %69 = arith.maximumf %67, %68 : vector<241x160xf32>
    %70 = vector.extract_strided_slice %69 {offsets = [0, 0], sizes = [241, 159], strides = [1, 1]} : vector<241x160xf32> to vector<241x159xf32>
    %71 = vector.extract_strided_slice %69 {offsets = [0, 1], sizes = [241, 159], strides = [1, 1]} : vector<241x160xf32> to vector<241x159xf32>
    %72 = arith.maximumf %70, %71 : vector<241x159xf32>
    %73 = arith.truncf %72 : vector<241x159xf32> to vector<241x159xbf16>
    %74 = vector.extract_strided_slice %73 {offsets = [0, 0], sizes = [225, 159], strides = [1, 1]} : vector<241x159xbf16> to vector<225x159xbf16>
    %c0_42 = arith.constant 0 : index
    %c0_43 = arith.constant 0 : index
    %c0_44 = arith.constant 0 : index
    %75 = vector.load %arg4[%c0_42, %c0_43, %c0_44] : memref<5x159x120xbf16, #tpu.memory_space<vmem>>, vector<1x159x120xbf16>
    %76 = vector.shape_cast %75 : vector<1x159x120xbf16> to vector<159x120xbf16>
    %cst_45 = arith.constant dense<0.000000e+00> : vector<225x120xf32>
    %77 = tpu.matmul %74, %76, %cst_45 {dimension_numbers = #tpu.dot_dimension_numbers<[1], [0], [0], [1], [0, 0, 1, 1], [], []>} : vector<225x159xbf16>, vector<159x120xbf16>, vector<225x120xf32> -> vector<225x120xf32>
    %78 = vector.extract_strided_slice %73 {offsets = [4, 0], sizes = [225, 159], strides = [1, 1]} : vector<241x159xbf16> to vector<225x159xbf16>
    %c1_46 = arith.constant 1 : index
    %c0_47 = arith.constant 0 : index
    %c0_48 = arith.constant 0 : index
    %79 = vector.load %arg4[%c1_46, %c0_47, %c0_48] : memref<5x159x120xbf16, #tpu.memory_space<vmem>>, vector<1x159x120xbf16>
    %80 = vector.shape_cast %79 : vector<1x159x120xbf16> to vector<159x120xbf16>
    %cst_49 = arith.constant dense<0.000000e+00> : vector<225x120xf32>
    %81 = tpu.matmul %78, %80, %cst_49 {dimension_numbers = #tpu.dot_dimension_numbers<[1], [0], [0], [1], [0, 0, 1, 1], [], []>} : vector<225x159xbf16>, vector<159x120xbf16>, vector<225x120xf32> -> vector<225x120xf32>
    %82 = arith.addf %77, %81 : vector<225x120xf32>
    %83 = vector.extract_strided_slice %73 {offsets = [8, 0], sizes = [225, 159], strides = [1, 1]} : vector<241x159xbf16> to vector<225x159xbf16>
    %c2_50 = arith.constant 2 : index
    %c0_51 = arith.constant 0 : index
    %c0_52 = arith.constant 0 : index
    %84 = vector.load %arg4[%c2_50, %c0_51, %c0_52] : memref<5x159x120xbf16, #tpu.memory_space<vmem>>, vector<1x159x120xbf16>
    %85 = vector.shape_cast %84 : vector<1x159x120xbf16> to vector<159x120xbf16>
    %cst_53 = arith.constant dense<0.000000e+00> : vector<225x120xf32>
    %86 = tpu.matmul %83, %85, %cst_53 {dimension_numbers = #tpu.dot_dimension_numbers<[1], [0], [0], [1], [0, 0, 1, 1], [], []>} : vector<225x159xbf16>, vector<159x120xbf16>, vector<225x120xf32> -> vector<225x120xf32>
    %87 = arith.addf %82, %86 : vector<225x120xf32>
    %88 = vector.extract_strided_slice %73 {offsets = [12, 0], sizes = [225, 159], strides = [1, 1]} : vector<241x159xbf16> to vector<225x159xbf16>
    %c3_54 = arith.constant 3 : index
    %c0_55 = arith.constant 0 : index
    %c0_56 = arith.constant 0 : index
    %89 = vector.load %arg4[%c3_54, %c0_55, %c0_56] : memref<5x159x120xbf16, #tpu.memory_space<vmem>>, vector<1x159x120xbf16>
    %90 = vector.shape_cast %89 : vector<1x159x120xbf16> to vector<159x120xbf16>
    %cst_57 = arith.constant dense<0.000000e+00> : vector<225x120xf32>
    %91 = tpu.matmul %88, %90, %cst_57 {dimension_numbers = #tpu.dot_dimension_numbers<[1], [0], [0], [1], [0, 0, 1, 1], [], []>} : vector<225x159xbf16>, vector<159x120xbf16>, vector<225x120xf32> -> vector<225x120xf32>
    %92 = arith.addf %87, %91 : vector<225x120xf32>
    %93 = vector.extract_strided_slice %73 {offsets = [16, 0], sizes = [225, 159], strides = [1, 1]} : vector<241x159xbf16> to vector<225x159xbf16>
    %c4_58 = arith.constant 4 : index
    %c0_59 = arith.constant 0 : index
    %c0_60 = arith.constant 0 : index
    %94 = vector.load %arg4[%c4_58, %c0_59, %c0_60] : memref<5x159x120xbf16, #tpu.memory_space<vmem>>, vector<1x159x120xbf16>
    %95 = vector.shape_cast %94 : vector<1x159x120xbf16> to vector<159x120xbf16>
    %cst_61 = arith.constant dense<0.000000e+00> : vector<225x120xf32>
    %96 = tpu.matmul %93, %95, %cst_61 {dimension_numbers = #tpu.dot_dimension_numbers<[1], [0], [0], [1], [0, 0, 1, 1], [], []>} : vector<225x159xbf16>, vector<159x120xbf16>, vector<225x120xf32> -> vector<225x120xf32>
    %97 = arith.addf %92, %96 : vector<225x120xf32>
    %c2_62 = arith.constant 2 : index
    %c0_63 = arith.constant 0 : index
    %98 = vector.load %arg7[%c2_62, %c0_63] : memref<5x168xf32, #tpu.memory_space<vmem>>, vector<1x120xf32>
    %99 = vector.broadcast %98 : vector<1x120xf32> to vector<225x120xf32>
    %100 = arith.addf %97, %99 : vector<225x120xf32>
    %101 = vector.extract_strided_slice %100 {offsets = [0, 0], sizes = [1, 120], strides = [1, 1]} : vector<225x120xf32> to vector<1x120xf32>
    %102 = vector.extract_strided_slice %100 {offsets = [32, 0], sizes = [1, 120], strides = [1, 1]} : vector<225x120xf32> to vector<1x120xf32>
    %103 = vector.extract_strided_slice %100 {offsets = [64, 0], sizes = [1, 120], strides = [1, 1]} : vector<225x120xf32> to vector<1x120xf32>
    %104 = vector.extract_strided_slice %100 {offsets = [96, 0], sizes = [1, 120], strides = [1, 1]} : vector<225x120xf32> to vector<1x120xf32>
    %105 = vector.extract_strided_slice %100 {offsets = [128, 0], sizes = [1, 120], strides = [1, 1]} : vector<225x120xf32> to vector<1x120xf32>
    %106 = vector.extract_strided_slice %100 {offsets = [160, 0], sizes = [1, 120], strides = [1, 1]} : vector<225x120xf32> to vector<1x120xf32>
    %107 = vector.extract_strided_slice %100 {offsets = [192, 0], sizes = [1, 120], strides = [1, 1]} : vector<225x120xf32> to vector<1x120xf32>
    %108 = vector.extract_strided_slice %100 {offsets = [224, 0], sizes = [1, 120], strides = [1, 1]} : vector<225x120xf32> to vector<1x120xf32>
    %109 = tpu.concatenate %101, %102, %103, %104, %105, %106, %107, %108 in 0 : vector<1x120xf32>, vector<1x120xf32>, vector<1x120xf32>, vector<1x120xf32>, vector<1x120xf32>, vector<1x120xf32>, vector<1x120xf32>, vector<1x120xf32> -> vector<8x120xf32>
    %110 = arith.truncf %109 : vector<8x120xf32> to vector<8x120xbf16>
    %c0_64 = arith.constant 0 : index
    %c0_65 = arith.constant 0 : index
    %111 = vector.load %arg5[%c0_64, %c0_65] : memref<120x84xbf16, #tpu.memory_space<vmem>>, vector<120x84xbf16>
    %cst_66 = arith.constant dense<0.000000e+00> : vector<8x84xf32>
    %112 = tpu.matmul %110, %111, %cst_66 {dimension_numbers = #tpu.dot_dimension_numbers<[1], [0], [0], [1], [0, 0, 1, 1], [], []>} : vector<8x120xbf16>, vector<120x84xbf16>, vector<8x84xf32> -> vector<8x84xf32>
    %c3_67 = arith.constant 3 : index
    %c0_68 = arith.constant 0 : index
    %113 = vector.load %arg7[%c3_67, %c0_68] : memref<5x168xf32, #tpu.memory_space<vmem>>, vector<1x84xf32>
    %114 = vector.broadcast %113 : vector<1x84xf32> to vector<8x84xf32>
    %115 = arith.addf %112, %114 : vector<8x84xf32>
    %cst_69 = arith.constant 0.000000e+00 : f32
    %116 = vector.broadcast %cst_69 : f32 to vector<8x84xf32>
    %117 = arith.maximumf %115, %116 : vector<8x84xf32>
    %118 = arith.truncf %117 : vector<8x84xf32> to vector<8x84xbf16>
    %c0_70 = arith.constant 0 : index
    %c0_71 = arith.constant 0 : index
    %119 = vector.load %arg6[%c0_70, %c0_71] : memref<84x128xbf16, #tpu.memory_space<vmem>>, vector<84x128xbf16>
    %cst_72 = arith.constant dense<0.000000e+00> : vector<8x128xf32>
    %120 = tpu.matmul %118, %119, %cst_72 {dimension_numbers = #tpu.dot_dimension_numbers<[1], [0], [0], [1], [0, 0, 1, 1], [], []>} : vector<8x84xbf16>, vector<84x128xbf16>, vector<8x128xf32> -> vector<8x128xf32>
    %c4_73 = arith.constant 4 : index
    %c0_74 = arith.constant 0 : index
    %121 = vector.load %arg7[%c4_73, %c0_74] : memref<5x168xf32, #tpu.memory_space<vmem>>, vector<1x128xf32>
    %122 = vector.broadcast %121 : vector<1x128xf32> to vector<8x128xf32>
    %123 = arith.addf %120, %122 : vector<8x128xf32>
    %124 = tpu.iota {dimensions = array<i32: 1>} : vector<8x128xi32>
    %c10_i32 = arith.constant 10 : i32
    %125 = vector.broadcast %c10_i32 : i32 to vector<8x128xi32>
    %126 = arith.cmpi slt, %124, %125 : vector<8x128xi32>
    %cst_75 = arith.constant 0xFF800000 : f32
    %127 = vector.broadcast %cst_75 : f32 to vector<8x128xf32>
    %128 = arith.select %126, %123, %127 : vector<8x128xi1>, vector<8x128xf32>
    %cst_76 = arith.constant dense<0xFF800000> : vector<8xf32>
    %129 = vector.multi_reduction <maximumf>, %128, %cst_76 [1] : vector<8x128xf32> to vector<8xf32>
    %130 = vector.shape_cast %129 : vector<8xf32> to vector<8x1xf32>
    %131 = vector.broadcast %130 : vector<8x1xf32> to vector<8x128xf32>
    %132 = arith.subf %128, %131 : vector<8x128xf32>
    %133 = math.exp %132 : vector<8x128xf32>
    %cst_77 = arith.constant 0.000000e+00 : f32
    %134 = vector.broadcast %cst_77 : f32 to vector<8x128xf32>
    %135 = arith.select %126, %133, %134 : vector<8x128xi1>, vector<8x128xf32>
    %cst_78 = arith.constant dense<0.000000e+00> : vector<8xf32>
    %136 = vector.multi_reduction <add>, %135, %cst_78 [1] : vector<8x128xf32> to vector<8xf32>
    %137 = vector.shape_cast %136 : vector<8xf32> to vector<8x1xf32>
    %138 = vector.broadcast %130 : vector<8x1xf32> to vector<8x128xf32>
    %139 = arith.subf %128, %138 : vector<8x128xf32>
    %140 = math.log %137 : vector<8x1xf32>
    %141 = vector.broadcast %140 : vector<8x1xf32> to vector<8x128xf32>
    %142 = arith.subf %139, %141 : vector<8x128xf32>
    %cst_79 = arith.constant 0.000000e+00 : f32
    %143 = vector.broadcast %cst_79 : f32 to vector<8x128xf32>
    %144 = arith.select %126, %142, %143 : vector<8x128xi1>, vector<8x128xf32>
    %c0_80 = arith.constant 0 : index
    %c0_81 = arith.constant 0 : index
    %145 = vector.load %arg8[%c0_80, %c0_81] : memref<8x128xf32, #tpu.memory_space<vmem>>, vector<8x128xf32>
    tpu.vector_store %arg8[%c0_80, %c0_81], %144 {strides = array<i32>} : memref<8x128xf32, #tpu.memory_space<vmem>>, vector<8x128xf32>,
    return
  }
  func.func @transform_0(%arg0: i32) -> (i32, i32) {
    %c0_i32 = arith.constant 0 : i32
    %c0_i32_0 = arith.constant 0 : i32
    return %arg0, %c0_i32 : i32, i32
  }
  func.func @transform_1(%arg0: i32) -> (i32, i32, i32) {
    %c0_i32 = arith.constant 0 : i32
    %c0_i32_0 = arith.constant 0 : i32
    %c0_i32_1 = arith.constant 0 : i32
    %c0_i32_2 = arith.constant 0 : i32
    return %c0_i32, %c0_i32_0, %c0_i32_1 : i32, i32, i32
  }
  func.func @transform_2(%arg0: i32) -> (i32, i32, i32) {
    %c0_i32 = arith.constant 0 : i32
    %c0_i32_0 = arith.constant 0 : i32
    %c0_i32_1 = arith.constant 0 : i32
    %c0_i32_2 = arith.constant 0 : i32
    return %c0_i32, %c0_i32_0, %c0_i32_1 : i32, i32, i32
  }
  func.func @transform_3(%arg0: i32) -> (i32, i32, i32) {
    %c0_i32 = arith.constant 0 : i32
    %c0_i32_0 = arith.constant 0 : i32
    %c0_i32_1 = arith.constant 0 : i32
    %c0_i32_2 = arith.constant 0 : i32
    return %c0_i32, %c0_i32_0, %c0_i32_1 : i32, i32, i32
  }
  func.func @transform_4(%arg0: i32) -> (i32, i32) {
    %c0_i32 = arith.constant 0 : i32
    %c0_i32_0 = arith.constant 0 : i32
    %c0_i32_1 = arith.constant 0 : i32
    return %c0_i32, %c0_i32_0 : i32, i32
  }
  func.func @transform_5(%arg0: i32) -> (i32, i32) {
    %c0_i32 = arith.constant 0 : i32
    %c0_i32_0 = arith.constant 0 : i32
    %c0_i32_1 = arith.constant 0 : i32
    return %c0_i32, %c0_i32_0 : i32, i32
  }
  func.func @transform_6(%arg0: i32) -> (i32, i32) {
    %c0_i32 = arith.constant 0 : i32
    %c0_i32_0 = arith.constant 0 : i32
    %c0_i32_1 = arith.constant 0 : i32
    return %c0_i32, %c0_i32_0 : i32, i32
  }
  func.func @transform_7(%arg0: i32) -> (i32, i32) {
    %c0_i32 = arith.constant 0 : i32
    %c0_i32_0 = arith.constant 0 : i32
    return %arg0, %c0_i32 : i32, i32
  }
}

</mosaic_0001>

<bundles_post_ra>
// kernel: lenet5_forward.1
= control target key start
LH: loop header
LB: loop body
LE: loop exit
PB: predicated region body
PF: predicated region fallthrough
CT: control target
= control target key end

     0   :  { %12 = vsyncpa [#allocation3], 0  ;;  %s14342_s0 = inlined_call_operand.vmem [shape: f32[512,32], index: 0, kind: input, shape index: {}]   ;;  %s14343_s1 = inlined_call_operand.vmem [shape: bf16[5,32,168], index: 1, kind: input, shape index: {}]   ;;  %s14344_s2 = inlined_call_operand.vmem [shape: bf16[5,167,160], index: 2, kind: input, shape index: {}]   ;;  %s14345_s3 = inlined_call_operand.vmem [shape: bf16[5,159,120], index: 3, kind: input, shape index: {}]   ;;  %s14346_s4 = inlined_call_operand.vmem [shape: bf16[120,84], index: 4, kind: input, shape index: {}]   ;;  %s14347_s5 = inlined_call_operand.vmem [shape: bf16[84,128], index: 5, kind: input, shape index: {}]   ;;  %s14348_s6 = inlined_call_operand.vmem [shape: f32[5,168], index: 6, kind: input, shape index: {}]   ;;  %s14349_s7 = inlined_call_operand.hbm [shape: f32[16,128], index: 7, kind: output, shape index: {}]  }
   0x1   :  { %14 = vsyncpa [#allocation3 + $0x1], 0  ;;  %s9432_s24 = smov 0   ;;  %s9434_s25 = smov 0  }
   0x2   :  { %s9436_s26 = smov 0   ;;  %s9438_s27 = smov 0  }
   0x3 LB: > { %s9453_s28 = sadd.s32 4294967295, %s9384_s27   ;;  %s8028_s29 = sadd.s32 4294967294, %s9384_s27   ;;  %s9384_s27 = sphi %s9438_s27, %s14965_s27   ;;  %s9380_s26 = sphi %s9436_s26, %s14964_s26   ;;  %s9376_s25 = sphi %s9434_s25, %s14963_s25   ;;  %s9372_s24 = sphi %s9432_s24, %s14962_s24  }
   0x4   : > { %s9457_s30 = sadd.s32 1, %s9384_s27   ;;  %s179_s8 = sadd.s32 1, %s9380_s26 }
   0x5   : > { %s176_s9 = ssub.s32 %s9384_s27, %s9457_s30  ;;  %p189_p0 = scmp.ne.s32.totalorder %s9380_s26, %s9376_s25 }
   0x6   : > { %p177_p1 = scmp.eq.s32.totalorder %s176_s9, 0  ;;  %p190_p2 = scmp.eq.s32.totalorder %s9453_s28, 1 }
   0x7   : > { %p195_p3 = scmp.ne.s32.totalorder %s9376_s25, %s9372_s24  ;;  %p196_p4 = scmp.eq.s32.totalorder %s8028_s29, 1 }
   0x8   : > { %s9468_s10 = scalar_select %p177_p1, %s9380_s26, %s179_s8  }
   0x9   : > { %p9470_p5 = por %p190_p2, %p189_p0  ;;  %p9474_p6 = por %p196_p4, %p195_p3 }
   0xa   : > { %p8031_p7 = scmp.ge.s32.totalorder %s9384_s27, 1  ;;  %p241_p8 = scmp.lt.s32.totalorder %s9384_s27, 3 }
   0xc   : > { %p242_p9 = pnand %p8031_p7, %p241_p8 }
   0xe   : > { %245 = sbr.rel (%p242_p9) target bundleno = 2492 (0x9bc), region = 48 }
  0x13   : > { %v9066_v0 = vld [vmem:[%s14343_s1 + $0x34] ss:$8 sps:$4 sm:$0xff]   ;;  %s8033_s15 = sshll.u32 %s9453_s28, 5  ;;  %v9068_v1 = vld [vmem:[%s14343_s1 + $0x30] ss:$8 sps:$4 sm:$0xff]   ;;  %v14350_v2 = vmov 0  }
  0x14   : > { %566 = vmatprep.mubr.bf16.mxu0 %v14350_v2  ;;  %676 = vmatprep.mubr.bf16.mxu1 %v14350_v2  ;;  %p274_p10 = scmp.lt.s32.totalorder %s8033_s15, 63  ;;  %v9069_v3 = vld [vmem:[%s14343_s1 + $0x24] ss:$8 sps:$4 sm:$0xff]   ;;  %v9071_v4 = vld [vmem:[%s14343_s1 + $0x20] ss:$8 sps:$4 sm:$0xff]   ;;  %vm485_vm1 = vcmask 261120  }
  0x15   : > { %546 = vmatprep.subr.bf16.mxu0 %v9066_v0  ;;  %8703 = vmatprep.subr.bf16.mxu1 %v9066_v0  ;;  %v9074_v5 = vld [vmem:[%s14343_s1 + $0x54] ss:$8 sps:$4 sm:$0xff]   ;;  %vm337_vm0 = vsmask.f32 7424  ;;  %v9072_v33 = vld [vmem:[%s14343_s1 + $0x50] ss:$8 sps:$4 sm:$0xff]  }
  0x16   : > { %547 = vmatpush1.bf16.msra.mxu0 %v9068_v1  ;;  %8705 = vmatpush1.bf16.msra.mxu1 %v9068_v1  ;;  %s14967_s15 = smov (!%p274_p10, %s8033_s15), 63  ;;  %v9077_v6 = vld [vmem:[%s14343_s1 + $0x14] ss:$8 sps:$4 sm:$0xff]   ;;  %v9075_v37 = vld [vmem:[%s14343_s1 + $0x10] ss:$8 sps:$4 sm:$0xff]   ;;  %vm993_vm3 = vcmask 1046528  }
  0x17   : > { %548 = vmatprep.subr.bf16.mxu0 %v9069_v3  ;;  %8704 = vmatprep.subr.bf16.mxu1 %v9069_v3  ;;  %s8034_s29 = sshll.u32 %s14967_s15, 3  ;;  %v9083_v47 = vld [vmem:[%s14343_s1 + $0x44] ss:$8 sps:$4 sm:$0xff]   ;;  %v9081_v54 = vld [vmem:[%s14343_s1 + $0x40] ss:$8 sps:$4 sm:$0xff]   ;;  %vm1749_vm4 = vcmask 1045504  }
  0x18   : > { %s9504_s16 = scalar_lea.vmem %s14342_s0, %s8034_s29  ;;  %v9080_v50 = vld [vmem:[%s14343_s1 + $0x4] ss:$8 sps:$4 sm:$0xff]   ;;  %v9078_v58 = vld [vmem:[%s14343_s1] ss:$8 sps:$4 sm:$0xff]   ;;  %v9086_v61 = vld [vmem:[%s14343_s1 + $0x74] ss:$8 sps:$4 sm:$0xff]  }
  0x19   : > { %v280_v7 = vld [vmem:[%s9504_s16] sm:$0xff]  ;;  %v281_v8 = vld [vmem:[%s9504_s16 + $0x8] sm:$0xff]  ;;  %v282_v9 = vld [vmem:[%s9504_s16 + $0x10] sm:$0xff]  ;;  %vm1355_vm2 = vsmask.f32 6400  ;;  %vm3257_vm5 = vcmask 1042432  }
  0x1a   : > { %549 = vmatpush1.bf16.msra.mxu0 %v9071_v4  ;;  %8706 = vmatpush1.bf16.msra.mxu1 %v9071_v4  ;;  %v283_v10 = vld [vmem:[%s9504_s16 + $0x18] sm:$0xff]  ;;  %v9510_v11 = vpack.c.bf16 %v281_v8, %v280_v7  ;;  %v302_v12 = vld [vmem:[%s9504_s16 + $0xb0] sm:$0xff]  ;;  %v304_v15 = vld [vmem:[%s9504_s16 + $0xc0] sm:$0xff]  ;;  %vm3258_vm6 = vcmask 1043456   ;;  %s9388_s19 = smov 127   ;;  %vm2757_vm7 = vcmask 1039360  }
  0x1b   : > { %1105 = vmatprep.subr.bf16.mxu0 %v9074_v5  ;;  %v303_v13 = vld [vmem:[%s9504_s16 + $0xb8] sm:$0xff]  ;;  %791 = vmatprep.subr.bf16.mxu1 %v9077_v6  ;;  %v9514_v14 = vpack.c.bf16 %v283_v10, %v282_v9  ;;  %v305_v16 = vld [vmem:[%s9504_s16 + $0xc8] sm:$0xff]  ;;  %v284_v18 = vld [vmem:[%s9504_s16 + $0x20] sm:$0xff]  ;;  %vm3208_vm8 = vcmask 318464   ;;  %vm4342_vm9 = vcmask 1044480   ;;  %vm6414_vm10 = vcmask 1047552  }
  0x1c   : > { %v9518_v17 = vpack.c.bf16 %v303_v13, %v302_v12  ;;  %v339_v19 = vshrl.u32 %v9510_v11, 16  ;;  %v341_v20 = vshll.u32 %v9510_v11, 16  ;;  %v9523_v21 = vpack.c.bf16 %v305_v16, %v304_v15  ;;  %v285_v22 = vld [vmem:[%s9504_s16 + $0x28] sm:$0xff]  ;;  %v306_v29 = vld [vmem:[%s9504_s16 + $0xd0] sm:$0xff]  ;;  %v307_v30 = vld [vmem:[%s9504_s16 + $0xd8] sm:$0xff]  ;;  %s270_s13 = sand.u32 1, %s9376_s25  }
  0x1d   : > { %v346_v23 = vshll.u32 %v9514_v14, 16  ;;  %v9529_v26 = vpack.c.bf16 %v285_v22, %v284_v18  ;;  %v350_v36 = vshrl.u32 %v9514_v14, 16  ;;  %v9557_v40 = vpack.c.bf16 %v307_v30, %v306_v29  ;;  %v286_v42 = vld [vmem:[%s9504_s16 + $0x30] sm:$0xff]  ;;  %v287_v43 = vld [vmem:[%s9504_s16 + $0x38] sm:$0xff]  ;;  %v308_v45 = vld [vmem:[%s9504_s16 + $0xe0] sm:$0xff]  ;;  %s8032_s14 = sshll.u32 %s270_s13, 3 }
  0x1e   : > { %v426_v24 = vshll.u32 %v9518_v17, 16  ;;  %v430_v25 = vshrl.u32 %v9518_v17, 16  ;;  %v343_v27 = vrot.slane %v341_v20, 1  ;;  %v434_v28 = vshll.u32 %v9523_v21, 16  ;;  %v309_v46 = vld [vmem:[%s9504_s16 + $0xe8] sm:$0xff]  ;;  %v288_v59 = vld [vmem:[%s9504_s16 + $0x40] sm:$0xff] }
  0x1f   : > { %v348_v31 = vrot.slane %v346_v23, 1  ;;  %v354_v39 = vshll.u32 %v9529_v26, 16  ;;  %v438_v41 = vshrl.u32 %v9523_v21, 16  ;;  %v442_v49 = vshll.u32 %v9557_v40, 16  ;;  %v289_v60 = vld [vmem:[%s9504_s16 + $0x48] sm:$0xff]  ;;  %v310_v1 = vld [vmem:[%s9504_s16 + $0xf0] sm:$0xff] }
  0x20   : > { %v9540_v32 = vrot.slane %v426_v24, 1  ;;  %v344_v34 = vor.u32 %v343_v27, %v339_v19  ;;  %v436_v35 = vrot.slane %v434_v28, 1  ;;  %v9579_v53 = vpack.c.bf16 %v287_v43, %v286_v42  ;;  %v311_v3 = vld [vmem:[%s9504_s16 + $0xf8] sm:$0xff]  ;;  %v300_v12 = vld [vmem:[%s9504_s16 + $0xa0] sm:$0xff]  ;;  %v301_v18 = vld [vmem:[%s9504_s16 + $0xa8] sm:$0xff]  ;;  %s8648_s15 = sshll.u32 %s9453_s28, 7 }
  0x21   : > { %v352_v51 = vor.u32 %v350_v36, %v348_v31  ;;  %v356_v52 = vrot.slane %v354_v39, 1  ;;  %v444_v56 = vrot.slane %v442_v49, 1  ;;  %v9590_v57 = vpack.c.bf16 %v309_v46, %v308_v45  ;;  %v9089_v4 = vld [vmem:[%s14343_s1 + $0x94] ss:$8 sps:$4 sm:$0xff]   ;;  %s272_s17 = scalar_lea.vmem [#allocation2], %s8032_s14  ;;  %s14306_s21 = scalar_lea.hbm %s14349_s7, %s8648_s15 }
  0x22   : > { %v432_v38 = vor.u32 %v430_v25, %v9540_v32  ;;  %v349_v44 = vsel %vm337_vm0, %v344_v34, %v348_v31  ;;  %v440_v55 = vor.u32 %v438_v41, %v436_v35  ;;  %v358_v63 = vshrl.u32 %v9529_v26, 16  ;;  %v290_v22 = vld [vmem:[%s9504_s16 + $0x50] sm:$0xff]  ;;  %v291_v31 = vld [vmem:[%s9504_s16 + $0x58] sm:$0xff]  ;;  %s7956_s22 = scalar_lea.sflag [#allocation3], %s270_s13  ;;  %s9391_s23 = smov [#allocation2]  }
  0x23   : > { %8043 = vmatmul.mubr.msk.bf16.vlgmr.msra.gmra.mxu0 %vm485_vm1, %v349_v44  ;;  %v357_v62 = vsel %vm337_vm0, %v352_v51, %v356_v52  ;;  %v362_v0 = vshll.u32 %v9579_v53, 16  ;;  %v446_v6 = vshrl.u32 %v9557_v40, 16  ;;  %v450_v7 = vshll.u32 %v9590_v57, 16  ;;  %v293_v51 = vld [vmem:[%s9504_s16 + $0x68] sm:$0xff]  ;;  %s9328_s28 = sshll.u32 %s9391_s23, 4  ;;  %s9329_s28 = int_to_ptr.vmem [resolvable:$false] %s9328_s28 }
  0x24   : > { %v437_v48 = vsel %vm337_vm0, %v432_v38, %v436_v35  ;;  %1106 = vmatpush1.bf16.msra.mxu0 %v9072_v33  ;;  %576 = vmatprep.mubr.bf16.mxu0 %v14350_v2  ;;  %v445_v5 = vsel %vm337_vm0, %v440_v55, %v444_v56  ;;  %v360_v8 = vor.u32 %v358_v63, %v356_v52  ;;  %v366_v29 = vshrl.u32 %v9579_v53, 16  ;;  %s9330_s29 = scalar_lea.vmem %s9329_s28, 256 }
  0x25   : > { %8054 = vmatmul.mubr.msk.bf16.vlgmr.msra.gmra.mxu1 %vm485_vm1, %v437_v48  ;;  %1107 = vmatprep.subr.bf16.mxu0 %v9083_v47  ;;  %v364_v9 = vrot.slane %v362_v0, 1  ;;  %v9618_v10 = vpack.c.bf16 %v289_v60, %v288_v59  ;;  %v448_v13 = vor.u32 %v446_v6, %v444_v56  ;;  %v452_v15 = vrot.slane %v450_v7, 1 }
  0x26   : > { %686 = vmatprep.mubr.bf16.mxu1 %v14350_v2  ;;  %792 = vmatpush1.bf16.msra.mxu1 %v9075_v37  ;;  %v9626_v16 = vpack.c.bf16 %v311_v3, %v310_v1  ;;  %v454_v34 = vshrl.u32 %v9590_v57, 16  ;;  %v9637_v37 = vpack.c.bf16 %v301_v18, %v300_v12  ;;  %v9646_v43 = vpack.c.bf16 %v291_v31, %v290_v22  ;;  %v295_v3 = vld [vmem:[%s9504_s16 + $0x78] sm:$0xff]  ;;  %v296_v12 = vld [vmem:[%s9504_s16 + $0x80] sm:$0xff] }
  0x27   : > { %793 = vmatprep.subr.bf16.mxu1 %v9080_v50  ;;  %v365_v27 = vsel %vm337_vm0, %v360_v8, %v364_v9  ;;  %v370_v30 = vshll.u32 %v9618_v10, 16  ;;  %v453_v33 = vsel %vm337_vm0, %v448_v13, %v452_v15  ;;  %v368_v38 = vor.u32 %v366_v29, %v364_v9  ;;  %v292_v50 = vld [vmem:[%s9504_s16 + $0x60] sm:$0xff]  ;;  %v297_v13 = vld [vmem:[%s9504_s16 + $0x88] sm:$0xff] }
  0x28   : > { %1108 = vmatpush1.bf16.msra.mxu0 %v9081_v54  ;;  %v458_v35 = vshll.u32 %v9626_v16, 16  ;;  %v418_v44 = vshll.u32 %v9637_v37, 16  ;;  %v456_v45 = vor.u32 %v454_v34, %v452_v15  ;;  %v422_v47 = vshrl.u32 %v9637_v37, 16 }
  0x29   : > { %1861 = vmatprep.subr.bf16.mxu0 %v9089_v4  ;;  %v372_v42 = vrot.slane %v370_v30, 1  ;;  %v374_v54 = vshrl.u32 %v9618_v10, 16  ;;  %v378_v55 = vshll.u32 %v9646_v43, 16  ;;  %v9680_v1 = vpack.c.bf16 %v293_v51, %v292_v50 }
  0x2a   : > { %794 = vmatpush1.bf16.msra.mxu1 %v9078_v58  ;;  %v460_v46 = vrot.slane %v458_v35, 1  ;;  %v9657_v48 = vrot.slane %v418_v44, 1  ;;  %v382_v8 = vshrl.u32 %v9646_v43, 16  ;;  %v1356_v15 = vrot.slane %v339_v19, 1 }
  0x2b   : > { %8044 = vmatmul.mubr.msk.bf16.gmra.mxu0 %vm485_vm1, %v357_v62  ;;  %1499 = vmatprep.subr.bf16.mxu1 %v9086_v61  ;;  %v373_v52 = vsel %vm337_vm0, %v368_v38, %v372_v42  ;;  %v376_v60 = vor.u32 %v374_v54, %v372_v42  ;;  %v380_v61 = vrot.slane %v378_v55, 1  ;;  %v462_v62 = vshrl.u32 %v9626_v16, 16  ;;  %v298_v42 = vld [vmem:[%s9504_s16 + $0x90] sm:$0xff] }
  0x2c   : > { %586 = vmatprep.mubr.bf16.mxu0 %v14350_v2  ;;  %v424_v56 = vor.u32 %v422_v47, %v9657_v48  ;;  %v461_v58 = vsel %vm337_vm0, %v456_v45, %v460_v46  ;;  %v386_v9 = vshll.u32 %v9680_v1, 16  ;;  %v1357_v31 = vrot.slane %v341_v20, 2  ;;  %v299_v45 = vld [vmem:[%s9504_s16 + $0x98] sm:$0xff] }
  0x2d   : > { %8055 = vmatmul.mubr.msk.bf16.gmra.mxu1 %vm485_vm1, %v445_v5  ;;  %v381_v4 = vsel %vm337_vm0, %v376_v60, %v380_v61  ;;  %v464_v5 = vor.u32 %v462_v62, %v460_v46  ;;  %v384_v18 = vor.u32 %v382_v8, %v380_v61  ;;  %v1359_v19 = vrot.slane %v350_v36, 1  ;;  %v9084_v46 = vld [vmem:[%s14343_s1 + $0x70] ss:$8 sps:$4 sm:$0xff]   ;;  %v9090_v60 = vld [vmem:[%s14343_s1 + $0x60] ss:$8 sps:$4 sm:$0xff]  }
  0x2e   : > { %696 = vmatprep.mubr.bf16.mxu1 %v14350_v2  ;;  %v9670_v59 = vsel %vm337_vm0, %v424_v56, %v9540_v32  ;;  %v294_v32 = vld [vmem:[%s9504_s16 + $0x70] sm:$0xff]  ;;  %v388_v22 = vrot.slane %v386_v9, 1  ;;  %v9710_v38 = vpack.c.bf16 %v297_v13, %v296_v12  ;;  %v390_v20 = vshrl.u32 %v9680_v1, 16 }
  0x2f   : > { %vm6368_vm11 = vcmask 252928   ;;  %vm7150_vm12 = vcmask 1041408   ;;  %vm9390_vm13 = vmmov 0   ;;  %vm7725_vm14 = vcmask 1040384  }
  0x30   : > { %v389_v50 = vsel %vm337_vm0, %v384_v18, %v388_v22  ;;  %v402_v36 = vshll.u32 %v9710_v38, 16  ;;  %v406_v12 = vshrl.u32 %v9710_v38, 16  ;;  %v1364_v18 = vrot.slane %v354_v39, 2 }
  0x31   : > { %vm7797_vm15 = vcmask 982016  }
  0x33   : > { %8045 = vmatmul.mubr.msk.bf16.gmra.mxu0 %vm485_vm1, %v365_v27  ;;  %v9701_v27 = vpack.c.bf16 %v295_v3, %v294_v32  ;;  %v392_v32 = vor.u32 %v390_v20, %v388_v22 }
  0x34   : > { %596 = vmatprep.mubr.bf16.mxu0 %v14350_v2 }
  0x35   : > { %8056 = vmatmul.mubr.msk.bf16.gmra.mxu1 %vm485_vm1, %v453_v33  ;;  %v1360_v33 = vrot.slane %v346_v23, 2  ;;  %v394_v51 = vshll.u32 %v9701_v27, 16  ;;  %v9092_v23 = vld [vmem:[%s14343_s1 + $0x64] ss:$8 sps:$4 sm:$0xff]  }
  0x36   : > { %706 = vmatprep.mubr.bf16.mxu1 %v14350_v2 }
  0x37   : > { %v1361_v56 = vor.u32 %v1360_v33, %v1359_v19  ;;  %v396_v3 = vrot.slane %v394_v51, 1 }
  0x39   : > { %v397_v22 = vsel %vm337_vm0, %v392_v32, %v396_v3 }
  0x3b   : > { %8046 = vmatmul.mubr.msk.bf16.gmra.mxu0 %vm485_vm1, %v373_v52  ;;  %v1358_v52 = vor.u32 %v1357_v31, %v1356_v15  ;;  %v1363_v15 = vrot.slane %v358_v63, 1 }
  0x3c   : > { %606 = vmatprep.mubr.bf16.mxu0 %v14350_v2 }
  0x3d   : > { %8057 = vmatmul.mubr.msk.bf16.gmra.mxu1 %vm485_vm1, %v461_v58  ;;  %v9724_v58 = vpack.c.bf16 %v299_v45, %v298_v42  ;;  %v9731_v61 = vsel %vm1355_vm2, %v1358_v52, %v1361_v56  ;;  %v1365_v31 = vor.u32 %v1364_v18, %v1363_v15  ;;  %v1367_v42 = vrot.slane %v366_v29, 1 }
  0x3e   : > { %716 = vmatprep.mubr.bf16.mxu1 %v14350_v2  ;;  %v1368_v45 = vrot.slane %v362_v0, 2  ;;  %v1371_v0 = vrot.slane %v374_v54, 1  ;;  %v1372_v29 = vrot.slane %v370_v30, 2  ;;  %v1375_v54 = vrot.slane %v382_v8, 1 }
  0x3f   : > { %v410_v13 = vshll.u32 %v9724_v58, 16  ;;  %v9753_v33 = vsel %vm1355_vm2, %v1361_v56, %v1365_v31  ;;  %v414_v19 = vshrl.u32 %v9724_v58, 16  ;;  %v1376_v30 = vrot.slane %v378_v55, 2 }
  0x40   : > { %v994_v15 = vrot.slane %v9510_v11, 1  ;;  %v995_v18 = vrot.slane %v9514_v14, 1  ;;  %v1380_v55 = vrot.slane %v386_v9, 2  ;;  %v9087_v9 = vld [vmem:[%s14343_s1 + $0x90] ss:$8 sps:$4 sm:$0xff]  }
  0x41   : > { %v412_v39 = vrot.slane %v410_v13, 1 }
  0x43   : > { %8047 = vmatmul.mubr.msk.bf16.gmra.mxu0 %vm485_vm1, %v381_v4  ;;  %v398_v4 = vshrl.u32 %v9701_v27, 16 }
  0x44   : > { %616 = vmatprep.mubr.bf16.mxu0 %v14350_v2 }
  0x45   : > { %8058 = vmatmul.mubr.msk.bf16.gmra.mxu1 %vm485_vm1, %v464_v5  ;;  %v404_v5 = vrot.slane %v402_v36, 1  ;;  %v400_v63 = vor.u32 %v398_v4, %v396_v3  ;;  %v416_v3 = vor.u32 %v414_v19, %v412_v39 }
  0x46   : > { %811 = vmatprep.mubr.bf16.mxu1 %v14350_v2 }
  0x47   : > { %v408_v52 = vor.u32 %v406_v12, %v404_v5 }
  0x49   : > { %v413_v56 = vsel %vm337_vm0, %v408_v52, %v412_v39  ;;  %v997_v39 = vrot.slane %v9529_v26, 1 }
  0x4b   : > { %8048 = vmatmul.mubr.msk.bf16.gmra.mxu0 %vm485_vm1, %v389_v50  ;;  %v1369_v50 = vor.u32 %v1368_v45, %v1367_v42  ;;  %v9093_v42 = vld [vmem:[%s14343_s1 + $0x80] ss:$8 sps:$4 sm:$0xff]   ;;  %v1388_v45 = vrot.slane %v402_v36, 2  ;;  %v999_v36 = vrot.slane %v9579_v53, 1 }
  0x4c   : > { %626 = vmatprep.mubr.bf16.mxu0 %v14350_v2 }
  0x4d   : > { %8063 = vmatmul.mubr.msk.bf16.vlgmr.msra.gmra.mxu1 %vm485_vm1, %v9510_v11 }
  0x4e   : > { %821 = vmatprep.mubr.bf16.mxu1 %v14350_v2  ;;  %1500 = vmatpush1.bf16.msra.mxu1 %v9084_v46  ;;  %v405_v46 = vsel %vm337_vm0, %v400_v63, %v404_v5  ;;  %v421_v5 = vsel %vm337_vm0, %v416_v3, %v9657_v48  ;;  %v1379_v48 = vrot.slane %v390_v20, 1  ;;  %v996_v20 = vsel %vm993_vm3, %v994_v15, %v995_v18 }
  0x4f   : > { %1501 = vmatprep.subr.bf16.mxu1 %v9092_v23  ;;  %v9771_v23 = vsel %vm1355_vm2, %v1365_v31, %v1369_v50  ;;  %v1001_v3 = vrot.slane %v9618_v10, 1  ;;  %v1400_v15 = vrot.slane %v426_v24, 2  ;;  %v1403_v24 = vrot.slane %v438_v41, 1 }
  0x50   : > { %v9812_v8 = vor.u32 %v1380_v55, %v1379_v48  ;;  %v1404_v55 = vrot.slane %v434_v28, 2  ;;  %v1007_v28 = vrot.slane %v9701_v27, 1  ;;  %v1408_v41 = vrot.slane %v442_v49, 2 }
  0x51   : > { %v1009_v49 = vrot.slane %v9710_v38, 1  ;;  %vm7891_vm0 = vcmask 687104  }
  0x52   : > { %1502 = vmatpush1.bf16.msra.mxu1 %v9090_v60  ;;  %v1373_v60 = vor.u32 %v1372_v29, %v1371_v0  ;;  %v1391_v0 = vrot.slane %v414_v19, 1  ;;  %v1000_v29 = vsel %vm993_vm3, %v997_v39, %v999_v36  ;;  %v1395_v19 = vrot.slane %v422_v47, 1 }
  0x53   : > { %8049 = vmatmul.mubr.msk.bf16.gmra.mxu0 %vm485_vm1, %v397_v22  ;;  %v1377_v22 = vor.u32 %v1376_v30, %v1375_v54  ;;  %v1002_v54 = vsel %vm993_vm3, %v999_v36, %v1001_v3  ;;  %v1399_v47 = vrot.slane %v430_v25, 1  ;;  %v1005_v25 = vrot.slane %v9680_v1, 1 }
  0x54   : > { %636 = vmatprep.mubr.bf16.mxu0 %v14350_v2  ;;  %v9786_v32 = vsel %vm1355_vm2, %v1369_v50, %v1373_v60  ;;  %v998_v50 = vsel %vm993_vm3, %v995_v18, %v997_v39  ;;  %v1407_v39 = vrot.slane %v446_v6, 1  ;;  %v1412_v6 = vrot.slane %v450_v7, 2 }
  0x55   : > { %8064 = vmatmul.mubr.msk.bf16.gmra.mxu1 %vm485_vm1, %v9514_v14  ;;  %v9802_v31 = vsel %vm1355_vm2, %v1373_v60, %v1377_v22  ;;  %v9818_v63 = vsel %vm1355_vm2, %v1377_v22, %v9812_v8  ;;  %v1401_v22 = vor.u32 %v1400_v15, %v1399_v47  ;;  %v1010_v36 = vsel %vm993_vm3, %v1007_v28, %v1009_v49 }
  0x56   : > { %831 = vmatprep.mubr.bf16.mxu1 %v14350_v2  ;;  %v1011_v7 = vrot.slane %v9724_v58, 1  ;;  %v1019_v47 = vrot.slane %v9557_v40, 1  ;;  %v1021_v15 = vrot.slane %v9590_v57, 1 }
  0x5b   : > { %8050 = vmatmul.mubr.msk.bf16.gmra.mxu0 %vm485_vm1, %v405_v46  ;;  %v1387_v46 = vrot.slane %v406_v12, 1  ;;  %v1392_v12 = vrot.slane %v410_v13, 2  ;;  %v1396_v13 = vrot.slane %v418_v44, 2  ;;  %v1003_v44 = vrot.slane %v9646_v43, 1 }
  0x5c   : > { %646 = vmatprep.mubr.bf16.mxu0 %v14350_v2 }
  0x5d   : > { %8065 = vmatmul.mubr.msk.bf16.gmra.mxu1 %vm485_vm1, %v9529_v26  ;;  %v9845_v52 = vor.u32 %v1388_v45, %v1387_v46  ;;  %v1397_v30 = vor.u32 %v1396_v13, %v1395_v19  ;;  %v1004_v18 = vsel %vm993_vm3, %v1001_v3, %v1003_v44  ;;  %v1409_v45 = vor.u32 %v1408_v41, %v1407_v39 }
  0x5e   : > { %841 = vmatprep.mubr.bf16.mxu1 %v14350_v2  ;;  %v1015_v19 = vrot.slane %v9518_v17, 1 }
  0x5f   : > { %v9887_v48 = vsel %vm1355_vm2, %v1397_v30, %v1401_v22 }
  0x63   : > { %8051 = vmatmul.mubr.msk.bf16.gmra.mxu0 %vm485_vm1, %v413_v56  ;;  %v1393_v56 = vor.u32 %v1392_v12, %v1391_v0 }
  0x64   : > { %656 = vmatprep.mubr.bf16.mxu0 %v14350_v2 }
  0x65   : > { %8066 = vmatmul.mubr.msk.bf16.gmra.mxu1 %vm485_vm1, %v9579_v53  ;;  %v9859_v60 = vsel %vm1355_vm2, %v9845_v52, %v1393_v56 }
  0x66   : > { %851 = vmatprep.mubr.bf16.mxu1 %v14350_v2 }
  0x6b   : > { %8052 = vmatmul.mubr.msk.bf16.gmra.mxu0 %vm485_vm1, %v421_v5  ;;  %v9873_v5 = vsel %vm1355_vm2, %v1393_v56, %v1397_v30  ;;  %v1012_v56 = vsel %vm993_vm3, %v1009_v49, %v1011_v7  ;;  %v1017_v30 = vrot.slane %v9523_v21, 1 }
  0x6c   : > { %666 = vmatprep.mubr.bf16.mxu0 %v14350_v2 }
  0x6d   : > { %8067 = vmatmul.mubr.msk.bf16.gmra.mxu1 %vm485_vm1, %v9618_v10 }
  0x6e   : > { %861 = vmatprep.mubr.bf16.mxu1 %v14350_v2 }
  0x73   : > { %8053 = vmatmul.mubr.msk.bf16.gmra.mxu0 %vm485_vm1, %v9670_v59  ;;  %v9095_v59 = vld [vmem:[%s14343_s1 + $0x84] ss:$8 sps:$4 sm:$0xff]  }
  0x74   : > { %1125 = vmatprep.mubr.bf16.mxu0 %v14350_v2 }
  0x75   : > { %8068 = vmatmul.mubr.msk.bf16.gmra.mxu1 %vm485_vm1, %v9646_v43 }
  0x76   : > { %871 = vmatprep.mubr.bf16.mxu1 %v14350_v2 }
  0x7b   : > { %8087 = vmatmul.mubr.msk.bf16.vlgmr.msra.gmra.mxu0 %vm485_vm1, %v996_v20  ;;  %v1405_v20 = vor.u32 %v1404_v55, %v1403_v24 }
  0x7c   : > { %1862 = vmatpush1.bf16.msra.mxu0 %v9087_v9  ;;  %1135 = vmatprep.mubr.bf16.mxu0 %v14350_v2  ;;  %v1006_v9 = vsel %vm993_vm3, %v1003_v44, %v1005_v25  ;;  %v1018_v44 = vsel %vm993_vm3, %v1015_v19, %v1017_v30 }
  0x7d   : > { %8069 = vmatmul.mubr.msk.bf16.gmra.mxu1 %vm485_vm1, %v9680_v1  ;;  %1863 = vmatprep.subr.bf16.mxu0 %v9095_v59  ;;  %v9901_v59 = vsel %vm1355_vm2, %v1401_v22, %v1405_v20  ;;  %v9915_v46 = vsel %vm1355_vm2, %v1405_v20, %v1409_v45 }
  0x7e   : > { %881 = vmatprep.mubr.bf16.mxu1 %v14350_v2 }
  0x80   : > { %1864 = vmatpush1.bf16.msra.mxu0 %v9093_v42  ;;  %v1008_v42 = vsel %vm993_vm3, %v1005_v25, %v1007_v28 }
  0x83   : > { %8088 = vmatmul.mubr.msk.bf16.gmra.mxu0 %vm485_vm1, %v998_v50  ;;  %v1411_v50 = vrot.slane %v454_v34, 1  ;;  %v1416_v34 = vrot.slane %v458_v35, 2  ;;  %v1013_v35 = vrot.slane %v9637_v37, 1 }
  0x84   : > { %1145 = vmatprep.mubr.bf16.mxu0 %v14350_v2 }
  0x85   : > { %8070 = vmatmul.mubr.msk.bf16.gmra.mxu1 %vm485_vm1, %v9701_v27  ;;  %v1413_v12 = vor.u32 %v1412_v6, %v1411_v50 }
  0x86   : > { %891 = vmatprep.mubr.bf16.mxu1 %v14350_v2 }
  0x87   : > { %v9929_v0 = vsel %vm1355_vm2, %v1409_v45, %v1413_v12 }
  0x8b   : > { %8089 = vmatmul.mubr.msk.bf16.gmra.mxu0 %vm485_vm1, %v1000_v29  ;;  %v1415_v29 = vrot.slane %v462_v62, 1  ;;  %v1014_v62 = vsel %vm993_vm3, %v1011_v7, %v1013_v35 }
  0x8c   : > { %1155 = vmatprep.mubr.bf16.mxu0 %v14350_v2 }
  0x8d   : > { %8071 = vmatmul.mubr.msk.bf16.gmra.mxu1 %vm485_vm1, %v9710_v38  ;;  %v9941_v3 = vor.u32 %v1416_v34, %v1415_v29  ;;  %v1750_v29 = vrot.slane %v9510_v11, 2 }
  0x8e   : > { %901 = vmatprep.mubr.bf16.mxu1 %v14350_v2 }
  0x8f   : > { %v9946_v13 = vsel %vm1355_vm2, %v1413_v12, %v9941_v3 }
  0x93   : > { %8090 = vmatmul.mubr.msk.bf16.gmra.mxu0 %vm485_vm1, %v1002_v54  ;;  %v1016_v54 = vsel %vm993_vm3, %v1013_v35, %v1015_v19 }
  0x94   : > { %1165 = vmatprep.mubr.bf16.mxu0 %v14350_v2 }
  0x95   : > { %8072 = vmatmul.mubr.msk.bf16.gmra.mxu1 %vm485_vm1, %v9724_v58 }
  0x96   : > { %911 = vmatprep.mubr.bf16.mxu1 %v14350_v2 }
  0x9b   : > { %8091 = vmatmul.mubr.msk.bf16.gmra.mxu0 %vm485_vm1, %v1004_v18 }
  0x9c   : > { %1175 = vmatprep.mubr.bf16.mxu0 %v14350_v2 }
  0x9d   : > { %8073 = vmatmul.mubr.msk.bf16.gmra.mxu1 %vm485_vm1, %v9637_v37 }
  0x9e   : > { %921 = vmatprep.mubr.bf16.mxu1 %v14350_v2 }
  0xa3   : > { %8092 = vmatmul.mubr.msk.bf16.gmra.mxu0 %vm485_vm1, %v1006_v9 }
  0xa4   : > { %1185 = vmatprep.mubr.bf16.mxu0 %v14350_v2 }
  0xa5   : > { %8074 = vmatmul.mubr.msk.bf16.gmra.mxu1 %vm485_vm1, %v9518_v17 }
  0xa6   : > { %931 = vmatprep.mubr.bf16.mxu1 %v14350_v2 }
  0xab   : > { %8093 = vmatmul.mubr.msk.bf16.gmra.mxu0 %vm485_vm1, %v1008_v42 }
  0xac   : > { %1195 = vmatprep.mubr.bf16.mxu0 %v14350_v2 }
  0xad   : > { %8075 = vmatmul.mubr.msk.bf16.gmra.mxu1 %vm485_vm1, %v9523_v21 }
  0xae   : > { %941 = vmatprep.mubr.bf16.mxu1 %v14350_v2 }
  0xb3   : > { %8094 = vmatmul.mubr.msk.bf16.gmra.mxu0 %vm485_vm1, %v1010_v36  ;;  %v1383_v36 = vrot.slane %v398_v4, 1  ;;  %v1751_v4 = vrot.slane %v9514_v14, 2 }
  0xb4   : > { %1205 = vmatprep.mubr.bf16.mxu0 %v14350_v2 }
  0xb5   : > { %8076 = vmatmul.mubr.msk.bf16.gmra.mxu1 %vm485_vm1, %v9557_v40 }
  0xb6   : > { %951 = vmatprep.mubr.bf16.mxu1 %v14350_v2 }
  0xbb   : > { %8095 = vmatmul.mubr.msk.bf16.gmra.mxu0 %vm485_vm1, %v1012_v56 }
  0xbc   : > { %1215 = vmatprep.mubr.bf16.mxu0 %v14350_v2 }
  0xbd   : > { %8077 = vmatmul.mubr.msk.bf16.gmra.mxu1 %vm485_vm1, %v9590_v57 }
  0xbe   : > { %961 = vmatprep.mubr.bf16.mxu1 %v14350_v2 }
  0xc3   : > { %8096 = vmatmul.mubr.msk.bf16.gmra.mxu0 %vm485_vm1, %v1014_v62 }
  0xc4   : > { %1225 = vmatprep.mubr.bf16.mxu0 %v14350_v2 }
  0xc5   : > { %8078 = vmatmul.mubr.msk.bf16.gmra.mxu1 %vm485_vm1, %v9626_v16 }
  0xc6   : > { %1519 = vmatprep.mubr.bf16.mxu1 %v14350_v2 }
  0xcb   : > { %8097 = vmatmul.mubr.msk.bf16.gmra.mxu0 %vm485_vm1, %v1016_v54 }
  0xcc   : > { %1235 = vmatprep.mubr.bf16.mxu0 %v14350_v2 }
  0xcd   : > { %8111 = vmatmul.mubr.msk.bf16.vlgmr.msra.gmra.mxu1 %vm485_vm1, %v9731_v61  ;;  %v1020_v61 = vsel %vm993_vm3, %v1017_v30, %v1019_v47 }
  0xce   : > { %1529 = vmatprep.mubr.bf16.mxu1 %v14350_v2 }
  0xd3   : > { %8098 = vmatmul.mubr.msk.bf16.gmra.mxu0 %vm485_vm1, %v1018_v44 }
  0xd4   : > { %1245 = vmatprep.mubr.bf16.mxu0 %v14350_v2 }
  0xd5   : > { %8112 = vmatmul.mubr.msk.bf16.gmra.mxu1 %vm485_vm1, %v9753_v33  ;;  %v1022_v33 = vsel %vm993_vm3, %v1019_v47, %v1021_v15  ;;  %v1753_v47 = vrot.slane %v9529_v26, 2 }
  0xd6   : > { %1539 = vmatprep.mubr.bf16.mxu1 %v14350_v2 }
  0xdb   : > { %8099 = vmatmul.mubr.msk.bf16.gmra.mxu0 %vm485_vm1, %v1020_v61 }
  0xdc   : > { %1255 = vmatprep.mubr.bf16.mxu0 %v14350_v2 }
  0xdd   : > { %8113 = vmatmul.mubr.msk.bf16.gmra.mxu1 %vm485_vm1, %v9771_v23  ;;  %v1023_v23 = vrot.slane %v9626_v16, 1 }
  0xde   : > { %1549 = vmatprep.mubr.bf16.mxu1 %v14350_v2 }
  0xdf   : > { %v1024_v20 = vsel %vm993_vm3, %v1021_v15, %v1023_v23 }
  0xe3   : > { %v9982_v18 = vpop.f32.mrf.mxu0  ;;  %8100 = vmatmul.mubr.msk.bf16.gmra.mxu0 %vm485_vm1, %v1022_v33 }
  0xe4   : > { %1265 = vmatprep.mubr.bf16.mxu0 %v14350_v2 }
  0xe5   : > { %v9985_v22 = vpop.f32.mrf.mxu1  ;;  %8114 = vmatmul.mubr.msk.bf16.gmra.mxu1 %vm485_vm1, %v9786_v32  ;;  %v9991_v25 = vpop.f32.mrf.mxu0 }
  0xe6   : > { %1559 = vmatprep.mubr.bf16.mxu1 %v14350_v2 }
  0xe7   : > { %v9994_v55 = vpop.f32.mrf.mxu1  ;;  %v9996_v24 = vpop.f32.mrf.mxu0 }
  0xe9   : > { %v9998_v9 = vpop.f32.mrf.mxu1  ;;  %v10001_v28 = vpop.f32.mrf.mxu0 }
  0xeb   : > { %v10003_v41 = vpop.f32.mrf.mxu1  ;;  %v10005_v32 = vpop.f32.mrf.mxu0  ;;  %8101 = vmatmul.mubr.msk.bf16.gmra.mxu0 %vm485_vm1, %v1024_v20 }
  0xec   : > { %14438 = vst [vmem:[#allocation5_spill] sm:$0xff] %v10003_v41  ;;  %1275 = vmatprep.mubr.bf16.mxu0 %v14350_v2 }
  0xed   : > { %v10008_v39 = vpop.f32.mrf.mxu1  ;;  %8115 = vmatmul.mubr.msk.bf16.gmra.mxu1 %vm485_vm1, %v9802_v31  ;;  %v10013_v42 = vpop.f32.mrf.mxu0  ;;  %v1384_v31 = vrot.slane %v394_v51, 2 }
  0xee   : > { %1569 = vmatprep.mubr.bf16.mxu1 %v14350_v2 }
  0xef   : > { %v10016_v45 = vpop.f32.mrf.mxu1  ;;  %v10018_v49 = vpop.f32.mrf.mxu0  ;;  %v1385_v51 = vor.u32 %v1384_v31, %v1383_v36 }
  0xf1   : > { %v10020_v6 = vpop.f32.mrf.mxu1  ;;  %v10022_v50 = vpop.f32.mrf.mxu0  ;;  %v1386_v11 = vsel %vm1355_vm2, %v9812_v8, %v1385_v51  ;;  %v1390_v36 = vsel %vm1355_vm2, %v1385_v51, %v9845_v52 }
  0xf3   : > { %v10028_v12 = vpop.f32.mrf.mxu1  ;;  %v10030_v7 = vpop.f32.mrf.mxu0  ;;  %8102 = vmatmul.mubr.msk.bf16.gmra.mxu0 %vm485_vm1, %v1023_v23  ;;  %v1754_v23 = vsel %vm1749_vm4, %v1751_v4, %v1753_v47 }
  0xf4   : > { %14439 = vst [vmem:[#allocation6_spill] sm:$0xff] %v10028_v12  ;;  %1881 = vmatprep.mubr.bf16.mxu0 %v14350_v2  ;;  %v1757_v12 = vrot.slane %v9618_v10, 2 }
  0xf5   : > { %v10033_v34 = vpop.f32.mrf.mxu1  ;;  %8116 = vmatmul.mubr.msk.bf16.gmra.mxu1 %vm485_vm1, %v9818_v63  ;;  %v10040_v56 = vpop.f32.mrf.mxu0  ;;  %v1752_v63 = vsel %vm1749_vm4, %v1750_v29, %v1751_v4 }
  0xf6   : > { %14440 = vst [vmem:[#allocation7_spill] sm:$0xff] %v10033_v34  ;;  %1579 = vmatprep.mubr.bf16.mxu1 %v14350_v2 }
  0xf7   : > { %v10043_v35 = vpop.f32.mrf.mxu1  ;;  %v10045_v62 = vpop.f32.mrf.mxu0 }
  0xf8   : > { %14441 = vst [vmem:[#allocation8_spill] sm:$0xff] %v10043_v35 }
  0xf9   : > { %v10047_v19 = vpop.f32.mrf.mxu1  ;;  %v10050_v54 = vpop.f32.mrf.mxu0 }
  0xfa   : > { %14442 = vst [vmem:[#allocation9_spill] sm:$0xff] %v10047_v19 }
  0xfb   : > { %v10054_v14 = vpop.f32.mrf.mxu1  ;;  %v10056_v30 = vpop.f32.mrf.mxu0  ;;  %8135 = vmatmul.mubr.msk.bf16.vlgmr.msra.gmra.mxu0 %vm485_vm1, %v1752_v63  ;;  %v1755_v63 = vrot.slane %v9579_v53, 2 }
  0xfc   : > { %14443 = vst [vmem:[#allocation10_spill] sm:$0xff] %v10054_v14  ;;  %1891 = vmatprep.mubr.bf16.mxu0 %v14350_v2 }
  0xfd   : > { %v10059_v44 = vpop.f32.mrf.mxu1  ;;  %8117 = vmatmul.mubr.msk.bf16.gmra.mxu1 %vm485_vm1, %v1386_v11  ;;  %v10064_v61 = vpop.f32.mrf.mxu0 }
  0xfe   : > { %14444 = vst [vmem:[#allocation11_spill] sm:$0xff] %v10059_v44  ;;  %1589 = vmatprep.mubr.bf16.mxu1 %v14350_v2 }
  0xff   : > { %v10067_v15 = vpop.f32.mrf.mxu1  ;;  %v10069_v8 = vpop.f32.mrf.mxu0 }
 0x100   : > { %14445 = vst [vmem:[#allocation12_spill] sm:$0xff] %v10067_v15 }
 0x101   : > { %v10071_v33 = vpop.f32.mrf.mxu1  ;;  %v10074_v20 = vpop.f32.mrf.mxu0 }
 0x102   : > { %14446 = vst [vmem:[#allocation13_spill] sm:$0xff] %v10071_v33 }
 0x103   : > { %v10078_v31 = vpop.f32.mrf.mxu1  ;;  %v10080_v26 = vpop.f32.mrf.mxu0  ;;  %8136 = vmatmul.mubr.msk.bf16.gmra.mxu0 %vm485_vm1, %v1754_v23  ;;  %v1756_v23 = vsel %vm1749_vm4, %v1753_v47, %v1755_v63 }
 0x104   : > { %14447 = vst [vmem:[#allocation14_spill] sm:$0xff] %v10078_v31  ;;  %1901 = vmatprep.mubr.bf16.mxu0 %v14350_v2 }
 0x105   : > { %v10083_v29 = vpop.f32.mrf.mxu1  ;;  %8118 = vmatmul.mubr.msk.bf16.gmra.mxu1 %vm485_vm1, %v1390_v36  ;;  %v10088_v4 = vpop.f32.mrf.mxu0 }
 0x106   : > { %14448 = vst [vmem:[#allocation15_spill] sm:$0xff] %v10083_v29  ;;  %1599 = vmatprep.mubr.bf16.mxu1 %v14350_v2 }
 0x107   : > { %v10091_v11 = vpop.f32.mrf.mxu1  ;;  %v10093_v52 = vpop.f32.mrf.mxu0 }
 0x108   : > { %14449 = vst [vmem:[#allocation16_spill] sm:$0xff] %v10091_v11 }
 0x109   : > { %v10095_v51 = vpop.f32.mrf.mxu1  ;;  %v10098_v31 = vpop.f32.mrf.mxu0 }
 0x10a   : > { %14450 = vst [vmem:[#allocation17_spill] sm:$0xff] %v10095_v51  ;;  %14451 = vst [vmem:[#allocation18_spill] sm:$0xff] %v10098_v31 }
 0x10b   : > { %v10100_v14 = vpop.f32.mrf.mxu1  ;;  %v10102_v36 = vpop.f32.mrf.mxu0  ;;  %8137 = vmatmul.mubr.msk.bf16.gmra.mxu0 %vm485_vm1, %v1756_v23 }
 0x10c   : > { %14452 = vst [vmem:[#allocation19_spill] sm:$0xff] %v10100_v14  ;;  %1911 = vmatprep.mubr.bf16.mxu0 %v14350_v2 }
 0x10d   : > { %v813_v53 = vpop.f32.mrf.mxu1  ;;  %8119 = vmatmul.mubr.msk.bf16.gmra.mxu1 %vm485_vm1, %v9859_v60  ;;  %v10112_v47 = vpop.f32.mrf.mxu0  ;;  %v1758_v60 = vsel %vm1749_vm4, %v1755_v63, %v1757_v12 }
 0x10e   : > { %v10110_v41 = vadd.f32 %v813_v53, %v9982_v18  ;;  %1609 = vmatprep.mubr.bf16.mxu1 %v14350_v2 }
 0x10f   : > { %v815_v14 = vpop.f32.mrf.mxu1  ;;  %v10118_v23 = vpop.f32.mrf.mxu0 }
 0x110   : > { %v10116_v31 = vadd.f32 %v815_v14, %v9991_v25  ;;  %v1759_v14 = vrot.slane %v9646_v43, 2 }
 0x111   : > { %v817_v51 = vpop.f32.mrf.mxu1  ;;  %v10124_v10 = vpop.f32.mrf.mxu0 }
 0x112   : > { %v10122_v11 = vadd.f32 %v817_v51, %v9996_v24  ;;  %14453 = vst [vmem:[#allocation20_spill] sm:$0xff] %v10124_v10 }
 0x113   : > { %v819_v18 = vpop.f32.mrf.mxu1  ;;  %v10129_v29 = vpop.f32.mrf.mxu0  ;;  %8138 = vmatmul.mubr.msk.bf16.gmra.mxu0 %vm485_vm1, %v1758_v60 }
 0x114   : > { %v10127_v53 = vadd.f32 %v819_v18, %v10001_v28  ;;  %1921 = vmatprep.mubr.bf16.mxu0 %v14350_v2 }
 0x115   : > { %v823_v25 = vpop.f32.mrf.mxu1  ;;  %8120 = vmatmul.mubr.msk.bf16.gmra.mxu1 %vm485_vm1, %v9873_v5  ;;  %v10139_v63 = vpop.f32.mrf.mxu0  ;;  %v1760_v5 = vsel %vm1749_vm4, %v1757_v12, %v1759_v14  ;;  %v1761_v12 = vrot.slane %v9680_v1, 2 }
 0x116   : > { %v10137_v24 = vadd.f32 %v823_v25, %v10005_v32  ;;  %1619 = vmatprep.mubr.bf16.mxu1 %v14350_v2 }
 0x117   : > { %v825_v28 = vpop.f32.mrf.mxu1  ;;  %v10145_v60 = vpop.f32.mrf.mxu0 }
 0x118   : > { %v10143_v51 = vadd.f32 %v825_v28, %v10013_v42 }
 0x119   : > { %v827_v18 = vpop.f32.mrf.mxu1  ;;  %v10151_v43 = vpop.f32.mrf.mxu0 }
 0x11a   : > { %v10149_v10 = vadd.f32 %v827_v18, %v10018_v49  ;;  %14454 = vst [vmem:[#allocation21_spill] sm:$0xff] %v10151_v43 }
 0x11b   : > { %v829_v32 = vpop.f32.mrf.mxu1  ;;  %v10156_v33 = vpop.f32.mrf.mxu0  ;;  %8139 = vmatmul.mubr.msk.bf16.gmra.mxu0 %vm485_vm1, %v1760_v5 }
 0x11c   : > { %v10154_v25 = vadd.f32 %v829_v32, %v10022_v50  ;;  %1931 = vmatprep.mubr.bf16.mxu0 %v14350_v2 }
 0x11d   : > { %v833_v42 = vpop.f32.mrf.mxu1  ;;  %8121 = vmatmul.mubr.msk.bf16.gmra.mxu1 %vm485_vm1, %v9887_v48  ;;  %v10166_v28 = vpop.f32.mrf.mxu0  ;;  %v1762_v48 = vsel %vm1749_vm4, %v1759_v14, %v1761_v12  ;;  %v1763_v14 = vrot.slane %v9701_v27, 2 }
 0x11e   : > { %v10164_v49 = vadd.f32 %v833_v42, %v10030_v7  ;;  %1629 = vmatprep.mubr.bf16.mxu1 %v14350_v2 }
 0x11f   : > { %v835_v50 = vpop.f32.mrf.mxu1  ;;  %v10172_v5 = vpop.f32.mrf.mxu0 }
 0x120   : > { %v10170_v18 = vadd.f32 %v835_v50, %v10040_v56 }
 0x121   : > { %v837_v32 = vpop.f32.mrf.mxu1  ;;  %v10178_v1 = vpop.f32.mrf.mxu0 }
 0x122   : > { %v10176_v43 = vadd.f32 %v837_v32, %v10045_v62  ;;  %14455 = vst [vmem:[#allocation22_spill] sm:$0xff] %v10178_v1 }
 0x123   : > { %v839_v7 = vpop.f32.mrf.mxu1  ;;  %v10183_v15 = vpop.f32.mrf.mxu0  ;;  %8140 = vmatmul.mubr.msk.bf16.gmra.mxu0 %vm485_vm1, %v1762_v48 }
 0x124   : > { %v10181_v42 = vadd.f32 %v839_v7, %v10050_v54  ;;  %1941 = vmatprep.mubr.bf16.mxu0 %v14350_v2 }
 0x125   : > { %v843_v56 = vpop.f32.mrf.mxu1  ;;  %8122 = vmatmul.mubr.msk.bf16.gmra.mxu1 %vm485_vm1, %v9901_v59  ;;  %v10193_v50 = vpop.f32.mrf.mxu0  ;;  %v1764_v59 = vsel %vm1749_vm4, %v1761_v12, %v1763_v14  ;;  %v1765_v12 = vrot.slane %v9710_v38, 2 }
 0x126   : > { %v10191_v62 = vadd.f32 %v843_v56, %v10056_v30  ;;  %1639 = vmatprep.mubr.bf16.mxu1 %v14350_v2 }
 0x127   : > { %v845_v54 = vpop.f32.mrf.mxu1  ;;  %v10199_v48 = vpop.f32.mrf.mxu0 }
 0x128   : > { %v10197_v32 = vadd.f32 %v845_v54, %v10064_v61 }
 0x129   : > { %v847_v7 = vpop.f32.mrf.mxu1  ;;  %v10205_v27 = vpop.f32.mrf.mxu0 }
 0x12a   : > { %v10203_v1 = vadd.f32 %v847_v7, %v10069_v8  ;;  %14456 = vst [vmem:[#allocation23_spill] sm:$0xff] %v10205_v27 }
 0x12b   : > { %v849_v30 = vpop.f32.mrf.mxu1  ;;  %v10210_v44 = vpop.f32.mrf.mxu0  ;;  %8141 = vmatmul.mubr.msk.bf16.gmra.mxu0 %vm485_vm1, %v1764_v59 }
 0x12c   : > { %v10208_v56 = vadd.f32 %v849_v30, %v10074_v20  ;;  %1951 = vmatprep.mubr.bf16.mxu0 %v14350_v2 }
 0x12d   : > { %v853_v61 = vpop.f32.mrf.mxu1  ;;  %8123 = vmatmul.mubr.msk.bf16.gmra.mxu1 %vm485_vm1, %v9915_v46  ;;  %v10220_v54 = vpop.f32.mrf.mxu0  ;;  %v1766_v46 = vsel %vm1749_vm4, %v1763_v14, %v1765_v12 }
 0x12e   : > { %v10218_v8 = vadd.f32 %v853_v61, %v10080_v26  ;;  %1649 = vmatprep.mubr.bf16.mxu1 %v14350_v2 }
 0x12f   : > { %v855_v20 = vpop.f32.mrf.mxu1  ;;  %v10226_v59 = vpop.f32.mrf.mxu0 }
 0x130   : > { %v10224_v7 = vadd.f32 %v855_v20, %v10088_v4  ;;  %v14459_v4 = vmov 0   ;;  %v1767_v20 = vrot.slane %v9724_v58, 2 }
 0x131   : > { %v857_v30 = vpop.f32.mrf.mxu1  ;;  %v10232_v38 = vpop.f32.mrf.mxu0 }
 0x132   : > { %v10230_v27 = vadd.f32 %v857_v30, %v10093_v52  ;;  %14457 = vst [vmem:[#allocation24_spill] sm:$0xff] %v10232_v38 }
 0x133   : > { %v10234_v26 = vpop.f32.mrf.mxu1  ;;  %v10236_v61 = vpop.f32.mrf.mxu0  ;;  %8142 = vmatmul.mubr.msk.bf16.gmra.mxu0 %vm485_vm1, %v1766_v46 }
 0x134   : > { %14458 = vst [vmem:[#allocation25_spill] sm:$0xff] %v10234_v26  ;;  %1961 = vmatprep.mubr.bf16.mxu0 %v14459_v4 }
 0x135   : > { %v863_v2 = vpop.f32.mrf.mxu1  ;;  %8124 = vmatmul.mubr.msk.bf16.gmra.mxu1 %vm485_vm1, %v9929_v0  ;;  %v10246_v52 = vpop.f32.mrf.mxu0  ;;  %v1768_v0 = vsel %vm1749_vm4, %v1765_v12, %v1767_v20 }
 0x136   : > { %v10244_v14 = vadd.f32 %v863_v2, %v10102_v36  ;;  %1659 = vmatprep.mubr.bf16.mxu1 %v14459_v4 }
 0x137   : > { %v865_v30 = vpop.f32.mrf.mxu1  ;;  %v10252_v46 = vpop.f32.mrf.mxu0 }
 0x138   : > { %v10250_v38 = vadd.f32 %v865_v30, %v10112_v47  ;;  %v1769_v47 = vrot.slane %v9637_v37, 2 }
 0x139   : > { %v867_v26 = vpop.f32.mrf.mxu1  ;;  %v10258_v58 = vpop.f32.mrf.mxu0 }
 0x13a   : > { %v10256_v19 = vadd.f32 %v867_v26, %v10118_v23  ;;  %14460 = vst [vmem:[#allocation26_spill] sm:$0xff] %v10258_v58  ;;  %v1770_v37 = vsel %vm1749_vm4, %v1767_v20, %v1769_v47 }
 0x13b   : > { %v10260_v2 = vpop.f32.mrf.mxu1  ;;  %v1127_v36 = vpop.f32.mrf.mxu0  ;;  %8143 = vmatmul.mubr.msk.bf16.gmra.mxu0 %vm485_vm1, %v1768_v0 }
 0x13c   : > { %14461 = vst [vmem:[#allocation27_spill] sm:$0xff] %v10260_v2  ;;  %v10264_v34 = vadd.f32 %v1127_v36, %v10110_v41  ;;  %1971 = vmatprep.mubr.bf16.mxu0 %v14459_v4 }
 0x13d   : > { %v873_v35 = vpop.f32.mrf.mxu1  ;;  %8125 = vmatmul.mubr.msk.bf16.gmra.mxu1 %vm485_vm1, %v9946_v13  ;;  %v1129_v12 = vpop.f32.mrf.mxu0 }
 0x13e   : > { %v10271_v23 = vadd.f32 %v873_v35, %v10129_v29  ;;  %1669 = vmatprep.mubr.bf16.mxu1 %v14459_v4  ;;  %v10275_v30 = vadd.f32 %v1129_v12, %v10116_v31 }
 0x13f   : > { %v875_v26 = vpop.f32.mrf.mxu1  ;;  %v1131_v0 = vpop.f32.mrf.mxu0 }
 0x140   : > { %v10278_v41 = vadd.f32 %v875_v26, %v10139_v63  ;;  %v10281_v13 = vadd.f32 %v1131_v0, %v10122_v11  ;;  %v1771_v11 = vrot.slane %v9518_v17, 2 }
 0x141   : > { %v877_v36 = vpop.f32.mrf.mxu1  ;;  %v1133_v29 = vpop.f32.mrf.mxu0 }
 0x142   : > { %v10285_v35 = vadd.f32 %v877_v36, %v10145_v60  ;;  %v10290_v2 = vadd.f32 %v1133_v29, %v10127_v53 }
 0x143   : > { %v10287_v58 = vpop.f32.mrf.mxu1  ;;  %v1137_v31 = vpop.f32.mrf.mxu0  ;;  %8144 = vmatmul.mubr.msk.bf16.gmra.mxu0 %vm485_vm1, %v1770_v37 }
 0x144   : > { %v10294_v12 = vadd.f32 %v1137_v31, %v10137_v24  ;;  %1981 = vmatprep.mubr.bf16.mxu0 %v14459_v4 }
 0x145   : > { %v883_v63 = vpop.f32.mrf.mxu1  ;;  %8126 = vmatmul.mubr.msk.bf16.gmra.mxu1 %vm485_vm1, %v9941_v3  ;;  %v1139_v20 = vpop.f32.mrf.mxu0  ;;  %v1772_v3 = vsel %vm1749_vm4, %v1769_v47, %v1771_v11 }
 0x146   : > { %v10301_v60 = vadd.f32 %v883_v63, %v10156_v33  ;;  %v10304_v26 = vadd.f32 %v1139_v20, %v10143_v51 }
 0x147   : > { %v885_v53 = vpop.f32.mrf.mxu1  ;;  %v1141_v24 = vpop.f32.mrf.mxu0 }
 0x148   : > { %v10307_v0 = vadd.f32 %v885_v53, %v10166_v28  ;;  %v10310_v37 = vadd.f32 %v1141_v24, %v10149_v10  ;;  %v1773_v10 = vrot.slane %v9523_v21, 2 }
 0x149   : > { %v887_v36 = vpop.f32.mrf.mxu1  ;;  %v1143_v33 = vpop.f32.mrf.mxu0 }
 0x14a   : > { %v10314_v17 = vadd.f32 %v887_v36, %v10172_v5  ;;  %v10319_v31 = vadd.f32 %v1143_v33, %v10154_v25 }
 0x14b   : > { %v10316_v29 = vpop.f32.mrf.mxu1  ;;  %v1147_v51 = vpop.f32.mrf.mxu0  ;;  %8145 = vmatmul.mubr.msk.bf16.gmra.mxu0 %vm485_vm1, %v1772_v3  ;;  %v1774_v3 = vsel %vm1749_vm4, %v1771_v11, %v1773_v10 }
 0x14c   : > { %14462 = vst [vmem:[#allocation28_spill] sm:$0xff] %v10316_v29  ;;  %v10323_v63 = vadd.f32 %v1147_v51, %v10164_v49  ;;  %1991 = vmatprep.mubr.bf16.mxu0 %v14459_v4 }
 0x14d   : > { %v893_v28 = vpop.f32.mrf.mxu1  ;;  %v1149_v47 = vpop.f32.mrf.mxu0 }
 0x14e   : > { %v10328_v5 = vadd.f32 %v893_v28, %v10183_v15  ;;  %v10331_v53 = vadd.f32 %v1149_v47, %v10170_v18 }
 0x14f   : > { %v895_v20 = vpop.f32.mrf.mxu1  ;;  %v1151_v24 = vpop.f32.mrf.mxu0 }
 0x150   : > { %v10334_v25 = vadd.f32 %v895_v20, %v10193_v50  ;;  %v10337_v49 = vadd.f32 %v1151_v24, %v10176_v43  ;;  %v1775_v43 = vrot.slane %v9557_v40, 2 }
 0x151   : > { %v897_v36 = vpop.f32.mrf.mxu1  ;;  %v1153_v15 = vpop.f32.mrf.mxu0 }
 0x152   : > { %v10341_v21 = vadd.f32 %v897_v36, %v10199_v48  ;;  %v10346_v51 = vadd.f32 %v1153_v15, %v10181_v42 }
 0x153   : > { %v10343_v33 = vpop.f32.mrf.mxu1  ;;  %v1157_v18 = vpop.f32.mrf.mxu0  ;;  %8146 = vmatmul.mubr.msk.bf16.gmra.mxu0 %vm485_vm1, %v1774_v3  ;;  %v1776_v3 = vsel %vm1749_vm4, %v1773_v10, %v1775_v43 }
 0x154   : > { %14463 = vst [vmem:[#allocation29_spill] sm:$0xff] %v10343_v33  ;;  %v10350_v28 = vadd.f32 %v1157_v18, %v10191_v62  ;;  %2001 = vmatprep.mubr.bf16.mxu0 %v14459_v4 }
 0x155   : > { %v903_v50 = vpop.f32.mrf.mxu1  ;;  %v1159_v11 = vpop.f32.mrf.mxu0 }
 0x156   : > { %v10355_v48 = vadd.f32 %v903_v50, %v10210_v44  ;;  %v10358_v20 = vadd.f32 %v1159_v11, %v10197_v32 }
 0x157   : > { %v905_v47 = vpop.f32.mrf.mxu1  ;;  %v1161_v24 = vpop.f32.mrf.mxu0 }
 0x158   : > { %v10361_v42 = vadd.f32 %v905_v47, %v10220_v54  ;;  %v10364_v62 = vadd.f32 %v1161_v24, %v10203_v1  ;;  %v1777_v1 = vrot.slane %v9590_v57, 2 }
 0x159   : > { %v907_v36 = vpop.f32.mrf.mxu1  ;;  %v1163_v44 = vpop.f32.mrf.mxu0 }
 0x15a   : > { %v10368_v40 = vadd.f32 %v907_v36, %v10226_v59  ;;  %v10373_v18 = vadd.f32 %v1163_v44, %v10208_v56  ;;  %v9096_v59 = vld [vmem:[%s14344_s2 + $0x118] ss:$8 sps:$4 sm:$0xff]   ;;  %v9098_v56 = vld [vmem:[%s14344_s2 + $0x11c] ss:$8 sps:$4 sm:$0xff]   ;;  %v1778_v44 = vsel %vm1749_vm4, %v1775_v43, %v1777_v1 }
 0x15b   : > { %v10370_v15 = vpop.f32.mrf.mxu1  ;;  %v1167_v32 = vpop.f32.mrf.mxu0  ;;  %8147 = vmatmul.mubr.msk.bf16.gmra.mxu0 %vm485_vm1, %v1776_v3  ;;  %3267 = vmatprep.subr.bf16.mxu1 %v9098_v56 }
 0x15c   : > { %14464 = vst [vmem:[#allocation30_spill] sm:$0xff] %v10370_v15  ;;  %v10377_v50 = vadd.f32 %v1167_v32, %v10218_v8  ;;  %2011 = vmatprep.mubr.bf16.mxu0 %v14459_v4  ;;  %3268 = vmatpush1.bf16.msra.mxu1 %v9096_v59 }
 0x15d   : > { %v913_v54 = vpop.f32.mrf.mxu1  ;;  %v1169_v11 = vpop.f32.mrf.mxu0 }
 0x15e   : > { %v10388_v10 = vadd.f32 %v913_v54, %v10236_v61  ;;  %v10391_v8 = vadd.f32 %v1169_v11, %v10224_v7 }
 0x15f   : > { %v915_v47 = vpop.f32.mrf.mxu1  ;;  %v1171_v57 = vpop.f32.mrf.mxu0 }
 0x160   : > { %v10394_v24 = vadd.f32 %v915_v47, %v10246_v52  ;;  %v10397_v3 = vadd.f32 %v1171_v57, %v10230_v27  ;;  %v1779_v27 = vrot.slane %v9626_v16, 2  ;;  %v9101_v16 = vld [vmem:[%s14344_s2 + $0x10c] ss:$8 sps:$4 sm:$0xff]  }
 0x161   : > { %v917_v36 = vpop.f32.mrf.mxu1  ;;  %v10403_v32 = vpop.f32.mrf.mxu0  ;;  %3269 = vmatprep.subr.bf16.mxu1 %v9101_v16 }
 0x162   : > { %v10401_v61 = vadd.f32 %v917_v36, %v10252_v46  ;;  %v1780_v36 = vsel %vm1749_vm4, %v1777_v1, %v1779_v27 }
 0x163   : > { %v10405_v54 = vpop.f32.mrf.mxu1  ;;  %v1177_v7 = vpop.f32.mrf.mxu0  ;;  %8148 = vmatmul.mubr.msk.bf16.gmra.mxu0 %vm485_vm1, %v1778_v44 }
 0x164   : > { %14465 = vst [vmem:[#allocation31_spill] sm:$0xff] %v10405_v54  ;;  %v10411_v59 = vadd.f32 %v1177_v7, %v10244_v14  ;;  %2021 = vmatprep.mubr.bf16.mxu0 %v14459_v4  ;;  %v9099_v14 = vld [vmem:[%s14344_s2 + $0x108] ss:$8 sps:$4 sm:$0xff]  }
 0x165   : > { %v10408_v52 = vpop.f32.mrf.mxu1  ;;  %v1179_v43 = vpop.f32.mrf.mxu0  ;;  %3270 = vmatpush1.bf16.msra.mxu1 %v9099_v14 }
 0x166   : > { %v10418_v46 = vadd.f32 %v1179_v43, %v10250_v38 }
 0x167   : > { %v10415_v56 = vpop.f32.mrf.mxu1  ;;  %v1181_v11 = vpop.f32.mrf.mxu0 }
 0x168   : > { %v10423_v57 = vadd.f32 %v1181_v11, %v10256_v19 }
 0x169   : > { %v10420_v47 = vpop.f32.mrf.mxu1  ;;  %v10432_v44 = vpop.f32.mrf.mxu0 }
 0x16b   : > { %v10434_v38 = vpop.f32.mrf.mxu1  ;;  %v1187_v7 = vpop.f32.mrf.mxu0  ;;  %8149 = vmatmul.mubr.msk.bf16.gmra.mxu0 %vm485_vm1, %v1780_v36 }
 0x16c   : > { %14466 = vst [vmem:[#allocation32_spill] sm:$0xff] %v10434_v38  ;;  %v10440_v1 = vadd.f32 %v1187_v7, %v10271_v23  ;;  %2031 = vmatprep.mubr.bf16.mxu0 %v14459_v4 }
 0x16d   : > { %v10437_v19 = vpop.f32.mrf.mxu1  ;;  %v1189_v43 = vpop.f32.mrf.mxu0 }
 0x16e   : > { %14467 = vst [vmem:[#allocation33_spill] sm:$0xff] %v10440_v1  ;;  %v10446_v54 = vadd.f32 %v1189_v43, %v10278_v41  ;;  %v9102_v41 = vld [vmem:[%s14344_s2 + $0xf8] ss:$8 sps:$4 sm:$0xff]  }
 0x16f   : > { %v10443_v11 = vpop.f32.mrf.mxu1  ;;  %v1191_v15 = vpop.f32.mrf.mxu0 }
 0x170   : > { %14468 = vst [vmem:[#allocation34_spill] sm:$0xff] %v10446_v54  ;;  %v10451_v16 = vadd.f32 %v1191_v15, %v10285_v35  ;;  %v9104_v35 = vld [vmem:[%s14344_s2 + $0xfc] ss:$8 sps:$4 sm:$0xff]  }
 0x171   : > { %v10448_v38 = vpop.f32.mrf.mxu1  ;;  %v10453_v36 = vpop.f32.mrf.mxu0  ;;  %3271 = vmatprep.subr.bf16.mxu1 %v9104_v35 }
 0x172   : > { %14469 = vst [vmem:[#allocation35_spill] sm:$0xff] %v10451_v16  ;;  %14470 = vst [vmem:[#allocation36_spill] sm:$0xff] %v10453_v36  ;;  %3272 = vmatpush1.bf16.msra.mxu1 %v9102_v41 }
 0x173   : > { %v10455_v14 = vpop.f32.mrf.mxu1  ;;  %v1197_v23 = vpop.f32.mrf.mxu0  ;;  %8150 = vmatmul.mubr.msk.bf16.gmra.mxu0 %vm485_vm1, %v1779_v27 }
 0x174   : > { %14471 = vst [vmem:[#allocation37_spill] sm:$0xff] %v10455_v14  ;;  %v10461_v4 = vadd.f32 %v1197_v23, %v10301_v60 }
 0x175   : > { %v10458_v7 = vpop.f32.mrf.mxu1  ;;  %v1199_v15 = vpop.f32.mrf.mxu0 }
 0x176   : > { %14472 = vst [vmem:[#allocation38_spill] sm:$0xff] %v10461_v4  ;;  %v10472_v14 = vadd.f32 %v1199_v15, %v10307_v0 }
 0x177   : > { %v10469_v43 = vpop.f32.mrf.mxu1  ;;  %v1201_v27 = vpop.f32.mrf.mxu0 }
 0x178   : > { %14473 = vst [vmem:[#allocation39_spill] sm:$0xff] %v10472_v14  ;;  %v10477_v60 = vadd.f32 %v1201_v27, %v10314_v17  ;;  %v9105_v27 = vld [vmem:[%s14344_s2 + $0xe8] ss:$8 sps:$4 sm:$0xff]  }
 0x179   : > { %v10474_v33 = vpop.f32.mrf.mxu1  ;;  %v10479_v23 = vpop.f32.mrf.mxu0 }
 0x17a   : > { %14474 = vst [vmem:[#allocation40_spill] sm:$0xff] %v10477_v60  ;;  %14475 = vst [vmem:[#allocation41_spill] sm:$0xff] %v10479_v23 }
 0x17b   : > { %v10481_v4 = vpop.f32.mrf.mxu1  ;;  %v1207_v29 = vpop.f32.mrf.mxu0 }
 0x17c   : > { %14476 = vst [vmem:[#allocation42_spill] sm:$0xff] %v10481_v4  ;;  %v10486_v36 = vadd.f32 %v1207_v29, %v10328_v5  ;;  %v9107_v29 = vld [vmem:[%s14344_s2 + $0xec] ss:$8 sps:$4 sm:$0xff]  }
 0x17d   : > { %v10483_v16 = vpop.f32.mrf.mxu1  ;;  %v1209_v0 = vpop.f32.mrf.mxu0  ;;  %3273 = vmatprep.subr.bf16.mxu1 %v9107_v29 }
 0x17e   : > { %14477 = vst [vmem:[#allocation43_spill] sm:$0xff] %v10486_v36  ;;  %v10491_v41 = vadd.f32 %v1209_v0, %v10334_v25  ;;  %3274 = vmatpush1.bf16.msra.mxu1 %v9105_v27 }
 0x17f   : > { %v10488_v15 = vpop.f32.mrf.mxu1  ;;  %v1211_v35 = vpop.f32.mrf.mxu0 }
 0x180   : > { %14478 = vst [vmem:[#allocation44_spill] sm:$0xff] %v10491_v41  ;;  %v10496_v17 = vadd.f32 %v1211_v35, %v10341_v21 }
 0x181   : > { %v10493_v14 = vpop.f32.mrf.mxu1  ;;  %v10504_v5 = vpop.f32.mrf.mxu0 }
 0x182   : > { %14479 = vst [vmem:[#allocation45_spill] sm:$0xff] %v10496_v17  ;;  %14480 = vst [vmem:[#allocation46_spill] sm:$0xff] %v10504_v5 }
 0x183   : > { %v10506_v4 = vpop.f32.mrf.mxu1  ;;  %v1217_v25 = vpop.f32.mrf.mxu0 }
 0x184   : > { %14481 = vst [vmem:[#allocation47_spill] sm:$0xff] %v10506_v4  ;;  %v10511_v21 = vadd.f32 %v1217_v25, %v10355_v48 }
 0x185   : > { %v10508_v0 = vpop.f32.mrf.mxu1  ;;  %v1219_v35 = vpop.f32.mrf.mxu0 }
 0x186   : > { %14482 = vst [vmem:[#allocation48_spill] sm:$0xff] %v10511_v21  ;;  %v10516_v41 = vadd.f32 %v1219_v35, %v10361_v42  ;;  %v9108_v42 = vld [vmem:[%s14344_s2 + $0xd8] ss:$8 sps:$4 sm:$0xff]   ;;  %v9110_v35 = vld [vmem:[%s14344_s2 + $0xdc] ss:$8 sps:$4 sm:$0xff]  }
 0x187   : > { %v10513_v17 = vpop.f32.mrf.mxu1  ;;  %v1221_v36 = vpop.f32.mrf.mxu0  ;;  %3275 = vmatprep.subr.bf16.mxu1 %v9110_v35 }
 0x188   : > { %14483 = vst [vmem:[#allocation49_spill] sm:$0xff] %v10516_v41  ;;  %v10521_v5 = vadd.f32 %v1221_v36, %v10368_v40  ;;  %3276 = vmatpush1.bf16.msra.mxu1 %v9108_v42 }
 0x189   : > { %v10518_v60 = vpop.f32.mrf.mxu1  ;;  %v10523_v29 = vpop.f32.mrf.mxu0 }
 0x18a   : > { %14484 = vst [vmem:[#allocation50_spill] sm:$0xff] %v10521_v5  ;;  %14485 = vst [vmem:[#allocation51_spill] sm:$0xff] %v10523_v29  ;;  %v924_v29 = vadd.f32 %v10408_v52, %v9985_v22 }
 0x18b   : > { %v10525_v27 = vpop.f32.mrf.mxu1  ;;  %v1227_v4 = vpop.f32.mrf.mxu0 }
 0x18c   : > { %14486 = vst [vmem:[#allocation52_spill] sm:$0xff] %v10525_v27  ;;  %v10528_v48 = vadd.f32 %v1227_v4, %v10388_v10 }
 0x18d   : > { %v10530_v25 = vpop.f32.mrf.mxu1  ;;  %v1229_v40 = vpop.f32.mrf.mxu0 }
 0x18e   : > { %14487 = vst [vmem:[#allocation53_spill] sm:$0xff] %v10528_v48  ;;  %v10539_v36 = vadd.f32 %v1229_v40, %v10394_v24  ;;  %v926_v24 = vadd.f32 %v10415_v56, %v9994_v55  ;;  %v9111_v55 = vld [vmem:[%s14344_s2 + $0xc8] ss:$8 sps:$4 sm:$0xff]   ;;  %v9113_v56 = vld [vmem:[%s14344_s2 + $0xcc] ss:$8 sps:$4 sm:$0xff]  }
 0x18f   : > { %v10541_v5 = vpop.f32.mrf.mxu1  ;;  %v1231_v27 = vpop.f32.mrf.mxu0  ;;  %3277 = vmatprep.subr.bf16.mxu1 %v9113_v56 }
 0x190   : > { %14488 = vst [vmem:[#allocation54_spill] sm:$0xff] %v10539_v36  ;;  %v10544_v4 = vadd.f32 %v1231_v27, %v10401_v61  ;;  %v928_v61 = vadd.f32 %v10420_v47, %v9998_v9  ;;  %v934_v9 = vadd.f32 %v10437_v19, %v10008_v39  ;;  %3278 = vmatpush1.bf16.msra.mxu1 %v9111_v55 }
 0x191   : > { %v10546_v10 = vpop.f32.mrf.mxu1  ;;  %v10548_v48 = vpop.f32.mrf.mxu0 }
 0x192   : > { %14489 = vst [vmem:[#allocation55_spill] sm:$0xff] %v10544_v4  ;;  %14490 = vst [vmem:[#allocation56_spill] sm:$0xff] %v10548_v48 }
 0x193   : > { %v10552_v41 = vpop.f32.mrf.mxu1  ;;  %v1237_v21 = vpop.f32.mrf.mxu0 }
 0x194   : > { %v10556_v40 = vadd.f32 %v1237_v21, %v924_v29 }
 0x195   : > { %v10558_v35 = vpop.f32.mrf.mxu1  ;;  %v1239_v42 = vpop.f32.mrf.mxu0 }
 0x196   : > { %14491 = vst [vmem:[#allocation57_spill] sm:$0xff] %v10556_v40  ;;  %v10562_v27 = vadd.f32 %v1239_v42, %v926_v24 }
 0x197   : > { %v10564_v4 = vpop.f32.mrf.mxu1  ;;  %v1241_v48 = vpop.f32.mrf.mxu0 }
 0x198   : > { %14492 = vst [vmem:[#allocation58_spill] sm:$0xff] %v10562_v27  ;;  %v10566_v22 = vadd.f32 %v1241_v48, %v928_v61  ;;  %v936_v48 = vadd.f32 %v10443_v11, %v10016_v45  ;;  %v9119_v45 = vld [vmem:[%s14344_s2 + $0x74] ss:$8 sps:$4 sm:$0xff]   ;;  %v14499_v11 = vld [vmem:[#allocation7_spill] sm:$0xff] }
 0x199   : > { %v10568_v52 = vpop.f32.mrf.mxu1  ;;  %v10576_v21 = vpop.f32.mrf.mxu0  ;;  %3617 = vmatprep.subr.bf16.mxu0 %v9119_v45  ;;  %v9122_v45 = vld [vmem:[%s14344_s2 + $0x64] ss:$8 sps:$4 sm:$0xff]  }
 0x19a   : > { %14493 = vst [vmem:[#allocation59_spill] sm:$0xff] %v10566_v22  ;;  %14494 = vst [vmem:[#allocation60_spill] sm:$0xff] %v10576_v21  ;;  %v938_v22 = vadd.f32 %v10448_v38, %v10020_v6  ;;  %v9117_v6 = vld [vmem:[%s14344_s2 + $0x70] ss:$8 sps:$4 sm:$0xff]  }
 0x19b   : > { %v10580_v47 = vpop.f32.mrf.mxu1  ;;  %v1247_v29 = vpop.f32.mrf.mxu0  ;;  %3618 = vmatpush1.bf16.msra.mxu0 %v9117_v6 }
 0x19c   : > { %v10584_v24 = vadd.f32 %v1247_v29, %v934_v9  ;;  %v944_v9 = vadd.f32 %v10458_v7, %v14499_v11  ;;  %v9116_v7 = vld [vmem:[%s14344_s2 + $0xbc] ss:$8 sps:$4 sm:$0xff]   ;;  %3619 = vmatprep.subr.bf16.mxu0 %v9122_v45 }
 0x19d   : > { %v10586_v42 = vpop.f32.mrf.mxu1  ;;  %v1249_v61 = vpop.f32.mrf.mxu0  ;;  %3279 = vmatprep.subr.bf16.mxu1 %v9116_v7 }
 0x19e   : > { %14495 = vst [vmem:[#allocation61_spill] sm:$0xff] %v10584_v24  ;;  %v10590_v21 = vadd.f32 %v1249_v61, %v936_v48 }
 0x19f   : > { %v10592_v27 = vpop.f32.mrf.mxu1  ;;  %v1251_v39 = vpop.f32.mrf.mxu0 }
 0x1a0   : > { %14496 = vst [vmem:[#allocation62_spill] sm:$0xff] %v10590_v21  ;;  %v10594_v19 = vadd.f32 %v1251_v39, %v938_v22  ;;  %v14500_v22 = vld [vmem:[#allocation8_spill] sm:$0xff] }
 0x1a1   : > { %v10596_v56 = vpop.f32.mrf.mxu1  ;;  %v10598_v55 = vpop.f32.mrf.mxu0  ;;  %v946_v48 = vadd.f32 %v10469_v43, %v14500_v22  ;;  %v9120_v22 = vld [vmem:[%s14344_s2 + $0x60] ss:$8 sps:$4 sm:$0xff]  }
 0x1a2   : > { %14497 = vst [vmem:[#allocation63_spill] sm:$0xff] %v10594_v19  ;;  %14498 = vst [vmem:[#allocation64_spill] sm:$0xff] %v10598_v55  ;;  %v9114_v19 = vld [vmem:[%s14344_s2 + $0xb8] ss:$8 sps:$4 sm:$0xff]   ;;  %v14502_v55 = vld [vmem:[#allocation9_spill] sm:$0xff]  ;;  %3620 = vmatpush1.bf16.msra.mxu0 %v9120_v22 }
 0x1a3   : > { %v10605_v29 = vpop.f32.mrf.mxu1  ;;  %v1257_v38 = vpop.f32.mrf.mxu0  ;;  %v948_v43 = vadd.f32 %v10474_v33, %v14502_v55  ;;  %3280 = vmatpush1.bf16.msra.mxu1 %v9114_v19  ;;  %v9128_v33 = vld [vmem:[%s14344_s2 + $0x54] ss:$8 sps:$4 sm:$0xff]   ;;  %v14506_v55 = vld [vmem:[#allocation11_spill] sm:$0xff]  ;;  %v9126_v19 = vld [vmem:[%s14344_s2 + $0x50] ss:$8 sps:$4 sm:$0xff]  }
 0x1a4   : > { %v10612_v61 = vadd.f32 %v1257_v38, %v944_v9  ;;  %3621 = vmatprep.subr.bf16.mxu0 %v9128_v33 }
 0x1a5   : > { %v10614_v39 = vpop.f32.mrf.mxu1  ;;  %v1259_v11 = vpop.f32.mrf.mxu0 }
 0x1a6   : > { %14501 = vst [vmem:[#allocation7_spill] sm:$0xff] %v10612_v61  ;;  %v10627_v9 = vadd.f32 %v1259_v11, %v946_v48  ;;  %v954_v48 = vadd.f32 %v10483_v16, %v14506_v55  ;;  %v14507_v11 = vld [vmem:[#allocation12_spill] sm:$0xff]  ;;  %3622 = vmatpush1.bf16.msra.mxu0 %v9126_v19  ;;  %v14509_v55 = vld [vmem:[#allocation13_spill] sm:$0xff] }
 0x1a7   : > { %v10629_v38 = vpop.f32.mrf.mxu1  ;;  %v1261_v61 = vpop.f32.mrf.mxu0  ;;  %v956_v45 = vadd.f32 %v10488_v15, %v14507_v11  ;;  %v9131_v16 = vld [vmem:[%s14344_s2 + $0x44] ss:$8 sps:$4 sm:$0xff]   ;;  %v9129_v15 = vld [vmem:[%s14344_s2 + $0x40] ss:$8 sps:$4 sm:$0xff]  }
 0x1a8   : > { %14503 = vst [vmem:[#allocation8_spill] sm:$0xff] %v10627_v9  ;;  %v10634_v6 = vadd.f32 %v1261_v61, %v948_v43  ;;  %3623 = vmatprep.subr.bf16.mxu0 %v9131_v16  ;;  %v9123_v11 = vld [vmem:[%s14344_s2 + $0xa8] ss:$8 sps:$4 sm:$0xff]   ;;  %v14513_v16 = vld [vmem:[#allocation15_spill] sm:$0xff] }
 0x1a9   : > { %v10636_v21 = vpop.f32.mrf.mxu1  ;;  %v10638_v24 = vpop.f32.mrf.mxu0 }
 0x1aa   : > { %14504 = vst [vmem:[#allocation9_spill] sm:$0xff] %v10634_v6  ;;  %14505 = vst [vmem:[#allocation65_spill] sm:$0xff] %v10638_v24  ;;  %v958_v24 = vadd.f32 %v10493_v14, %v14509_v55  ;;  %v9125_v14 = vld [vmem:[%s14344_s2 + $0xac] ss:$8 sps:$4 sm:$0xff]   ;;  %3624 = vmatpush1.bf16.msra.mxu0 %v9129_v15 }
 0x1ab   : > { %v10645_v7 = vpop.f32.mrf.mxu1  ;;  %v1267_v61 = vpop.f32.mrf.mxu0  ;;  %3281 = vmatprep.subr.bf16.mxu1 %v9125_v14  ;;  %v14516_v15 = vld [vmem:[#allocation16_spill] sm:$0xff] }
 0x1ac   : > { %v10652_v43 = vadd.f32 %v1267_v61, %v954_v48  ;;  %3282 = vmatpush1.bf16.msra.mxu1 %v9123_v11  ;;  %v9139_v14 = vld [vmem:[%s14344_s2 + $0x24] ss:$8 sps:$4 sm:$0xff]  }
 0x1ad   : > { %v10654_v22 = vpop.f32.mrf.mxu1  ;;  %v1269_v6 = vpop.f32.mrf.mxu0 }
 0x1ae   : > { %14508 = vst [vmem:[#allocation11_spill] sm:$0xff] %v10652_v43  ;;  %v10661_v9 = vadd.f32 %v1269_v6, %v956_v45  ;;  %v9134_v45 = vld [vmem:[%s14344_s2 + $0x34] ss:$8 sps:$4 sm:$0xff]  }
 0x1af   : > { %v10663_v40 = vpop.f32.mrf.mxu1  ;;  %v1271_v33 = vpop.f32.mrf.mxu0  ;;  %3625 = vmatprep.subr.bf16.mxu0 %v9134_v45 }
 0x1b0   : > { %14510 = vst [vmem:[#allocation12_spill] sm:$0xff] %v10661_v9  ;;  %v10668_v19 = vadd.f32 %v1271_v33, %v958_v24  ;;  %v964_v24 = vadd.f32 %v10508_v0, %v14513_v16  ;;  %v9132_v33 = vld [vmem:[%s14344_s2 + $0x30] ss:$8 sps:$4 sm:$0xff]  }
 0x1b1   : > { %v10670_v61 = vpop.f32.mrf.mxu1  ;;  %v10678_v6 = vpop.f32.mrf.mxu0  ;;  %3626 = vmatpush1.bf16.msra.mxu0 %v9132_v33  ;;  %v14518_v16 = vld [vmem:[#allocation17_spill] sm:$0xff] }
 0x1b2   : > { %14511 = vst [vmem:[#allocation13_spill] sm:$0xff] %v10668_v19  ;;  %14512 = vst [vmem:[#allocation66_spill] sm:$0xff] %v10678_v6  ;;  %v14514_v19 = vlaneseq  ;;  %v966_v6 = vadd.f32 %v10513_v17, %v14516_v15  ;;  %v968_v23 = vadd.f32 %v10518_v60, %v14518_v16  ;;  %v9137_v17 = vld [vmem:[%s14344_s2 + $0x20] ss:$8 sps:$4 sm:$0xff]   ;;  %3627 = vmatprep.subr.bf16.mxu0 %v9139_v14  ;;  %v1680_v14 = vadd.f32 %v10530_v25, %v10264_v34  ;;  %v9140_v16 = vld [vmem:[%s14344_s2 + $0x10] ss:$8 sps:$4 sm:$0xff]  }
 0x1b3   : > { %v10685_v55 = vpop.f32.mrf.mxu1  ;;  %v1277_v48 = vpop.f32.mrf.mxu0  ;;  %v2106_v60 = vld [vmem:[%s14348_s6] ss:$8 sm:$0x3] }
 0x1b4   : > { %v10691_v9 = vshrl.u32 %v14514_v19, 7  ;;  %v10695_v43 = vadd.f32 %v1277_v48, %v964_v24  ;;  %v8171_v34 = vld [vmem:[%s14344_s2 + $0x148] sm:$0xff] }
 0x1b5   : > { %v10697_v36 = vpop.f32.mrf.mxu1  ;;  %v1279_v0 = vpop.f32.mrf.mxu0  ;;  %3628 = vmatpush1.bf16.msra.mxu0 %v9137_v17  ;;  %v1681_v17 = vadd.f32 %v10541_v5, %v10275_v30  ;;  %v8192_v5 = vcombine.low %v8171_v34, %v8171_v34 }
 0x1b6   : > { %14515 = vst [vmem:[#allocation15_spill] sm:$0xff] %v10691_v9  ;;  %14517 = vst [vmem:[#allocation16_spill] sm:$0xff] %v10695_v43  ;;  %v10704_v19 = vadd.f32 %v1279_v0, %v966_v6  ;;  %v14354_v45 = vsub.s32 0, %v10691_v9  ;;  %v9142_v0 = vld [vmem:[%s14344_s2 + $0x14] ss:$8 sps:$4 sm:$0xff]   ;;  %v8193_v43 = vcombine.high %v8171_v34, %v8171_v34 }
 0x1b7   : > { %v10706_v11 = vpop.f32.mrf.mxu1  ;;  %v1281_v48 = vpop.f32.mrf.mxu0  ;;  %3629 = vmatprep.subr.bf16.mxu0 %v9142_v0 }
 0x1b8   : > { %14519 = vst [vmem:[#allocation17_spill] sm:$0xff] %v10704_v19  ;;  %v10712_v24 = vadd.f32 %v1281_v48, %v968_v23  ;;  %v10736_v15 = vrot.slane %v2106_v60, %v14354_v45  ;;  %v14523_v19 = vsub.s32 1, %v10691_v9  ;;  %v14357_v45 = vmov 65535  }
 0x1b9   : > { %v10714_v33 = vpop.f32.mrf.mxu1  ;;  %v10719_v6 = vpop.f32.mrf.mxu0  ;;  %3630 = vmatpush1.bf16.msra.mxu0 %v9140_v16  ;;  %v3259_v0 = vsel %vm3257_vm5, 4294967295, %v14357_v45 }
 0x1ba   : > { %14520 = vst [vmem:[#allocation67_spill] sm:$0xff] %v10712_v24  ;;  %14521 = vst [vmem:[#allocation68_spill] sm:$0xff] %v10719_v6  ;;  %v10745_v30 = vrot.slane %v2106_v60, %v14523_v19  ;;  %v10757_v9 = vsel %vm3258_vm6, %v3259_v0, 0  ;;  %v9143_v19 = vld [vmem:[%s14344_s2] ss:$8 sps:$4 sm:$0xff]  }
 0x1bb   : > { %v10727_v23 = vpop.f32.mrf.mxu1  ;;  %v1883_v48 = vpop.f32.mrf.mxu0  ;;  %14525 = vst [vmem:[#allocation71_spill] sm:$0xff] %v10757_v9  ;;  %v2970_v60 = vld [vmem:[%s14344_s2 + $0xa0] sm:$0xff] }
 0x1bc   : > { %v2042_v6 = vadd.f32 %v1883_v48, %v1680_v14  ;;  %v9145_v14 = vld [vmem:[%s14344_s2 + $0x4] ss:$8 sps:$4 sm:$0xff]   ;;  %v1682_v48 = vadd.f32 %v10546_v10, %v10281_v13  ;;  %v3265_v13 = vand.u32 %v8193_v43, %v10757_v9  ;;  %v3262_v10 = vand.u32 %v8192_v5, %v10757_v9 }
 0x1bd   : > { %v10738_v24 = vpop.f32.mrf.mxu1  ;;  %v1885_v25 = vpop.f32.mrf.mxu0  ;;  %3631 = vmatprep.subr.bf16.mxu0 %v9145_v14  ;;  %v1684_v14 = vadd.f32 %v10558_v35, %v10294_v12  ;;  %v1685_v12 = vadd.f32 %v10564_v4, %v10304_v26 }
 0x1be   : > { %14522 = vst [vmem:[#allocation69_spill] sm:$0xff] %v10738_v24  ;;  %v2043_v16 = vadd.f32 %v1885_v25, %v1681_v17  ;;  %v10766_v34 = vadd.f32 %v10736_v15, %v2042_v6  ;;  %v8231_v17 = vcombine.high %v2970_v60, %v2970_v60  ;;  %v1683_v25 = vadd.f32 %v10552_v41, %v10290_v2  ;;  %v9148_v24 = vld [vmem:[%s14344_s2 + $0x13c] ss:$8 sps:$4 sm:$0xff]  }
 0x1bf   : > { %v10754_v54 = vpop.f32.mrf.mxu1  ;;  %v1887_v45 = vpop.f32.mrf.mxu0  ;;  %3632 = vmatpush1.bf16.msra.mxu0 %v9143_v19  ;;  %v8230_v6 = vcombine.low %v2970_v60, %v2970_v60  ;;  %3293 = vmatprep.subr.bf16.mxu1 %v3265_v13 }
 0x1c0   : > { %14524 = vst [vmem:[#allocation70_spill] sm:$0xff] %v10754_v54  ;;  %v2044_v54 = vadd.f32 %v1887_v45, %v1682_v48  ;;  %v10778_v1 = vadd.f32 %v10745_v30, %v2043_v16  ;;  %v3615_v5 = vand.u32 %v8231_v17, %v10757_v9  ;;  %3294 = vmatpush2.bf16.msra.mxu1 %v3262_v10  ;;  %v9146_v48 = vld [vmem:[%s14344_s2 + $0x138] ss:$8 sps:$4 sm:$0xff]   ;;  %v2182_v16 = vmax.f32 %v10766_v34, 0.0 }
 0x1c1   : > { %v10772_v0 = vpop.f32.mrf.mxu1  ;;  %v1889_v43 = vpop.f32.mrf.mxu0  ;;  %3295 = vmatprep.subr.bf16.mxu1 %v9148_v24  ;;  %v3612_v60 = vand.u32 %v8230_v6, %v10757_v9  ;;  %v1686_v17 = vadd.f32 %v10568_v52, %v10310_v37  ;;  %v9151_v37 = vld [vmem:[%s14344_s2 + $0x90] ss:$8 sps:$4 sm:$0xff]  }
 0x1c2   : > { %v10784_v2 = vadd.f32 %v10736_v15, %v2044_v54  ;;  %v2045_v45 = vadd.f32 %v1889_v43, %v1683_v25  ;;  %3643 = vmatprep.subr.bf16.mxu0 %v3615_v5  ;;  %v2183_v34 = vmax.f32 %v10778_v1, 0.0  ;;  %v9153_v25 = vld [vmem:[%s14344_s2 + $0x94] ss:$8 sps:$4 sm:$0xff]   ;;  %v1687_v1 = vadd.f32 %v10580_v47, %v10319_v31  ;;  %v9156_v47 = vld [vmem:[%s14344_s2 + $0x84] ss:$8 sps:$4 sm:$0xff]  }
 0x1c3   : > { %v10786_v41 = vpop.f32.mrf.mxu1  ;;  %v1893_v19 = vpop.f32.mrf.mxu0  ;;  %3644 = vmatpush2.bf16.msra.mxu0 %v3612_v60  ;;  %v2311_v52 = vrot.slane %v2182_v16, 1 }
 0x1c4   : > { %v2184_v54 = vmax.f32 %v10784_v2, 0.0  ;;  %v10797_v35 = vadd.f32 %v10745_v30, %v2045_v45  ;;  %v2046_v10 = vadd.f32 %v1893_v19, %v1684_v14  ;;  %3296 = vmatpush2.bf16.msra.mxu1 %v9146_v48  ;;  %3645 = vmatprep.subr.bf16.mxu0 %v9153_v25 }
 0x1c5   : > { %v10799_v13 = vpop.f32.mrf.mxu1  ;;  %v1895_v24 = vpop.f32.mrf.mxu0 }
 0x1c6   : > { %v2312_v26 = vrot.slane %v2184_v54, 1  ;;  %v14358_v4 = vmax.f32 %v10797_v35, 0.0  ;;  %v10809_v6 = vadd.f32 %v10736_v15, %v2046_v10  ;;  %v2047_v5 = vadd.f32 %v1895_v24, %v1685_v12 }
 0x1c7   : > { %v10811_v43 = vpop.f32.mrf.mxu1  ;;  %v1897_v14 = vpop.f32.mrf.mxu0  ;;  %v1688_v12 = vadd.f32 %v10586_v42, %v10323_v63  ;;  %v2314_v10 = vrot.slane %v2183_v34, 1  ;;  %3646 = vmatpush2.bf16.msra.mxu0 %v9151_v37  ;;  %v9154_v42 = vld [vmem:[%s14344_s2 + $0x80] ss:$8 sps:$4 sm:$0xff]   ;;  %v1689_v37 = vadd.f32 %v10592_v27, %v10331_v53  ;;  %v1690_v53 = vadd.f32 %v10596_v56, %v10337_v49 }
 0x1c8   : > { %v2315_v2 = vrot.slane %v14358_v4, 1  ;;  %v14361_v45 = vmax.f32 %v10809_v6, 0.0  ;;  %v10822_v19 = vadd.f32 %v10745_v30, %v2047_v5  ;;  %v2048_v48 = vadd.f32 %v1897_v14, %v1686_v17  ;;  %3647 = vmatprep.subr.bf16.mxu0 %v9156_v47 }
 0x1c9   : > { %v10824_v60 = vpop.f32.mrf.mxu1  ;;  %v1899_v24 = vpop.f32.mrf.mxu0  ;;  %v2313_v31 = vsel %vm993_vm3, %v2311_v52, %v2312_v26  ;;  %v1691_v49 = vadd.f32 %v10605_v29, %v10346_v51 }
 0x1ca   : > { %14526 = vst [vmem:[#allocation72_spill] sm:$0xff] %v10824_v60  ;;  %v2317_v25 = vrot.slane %v14361_v45, 1  ;;  %v14364_v5 = vmax.f32 %v10822_v19, 0.0  ;;  %v10836_v4 = vadd.f32 %v10736_v15, %v2048_v48  ;;  %v2049_v63 = vadd.f32 %v1899_v24, %v1687_v1 }
 0x1cb   : > { %v10838_v17 = vpop.f32.mrf.mxu1  ;;  %v1903_v52 = vpop.f32.mrf.mxu0  ;;  %v2316_v14 = vsel %vm993_vm3, %v2314_v10, %v2315_v2  ;;  %v10846_v9 = vmax.f32 %v2182_v16, %v2313_v31  ;;  %3648 = vmatpush2.bf16.msra.mxu0 %v9154_v42 }
 0x1cc   : > { %14527 = vst [vmem:[#allocation73_spill] sm:$0xff] %v10838_v17  ;;  %v2319_v48 = vrot.slane %v14364_v5, 1  ;;  %v14362_v45 = vmax.f32 %v10836_v4, 0.0  ;;  %v10852_v1 = vadd.f32 %v10745_v30, %v2049_v63  ;;  %v2050_v17 = vadd.f32 %v1903_v52, %v1688_v12  ;;  %v9157_v52 = vld [vmem:[%s14344_s2 + $0x128] ss:$8 sps:$4 sm:$0xff]  }
 0x1cd   : > { %v10854_v24 = vpop.f32.mrf.mxu1  ;;  %v1905_v27 = vpop.f32.mrf.mxu0  ;;  %v10858_v60 = vmax.f32 %v2183_v34, %v2316_v14  ;;  %v2318_v16 = vsel %vm993_vm3, %v2312_v26, %v2317_v25 }
 0x1ce   : > { %v2321_v10 = vrot.slane %v14362_v45, 1  ;;  %v14363_v31 = vmax.f32 %v10852_v1, 0.0  ;;  %v10865_v47 = vadd.f32 %v10736_v15, %v2050_v17  ;;  %v2051_v12 = vadd.f32 %v1905_v27, %v1689_v37  ;;  %v9159_v17 = vld [vmem:[%s14344_s2 + $0x12c] ss:$8 sps:$4 sm:$0xff]  }
 0x1cf   : > { %v10867_v63 = vpop.f32.mrf.mxu1  ;;  %v8751_v56 = vpack.i.bf16 %v10858_v60, %v10846_v9  ;;  %v1907_v34 = vpop.f32.mrf.mxu0  ;;  %v2320_v26 = vsel %vm993_vm3, %v2315_v2, %v2319_v48  ;;  %v10874_v42 = vmax.f32 %v2184_v54, %v2318_v16  ;;  %v1692_v2 = vadd.f32 %v10614_v39, %v10350_v28  ;;  %3297 = vmatprep.subr.bf16.mxu1 %v9159_v17 }
 0x1d0   : > { %v2323_v37 = vrot.slane %v14363_v31, 1  ;;  %v14365_v51 = vmax.f32 %v10865_v47, 0.0  ;;  %v10886_v29 = vadd.f32 %v10745_v30, %v2051_v12  ;;  %v2052_v54 = vadd.f32 %v1907_v34, %v1690_v53  ;;  %3298 = vmatpush2.bf16.msra.mxu1 %v9157_v52 }
 0x1d1   : > { %v10888_v14 = vpop.f32.mrf.mxu1  ;;  %8752 = vrot.lane.b32.xlu0 %v8751_v56, %s9388_s19  ;;  %v1909_v27 = vpop.f32.mrf.mxu0  ;;  %v14528_v16 = vmax.f32 %v10797_v35, 0.0  ;;  %v2322_v31 = vsel %vm993_vm3, %v2317_v25, %v2321_v10  ;;  %v1693_v35 = vadd.f32 %v10629_v38, %v10358_v20  ;;  %v1694_v20 = vadd.f32 %v10636_v21, %v10364_v62 }
 0x1d2   : > { %v2325_v12 = vrot.slane %v14365_v51, 1  ;;  %v2191_v5 = vmax.f32 %v10886_v29, 0.0  ;;  %v10902_v53 = vadd.f32 %v10736_v15, %v2052_v54  ;;  %v2053_v39 = vadd.f32 %v1909_v27, %v1691_v49 }
 0x1d3   : > { %v10895_v45 = vmax.f32 %v14528_v16, %v2320_v26  ;;  %v10904_v28 = vpop.f32.mrf.mxu1  ;;  %v1913_v25 = vpop.f32.mrf.mxu0  ;;  %v2324_v34 = vsel %vm993_vm3, %v2319_v48, %v2323_v37  ;;  %v14529_v26 = vmax.f32 %v10809_v6, 0.0  ;;  %v14530_v48 = vmax.f32 %v10822_v19, 0.0 }
 0x1d4   : > { %v2327_v29 = vrot.slane %v2191_v5, 1  ;;  %v2192_v54 = vmax.f32 %v10902_v53, 0.0  ;;  %v10917_v16 = vadd.f32 %v10745_v30, %v2053_v39  ;;  %v2054_v52 = vadd.f32 %v1913_v25, %v1692_v2 }
 0x1d5   : > { %v8756_v56 = vpack.i.bf16 %v10895_v45, %v10874_v42  ;;  %v10913_v17 = vmax.f32 %v14529_v26, %v2322_v31  ;;  %v10919_v49 = vpop.f32.mrf.mxu1  ;;  %v1915_v38 = vpop.f32.mrf.mxu0  ;;  %v10926_v6 = vmax.f32 %v14530_v48, %v2324_v34  ;;  %v2326_v31 = vsel %vm993_vm3, %v2321_v10, %v2325_v12 }
 0x1d6   : > { %v2329_v27 = vrot.slane %v2192_v54, 1  ;;  %v2193_v53 = vmax.f32 %v10917_v16, 0.0  ;;  %v10931_v39 = vadd.f32 %v10736_v15, %v2054_v52  ;;  %v2055_v2 = vadd.f32 %v1915_v38, %v1693_v35 }
 0x1d7   : > { %8757 = vrot.lane.b32.xlu0 %v8756_v56, %s9388_s19  ;;  %v10933_v26 = vpop.f32.mrf.mxu1  ;;  %v1695_v62 = vadd.f32 %v10645_v7, %v10373_v18  ;;  %v8761_v21 = vpack.i.bf16 %v10926_v6, %v10913_v17  ;;  %v1917_v19 = vpop.f32.mrf.mxu0  ;;  %v2328_v56 = vsel %vm993_vm3, %v2323_v37, %v2327_v29  ;;  %v14531_v10 = vmax.f32 %v10836_v4, 0.0  ;;  %v14532_v18 = vld [vmem:[#allocation18_spill] sm:$0xff]  ;;  %v14533_v7 = vld [vmem:[#allocation25_spill] sm:$0xff] }
 0x1d8   : > { %v2331_v34 = vrot.slane %v2193_v53, 1  ;;  %v14366_v16 = vmax.f32 %v10931_v39, 0.0  ;;  %v10946_v52 = vadd.f32 %v10745_v30, %v2055_v2  ;;  %v2056_v38 = vadd.f32 %v1917_v19, %v1694_v20 }
 0x1d9   : > { %v10942_v25 = vmax.f32 %v14531_v10, %v2326_v31  ;;  %v10948_v35 = vpop.f32.mrf.mxu1  ;;  %v860_v48 = vadd.f32 %v14533_v7, %v14532_v18  ;;  %v1696_v51 = vadd.f32 %v10654_v22, %v10377_v50  ;;  %8762 = vrot.lane.b32.xlu1 %v8761_v21, %s9388_s19  ;;  %v1919_v4 = vpop.f32.mrf.mxu0  ;;  %v14534_v37 = vmax.f32 %v10852_v1, 0.0 }
 0x1da   : > { %v2330_v10 = vsel %vm993_vm3, %v2325_v12, %v2329_v27  ;;  %v2333_v2 = vrot.slane %v14366_v16, 1  ;;  %v2195_v20 = vmax.f32 %v10946_v52, 0.0  ;;  %v10964_v19 = vadd.f32 %v10736_v15, %v2056_v38 }
 0x1db   : > { %v10957_v31 = vmax.f32 %v14534_v37, %v2328_v56  ;;  %v10966_v18 = vpop.f32.mrf.mxu1  ;;  %v2057_v50 = vadd.f32 %v1919_v4, %v1695_v62  ;;  %v1697_v22 = vadd.f32 %v10663_v40, %v10391_v8  ;;  %v1923_v21 = vpop.f32.mrf.mxu0  ;;  %v2332_v12 = vsel %vm993_vm3, %v2327_v29, %v2331_v34 }
 0x1dc   : > { %v14535_v56 = vmax.f32 %v10865_v47, 0.0  ;;  %v2335_v52 = vrot.slane %v2195_v20, 1  ;;  %v2196_v38 = vmax.f32 %v10964_v19, 0.0  ;;  %v2058_v4 = vadd.f32 %v1923_v21, %v1696_v51  ;;  %v9162_v19 = vld [vmem:[%s14344_s2 + $0x1c4] ss:$8 sps:$4 sm:$0xff]  }
 0x1dd   : > { %v8766_v1 = vpack.i.bf16 %v10957_v31, %v10942_v25  ;;  %v10979_v37 = vadd.f32 %v10745_v30, %v2057_v50  ;;  %v10981_v62 = vpop.f32.mrf.mxu1  ;;  %v1305_v8 = vadd.f32 %v10403_v32, %v860_v48  ;;  %v1698_v40 = vadd.f32 %v10670_v61, %v10397_v3  ;;  %v1925_v29 = vpop.f32.mrf.mxu0  ;;  %4067 = vmatprep.subr.bf16.mxu1 %v9162_v19 }
 0x1de   : > { %v10975_v7 = vmax.f32 %v14535_v56, %v2330_v10  ;;  %v10987_v47 = vmax.f32 %v2191_v5, %v2332_v12  ;;  %v2334_v10 = vsel %vm993_vm3, %v2329_v27, %v2333_v2  ;;  %v2337_v50 = vrot.slane %v2196_v38, 1 }
 0x1df   : > { %8767 = vrot.lane.b32.xlu1 %v8766_v1, %s9388_s19  ;;  %v2197_v56 = vmax.f32 %v10979_v37, 0.0  ;;  %v10995_v51 = vadd.f32 %v10736_v15, %v2058_v4  ;;  %v10997_v32 = vpop.f32.mrf.mxu1  ;;  %v2059_v3 = vadd.f32 %v1925_v29, %v1697_v22  ;;  %v1699_v61 = vadd.f32 %v10685_v55, %v1305_v8  ;;  %v1927_v48 = vpop.f32.mrf.mxu0  ;;  %v14536_v29 = vld [vmem:[#allocation20_spill] sm:$0xff]  ;;  %v14537_v55 = vld [vmem:[#allocation27_spill] sm:$0xff] }
 0x1e0   : > { %v8771_v5 = vpack.i.bf16 %v10987_v47, %v10975_v7  ;;  %v2336_v27 = vsel %vm993_vm3, %v2331_v34, %v2335_v52  ;;  %v11003_v1 = vmax.f32 %v2192_v54, %v2334_v10  ;;  %v2060_v22 = vadd.f32 %v1927_v48, %v1698_v40 }
 0x1e1   : > { %v2339_v21 = vrot.slane %v2197_v56, 1  ;;  %v2198_v12 = vmax.f32 %v10995_v51, 0.0  ;;  %v11007_v37 = vadd.f32 %v10745_v30, %v2059_v3  ;;  %v11009_v4 = vpop.f32.mrf.mxu1  ;;  %v870_v8 = vadd.f32 %v14537_v55, %v14536_v29  ;;  %v1929_v54 = vpop.f32.mrf.mxu0 }
 0x1e2   : > { %v1700_v16 = vadd.f32 %v10697_v36, %v10411_v59  ;;  %8772 = vrot.lane.b32.xlu0 %v8771_v5, %s9388_s19  ;;  %v11016_v34 = vmax.f32 %v2193_v53, %v2336_v27  ;;  %v2338_v10 = vsel %vm993_vm3, %v2333_v2, %v2337_v50  ;;  %v11021_v3 = vadd.f32 %v10736_v15, %v2060_v22 }
 0x1e3   : > { %v2341_v19 = vrot.slane %v2198_v12, 1  ;;  %v2199_v51 = vmax.f32 %v11007_v37, 0.0  ;;  %v2061_v40 = vadd.f32 %v1929_v54, %v1699_v61  ;;  %v1701_v48 = vadd.f32 %v10706_v11, %v10418_v46  ;;  %v1933_v36 = vpop.f32.mrf.mxu0  ;;  %v11033_v29 = vpop.f32.mrf.mxu1 }
 0x1e4   : > { %v8776_v59 = vpack.i.bf16 %v11016_v34, %v11003_v1  ;;  %v2340_v5 = vsel %vm993_vm3, %v2335_v52, %v2339_v21  ;;  %v14538_v53 = vmax.f32 %v10931_v39, 0.0  ;;  %v2200_v37 = vmax.f32 %v11021_v3, 0.0 }
 0x1e5   : > { %v2343_v2 = vrot.slane %v2199_v51, 1  ;;  %v11036_v61 = vadd.f32 %v10745_v30, %v2061_v40  ;;  %v2062_v22 = vadd.f32 %v1933_v36, %v1700_v16  ;;  %v1309_v46 = vadd.f32 %v10432_v44, %v870_v8  ;;  %v1935_v52 = vpop.f32.mrf.mxu0 }
 0x1e6   : > { %v11030_v27 = vmax.f32 %v14538_v53, %v2338_v10  ;;  %v1702_v11 = vadd.f32 %v10714_v33, %v10423_v57  ;;  %8777 = vrot.lane.b32.xlu1 %v8776_v59, %s9388_s19  ;;  %v11042_v39 = vmax.f32 %v2195_v20, %v2340_v5  ;;  %v2342_v55 = vsel %vm993_vm3, %v2337_v50, %v2341_v19  ;;  %v11055_v59 = vpop.f32.mrf.mxu1  ;;  %v14542_v53 = vld [vmem:[#allocation33_spill] sm:$0xff] }
 0x1e7   : > { %v2345_v54 = vrot.slane %v2200_v37, 1  ;;  %v2201_v10 = vmax.f32 %v11036_v61, 0.0  ;;  %v11047_v3 = vadd.f32 %v10736_v15, %v2062_v22  ;;  %v2063_v40 = vadd.f32 %v1935_v52, %v1701_v48  ;;  %v1937_v57 = vpop.f32.mrf.mxu0  ;;  %v14541_v48 = vld [vmem:[#allocation21_spill] sm:$0xff] }
 0x1e8   : > { %14539 = vst [vmem:[#allocation18_spill] sm:$0xff] %v11030_v27  ;;  %v1703_v16 = vadd.f32 %v10727_v23, %v1309_v46  ;;  %v8781_v44 = vpack.i.bf16 %v11042_v39, %v11030_v27  ;;  %v2344_v33 = vsel %vm993_vm3, %v2339_v21, %v2343_v2  ;;  %v11053_v8 = vmax.f32 %v2196_v38, %v2342_v55  ;;  %v14543_v61 = vld [vmem:[#allocation69_spill] sm:$0xff] }
 0x1e9   : > { %v2347_v20 = vrot.slane %v2201_v10, 1  ;;  %v2202_v50 = vmax.f32 %v11047_v3, 0.0  ;;  %v11059_v36 = vadd.f32 %v10745_v30, %v2063_v40  ;;  %v2064_v5 = vadd.f32 %v1937_v57, %v1702_v11  ;;  %v1939_v21 = vpop.f32.mrf.mxu0  ;;  %v14544_v40 = vld [vmem:[#allocation34_spill] sm:$0xff] }
 0x1ea   : > { %14540 = vst [vmem:[#allocation25_spill] sm:$0xff] %v11053_v8  ;;  %v880_v23 = vadd.f32 %v10287_v58, %v14541_v48  ;;  %v1704_v22 = vadd.f32 %v14543_v61, %v14542_v53  ;;  %8782 = vrot.lane.b32.xlu0 %v8781_v44, %s9388_s19  ;;  %v11066_v38 = vmax.f32 %v2197_v56, %v2344_v33  ;;  %v14545_v57 = vld [vmem:[#allocation70_spill] sm:$0xff]  ;;  %v11080_v33 = vpop.f32.mrf.mxu1  ;;  %v14547_v61 = vld [vmem:[#allocation36_spill] sm:$0xff] }
 0x1eb   : > { %v2346_v46 = vsel %vm993_vm3, %v2341_v19, %v2345_v54  ;;  %v2349_v52 = vrot.slane %v2202_v50, 1  ;;  %v2203_v55 = vmax.f32 %v11059_v36, 0.0  ;;  %v11071_v3 = vadd.f32 %v10736_v15, %v2064_v5  ;;  %v1943_v53 = vpop.f32.mrf.mxu0 }
 0x1ec   : > { %v2065_v11 = vadd.f32 %v1939_v21, %v1703_v16  ;;  %v1705_v58 = vadd.f32 %v14545_v57, %v14544_v40  ;;  %v8786_v48 = vpack.i.bf16 %v11066_v38, %v11053_v8  ;;  %v2348_v44 = vsel %vm993_vm3, %v2343_v2, %v2347_v20  ;;  %v14548_v40 = vld [vmem:[#allocation35_spill] sm:$0xff] }
 0x1ed   : > { %v11078_v56 = vmax.f32 %v2198_v12, %v2346_v46  ;;  %v2351_v19 = vrot.slane %v2203_v55, 1  ;;  %v2204_v36 = vmax.f32 %v11071_v3, 0.0  ;;  %v2066_v16 = vadd.f32 %v1943_v53, %v1704_v22  ;;  %v1945_v8 = vpop.f32.mrf.mxu0 }
 0x1ee   : > { %v11084_v5 = vadd.f32 %v10745_v30, %v2065_v11  ;;  %v1313_v21 = vadd.f32 %v14547_v61, %v880_v23  ;;  %v1706_v57 = vadd.f32 %v10772_v0, %v14548_v40  ;;  %8787 = vrot.lane.b32.xlu1 %v8786_v48, %s9388_s19  ;;  %v11090_v2 = vmax.f32 %v2199_v51, %v2348_v44  ;;  %v11103_v51 = vpop.f32.mrf.mxu1  ;;  %v14552_v61 = vld [vmem:[#allocation38_spill] sm:$0xff] }
 0x1ef   : > { %14546 = vst [vmem:[#allocation20_spill] sm:$0xff] %v11078_v56  ;;  %v2350_v12 = vsel %vm993_vm3, %v2345_v54, %v2349_v52  ;;  %v2353_v46 = vrot.slane %v2204_v36, 1  ;;  %v11095_v3 = vadd.f32 %v10736_v15, %v2066_v16  ;;  %v2067_v11 = vadd.f32 %v1945_v8, %v1705_v58  ;;  %v1947_v0 = vpop.f32.mrf.mxu0  ;;  %v14550_v8 = vld [vmem:[#allocation22_spill] sm:$0xff]  ;;  %v14551_v58 = vld [vmem:[#allocation28_spill] sm:$0xff] }
 0x1f0   : > { %v2205_v27 = vmax.f32 %v11084_v5, 0.0  ;;  %v1707_v22 = vadd.f32 %v10786_v41, %v1313_v21  ;;  %v8791_v23 = vpack.i.bf16 %v11090_v2, %v11078_v56  ;;  %v2352_v48 = vsel %vm993_vm3, %v2347_v20, %v2351_v19 }
 0x1f1   : > { %v11101_v53 = vmax.f32 %v2200_v37, %v2350_v12  ;;  %v2206_v44 = vmax.f32 %v11095_v3, 0.0  ;;  %v11107_v5 = vadd.f32 %v10745_v30, %v2067_v11  ;;  %v2068_v16 = vadd.f32 %v1947_v0, %v1706_v57  ;;  %v1949_v20 = vpop.f32.mrf.mxu0  ;;  %v14554_v0 = vld [vmem:[#allocation39_spill] sm:$0xff] }
 0x1f2   : > { %v2355_v54 = vrot.slane %v2205_v27, 1  ;;  %v890_v41 = vadd.f32 %v14551_v58, %v14550_v8  ;;  %v1708_v21 = vadd.f32 %v10799_v13, %v14552_v61  ;;  %8792 = vrot.lane.b32.xlu0 %v8791_v23, %s9388_s19  ;;  %v11114_v37 = vmax.f32 %v2201_v10, %v2352_v48  ;;  %v11128_v48 = vpop.f32.mrf.mxu1  ;;  %v14556_v61 = vld [vmem:[#allocation41_spill] sm:$0xff] }
 0x1f3   : > { %14549 = vst [vmem:[#allocation27_spill] sm:$0xff] %v11101_v53  ;;  %v2354_v40 = vsel %vm993_vm3, %v2349_v52, %v2353_v46  ;;  %v2357_v12 = vrot.slane %v2206_v44, 1  ;;  %v2207_v3 = vmax.f32 %v11107_v5, 0.0  ;;  %v11119_v11 = vadd.f32 %v10736_v15, %v2068_v16  ;;  %v1953_v58 = vpop.f32.mrf.mxu0 }
 0x1f4   : > { %14553 = vst [vmem:[#allocation21_spill] sm:$0xff] %v11114_v37  ;;  %v2069_v57 = vadd.f32 %v1949_v20, %v1707_v22  ;;  %v1709_v8 = vadd.f32 %v10811_v43, %v14554_v0  ;;  %v8796_v13 = vpack.i.bf16 %v11114_v37, %v11101_v53  ;;  %v2356_v23 = vsel %vm993_vm3, %v2351_v19, %v2355_v54  ;;  %v14557_v43 = vld [vmem:[#allocation40_spill] sm:$0xff] }
 0x1f5   : > { %v11126_v10 = vmax.f32 %v2202_v50, %v2354_v40  ;;  %v2359_v52 = vrot.slane %v2207_v3, 1  ;;  %v2208_v5 = vmax.f32 %v11119_v11, 0.0  ;;  %v2070_v22 = vadd.f32 %v1953_v58, %v1708_v21  ;;  %v14558_v0 = vld [vmem:[#allocation72_spill] sm:$0xff]  ;;  %v1955_v53 = vpop.f32.mrf.mxu0  ;;  %v14559_v21 = vld [vmem:[#allocation73_spill] sm:$0xff] }
 0x1f6   : > { %v11132_v16 = vadd.f32 %v10745_v30, %v2069_v57  ;;  %v1317_v20 = vadd.f32 %v14556_v61, %v890_v41  ;;  %v1710_v56 = vadd.f32 %v14558_v0, %v14557_v43  ;;  %8797 = vrot.lane.b32.xlu1 %v8796_v13, %s9388_s19  ;;  %v11138_v19 = vmax.f32 %v2203_v55, %v2356_v23  ;;  %v11151_v55 = vpop.f32.mrf.mxu1  ;;  %v14563_v0 = vld [vmem:[#allocation43_spill] sm:$0xff] }
 0x1f7   : > { %14555 = vst [vmem:[#allocation33_spill] sm:$0xff] %v11126_v10  ;;  %v2358_v50 = vsel %vm993_vm3, %v2353_v46, %v2357_v12  ;;  %v2361_v40 = vrot.slane %v2208_v5, 1  ;;  %v11143_v11 = vadd.f32 %v10736_v15, %v2070_v22  ;;  %v2071_v57 = vadd.f32 %v1955_v53, %v1709_v8  ;;  %v1957_v61 = vpop.f32.mrf.mxu0  ;;  %v14561_v53 = vld [vmem:[#allocation23_spill] sm:$0xff]  ;;  %v14562_v8 = vld [vmem:[#allocation29_spill] sm:$0xff] }
 0x1f8   : > { %v2209_v37 = vmax.f32 %v11132_v16, 0.0  ;;  %v1711_v58 = vadd.f32 %v14559_v21, %v1317_v20  ;;  %v8801_v41 = vpack.i.bf16 %v11138_v19, %v11126_v10  ;;  %v2360_v13 = vsel %vm993_vm3, %v2355_v54, %v2359_v52 }
 0x1f9   : > { %v11149_v43 = vmax.f32 %v2204_v36, %v2358_v50  ;;  %v2210_v23 = vmax.f32 %v11143_v11, 0.0  ;;  %v11155_v16 = vadd.f32 %v10745_v30, %v2071_v57  ;;  %v2072_v22 = vadd.f32 %v1957_v61, %v1710_v56  ;;  %v1959_v54 = vpop.f32.mrf.mxu0  ;;  %v14565_v61 = vld [vmem:[#allocation44_spill] sm:$0xff] }
 0x1fa   : > { %v2363_v46 = vrot.slane %v2209_v37, 1  ;;  %v900_v20 = vadd.f32 %v14562_v8, %v14561_v53  ;;  %v1712_v21 = vadd.f32 %v10854_v24, %v14563_v0  ;;  %8802 = vrot.lane.b32.xlu0 %v8801_v41, %s9388_s19  ;;  %v11162_v36 = vmax.f32 %v2205_v27, %v2360_v13  ;;  %v11176_v13 = vpop.f32.mrf.mxu1  ;;  %v14567_v0 = vld [vmem:[#allocation46_spill] sm:$0xff] }
 0x1fb   : > { %14560 = vst [vmem:[#allocation69_spill] sm:$0xff] %v11149_v43  ;;  %v2362_v50 = vsel %vm993_vm3, %v2357_v12, %v2361_v40  ;;  %v2365_v10 = vrot.slane %v2210_v23, 1  ;;  %v2211_v11 = vmax.f32 %v11155_v16, 0.0  ;;  %v11167_v57 = vadd.f32 %v10736_v15, %v2072_v22  ;;  %v1963_v8 = vpop.f32.mrf.mxu0 }
 0x1fc   : > { %14564 = vst [vmem:[#allocation34_spill] sm:$0xff] %v11162_v36  ;;  %v2073_v56 = vadd.f32 %v1959_v54, %v1711_v58  ;;  %v1713_v53 = vadd.f32 %v10867_v63, %v14565_v61  ;;  %v8806_v24 = vpack.i.bf16 %v11162_v36, %v11149_v43  ;;  %v2364_v41 = vsel %vm993_vm3, %v2359_v52, %v2363_v46  ;;  %v14568_v63 = vld [vmem:[#allocation45_spill] sm:$0xff] }
 0x1fd   : > { %v11174_v27 = vmax.f32 %v2206_v44, %v2362_v50  ;;  %v2367_v12 = vrot.slane %v2211_v11, 1  ;;  %v2212_v16 = vmax.f32 %v11167_v57, 0.0  ;;  %v2074_v58 = vadd.f32 %v1963_v8, %v1712_v21  ;;  %v1965_v43 = vpop.f32.mrf.mxu0 }
 0x1fe   : > { %v11180_v22 = vadd.f32 %v10745_v30, %v2073_v56  ;;  %v1321_v54 = vadd.f32 %v14567_v0, %v900_v20  ;;  %v1714_v61 = vadd.f32 %v10888_v14, %v14568_v63  ;;  %8807 = vrot.lane.b32.xlu1 %v8806_v24, %s9388_s19  ;;  %v11186_v52 = vmax.f32 %v2207_v3, %v2364_v41  ;;  %v11199_v3 = vpop.f32.mrf.mxu1  ;;  %v14572_v0 = vld [vmem:[#allocation48_spill] sm:$0xff] }
 0x1ff   : > { %14566 = vst [vmem:[#allocation70_spill] sm:$0xff] %v11174_v27  ;;  %v2366_v44 = vsel %vm993_vm3, %v2361_v40, %v2365_v10  ;;  %v2369_v50 = vrot.slane %v2212_v16, 1  ;;  %v11191_v57 = vadd.f32 %v10736_v15, %v2074_v58  ;;  %v2075_v56 = vadd.f32 %v1965_v43, %v1713_v53  ;;  %v1967_v14 = vpop.f32.mrf.mxu0  ;;  %v14570_v43 = vld [vmem:[#allocation24_spill] sm:$0xff]  ;;  %v14571_v53 = vld [vmem:[#allocation30_spill] sm:$0xff] }
 0x200   : > { %v2213_v36 = vmax.f32 %v11180_v22, 0.0  ;;  %v1715_v21 = vadd.f32 %v10904_v28, %v1321_v54  ;;  %v8811_v20 = vpack.i.bf16 %v11186_v52, %v11174_v27  ;;  %v2368_v24 = vsel %vm993_vm3, %v2363_v46, %v2367_v12 }
 0x201   : > { %v11197_v8 = vmax.f32 %v2208_v5, %v2366_v44  ;;  %v2214_v41 = vmax.f32 %v11191_v57, 0.0  ;;  %v11203_v22 = vadd.f32 %v10745_v30, %v2075_v56  ;;  %v2076_v58 = vadd.f32 %v1967_v14, %v1714_v61  ;;  %v1969_v46 = vpop.f32.mrf.mxu0  ;;  %v14573_v14 = vld [vmem:[#allocation49_spill] sm:$0xff] }
 0x202   : > { %v2371_v40 = vrot.slane %v2213_v36, 1  ;;  %v910_v28 = vadd.f32 %v14571_v53, %v14570_v43  ;;  %v1716_v54 = vadd.f32 %v10919_v49, %v14572_v0  ;;  %8812 = vrot.lane.b32.xlu0 %v8811_v20, %s9388_s19  ;;  %v11210_v5 = vmax.f32 %v2209_v37, %v2368_v24  ;;  %v11224_v24 = vpop.f32.mrf.mxu1  ;;  %v14575_v0 = vld [vmem:[#allocation51_spill] sm:$0xff] }
 0x203   : > { %14569 = vst [vmem:[#allocation36_spill] sm:$0xff] %v11197_v8  ;;  %v2370_v63 = vsel %vm993_vm3, %v2365_v10, %v2369_v50  ;;  %v2373_v44 = vrot.slane %v2214_v41, 1  ;;  %v2215_v57 = vmax.f32 %v11203_v22, 0.0  ;;  %v11215_v56 = vadd.f32 %v10736_v15, %v2076_v58  ;;  %v1973_v53 = vpop.f32.mrf.mxu0 }
 0x204   : > { %v2077_v61 = vadd.f32 %v1969_v46, %v1715_v21  ;;  %v1717_v43 = vadd.f32 %v10933_v26, %v14573_v14  ;;  %v8816_v49 = vpack.i.bf16 %v11210_v5, %v11197_v8  ;;  %v2372_v20 = vsel %vm993_vm3, %v2367_v12, %v2371_v40  ;;  %v14576_v26 = vld [vmem:[#allocation50_spill] sm:$0xff] }
 0x205   : > { %v11222_v37 = vmax.f32 %v2210_v23, %v2370_v63  ;;  %v2375_v10 = vrot.slane %v2215_v57, 1  ;;  %v2216_v22 = vmax.f32 %v11215_v56, 0.0  ;;  %v2078_v21 = vadd.f32 %v1973_v53, %v1716_v54  ;;  %v1975_v8 = vpop.f32.mrf.mxu0 }
 0x206   : > { %v11228_v58 = vadd.f32 %v10745_v30, %v2077_v61  ;;  %v1325_v46 = vadd.f32 %v14575_v0, %v910_v28  ;;  %v1718_v14 = vadd.f32 %v10948_v35, %v14576_v26  ;;  %8817 = vrot.lane.b32.xlu1 %v8816_v49, %s9388_s19  ;;  %v11234_v12 = vmax.f32 %v2211_v11, %v2372_v20  ;;  %v11247_v11 = vpop.f32.mrf.mxu1  ;;  %v14580_v0 = vld [vmem:[#allocation53_spill] sm:$0xff] }
 0x207   : > { %14574 = vst [vmem:[#allocation35_spill] sm:$0xff] %v11222_v37  ;;  %v2374_v23 = vsel %vm993_vm3, %v2369_v50, %v2373_v44  ;;  %v2377_v63 = vrot.slane %v2216_v22, 1  ;;  %v11239_v56 = vadd.f32 %v10736_v15, %v2078_v21  ;;  %v2079_v61 = vadd.f32 %v1975_v8, %v1717_v43  ;;  %v1977_v35 = vpop.f32.mrf.mxu0  ;;  %v14578_v8 = vld [vmem:[#allocation26_spill] sm:$0xff]  ;;  %v14579_v43 = vld [vmem:[#allocation31_spill] sm:$0xff] }
 0x208   : > { %v2217_v27 = vmax.f32 %v11228_v58, 0.0  ;;  %v1719_v54 = vadd.f32 %v10966_v18, %v1325_v46  ;;  %v8821_v28 = vpack.i.bf16 %v11234_v12, %v11222_v37  ;;  %v2376_v49 = vsel %vm993_vm3, %v2371_v40, %v2375_v10 }
 0x209   : > { %v11245_v53 = vmax.f32 %v2212_v16, %v2374_v23  ;;  %v2218_v20 = vmax.f32 %v11239_v56, 0.0  ;;  %v11251_v58 = vadd.f32 %v10745_v30, %v2079_v61  ;;  %v2080_v21 = vadd.f32 %v1977_v35, %v1718_v14  ;;  %v1979_v40 = vpop.f32.mrf.mxu0  ;;  %v14581_v35 = vld [vmem:[#allocation54_spill] sm:$0xff] }
 0x20a   : > { %v2379_v50 = vrot.slane %v2217_v27, 1  ;;  %v920_v18 = vadd.f32 %v14579_v43, %v14578_v8  ;;  %v1720_v46 = vadd.f32 %v10981_v62, %v14580_v0  ;;  %8822 = vrot.lane.b32.xlu0 %v8821_v28, %s9388_s19  ;;  %v11258_v16 = vmax.f32 %v2213_v36, %v2376_v49  ;;  %v11272_v49 = vpop.f32.mrf.mxu1  ;;  %v14583_v0 = vld [vmem:[#allocation56_spill] sm:$0xff] }
 0x20b   : > { %14577 = vst [vmem:[#allocation22_spill] sm:$0xff] %v11245_v53  ;;  %v2378_v26 = vsel %vm993_vm3, %v2373_v44, %v2377_v63  ;;  %v2381_v23 = vrot.slane %v2218_v20, 1  ;;  %v2219_v56 = vmax.f32 %v11251_v58, 0.0  ;;  %v11263_v61 = vadd.f32 %v10736_v15, %v2080_v21  ;;  %v1983_v43 = vpop.f32.mrf.mxu0 }
 0x20c   : > { %v2081_v14 = vadd.f32 %v1979_v40, %v1719_v54  ;;  %v1721_v8 = vadd.f32 %v10997_v32, %v14581_v35  ;;  %v8826_v62 = vpack.i.bf16 %v11258_v16, %v11245_v53  ;;  %v2380_v28 = vsel %vm993_vm3, %v2375_v10, %v2379_v50  ;;  %v14584_v32 = vld [vmem:[#allocation55_spill] sm:$0xff] }
 0x20d   : > { %v11270_v36 = vmax.f32 %v2214_v41, %v2378_v26  ;;  %v2383_v44 = vrot.slane %v2219_v56, 1  ;;  %v2220_v58 = vmax.f32 %v11263_v61, 0.0  ;;  %v2082_v54 = vadd.f32 %v1983_v43, %v1720_v46  ;;  %v1985_v53 = vpop.f32.mrf.mxu0 }
 0x20e   : > { %v11276_v21 = vadd.f32 %v10745_v30, %v2081_v14  ;;  %v1329_v40 = vadd.f32 %v14583_v0, %v920_v18  ;;  %v1722_v35 = vadd.f32 %v11009_v4, %v14584_v32  ;;  %8827 = vrot.lane.b32.xlu1 %v8826_v62, %s9388_s19  ;;  %v11282_v10 = vmax.f32 %v2215_v57, %v2380_v28  ;;  %v11295_v57 = vpop.f32.mrf.mxu1  ;;  %v14588_v0 = vld [vmem:[#allocation57_spill] sm:$0xff] }
 0x20f   : > { %14582 = vst [vmem:[#allocation28_spill] sm:$0xff] %v11270_v36  ;;  %v2382_v41 = vsel %vm993_vm3, %v2377_v63, %v2381_v23  ;;  %v2385_v26 = vrot.slane %v2220_v58, 1  ;;  %v11287_v61 = vadd.f32 %v10736_v15, %v2082_v54  ;;  %v2083_v14 = vadd.f32 %v1985_v53, %v1721_v8  ;;  %v1987_v4 = vpop.f32.mrf.mxu0  ;;  %v14586_v53 = vld [vmem:[#allocation5_spill] sm:$0xff]  ;;  %v14587_v8 = vld [vmem:[#allocation32_spill] sm:$0xff] }
 0x210   : > { %v2221_v37 = vmax.f32 %v11276_v21, 0.0  ;;  %v1723_v46 = vadd.f32 %v11033_v29, %v1329_v40  ;;  %v8831_v18 = vpack.i.bf16 %v11282_v10, %v11270_v36  ;;  %v2384_v62 = vsel %vm993_vm3, %v2379_v50, %v2383_v44 }
 0x211   : > { %v11293_v43 = vmax.f32 %v2216_v22, %v2382_v41  ;;  %v2222_v28 = vmax.f32 %v11287_v61, 0.0  ;;  %v11299_v21 = vadd.f32 %v10745_v30, %v2083_v14  ;;  %v2084_v54 = vadd.f32 %v1987_v4, %v1722_v35  ;;  %v1989_v50 = vpop.f32.mrf.mxu0  ;;  %v14589_v4 = vld [vmem:[#allocation58_spill] sm:$0xff] }
 0x212   : > { %v2387_v63 = vrot.slane %v2221_v37, 1  ;;  %v930_v29 = vadd.f32 %v14587_v8, %v14586_v53  ;;  %v1724_v40 = vadd.f32 %v11055_v59, %v14588_v0  ;;  %8832 = vrot.lane.b32.xlu0 %v8831_v18, %s9388_s19  ;;  %v11306_v22 = vmax.f32 %v2217_v27, %v2384_v62  ;;  %v11320_v62 = vpop.f32.mrf.mxu1  ;;  %v14591_v0 = vld [vmem:[#allocation60_spill] sm:$0xff] }
 0x213   : > { %14585 = vst [vmem:[#allocation38_spill] sm:$0xff] %v11293_v43  ;;  %v2386_v32 = vsel %vm993_vm3, %v2381_v23, %v2385_v26  ;;  %v2389_v41 = vrot.slane %v2222_v28, 1  ;;  %v2223_v61 = vmax.f32 %v11299_v21, 0.0  ;;  %v11311_v14 = vadd.f32 %v10736_v15, %v2084_v54  ;;  %v1993_v8 = vpop.f32.mrf.mxu0 }
 0x214   : > { %v2085_v35 = vadd.f32 %v1989_v50, %v1723_v46  ;;  %v1725_v53 = vadd.f32 %v11080_v33, %v14589_v4  ;;  %v8836_v59 = vpack.i.bf16 %v11306_v22, %v11293_v43  ;;  %v2388_v18 = vsel %vm993_vm3, %v2383_v44, %v2387_v63  ;;  %v14592_v33 = vld [vmem:[#allocation59_spill] sm:$0xff] }
 0x215   : > { %v11318_v27 = vmax.f32 %v2218_v20, %v2386_v32  ;;  %v2391_v23 = vrot.slane %v2223_v61, 1  ;;  %v2224_v21 = vmax.f32 %v11311_v14, 0.0  ;;  %v2086_v46 = vadd.f32 %v1993_v8, %v1724_v40  ;;  %v1995_v43 = vpop.f32.mrf.mxu0 }
 0x216   : > { %v11324_v54 = vadd.f32 %v10745_v30, %v2085_v35  ;;  %v1333_v50 = vadd.f32 %v14591_v0, %v930_v29  ;;  %v1726_v4 = vadd.f32 %v11103_v51, %v14592_v33  ;;  %8837 = vrot.lane.b32.xlu1 %v8836_v59, %s9388_s19  ;;  %v11330_v44 = vmax.f32 %v2219_v56, %v2388_v18  ;;  %v11343_v56 = vpop.f32.mrf.mxu1  ;;  %v14596_v0 = vld [vmem:[#allocation61_spill] sm:$0xff] }
 0x217   : > { %14590 = vst [vmem:[#allocation39_spill] sm:$0xff] %v11318_v27  ;;  %v2390_v20 = vsel %vm993_vm3, %v2385_v26, %v2389_v41  ;;  %v2393_v32 = vrot.slane %v2224_v21, 1  ;;  %v11335_v14 = vadd.f32 %v10736_v15, %v2086_v46  ;;  %v2087_v35 = vadd.f32 %v1995_v43, %v1725_v53  ;;  %v1997_v51 = vpop.f32.mrf.mxu0  ;;  %v14594_v43 = vld [vmem:[#allocation6_spill] sm:$0xff]  ;;  %v14595_v53 = vld [vmem:[#allocation37_spill] sm:$0xff] }
 0x218   : > { %v2225_v36 = vmax.f32 %v11324_v54, 0.0  ;;  %v1727_v40 = vadd.f32 %v11128_v48, %v1333_v50  ;;  %v8841_v29 = vpack.i.bf16 %v11330_v44, %v11318_v27  ;;  %v2392_v59 = vsel %vm993_vm3, %v2387_v63, %v2391_v23 }
 0x219   : > { %v11341_v8 = vmax.f32 %v2220_v58, %v2390_v20  ;;  %v2226_v18 = vmax.f32 %v11335_v14, 0.0  ;;  %v11347_v54 = vadd.f32 %v10745_v30, %v2087_v35  ;;  %v2088_v46 = vadd.f32 %v1997_v51, %v1726_v4  ;;  %v1999_v63 = vpop.f32.mrf.mxu0  ;;  %v14597_v51 = vld [vmem:[#allocation62_spill] sm:$0xff] }
 0x21a   : > { %v2395_v26 = vrot.slane %v2225_v36, 1  ;;  %v940_v48 = vadd.f32 %v14595_v53, %v14594_v43  ;;  %v1728_v50 = vadd.f32 %v11151_v55, %v14596_v0  ;;  %8842 = vrot.lane.b32.xlu0 %v8841_v29, %s9388_s19  ;;  %v11354_v58 = vmax.f32 %v2221_v37, %v2392_v59  ;;  %v11368_v59 = vpop.f32.mrf.mxu1  ;;  %v14599_v0 = vld [vmem:[#allocation64_spill] sm:$0xff] }
 0x21b   : > { %14593 = vst [vmem:[#allocation41_spill] sm:$0xff] %v11341_v8  ;;  %v2394_v33 = vsel %vm993_vm3, %v2389_v41, %v2393_v32  ;;  %v2397_v20 = vrot.slane %v2226_v18, 1  ;;  %v2227_v14 = vmax.f32 %v11347_v54, 0.0  ;;  %v11359_v35 = vadd.f32 %v10736_v15, %v2088_v46  ;;  %v2003_v53 = vpop.f32.mrf.mxu0 }
 0x21c   : > { %v2089_v4 = vadd.f32 %v1999_v63, %v1727_v40  ;;  %v1729_v43 = vadd.f32 %v11176_v13, %v14597_v51  ;;  %v8846_v55 = vpack.i.bf16 %v11354_v58, %v11341_v8  ;;  %v2396_v29 = vsel %vm993_vm3, %v2391_v23, %v2395_v26  ;;  %v14600_v13 = vld [vmem:[#allocation63_spill] sm:$0xff] }
 0x21d   : > { %v11366_v37 = vmax.f32 %v2222_v28, %v2394_v33  ;;  %v2399_v41 = vrot.slane %v2227_v14, 1  ;;  %v2228_v54 = vmax.f32 %v11359_v35, 0.0  ;;  %v2090_v40 = vadd.f32 %v2003_v53, %v1728_v50  ;;  %v2005_v8 = vpop.f32.mrf.mxu0 }
 0x21e   : > { %v11372_v46 = vadd.f32 %v10745_v30, %v2089_v4  ;;  %v1337_v63 = vadd.f32 %v14599_v0, %v940_v48  ;;  %v1730_v51 = vadd.f32 %v11199_v3, %v14600_v13  ;;  %8847 = vrot.lane.b32.xlu1 %v8846_v55, %s9388_s19  ;;  %v11378_v23 = vmax.f32 %v2223_v61, %v2396_v29  ;;  %v11391_v61 = vpop.f32.mrf.mxu1  ;;  %v14604_v0 = vld [vmem:[#allocation7_spill] sm:$0xff] }
 0x21f   : > { %14598 = vst [vmem:[#allocation40_spill] sm:$0xff] %v11366_v37  ;;  %v2398_v28 = vsel %vm993_vm3, %v2393_v32, %v2397_v20  ;;  %v2401_v33 = vrot.slane %v2228_v54, 1  ;;  %v11383_v35 = vadd.f32 %v10736_v15, %v2090_v40  ;;  %v2091_v4 = vadd.f32 %v2005_v8, %v1729_v43  ;;  %v2007_v48 = vpop.f32.mrf.mxu0  ;;  %v14602_v8 = vld [vmem:[#allocation10_spill] sm:$0xff] }
 0x220   : > { %v2229_v27 = vmax.f32 %v11372_v46, 0.0  ;;  %v1731_v50 = vadd.f32 %v11224_v24, %v1337_v63  ;;  %v8851_v3 = vpack.i.bf16 %v11378_v23, %v11366_v37  ;;  %v2400_v55 = vsel %vm993_vm3, %v2395_v26, %v2399_v41  ;;  %v14603_v43 = vld [vmem:[#allocation42_spill] sm:$0xff] }
 0x221   : > { %v11389_v53 = vmax.f32 %v2224_v21, %v2398_v28  ;;  %v2230_v29 = vmax.f32 %v11383_v35, 0.0  ;;  %v11395_v46 = vadd.f32 %v10745_v30, %v2091_v4  ;;  %v2092_v40 = vadd.f32 %v2007_v48, %v1730_v51  ;;  %v2009_v26 = vpop.f32.mrf.mxu0  ;;  %v9183_v28 = vld [vmem:[%s14344_s2 + $0x26c] ss:$8 sps:$4 sm:$0xff]  }
 0x222   : > { %v2403_v32 = vrot.slane %v2229_v27, 1  ;;  %v950_v24 = vadd.f32 %v14603_v43, %v14602_v8  ;;  %v1732_v63 = vadd.f32 %v11247_v11, %v14604_v0  ;;  %8852 = vrot.lane.b32.xlu0 %v8851_v3, %s9388_s19  ;;  %v11402_v21 = vmax.f32 %v2225_v36, %v2400_v55  ;;  %v14605_v8 = vld [vmem:[#allocation8_spill] sm:$0xff]  ;;  %4580 = vmatprep.subr.bf16.mxu0 %v9183_v28  ;;  %v1667_v43 = vpop.f32.mrf.mxu1 }
 0x223   : > { %14601 = vst [vmem:[#allocation72_spill] sm:$0xff] %v11389_v53  ;;  %v2402_v13 = vsel %vm993_vm3, %v2397_v20, %v2401_v33  ;;  %v2405_v35 = vrot.slane %v2230_v29, 1  ;;  %v2231_v51 = vmax.f32 %v11395_v46, 0.0  ;;  %v11410_v4 = vadd.f32 %v10736_v15, %v2092_v40  ;;  %v2013_v3 = vpop.f32.mrf.mxu0 }
 0x224   : > { %v2093_v48 = vadd.f32 %v2009_v26, %v1731_v50  ;;  %v1733_v11 = vadd.f32 %v11272_v49, %v14605_v8  ;;  %v8856_v36 = vpack.i.bf16 %v11402_v21, %v11389_v53  ;;  %v2404_v20 = vsel %vm993_vm3, %v2399_v41, %v2403_v32  ;;  %v14607_v26 = vld [vmem:[#allocation65_spill] sm:$0xff] }
 0x225   : > { %v11417_v55 = vmax.f32 %v2226_v18, %v2402_v13  ;;  %v2407_v0 = vrot.slane %v2231_v51, 1  ;;  %v2232_v46 = vmax.f32 %v11410_v4, 0.0  ;;  %v2094_v50 = vadd.f32 %v2013_v3, %v1732_v63  ;;  %v14608_v49 = vld [vmem:[#allocation9_spill] sm:$0xff]  ;;  %v2015_v53 = vpop.f32.mrf.mxu0 }
 0x226   : > { %v11421_v40 = vadd.f32 %v10745_v30, %v2093_v48  ;;  %v1341_v37 = vadd.f32 %v14607_v26, %v950_v24  ;;  %v1734_v8 = vadd.f32 %v11295_v57, %v14608_v49  ;;  %8857 = vrot.lane.b32.xlu1 %v8856_v36, %s9388_s19  ;;  %v11427_v41 = vmax.f32 %v2227_v14, %v2404_v20  ;;  %v1671_v14 = vpop.f32.mrf.mxu1  ;;  %v14611_v26 = vld [vmem:[#allocation14_spill] sm:$0xff] }
 0x227   : > { %14606 = vst [vmem:[#allocation73_spill] sm:$0xff] %v11417_v55  ;;  %v2406_v18 = vsel %vm993_vm3, %v2401_v33, %v2405_v35  ;;  %v2409_v13 = vrot.slane %v2232_v46, 1  ;;  %v11432_v4 = vadd.f32 %v10736_v15, %v2094_v50  ;;  %v2095_v48 = vadd.f32 %v2015_v53, %v1733_v11  ;;  %v2017_v24 = vpop.f32.mrf.mxu0  ;;  %v14612_v53 = vld [vmem:[#allocation47_spill] sm:$0xff] }
 0x228   : > { %14609 = vst [vmem:[#allocation23_spill] sm:$0xff] %v11427_v41  ;;  %v2233_v28 = vmax.f32 %v11421_v40, 0.0  ;;  %v1735_v63 = vadd.f32 %v11320_v62, %v1341_v37  ;;  %v8861_v57 = vpack.i.bf16 %v11427_v41, %v11417_v55  ;;  %v2408_v3 = vsel %vm993_vm3, %v2403_v32, %v2407_v0  ;;  %v14613_v62 = vld [vmem:[#allocation11_spill] sm:$0xff]  ;;  %v14618_v55 = vld [vmem:[#allocation13_spill] sm:$0xff] }
 0x229   : > { %v11438_v36 = vmax.f32 %v2228_v54, %v2406_v18  ;;  %v2234_v33 = vmax.f32 %v11432_v4, 0.0  ;;  %v11442_v40 = vadd.f32 %v10745_v30, %v2095_v48  ;;  %v2096_v50 = vadd.f32 %v2017_v24, %v1734_v8  ;;  %v2019_v49 = vpop.f32.mrf.mxu0  ;;  %v14615_v24 = vld [vmem:[#allocation12_spill] sm:$0xff] }
 0x22a   : > { %v2411_v20 = vrot.slane %v2233_v28, 1  ;;  %v960_v11 = vadd.f32 %v14612_v53, %v14611_v26  ;;  %v1736_v37 = vadd.f32 %v11343_v56, %v14613_v62  ;;  %8862 = vrot.lane.b32.xlu0 %v8861_v57, %s9388_s19  ;;  %v11449_v32 = vmax.f32 %v2229_v27, %v2408_v3  ;;  %v1673_v3 = vpop.f32.mrf.mxu1 }
 0x22b   : > { %14610 = vst [vmem:[#allocation29_spill] sm:$0xff] %v11438_v36  ;;  %v2410_v54 = vsel %vm993_vm3, %v2405_v35, %v2409_v13  ;;  %v2413_v18 = vrot.slane %v2234_v33, 1  ;;  %v2235_v4 = vmax.f32 %v11442_v40, 0.0  ;;  %v11454_v48 = vadd.f32 %v10736_v15, %v2096_v50  ;;  %v2023_v53 = vpop.f32.mrf.mxu0 }
 0x22c   : > { %14614 = vst [vmem:[#allocation43_spill] sm:$0xff] %v11449_v32  ;;  %v2097_v8 = vadd.f32 %v2019_v49, %v1735_v63  ;;  %v1737_v26 = vadd.f32 %v11368_v59, %v14615_v24  ;;  %v8866_v56 = vpack.i.bf16 %v11449_v32, %v11438_v36  ;;  %v2412_v57 = vsel %vm993_vm3, %v2407_v0, %v2411_v20  ;;  %v14617_v63 = vld [vmem:[#allocation66_spill] sm:$0xff] }
 0x22d   : > { %v11461_v27 = vmax.f32 %v2230_v29, %v2410_v54  ;;  %v2415_v35 = vrot.slane %v2235_v4, 1  ;;  %v2236_v62 = vmax.f32 %v11454_v48, 0.0  ;;  %v2098_v50 = vadd.f32 %v2023_v53, %v1736_v37  ;;  %v2025_v24 = vpop.f32.mrf.mxu0  ;;  %v1675_v53 = vpop.f32.mrf.mxu1 }
 0x22e   : > { %v11465_v40 = vadd.f32 %v10745_v30, %v2097_v8  ;;  %v1345_v49 = vadd.f32 %v14617_v63, %v960_v11  ;;  %v1738_v59 = vadd.f32 %v11391_v61, %v14618_v55  ;;  %8867 = vrot.lane.b32.xlu1 %v8866_v56, %s9388_s19  ;;  %v11471_v36 = vmax.f32 %v2231_v51, %v2412_v57  ;;  %v14620_v63 = vld [vmem:[#allocation19_spill] sm:$0xff] }
 0x22f   : > { %14616 = vst [vmem:[#allocation44_spill] sm:$0xff] %v11461_v27  ;;  %v2414_v29 = vsel %vm993_vm3, %v2409_v13, %v2413_v18  ;;  %v2417_v0 = vrot.slane %v2236_v62, 1  ;;  %v2174_v48 = vadd.f32 %v10736_v15, %v2098_v50  ;;  %v2099_v8 = vadd.f32 %v2025_v24, %v1737_v26  ;;  %v2027_v37 = vpop.f32.mrf.mxu0  ;;  %v14622_v50 = vld [vmem:[#allocation16_spill] sm:$0xff] }
 0x230   : > { %v2237_v54 = vmax.f32 %v11465_v40, 0.0  ;;  %v1739_v32 = vadd.f32 %v1667_v43, %v1345_v49  ;;  %v8871_v11 = vpack.i.bf16 %v11471_v36, %v11461_v27  ;;  %v2416_v61 = vsel %vm993_vm3, %v2411_v20, %v2415_v35  ;;  %v14621_v40 = vld [vmem:[#allocation52_spill] sm:$0xff]  ;;  %v14624_v27 = vld [vmem:[#allocation17_spill] sm:$0xff] }
 0x231   : > { %v11479_v55 = vmax.f32 %v2232_v46, %v2414_v29  ;;  %v2238_v56 = vmax.f32 %v2174_v48, 0.0  ;;  %v2175_v13 = vadd.f32 %v10745_v30, %v2099_v8  ;;  %v2100_v57 = vadd.f32 %v2027_v37, %v1738_v59  ;;  %v2029_v43 = vpop.f32.mrf.mxu0 }
 0x232   : > { %v2419_v51 = vrot.slane %v2237_v54, 1  ;;  %v970_v41 = vadd.f32 %v14621_v40, %v14620_v63  ;;  %v1740_v26 = vadd.f32 %v1671_v14, %v14622_v50  ;;  %8872 = vrot.lane.b32.xlu0 %v8871_v11, %s9388_s19  ;;  %v11486_v49 = vmax.f32 %v2233_v28, %v2416_v61  ;;  %v1677_v11 = vpop.f32.mrf.mxu1 }
 0x233   : > { %14619 = vst [vmem:[#allocation46_spill] sm:$0xff] %v11479_v55  ;;  %v2418_v20 = vsel %vm993_vm3, %v2413_v18, %v2417_v0  ;;  %v2421_v46 = vrot.slane %v2238_v56, 1  ;;  %v2239_v24 = vmax.f32 %v2175_v13, 0.0  ;;  %v2176_v29 = vadd.f32 %v10736_v15, %v2100_v57  ;;  %v2033_v59 = vpop.f32.mrf.mxu0  ;;  %v14625_v13 = vld [vmem:[#allocation68_spill] sm:$0xff]  ;;  %v14626_v57 = vld [vmem:[#allocation67_spill] sm:$0xff] }
 0x234   : > { %14623 = vst [vmem:[#allocation45_spill] sm:$0xff] %v11486_v49  ;;  %v2101_v48 = vadd.f32 %v2029_v43, %v1739_v32  ;;  %v1741_v8 = vadd.f32 %v1673_v3, %v14624_v27  ;;  %v8876_v37 = vpack.i.bf16 %v11486_v49, %v11479_v55  ;;  %v2420_v14 = vsel %vm993_vm3, %v2415_v35, %v2419_v51 }
 0x235   : > { %v11494_v63 = vmax.f32 %v2234_v33, %v2418_v20  ;;  %v2423_v28 = vrot.slane %v2239_v24, 1  ;;  %v2240_v61 = vmax.f32 %v2176_v29, 0.0  ;;  %v2102_v40 = vadd.f32 %v2033_v59, %v1740_v26  ;;  %v2035_v27 = vpop.f32.mrf.mxu0 }
 0x236   : > { %v2177_v18 = vadd.f32 %v10745_v30, %v2101_v48  ;;  %v1349_v50 = vadd.f32 %v14625_v13, %v970_v41  ;;  %v1742_v32 = vadd.f32 %v1675_v53, %v14626_v57  ;;  %8877 = vrot.lane.b32.xlu1 %v8876_v37, %s9388_s19  ;;  %v11500_v3 = vmax.f32 %v2235_v4, %v2420_v14 }
 0x237   : > { %v2422_v43 = vsel %vm993_vm3, %v2417_v0, %v2421_v46  ;;  %v2425_v35 = vrot.slane %v2240_v61, 1  ;;  %v2178_v20 = vadd.f32 %v10736_v15, %v2102_v40  ;;  %v2103_v55 = vadd.f32 %v2035_v27, %v1741_v8  ;;  %v2037_v49 = vpop.f32.mrf.mxu0 }
 0x238   : > { %v2241_v33 = vmax.f32 %v2177_v18, 0.0  ;;  %v1743_v29 = vadd.f32 %v1677_v11, %v1349_v50  ;;  %v8881_v26 = vpack.i.bf16 %v11500_v3, %v11494_v63  ;;  %v2424_v41 = vsel %vm993_vm3, %v2419_v51, %v2423_v28 }
 0x239   : > { %v11507_v53 = vmax.f32 %v2236_v62, %v2422_v43  ;;  %v2242_v59 = vmax.f32 %v2178_v20, 0.0  ;;  %v2179_v4 = vadd.f32 %v10745_v30, %v2103_v55  ;;  %v2104_v37 = vadd.f32 %v2037_v49, %v1742_v32  ;;  %v2039_v0 = vpop.f32.mrf.mxu0 }
 0x23a   : > { %v2427_v48 = vrot.slane %v2241_v33, 1  ;;  %8882 = vrot.lane.b32.xlu0 %v8881_v26, %s9388_s19  ;;  %v11511_v14 = vmax.f32 %v2237_v54, %v2424_v41  ;;  %v2426_v8 = vsel %vm993_vm3, %v2421_v46, %v2425_v35  ;;  %v2105_v13 = vadd.f32 %v2039_v0, %v1743_v29 }
 0x23b   : > { %v2429_v11 = vrot.slane %v2242_v59, 1  ;;  %v2243_v18 = vmax.f32 %v2179_v4, 0.0  ;;  %v2180_v40 = vadd.f32 %v10736_v15, %v2104_v37  ;;  %v11518_v50 = vmax.f32 %v2238_v56, %v2426_v8 }
 0x23c   : > { %v8886_v62 = vpack.i.bf16 %v11511_v14, %v11507_v53  ;;  %v2428_v51 = vsel %vm993_vm3, %v2423_v28, %v2427_v48  ;;  %v2181_v57 = vadd.f32 %v10745_v30, %v2105_v13 }
 0x23d   : > { %v2431_v55 = vrot.slane %v2243_v18, 1  ;;  %v2244_v49 = vmax.f32 %v2180_v40, 0.0  ;;  %v11521_v54 = vmax.f32 %v2239_v24, %v2428_v51  ;;  %v2430_v46 = vsel %vm993_vm3, %v2425_v35, %v2429_v11 }
 0x23e   : > { %8887 = vrot.lane.b32.xlu1 %v8886_v62, %s9388_s19  ;;  %v2245_v15 = vmax.f32 %v2181_v57, 0.0  ;;  %v11528_v28 = vmax.f32 %v2240_v61, %v2430_v46 }
 0x23f   : > { %v2433_v32 = vrot.slane %v2244_v49, 1  ;;  %v8891_v27 = vpack.i.bf16 %v11521_v54, %v11518_v50  ;;  %v2432_v43 = vsel %vm993_vm3, %v2427_v48, %v2431_v55 }
 0x240   : > { %v11530_v56 = vmax.f32 %v2241_v33, %v2432_v43  ;;  %v2435_v20 = vrot.slane %v2245_v15, 1 }
 0x241   : > { %8892 = vrot.lane.b32.xlu0 %v8891_v27, %s9388_s19  ;;  %v2434_v30 = vsel %vm993_vm3, %v2429_v11, %v2433_v32  ;;  %v11538_v29 = vmax.f32 %v2244_v49, %v2433_v32 }
 0x242   : > { %v8896_v24 = vpack.i.bf16 %v11530_v56, %v11528_v28  ;;  %v11536_v35 = vmax.f32 %v2242_v59, %v2434_v30  ;;  %v11540_v26 = vmax.f32 %v2245_v15, %v2435_v20  ;;  %v2436_v41 = vsel %vm993_vm3, %v2431_v55, %v2435_v20  ;;  %v9181_v15 = vld [vmem:[%s14344_s2 + $0x268] ss:$8 sps:$4 sm:$0xff]   ;;  %v9184_v20 = vld [vmem:[%s14344_s2 + $0x258] ss:$8 sps:$4 sm:$0xff]   ;;  %v9192_v30 = vld [vmem:[%s14344_s2 + $0x24c] ss:$8 sps:$4 sm:$0xff]  }
 0x243   : > { %v8753_v61 = vpop.permute.xlu0 %8752  ;;  %v11544_v33 = vmax.f32 %v2243_v18, %v2436_v41 }
 0x244   : > { %8897 = vrot.lane.b32.xlu1 %v8896_v24, %s9388_s19  ;;  %v8755_v48 = vunpack.i.h.bf16 %v8753_v61  ;;  %v8754_v4 = vunpack.i.l.bf16 %v8753_v61  ;;  %v8906_v37 = vpack.i.bf16 %v11540_v26, %v11538_v29 }
 0x245   : > { %v8901_v59 = vpack.i.bf16 %v11544_v33, %v11536_v35 }
 0x246   : > { %v2758_v8 = vsel %vm2757_vm7, %v8754_v4, %v8755_v48  ;;  %v2855_v18 = vmax.f32 %v10858_v60, %v8755_v48 }
 0x247   : > { %8902 = vrot.lane.b32.xlu0 %v8901_v59, %s9388_s19  ;;  %v2854_v51 = vmax.f32 %v10846_v9, %v2758_v8 }
 0x248   : > { %8907 = vrot.lane.b32.xlu1 %v8906_v37, %s9388_s19 }
 0x249   : > { %v8758_v0 = vpop.permute.xlu0 %8757 }
 0x24a   : > { %v8760_v11 = vunpack.i.h.bf16 %v8758_v0  ;;  %v8759_v40 = vunpack.i.l.bf16 %v8758_v0 }
 0x24b   : > { %v8763_v49 = vpop.permute.xlu1 %8762 }
 0x24c   : > { %v2857_v13 = vmax.f32 %v10895_v45, %v8760_v11  ;;  %v2759_v62 = vsel %vm2757_vm7, %v8759_v40, %v8760_v11  ;;  %v8765_v46 = vunpack.i.h.bf16 %v8763_v49  ;;  %v8764_v32 = vunpack.i.l.bf16 %v8763_v49  ;;  %v9186_v45 = vld [vmem:[%s14344_s2 + $0x25c] ss:$8 sps:$4 sm:$0xff]  }
 0x24d   : > { %v2856_v55 = vmax.f32 %v10874_v42, %v2759_v62 }
 0x24e   : > { %v11558_v57 = vpack.c.bf16 %v2857_v13, %v2855_v18  ;;  %v2760_v60 = vsel %vm2757_vm7, %v8764_v32, %v8765_v46  ;;  %v2859_v24 = vmax.f32 %v10926_v6, %v8765_v46 }
 0x24f   : > { %v11563_v27 = vpack.c.bf16 %v2856_v55, %v2854_v51  ;;  %v2858_v48 = vmax.f32 %v10913_v17, %v2760_v60  ;;  %v9195_v17 = vld [vmem:[%s14344_s2 + $0x23c] ss:$8 sps:$4 sm:$0xff]  }
 0x250   : > { %8232 = vmatprep.mubr.msk.bf16.mxu0 %vm3208_vm8, %v11558_v57  ;;  %v3028_v59 = vrot.slane %v11558_v57, 1  ;;  %v4346_v0 = vrot.slane %v11558_v57, 3  ;;  %v3833_v13 = vrot.slane %v11558_v57, 2  ;;  %v4859_v46 = vrot.slane %v11558_v57, 4 }
 0x251   : > { %3650 = vmatmul.mubr.bf16.vlgmr.msra.gmra.mxu0 %v11563_v27  ;;  %v8768_v9 = vpop.permute.xlu1 %8767  ;;  %v3025_v6 = vrot.slane %v11563_v27, 1  ;;  %v3830_v62 = vrot.slane %v11563_v27, 2 }
 0x252   : > { %v8770_v42 = vunpack.i.h.bf16 %v8768_v9  ;;  %v8769_v43 = vunpack.i.l.bf16 %v8768_v9  ;;  %4581 = vmatpush1.bf16.msra.mxu0 %v9181_v15 }
 0x253   : > { %4582 = vmatprep.subr.bf16.mxu0 %v9186_v45  ;;  %v9160_v45 = vld [vmem:[%s14344_s2 + $0x1c0] ss:$8 sps:$4 sm:$0xff]  }
 0x254   : > { %v2861_v41 = vmax.f32 %v10957_v31, %v8770_v42  ;;  %v2761_v61 = vsel %vm2757_vm7, %v8769_v43, %v8770_v42  ;;  %v8773_v37 = vpop.permute.xlu0 %8772  ;;  %v9190_v31 = vld [vmem:[%s14344_s2 + $0x248] ss:$8 sps:$4 sm:$0xff]  }
 0x255   : > { %v2860_v4 = vmax.f32 %v10942_v25, %v2761_v61  ;;  %v8775_v11 = vunpack.i.h.bf16 %v8773_v37  ;;  %v8774_v40 = vunpack.i.l.bf16 %v8773_v37  ;;  %v4343_v25 = vrot.slane %v11563_v27, 3  ;;  %v9198_v61 = vld [vmem:[%s14344_s2 + $0x22c] ss:$8 sps:$4 sm:$0xff]  }
 0x256   : > { %v11585_v8 = vpack.c.bf16 %v2861_v41, %v2859_v24  ;;  %4583 = vmatpush1.bf16.msra.mxu0 %v9184_v20  ;;  %v9165_v20 = vld [vmem:[%s14344_s2 + $0x1b4] ss:$8 sps:$4 sm:$0xff]  }
 0x257   : > { %v11591_v18 = vpack.c.bf16 %v2860_v4, %v2858_v48  ;;  %4584 = vmatprep.subr.bf16.mxu0 %v9192_v30  ;;  %v2863_v51 = vmax.f32 %v10987_v47, %v8775_v11  ;;  %v2762_v32 = vsel %vm2757_vm7, %v8774_v40, %v8775_v11  ;;  %v9193_v30 = vld [vmem:[%s14344_s2 + $0x238] ss:$8 sps:$4 sm:$0xff]  }
 0x258   : > { %8233 = vmatprep.mubr.msk.bf16.mxu0 %vm3208_vm8, %v11585_v8  ;;  %v3029_v55 = vrot.slane %v11585_v8, 1  ;;  %v4347_v49 = vrot.slane %v11585_v8, 3  ;;  %v8778_v15 = vpop.permute.xlu1 %8777  ;;  %v3834_v60 = vrot.slane %v11585_v8, 2  ;;  %v4860_v11 = vrot.slane %v11585_v8, 4 }
 0x259   : > { %3660 = vmatmul.mubr.bf16.gmra.mxu0 %v11591_v18  ;;  %v3026_v47 = vrot.slane %v11591_v18, 1  ;;  %v4344_v9 = vrot.slane %v11591_v18, 3  ;;  %v8780_v42 = vunpack.i.h.bf16 %v8778_v15  ;;  %v8779_v43 = vunpack.i.l.bf16 %v8778_v15 }
 0x25a   : > { %v3030_v57 = vsel %vm993_vm3, %v3028_v59, %v3029_v55  ;;  %4585 = vmatpush1.bf16.msra.mxu0 %v9190_v31  ;;  %v11625_v24 = vsel %vm4342_vm9, %v4346_v0, %v4347_v49  ;;  %v11642_v4 = vsel %vm1749_vm4, %v3833_v13, %v3834_v60  ;;  %v3831_v37 = vrot.slane %v11591_v18, 2 }
 0x25b   : > { %8194 = vmatprep.mubr.msk.bf16.mxu1 %vm3208_vm8, %v3030_v57  ;;  %v3027_v41 = vsel %vm993_vm3, %v3025_v6, %v3026_v47  ;;  %4586 = vmatprep.subr.bf16.mxu0 %v9195_v17  ;;  %v11637_v48 = vsel %vm4342_vm9, %v4343_v25, %v4344_v9  ;;  %v2865_v59 = vmax.f32 %v11016_v34, %v8780_v42  ;;  %v14396_v40 = vrot.slane %v11591_v18, 4  ;;  %v9163_v25 = vld [vmem:[%s14344_s2 + $0x1b0] ss:$8 sps:$4 sm:$0xff]  }
 0x25c   : > { %v2763_v0 = vsel %vm2757_vm7, %v8779_v43, %v8780_v42  ;;  %3300 = vmatmul.mubr.bf16.vlgmr.msra.gmra.mxu1 %v3027_v41  ;;  %v2862_v6 = vmax.f32 %v10975_v7, %v2762_v32  ;;  %v8783_v17 = vpop.permute.xlu0 %8782  ;;  %v11657_v34 = vld [vmem:[%s14344_s2 + $0x298] sm:$0xff]  ;;  %v11662_v13 = vsel %vm1749_vm4, %v3830_v62, %v3831_v37  ;;  %v4856_v7 = vrot.slane %v11563_v27, 4  ;;  %v9196_v42 = vld [vmem:[%s14344_s2 + $0x228] ss:$8 sps:$4 sm:$0xff]  }
 0x25d   : > { %v2864_v31 = vmax.f32 %v11003_v1, %v2763_v0  ;;  %4068 = vmatpush1.bf16.msra.mxu1 %v9160_v45  ;;  %v11665_v32 = vpack.c.bf16 %v2865_v59, %v2863_v51  ;;  %v8785_v1 = vunpack.i.h.bf16 %v8783_v17  ;;  %v8784_v15 = vunpack.i.l.bf16 %v8783_v17  ;;  %v9168_v45 = vld [vmem:[%s14344_s2 + $0x1a4] ss:$8 sps:$4 sm:$0xff]  }
 0x25e   : > { %4069 = vmatprep.subr.bf16.mxu1 %v9165_v20  ;;  %4587 = vmatpush1.bf16.msra.mxu0 %v9193_v30  ;;  %v11676_v62 = vsel %vm3258_vm6, %v4859_v46, %v4860_v11  ;;  %v9203_v51 = vld [vmem:[%s14344_s2 + $0x21c] ss:$8 sps:$4 sm:$0xff]   ;;  %v11686_v43 = vsel %vm3258_vm6, %v4856_v7, %v14396_v40  ;;  %v8349_v20 = vcombine.high %v11657_v34, %v11657_v34 }
 0x25f   : > { %14627 = vst [vmem:[#allocation24_spill] sm:$0xff] %v11676_v62  ;;  %v11678_v27 = vpack.c.bf16 %v2864_v31, %v2862_v6  ;;  %4588 = vmatprep.subr.bf16.mxu0 %v9198_v61  ;;  %14628 = vst [vmem:[#allocation30_spill] sm:$0xff] %v11686_v43  ;;  %v2867_v57 = vmax.f32 %v11042_v39, %v8785_v1  ;;  %8234 = vmatprep.mubr.msk.bf16.mxu0 %vm3208_vm8, %v11665_v32  ;;  %v14395_v46 = vrot.slane %v11665_v32, 1  ;;  %v9166_v39 = vld [vmem:[%s14344_s2 + $0x1a0] ss:$8 sps:$4 sm:$0xff]   ;;  %v14660_v43 = vld [vmem:[#allocation34_spill] sm:$0xff] }
 0x260   : > { %v14394_v30 = vrot.slane %v11665_v32, 3  ;;  %v2764_v41 = vsel %vm2757_vm7, %v8784_v15, %v8785_v1  ;;  %v8788_v61 = vpop.permute.xlu1 %8787  ;;  %v3838_v6 = vrot.slane %v11665_v32, 2  ;;  %v9201_v1 = vld [vmem:[%s14344_s2 + $0x218] ss:$8 sps:$4 sm:$0xff]  }
 0x261   : > { %3670 = vmatmul.mubr.bf16.gmra.mxu0 %v11678_v27  ;;  %v14392_v59 = vrot.slane %v11678_v27, 1  ;;  %4070 = vmatpush1.bf16.msra.mxu1 %v9163_v25  ;;  %v14393_v0 = vrot.slane %v11678_v27, 3  ;;  %v8790_v31 = vunpack.i.h.bf16 %v8788_v61  ;;  %v8789_v17 = vunpack.i.l.bf16 %v8788_v61  ;;  %v9171_v25 = vld [vmem:[%s14344_s2 + $0x194] ss:$8 sps:$4 sm:$0xff]  }
 0x262   : > { %v3034_v7 = vsel %vm993_vm3, %v3029_v55, %v14395_v46  ;;  %4071 = vmatprep.subr.bf16.mxu1 %v9168_v45  ;;  %4589 = vmatpush1.bf16.msra.mxu0 %v9196_v42  ;;  %v11719_v15 = vsel %vm4342_vm9, %v4347_v49, %v14394_v30  ;;  %v9206_v45 = vld [vmem:[%s14344_s2 + $0x20c] ss:$8 sps:$4 sm:$0xff]   ;;  %v11742_v42 = vsel %vm1749_vm4, %v3834_v60, %v3838_v6  ;;  %v9169_v60 = vld [vmem:[%s14344_s2 + $0x190] ss:$8 sps:$4 sm:$0xff]  }
 0x263   : > { %8195 = vmatprep.mubr.msk.bf16.mxu1 %vm3208_vm8, %v3034_v7  ;;  %v3032_v55 = vsel %vm993_vm3, %v3026_v47, %v14392_v59  ;;  %4590 = vmatprep.subr.bf16.mxu0 %v9203_v51  ;;  %v11735_v49 = vsel %vm4342_vm9, %v4344_v9, %v14393_v0  ;;  %v14401_v47 = vrot.slane %v11678_v27, 2  ;;  %v2869_v51 = vmax.f32 %v11066_v38, %v8790_v31  ;;  %v14629_v9 = vld [vmem:[#allocation18_spill] sm:$0xff]  ;;  %v14630_v30 = vld [vmem:[#allocation25_spill] sm:$0xff] }
 0x264   : > { %v2765_v61 = vsel %vm2757_vm7, %v8789_v17, %v8790_v31  ;;  %3310 = vmatmul.mubr.bf16.gmra.mxu1 %v3032_v55  ;;  %v14398_v7 = vrot.slane %v11665_v32, 4  ;;  %v14397_v59 = vrot.slane %v11678_v27, 4  ;;  %v2866_v0 = vmax.f32 %v14629_v9, %v2764_v41  ;;  %v8793_v40 = vpop.permute.xlu0 %8792  ;;  %v9204_v41 = vld [vmem:[%s14344_s2 + $0x208] ss:$8 sps:$4 sm:$0xff]  }
 0x265   : > { %v2868_v46 = vmax.f32 %v14630_v30, %v2765_v61  ;;  %4072 = vmatpush1.bf16.msra.mxu1 %v9166_v39  ;;  %v11759_v38 = vsel %vm1749_vm4, %v3831_v37, %v14401_v47  ;;  %v11761_v31 = vpack.c.bf16 %v2869_v51, %v2867_v57  ;;  %v8795_v17 = vunpack.i.h.bf16 %v8793_v40  ;;  %v9174_v30 = vld [vmem:[%s14344_s2 + $0x184] ss:$8 sps:$4 sm:$0xff]  }
 0x266   : > { %14631 = vst [vmem:[#allocation48_spill] sm:$0xff] %v11759_v38  ;;  %v8794_v55 = vunpack.i.l.bf16 %v8793_v40  ;;  %4073 = vmatprep.subr.bf16.mxu1 %v9171_v25  ;;  %4591 = vmatpush1.bf16.msra.mxu0 %v9201_v1  ;;  %v11774_v37 = vsel %vm3258_vm6, %v4860_v11, %v14398_v7  ;;  %v9209_v40 = vld [vmem:[%s14344_s2 + $0x1fc] ss:$8 sps:$4 sm:$0xff]   ;;  %v8348_v39 = vcombine.low %v11657_v34, %v11657_v34  ;;  %v14633_v25 = vrot.slane %v11591_v18, 4 }
 0x267   : > { %14632 = vst [vmem:[#allocation49_spill] sm:$0xff] %v11774_v37  ;;  %v11776_v57 = vpack.c.bf16 %v2868_v46, %v2866_v0  ;;  %4592 = vmatprep.subr.bf16.mxu0 %v9206_v45  ;;  %v2871_v8 = vmax.f32 %v11090_v2, %v8795_v17  ;;  %8235 = vmatprep.mubr.msk.bf16.mxu0 %vm3208_vm8, %v11761_v31  ;;  %v14399_v11 = vrot.slane %v11761_v31, 1  ;;  %v14635_v46 = vld [vmem:[#allocation71_spill] sm:$0xff]  ;;  %v14400_v45 = vrot.slane %v11761_v31, 3 }
 0x268   : > { %v11788_v1 = vsel %vm3258_vm6, %v14633_v25, %v14397_v59  ;;  %v4578_v0 = vand.u32 %v8349_v20, %v14635_v46  ;;  %v2766_v34 = vsel %vm2757_vm7, %v8794_v55, %v8795_v17  ;;  %v8798_v51 = vpop.permute.xlu1 %8797  ;;  %v9172_v2 = vld [vmem:[%s14344_s2 + $0x180] ss:$8 sps:$4 sm:$0xff]   ;;  %v14404_v9 = vrot.slane %v11761_v31, 2 }
 0x269   : > { %14634 = vst [vmem:[#allocation51_spill] sm:$0xff] %v11788_v1  ;;  %3680 = vmatmul.mubr.bf16.gmra.mxu0 %v11776_v57  ;;  %v14403_v18 = vrot.slane %v11776_v57, 1  ;;  %4074 = vmatpush1.bf16.msra.mxu1 %v9169_v60  ;;  %v14402_v61 = vrot.slane %v11776_v57, 3  ;;  %v8800_v25 = vunpack.i.h.bf16 %v8798_v51  ;;  %v8799_v20 = vunpack.i.l.bf16 %v8798_v51  ;;  %v9177_v60 = vld [vmem:[%s14344_s2 + $0x174] ss:$8 sps:$4 sm:$0xff]  }
 0x26a   : > { %v14636_v17 = vrot.slane %v11665_v32, 1  ;;  %4075 = vmatprep.subr.bf16.mxu1 %v9174_v30  ;;  %4593 = vmatpush1.bf16.msra.mxu0 %v9204_v41  ;;  %v9207_v59 = vld [vmem:[%s14344_s2 + $0x1f8] ss:$8 sps:$4 sm:$0xff]   ;;  %v14637_v51 = vrot.slane %v11665_v32, 3  ;;  %v14638_v30 = vrot.slane %v11678_v27, 1  ;;  %v14639_v41 = vrot.slane %v11678_v27, 3 }
 0x26b   : > { %4594 = vmatprep.subr.bf16.mxu0 %v9209_v40  ;;  %v2767_v40 = vsel %vm2757_vm7, %v8799_v20, %v8800_v25  ;;  %v14644_v20 = vrot.slane %v11678_v27, 2 }
 0x26c   : > { %v3038_v55 = vsel %vm993_vm3, %v14636_v17, %v14399_v11  ;;  %v11820_v7 = vsel %vm4342_vm9, %v14637_v51, %v14400_v45  ;;  %v3036_v17 = vsel %vm993_vm3, %v14638_v30, %v14403_v18  ;;  %v11833_v11 = vsel %vm4342_vm9, %v14639_v41, %v14402_v61  ;;  %v14641_v45 = vld [vmem:[#allocation21_spill] sm:$0xff]  ;;  %v14642_v18 = vld [vmem:[#allocation20_spill] sm:$0xff]  ;;  %v8803_v37 = vpop.permute.xlu0 %8802 }
 0x26d   : > { %8196 = vmatprep.mubr.msk.bf16.mxu1 %vm3208_vm8, %v3038_v55  ;;  %v11840_v55 = vsel %vm1749_vm4, %v3838_v6, %v14404_v9  ;;  %v14406_v51 = vrot.slane %v11776_v57, 2  ;;  %v2873_v47 = vmax.f32 %v14641_v45, %v8800_v25  ;;  %v11848_v30 = vld [vmem:[%s14344_s2 + $0x1f0] sm:$0xff]  ;;  %v14405_v41 = vrot.slane %v11761_v31, 4  ;;  %v14643_v6 = vld [vmem:[#allocation27_spill] sm:$0xff]  ;;  %4076 = vmatpush1.bf16.msra.mxu1 %v9172_v2 }
 0x26e   : > { %14640 = vst [vmem:[#allocation50_spill] sm:$0xff] %v11840_v55  ;;  %3320 = vmatmul.mubr.bf16.gmra.mxu1 %v3036_v17  ;;  %v2870_v1 = vmax.f32 %v14642_v18, %v2766_v34  ;;  %v2872_v9 = vmax.f32 %v14643_v6, %v2767_v40  ;;  %v9175_v45 = vld [vmem:[%s14344_s2 + $0x170] ss:$8 sps:$4 sm:$0xff]   ;;  %v4575_v25 = vand.u32 %v8348_v39, %v14635_v46  ;;  %v8805_v34 = vunpack.i.h.bf16 %v8803_v37  ;;  %v9180_v2 = vld [vmem:[%s14344_s2 + $0x164] ss:$8 sps:$4 sm:$0xff]  }
 0x26f   : > { %v11863_v17 = vsel %vm1749_vm4, %v14644_v20, %v14406_v51  ;;  %v11865_v61 = vpack.c.bf16 %v2873_v47, %v2871_v8  ;;  %v8804_v18 = vunpack.i.l.bf16 %v8803_v37  ;;  %4077 = vmatprep.subr.bf16.mxu1 %v9177_v60  ;;  %4595 = vmatpush1.bf16.msra.mxu0 %v9207_v59  ;;  %v14646_v39 = vrot.slane %v11665_v32, 4  ;;  %v9217_v37 = vld [vmem:[%s14344_s2 + $0x28c] ss:$8 sps:$4 sm:$0xff]   ;;  %v9215_v51 = vld [vmem:[%s14344_s2 + $0x288] ss:$8 sps:$4 sm:$0xff]  }
 0x270   : > { %14645 = vst [vmem:[#allocation26_spill] sm:$0xff] %v11863_v17  ;;  %v11877_v6 = vpack.c.bf16 %v2872_v9, %v2870_v1  ;;  %v8289_v47 = vcombine.low %v11848_v30, %v11848_v30  ;;  %4606 = vmatprep.subr.bf16.mxu0 %v4578_v0  ;;  %v14648_v8 = vrot.slane %v11776_v57, 4  ;;  %v14649_v59 = vrot.slane %v11678_v27, 4  ;;  %v8808_v27 = vpop.permute.xlu1 %8807  ;;  %v14661_v17 = vld [vmem:[#allocation33_spill] sm:$0xff] }
 0x271   : > { %v11875_v40 = vsel %vm3258_vm6, %v14646_v39, %v14405_v41  ;;  %v2875_v32 = vmax.f32 %v11138_v19, %v8805_v34  ;;  %8236 = vmatprep.mubr.msk.bf16.mxu0 %vm3208_vm8, %v11865_v61  ;;  %v14407_v1 = vrot.slane %v11865_v61, 1  ;;  %v8290_v0 = vcombine.high %v11848_v30, %v11848_v30  ;;  %4078 = vmatpush1.bf16.msra.mxu1 %v9175_v45  ;;  %v9178_v19 = vld [vmem:[%s14344_s2 + $0x160] ss:$8 sps:$4 sm:$0xff]   ;;  %v9189_v45 = vld [vmem:[%s14344_s2 + $0x154] ss:$8 sps:$4 sm:$0xff]  }
 0x272   : > { %14647 = vst [vmem:[#allocation31_spill] sm:$0xff] %v11875_v40  ;;  %v11889_v60 = vsel %vm3258_vm6, %v14649_v59, %v14648_v8  ;;  %v14408_v9 = vrot.slane %v11865_v61, 3  ;;  %v2768_v20 = vsel %vm2757_vm7, %v8804_v18, %v8805_v34  ;;  %3690 = vmatmul.mubr.bf16.gmra.mxu0 %v11877_v6  ;;  %v4357_v8 = vrot.slane %v11877_v6, 3  ;;  %4079 = vmatprep.subr.bf16.mxu1 %v9180_v2 }
 0x273   : > { %14650 = vst [vmem:[#allocation53_spill] sm:$0xff] %v11889_v60  ;;  %v3846_v59 = vrot.slane %v11865_v61, 2  ;;  %v8810_v41 = vunpack.i.h.bf16 %v8808_v27  ;;  %v8809_v30 = vunpack.i.l.bf16 %v8808_v27  ;;  %v14651_v34 = vrot.slane %v11761_v31, 1  ;;  %4607 = vmatpush2.bf16.msra.mxu0 %v4575_v25  ;;  %v9220_v25 = vld [vmem:[%s14344_s2 + $0x27c] ss:$8 sps:$4 sm:$0xff]  }
 0x274   : > { %v14652_v27 = vrot.slane %v11761_v31, 3  ;;  %v14654_v2 = vrot.slane %v11877_v6, 1  ;;  %4608 = vmatprep.subr.bf16.mxu0 %v9217_v37  ;;  %v14656_v60 = vrot.slane %v11776_v57, 3  ;;  %v2874_v55 = vmax.f32 %v14661_v17, %v2768_v20  ;;  %v8813_v38 = vpop.permute.xlu0 %8812  ;;  %v9218_v17 = vld [vmem:[%s14344_s2 + $0x278] ss:$8 sps:$4 sm:$0xff]  }
 0x275   : > { %v3042_v18 = vsel %vm993_vm3, %v14651_v34, %v14407_v1  ;;  %v14655_v34 = vrot.slane %v11776_v57, 1  ;;  %v2877_v62 = vmax.f32 %v14660_v43, %v8810_v41  ;;  %v2769_v37 = vsel %vm2757_vm7, %v8809_v30, %v8810_v41  ;;  %4080 = vmatpush1.bf16.msra.mxu1 %v9178_v19 }
 0x276   : > { %v11922_v39 = vsel %vm4342_vm9, %v14652_v27, %v14408_v9  ;;  %8197 = vmatprep.mubr.msk.bf16.mxu1 %vm3208_vm8, %v3042_v18  ;;  %v11936_v40 = vsel %vm4342_vm9, %v14656_v60, %v4357_v8  ;;  %v14658_v27 = vrot.slane %v11761_v31, 2  ;;  %v3844_v9 = vrot.slane %v11877_v6, 2  ;;  %v14662_v60 = vld [vmem:[#allocation69_spill] sm:$0xff]  ;;  %4081 = vmatprep.subr.bf16.mxu1 %v9189_v45 }
 0x277   : > { %14653 = vst [vmem:[#allocation54_spill] sm:$0xff] %v11922_v39  ;;  %v3040_v1 = vsel %vm993_vm3, %v14655_v34, %v14654_v2  ;;  %14657 = vst [vmem:[#allocation56_spill] sm:$0xff] %v11936_v40  ;;  %v4872_v2 = vrot.slane %v11865_v61, 4  ;;  %v4870_v34 = vrot.slane %v11877_v6, 4  ;;  %v2876_v40 = vmax.f32 %v14662_v60, %v2769_v37  ;;  %4609 = vmatpush2.bf16.msra.mxu0 %v9215_v51 }
 0x278   : > { %v11941_v18 = vsel %vm1749_vm4, %v14658_v27, %v3846_v59  ;;  %3330 = vmatmul.mubr.bf16.gmra.mxu1 %v3040_v1  ;;  %v9187_v27 = vld [vmem:[%s14344_s2 + $0x150] ss:$8 sps:$4 sm:$0xff]   ;;  %v14663_v43 = vrot.slane %v11776_v57, 2  ;;  %v11959_v1 = vpack.c.bf16 %v2877_v62, %v2875_v32  ;;  %v8815_v30 = vunpack.i.h.bf16 %v8813_v38  ;;  %4610 = vmatprep.subr.bf16.mxu0 %v9220_v25 }
 0x279   : > { %14659 = vst [vmem:[#allocation55_spill] sm:$0xff] %v11941_v18  ;;  %v4065_v18 = vand.u32 %v8290_v0, %v14635_v46  ;;  %v8814_v39 = vunpack.i.l.bf16 %v8813_v38  ;;  %v14664_v20 = vrot.slane %v11761_v31, 4  ;;  %v11969_v0 = vpack.c.bf16 %v2876_v40, %v2874_v55  ;;  %v8818_v40 = vpop.permute.xlu1 %8817  ;;  %4082 = vmatpush1.bf16.msra.mxu1 %v9187_v27 }
 0x27a   : > { %v11957_v41 = vsel %vm1749_vm4, %v14663_v43, %v3844_v9  ;;  %v14666_v37 = vrot.slane %v11776_v57, 4  ;;  %v2879_v38 = vmax.f32 %v11186_v52, %v8815_v30  ;;  %8237 = vmatprep.mubr.msk.bf16.mxu0 %vm3208_vm8, %v11959_v1  ;;  %v3045_v51 = vrot.slane %v11959_v1, 1 }
 0x27b   : > { %v11967_v19 = vsel %vm3258_vm6, %v14664_v20, %v4872_v2  ;;  %v4062_v31 = vand.u32 %v8289_v47, %v14635_v46  ;;  %v4363_v32 = vrot.slane %v11959_v1, 3  ;;  %v2770_v55 = vsel %vm2757_vm7, %v8814_v39, %v8815_v30  ;;  %3700 = vmatmul.mubr.bf16.gmra.mxu0 %v11969_v0  ;;  %4093 = vmatprep.subr.bf16.mxu1 %v4065_v18  ;;  %v9212_v39 = vld [vmem:[%s14344_s2 + $0x1e4] ss:$8 sps:$4 sm:$0xff]  }
 0x27c   : > { %14665 = vst [vmem:[#allocation5_spill] sm:$0xff] %v11967_v19  ;;  %v11974_v62 = vsel %vm3258_vm6, %v14666_v37, %v4870_v34  ;;  %v3043_v57 = vrot.slane %v11969_v0, 1  ;;  %v4361_v45 = vrot.slane %v11969_v0, 3  ;;  %v3850_v52 = vrot.slane %v11959_v1, 2  ;;  %4611 = vmatpush2.bf16.msra.mxu0 %v9218_v17  ;;  %v8823_v46 = vpop.permute.xlu0 %8822 }
 0x27d   : > { %14667 = vst [vmem:[#allocation32_spill] sm:$0xff] %v11974_v62  ;;  %v8820_v25 = vunpack.i.h.bf16 %v8818_v40  ;;  %v8819_v60 = vunpack.i.l.bf16 %v8818_v40  ;;  %v14668_v43 = vrot.slane %v11865_v61, 1  ;;  %v14669_v30 = vrot.slane %v11865_v61, 3  ;;  %4094 = vmatpush2.bf16.msra.mxu1 %v4062_v31 }
 0x27e   : > { %v14670_v20 = vrot.slane %v11877_v6, 1  ;;  %v12003_v40 = vsel %vm4342_vm9, %v4357_v8, %v4361_v45  ;;  %v12006_v18 = vsel %vm1749_vm4, %v3846_v59, %v3850_v52  ;;  %v14671_v17 = vmov 0   ;;  %v14673_v8 = vld [vmem:[#allocation36_spill] sm:$0xff]  ;;  %4095 = vmatprep.subr.bf16.mxu1 %v9212_v39 }
 0x27f   : > { %v3046_v47 = vsel %vm993_vm3, %v14668_v43, %v3045_v51  ;;  %v11996_v27 = vsel %vm4342_vm9, %v14669_v30, %v4363_v32  ;;  %v3848_v43 = vrot.slane %v11969_v0, 2  ;;  %6420 = vmatprep.subr.bf16.mxu0 %v14671_v17  ;;  %v2881_v61 = vmax.f32 %v11210_v5, %v8820_v25  ;;  %v9210_v59 = vld [vmem:[%s14344_s2 + $0x1e0] ss:$8 sps:$4 sm:$0xff]  }
 0x280   : > { %8198 = vmatprep.mubr.msk.bf16.mxu1 %vm3208_vm8, %v3046_v47  ;;  %v3044_v37 = vsel %vm993_vm3, %v14670_v20, %v3043_v57  ;;  %v2771_v30 = vsel %vm2757_vm7, %v8819_v60, %v8820_v25  ;;  %v4876_v47 = vrot.slane %v11959_v1, 4  ;;  %v4874_v6 = vrot.slane %v11969_v0, 4  ;;  %v14672_v20 = vld [vmem:[#allocation70_spill] sm:$0xff] }
 0x281   : > { %3340 = vmatmul.mubr.bf16.gmra.mxu1 %v3044_v37  ;;  %v2878_v62 = vmax.f32 %v14672_v20, %v2770_v55  ;;  %v2880_v19 = vmax.f32 %v14673_v8, %v2771_v30  ;;  %v12020_v17 = vsel %vm1749_vm4, %v3844_v9, %v3848_v43  ;;  %v12022_v5 = vpack.c.bf16 %v2881_v61, %v2879_v38  ;;  %v9223_v1 = vld [vmem:[%s14344_s2 + $0x1d4] ss:$8 sps:$4 sm:$0xff]  }
 0x282   : > { %14674 = vst [vmem:[#allocation57_spill] sm:$0xff] %v12020_v17  ;;  %v8825_v25 = vunpack.i.h.bf16 %v8823_v46  ;;  %v8824_v60 = vunpack.i.l.bf16 %v8823_v46  ;;  %v12028_v0 = vsel %vm3258_vm6, %v4872_v2, %v4876_v47  ;;  %v12033_v55 = vsel %vm3258_vm6, %v4870_v34, %v4874_v6  ;;  %v8828_v2 = vpop.permute.xlu1 %8827  ;;  %4096 = vmatpush2.bf16.msra.mxu1 %v9210_v59  ;;  %v9221_v34 = vld [vmem:[%s14344_s2 + $0x1d0] ss:$8 sps:$4 sm:$0xff]   ;;  %v9226_v20 = vld [vmem:[%s14344_s2 + $0x314] ss:$8 sps:$4 sm:$0xff]  }
 0x283   : > { %14675 = vst [vmem:[#allocation58_spill] sm:$0xff] %v12028_v0  ;;  %v12030_v31 = vpack.c.bf16 %v2880_v19, %v2878_v62  ;;  %14676 = vst [vmem:[#allocation60_spill] sm:$0xff] %v12033_v55  ;;  %8238 = vmatprep.mubr.msk.bf16.mxu0 %vm3208_vm8, %v12022_v5  ;;  %v3049_v46 = vrot.slane %v12022_v5, 1  ;;  %v4367_v38 = vrot.slane %v12022_v5, 3  ;;  %v3854_v62 = vrot.slane %v12022_v5, 2  ;;  %4097 = vmatprep.subr.bf16.mxu1 %v9223_v1 }
 0x284   : > { %v2883_v9 = vmax.f32 %v11234_v12, %v8825_v25  ;;  %v2772_v39 = vsel %vm2757_vm7, %v8824_v60, %v8825_v25  ;;  %v8830_v37 = vunpack.i.h.bf16 %v8828_v2  ;;  %v8829_v61 = vunpack.i.l.bf16 %v8828_v2 }
 0x285   : > { %3710 = vmatmul.mubr.bf16.gmra.mxu0 %v12030_v31  ;;  %v3047_v19 = vrot.slane %v12030_v31, 1  ;;  %v4365_v12 = vrot.slane %v12030_v31, 3  ;;  %v3050_v30 = vsel %vm993_vm3, %v3045_v51, %v3049_v46  ;;  %v12053_v8 = vsel %vm4342_vm9, %v4363_v32, %v4367_v38 }
 0x286   : > { %8199 = vmatprep.mubr.msk.bf16.mxu1 %vm3208_vm8, %v3050_v30  ;;  %v12061_v60 = vsel %vm1749_vm4, %v3850_v52, %v3854_v62  ;;  %v3852_v51 = vrot.slane %v12030_v31, 2  ;;  %v2885_v1 = vmax.f32 %v11258_v16, %v8830_v37  ;;  %v2773_v2 = vsel %vm2757_vm7, %v8829_v61, %v8830_v37  ;;  %v14679_v30 = vld [vmem:[#allocation35_spill] sm:$0xff]  ;;  %4098 = vmatpush2.bf16.msra.mxu1 %v9221_v34 }
 0x287   : > { %v3048_v59 = vsel %vm993_vm3, %v3043_v57, %v3047_v19  ;;  %v12058_v25 = vsel %vm4342_vm9, %v4361_v45, %v4365_v12  ;;  %14678 = vst [vmem:[#allocation6_spill] sm:$0xff] %v12061_v60  ;;  %v4880_v32 = vrot.slane %v12022_v5, 4  ;;  %v4878_v55 = vrot.slane %v12030_v31, 4  ;;  %v14680_v57 = vld [vmem:[#allocation22_spill] sm:$0xff]  ;;  %v8833_v45 = vpop.permute.xlu0 %8832  ;;  %5093 = vmatprep.subr.bf16.mxu1 %v9226_v20 }
 0x288   : > { %14677 = vst [vmem:[#allocation59_spill] sm:$0xff] %v12058_v25  ;;  %v2882_v0 = vmax.f32 %v14679_v30, %v2772_v39  ;;  %v2884_v17 = vmax.f32 %v14680_v57, %v2773_v2  ;;  %v12071_v52 = vsel %vm1749_vm4, %v3848_v43, %v3852_v51  ;;  %v12073_v60 = vpack.c.bf16 %v2885_v1, %v2883_v9 }
 0x289   : > { %3350 = vmatmul.mubr.bf16.gmra.mxu1 %v3048_v59  ;;  %v8835_v25 = vunpack.i.h.bf16 %v8833_v45  ;;  %v8834_v16 = vunpack.i.l.bf16 %v8833_v45  ;;  %v12076_v37 = vsel %vm3258_vm6, %v4876_v47, %v4880_v32  ;;  %v12081_v31 = vsel %vm3258_vm6, %v4874_v6, %v4878_v55  ;;  %v8838_v47 = vpop.permute.xlu1 %8837 }
 0x28a   : > { %14681 = vst [vmem:[#allocation37_spill] sm:$0xff] %v12076_v37  ;;  %v12078_v5 = vpack.c.bf16 %v2884_v17, %v2882_v0  ;;  %14682 = vst [vmem:[#allocation61_spill] sm:$0xff] %v12081_v31  ;;  %8239 = vmatprep.mubr.msk.bf16.mxu0 %vm3208_vm8, %v12073_v60  ;;  %v3053_v43 = vrot.slane %v12073_v60, 1  ;;  %v4371_v9 = vrot.slane %v12073_v60, 3  ;;  %v3858_v6 = vrot.slane %v12073_v60, 2 }
 0x28b   : > { %v2887_v39 = vmax.f32 %v11282_v10, %v8835_v25  ;;  %v2774_v34 = vsel %vm2757_vm7, %v8834_v16, %v8835_v25  ;;  %v8840_v61 = vunpack.i.h.bf16 %v8838_v47  ;;  %v8839_v10 = vunpack.i.l.bf16 %v8838_v47  ;;  %v14684_v16 = vld [vmem:[#allocation28_spill] sm:$0xff] }
 0x28c   : > { %v3051_v17 = vrot.slane %v12078_v5, 1  ;;  %v4369_v0 = vrot.slane %v12078_v5, 3  ;;  %v3054_v20 = vsel %vm993_vm3, %v3049_v46, %v3053_v43  ;;  %v12095_v59 = vsel %vm4342_vm9, %v4367_v38, %v4371_v9 }
 0x28d   : > { %3720 = vmatmul.mubr.bf16.gmra.mxu0 %v12078_v5  ;;  %8200 = vmatprep.mubr.msk.bf16.mxu1 %vm3208_vm8, %v3054_v20  ;;  %v12103_v2 = vsel %vm1749_vm4, %v3854_v62, %v3858_v6  ;;  %v3856_v30 = vrot.slane %v12078_v5, 2  ;;  %v2889_v57 = vmax.f32 %v11306_v22, %v8840_v61  ;;  %v2775_v45 = vsel %vm2757_vm7, %v8839_v10, %v8840_v61 }
 0x28e   : > { %v3052_v25 = vsel %vm993_vm3, %v3047_v19, %v3051_v17  ;;  %v12100_v1 = vsel %vm4342_vm9, %v4365_v12, %v4369_v0  ;;  %14683 = vst [vmem:[#allocation62_spill] sm:$0xff] %v12103_v2  ;;  %v4884_v46 = vrot.slane %v12073_v60, 4  ;;  %v4882_v38 = vrot.slane %v12078_v5, 4  ;;  %v14685_v19 = vld [vmem:[#allocation38_spill] sm:$0xff]  ;;  %v8843_v12 = vpop.permute.xlu0 %8842 }
 0x28f   : > { %v2886_v47 = vmax.f32 %v14684_v16, %v2774_v34  ;;  %v2888_v20 = vmax.f32 %v14685_v19, %v2775_v45  ;;  %v12113_v31 = vsel %vm1749_vm4, %v3852_v51, %v3856_v30  ;;  %v12115_v62 = vpack.c.bf16 %v2889_v57, %v2887_v39 }
 0x290   : > { %14686 = vst [vmem:[#allocation64_spill] sm:$0xff] %v12113_v31  ;;  %v8845_v37 = vunpack.i.h.bf16 %v8843_v12  ;;  %v8844_v2 = vunpack.i.l.bf16 %v8843_v12  ;;  %v12118_v22 = vsel %vm3258_vm6, %v4880_v32, %v4884_v46  ;;  %v12123_v60 = vsel %vm3258_vm6, %v4878_v55, %v4882_v38  ;;  %v8848_v32 = vpop.permute.xlu1 %8847 }
 0x291   : > { %3360 = vmatmul.mubr.bf16.gmra.mxu1 %v3052_v25  ;;  %14687 = vst [vmem:[#allocation63_spill] sm:$0xff] %v12118_v22  ;;  %v12120_v61 = vpack.c.bf16 %v2888_v20, %v2886_v47  ;;  %14688 = vst [vmem:[#allocation10_spill] sm:$0xff] %v12123_v60  ;;  %8240 = vmatprep.mubr.msk.bf16.mxu0 %vm3208_vm8, %v12115_v62  ;;  %v3057_v51 = vrot.slane %v12115_v62, 1  ;;  %v4375_v39 = vrot.slane %v12115_v62, 3  ;;  %v3862_v55 = vrot.slane %v12115_v62, 2 }
 0x292   : > { %v2891_v5 = vmax.f32 %v11330_v44, %v8845_v37  ;;  %v2776_v34 = vsel %vm2757_vm7, %v8844_v2, %v8845_v37  ;;  %v8850_v57 = vunpack.i.h.bf16 %v8848_v32  ;;  %v8849_v44 = vunpack.i.l.bf16 %v8848_v32  ;;  %v14690_v32 = vld [vmem:[#allocation39_spill] sm:$0xff] }
 0x293   : > { %v3055_v10 = vrot.slane %v12120_v61, 1  ;;  %v4373_v25 = vrot.slane %v12120_v61, 3  ;;  %v3058_v45 = vsel %vm993_vm3, %v3053_v43, %v3057_v51  ;;  %v12137_v16 = vsel %vm4342_vm9, %v4371_v9, %v4375_v39 }
 0x294   : > { %8201 = vmatprep.mubr.msk.bf16.mxu1 %vm3208_vm8, %v3058_v45  ;;  %v12145_v47 = vsel %vm1749_vm4, %v3858_v6, %v3862_v55  ;;  %v3860_v19 = vrot.slane %v12120_v61, 2  ;;  %v2893_v20 = vmax.f32 %v11354_v58, %v8850_v57  ;;  %v2777_v12 = vsel %vm2757_vm7, %v8849_v44, %v8850_v57 }
 0x295   : > { %3730 = vmatmul.mubr.bf16.gmra.mxu0 %v12120_v61  ;;  %v3056_v37 = vsel %vm993_vm3, %v3051_v17, %v3055_v10  ;;  %v12142_v2 = vsel %vm4342_vm9, %v4369_v0, %v4373_v25  ;;  %14689 = vst [vmem:[#allocation42_spill] sm:$0xff] %v12145_v47  ;;  %v4888_v43 = vrot.slane %v12115_v62, 4  ;;  %v4886_v9 = vrot.slane %v12120_v61, 4  ;;  %v14691_v17 = vld [vmem:[#allocation41_spill] sm:$0xff]  ;;  %v8853_v0 = vpop.permute.xlu0 %8852 }
 0x296   : > { %v2890_v45 = vmax.f32 %v14690_v32, %v2776_v34  ;;  %v2892_v60 = vmax.f32 %v14691_v17, %v2777_v12  ;;  %v12155_v22 = vsel %vm1749_vm4, %v3856_v30, %v3860_v19  ;;  %v12157_v6 = vpack.c.bf16 %v2893_v20, %v2891_v5 }
 0x297   : > { %14692 = vst [vmem:[#allocation7_spill] sm:$0xff] %v12155_v22  ;;  %v8855_v47 = vunpack.i.h.bf16 %v8853_v0  ;;  %v8854_v31 = vunpack.i.l.bf16 %v8853_v0  ;;  %v12160_v58 = vsel %vm3258_vm6, %v4884_v46, %v4888_v43  ;;  %v12165_v62 = vsel %vm3258_vm6, %v4882_v38, %v4886_v9 }
 0x298   : > { %14693 = vst [vmem:[#allocation8_spill] sm:$0xff] %v12160_v58  ;;  %v12162_v57 = vpack.c.bf16 %v2892_v60, %v2890_v45  ;;  %14694 = vst [vmem:[#allocation65_spill] sm:$0xff] %v12165_v62  ;;  %8241 = vmatprep.mubr.msk.bf16.mxu0 %vm3208_vm8, %v12157_v6  ;;  %v3061_v30 = vrot.slane %v12157_v6, 1  ;;  %v4379_v5 = vrot.slane %v12157_v6, 3  ;;  %v8858_v46 = vpop.permute.xlu1 %8857  ;;  %v3866_v38 = vrot.slane %v12157_v6, 2 }
 0x299   : > { %3370 = vmatmul.mubr.bf16.gmra.mxu1 %v3056_v37  ;;  %v2895_v61 = vmax.f32 %v11378_v23, %v8855_v47  ;;  %v2778_v34 = vsel %vm2757_vm7, %v8854_v31, %v8855_v47  ;;  %v8860_v37 = vunpack.i.h.bf16 %v8858_v46  ;;  %v8859_v23 = vunpack.i.l.bf16 %v8858_v46  ;;  %v14696_v46 = vld [vmem:[#allocation40_spill] sm:$0xff] }
 0x29a   : > { %v3059_v60 = vrot.slane %v12162_v57, 1  ;;  %v4377_v44 = vrot.slane %v12162_v57, 3  ;;  %v3062_v20 = vsel %vm993_vm3, %v3057_v51, %v3061_v30  ;;  %v12179_v12 = vsel %vm4342_vm9, %v4375_v39, %v4379_v5 }
 0x29b   : > { %8202 = vmatprep.mubr.msk.bf16.mxu1 %vm3208_vm8, %v3062_v20  ;;  %v12187_v32 = vsel %vm1749_vm4, %v3862_v55, %v3866_v38  ;;  %v3864_v45 = vrot.slane %v12162_v57, 2  ;;  %v2897_v17 = vmax.f32 %v11402_v21, %v8860_v37  ;;  %v2779_v0 = vsel %vm2757_vm7, %v8859_v23, %v8860_v37 }
 0x29c   : > { %v3060_v31 = vsel %vm993_vm3, %v3055_v10, %v3059_v60  ;;  %v12184_v47 = vsel %vm4342_vm9, %v4373_v25, %v4377_v44  ;;  %14695 = vst [vmem:[#allocation9_spill] sm:$0xff] %v12187_v32  ;;  %v4892_v51 = vrot.slane %v12157_v6, 4  ;;  %v4890_v39 = vrot.slane %v12162_v57, 4  ;;  %v14697_v10 = vld [vmem:[#allocation72_spill] sm:$0xff]  ;;  %v8863_v25 = vpop.permute.xlu0 %8862 }
 0x29d   : > { %3740 = vmatmul.mubr.bf16.gmra.mxu0 %v12162_v57  ;;  %v2894_v20 = vmax.f32 %v14696_v46, %v2778_v34  ;;  %v2896_v62 = vmax.f32 %v14697_v10, %v2779_v0  ;;  %v12197_v58 = vsel %vm1749_vm4, %v3860_v19, %v3864_v45  ;;  %v12199_v55 = vpack.c.bf16 %v2897_v17, %v2895_v61  ;;  %v14701_v57 = vld [vmem:[#allocation23_spill] sm:$0xff] }
 0x29e   : > { %14698 = vst [vmem:[#allocation14_spill] sm:$0xff] %v12197_v58  ;;  %v8865_v32 = vunpack.i.h.bf16 %v8863_v25  ;;  %v8864_v22 = vunpack.i.l.bf16 %v8863_v25  ;;  %v12202_v21 = vsel %vm3258_vm6, %v4888_v43, %v4892_v51  ;;  %v12207_v6 = vsel %vm3258_vm6, %v4886_v9, %v4890_v39 }
 0x29f   : > { %14699 = vst [vmem:[#allocation47_spill] sm:$0xff] %v12202_v21  ;;  %v12204_v37 = vpack.c.bf16 %v2896_v62, %v2894_v20  ;;  %14700 = vst [vmem:[#allocation11_spill] sm:$0xff] %v12207_v6  ;;  %8242 = vmatprep.mubr.msk.bf16.mxu0 %vm3208_vm8, %v12199_v55  ;;  %v3065_v19 = vrot.slane %v12199_v55, 1  ;;  %v4383_v61 = vrot.slane %v12199_v55, 3  ;;  %v3870_v9 = vrot.slane %v12199_v55, 2 }
 0x2a0   : > { %v2899_v34 = vmax.f32 %v14701_v57, %v8865_v32  ;;  %v2780_v23 = vsel %vm2757_vm7, %v8864_v22, %v8865_v32  ;;  %v14705_v57 = vld [vmem:[#allocation43_spill] sm:$0xff] }
 0x2a1   : > { %3380 = vmatmul.mubr.bf16.gmra.mxu1 %v3060_v31  ;;  %v8868_v31 = vpop.permute.xlu1 %8867  ;;  %v3063_v43 = vrot.slane %v12204_v37, 1  ;;  %v4381_v62 = vrot.slane %v12204_v37, 3  ;;  %v3066_v46 = vsel %vm993_vm3, %v3061_v30, %v3065_v19  ;;  %v12221_v20 = vsel %vm4342_vm9, %v4379_v5, %v4383_v61 }
 0x2a2   : > { %v8870_v17 = vunpack.i.h.bf16 %v8868_v31  ;;  %v8869_v0 = vunpack.i.l.bf16 %v8868_v31  ;;  %14702 = vst [vmem:[#allocation12_spill] sm:$0xff] %v12221_v20  ;;  %8203 = vmatprep.mubr.msk.bf16.mxu1 %vm3208_vm8, %v3066_v46  ;;  %v12229_v10 = vsel %vm1749_vm4, %v3866_v38, %v3870_v9  ;;  %v3868_v25 = vrot.slane %v12204_v37, 2  ;;  %v14706_v46 = vld [vmem:[#allocation73_spill] sm:$0xff] }
 0x2a3   : > { %v3064_v22 = vsel %vm993_vm3, %v3059_v60, %v3063_v43  ;;  %v12226_v32 = vsel %vm4342_vm9, %v4377_v44, %v4381_v62  ;;  %14704 = vst [vmem:[#allocation13_spill] sm:$0xff] %v12229_v10  ;;  %v4896_v30 = vrot.slane %v12199_v55, 4  ;;  %v4894_v5 = vrot.slane %v12204_v37, 4  ;;  %v14707_v60 = vld [vmem:[#allocation29_spill] sm:$0xff] }
 0x2a4   : > { %14703 = vst [vmem:[#allocation66_spill] sm:$0xff] %v12226_v32  ;;  %v2901_v6 = vmax.f32 %v14705_v57, %v8870_v17  ;;  %v2781_v31 = vsel %vm2757_vm7, %v8869_v0, %v8870_v17  ;;  %v2898_v21 = vmax.f32 %v14706_v46, %v2780_v23  ;;  %v8873_v44 = vpop.permute.xlu0 %8872  ;;  %v12239_v32 = vsel %vm1749_vm4, %v3864_v45, %v3868_v25 }
 0x2a5   : > { %3750 = vmatmul.mubr.bf16.gmra.mxu0 %v12204_v37  ;;  %v2900_v58 = vmax.f32 %v14707_v60, %v2781_v31  ;;  %14708 = vst [vmem:[#allocation19_spill] sm:$0xff] %v12239_v32  ;;  %v8875_v10 = vunpack.i.h.bf16 %v8873_v44  ;;  %v8874_v20 = vunpack.i.l.bf16 %v8873_v44  ;;  %v12244_v57 = vsel %vm3258_vm6, %v4892_v51, %v4896_v30  ;;  %v14713_v60 = vld [vmem:[#allocation45_spill] sm:$0xff] }
 0x2a6   : > { %v12241_v38 = vpack.c.bf16 %v2901_v6, %v2899_v34  ;;  %14709 = vst [vmem:[#allocation52_spill] sm:$0xff] %v12244_v57  ;;  %v12249_v55 = vsel %vm3258_vm6, %v4890_v39, %v4894_v5 }
 0x2a7   : > { %v12246_v17 = vpack.c.bf16 %v2900_v58, %v2898_v21  ;;  %14710 = vst [vmem:[#allocation16_spill] sm:$0xff] %v12249_v55  ;;  %v2903_v37 = vmax.f32 %v11471_v36, %v8875_v10  ;;  %v2782_v34 = vsel %vm2757_vm7, %v8874_v20, %v8875_v10 }
 0x2a8   : > { %8243 = vmatprep.mubr.msk.bf16.mxu0 %vm3208_vm8, %v12241_v38  ;;  %v3069_v45 = vrot.slane %v12241_v38, 1  ;;  %v4387_v6 = vrot.slane %v12241_v38, 3  ;;  %v8878_v23 = vpop.permute.xlu1 %8877  ;;  %v3874_v39 = vrot.slane %v12241_v38, 2 }
 0x2a9   : > { %3390 = vmatmul.mubr.bf16.gmra.mxu1 %v3064_v22  ;;  %v3067_v58 = vrot.slane %v12246_v17, 1  ;;  %v4385_v51 = vrot.slane %v12246_v17, 3  ;;  %v8880_v21 = vunpack.i.h.bf16 %v8878_v23  ;;  %v8879_v36 = vunpack.i.l.bf16 %v8878_v23 }
 0x2aa   : > { %v3070_v0 = vsel %vm993_vm3, %v3065_v19, %v3069_v45  ;;  %v12263_v22 = vsel %vm4342_vm9, %v4383_v61, %v4387_v6  ;;  %v12271_v31 = vsel %vm1749_vm4, %v3870_v9, %v3874_v39  ;;  %v3872_v46 = vrot.slane %v12246_v17, 2 }
 0x2ab   : > { %8204 = vmatprep.mubr.msk.bf16.mxu1 %vm3208_vm8, %v3070_v0  ;;  %v3068_v20 = vsel %vm993_vm3, %v3063_v43, %v3067_v58  ;;  %v12268_v10 = vsel %vm4342_vm9, %v4381_v62, %v4385_v51  ;;  %14712 = vst [vmem:[#allocation68_spill] sm:$0xff] %v12271_v31  ;;  %v2905_v44 = vmax.f32 %v14713_v60, %v8880_v21  ;;  %v4900_v19 = vrot.slane %v12241_v38, 4  ;;  %v14714_v0 = vld [vmem:[#allocation44_spill] sm:$0xff]  ;;  %v14715_v43 = vld [vmem:[#allocation46_spill] sm:$0xff] }
 0x2ac   : > { %14711 = vst [vmem:[#allocation17_spill] sm:$0xff] %v12268_v10  ;;  %v2783_v23 = vsel %vm2757_vm7, %v8879_v36, %v8880_v21  ;;  %v4898_v61 = vrot.slane %v12246_v17, 4  ;;  %v2902_v55 = vmax.f32 %v14714_v0, %v2782_v34  ;;  %v8883_v62 = vpop.permute.xlu0 %8882  ;;  %v12281_v32 = vsel %vm1749_vm4, %v3868_v25, %v3872_v46 }
 0x2ad   : > { %3760 = vmatmul.mubr.bf16.gmra.mxu0 %v12246_v17  ;;  %v2904_v57 = vmax.f32 %v14715_v43, %v2783_v23  ;;  %v12283_v9 = vpack.c.bf16 %v2905_v44, %v2903_v37  ;;  %v8885_v31 = vunpack.i.h.bf16 %v8883_v62  ;;  %v8884_v10 = vunpack.i.l.bf16 %v8883_v62 }
 0x2ae   : > { %v12286_v60 = vsel %vm3258_vm6, %v4896_v30, %v4900_v19  ;;  %v12291_v38 = vsel %vm3258_vm6, %v4894_v5, %v4898_v61 }
 0x2af   : > { %v12288_v21 = vpack.c.bf16 %v2904_v57, %v2902_v55  ;;  %v2907_v17 = vmax.f32 %v11500_v3, %v8885_v31  ;;  %v2784_v34 = vsel %vm2757_vm7, %v8884_v10, %v8885_v31  ;;  %8244 = vmatprep.mubr.msk.bf16.mxu0 %vm3208_vm8, %v12283_v9  ;;  %v3073_v25 = vrot.slane %v12283_v9, 1 }
 0x2b0   : > { %v4391_v37 = vrot.slane %v12283_v9, 3  ;;  %v2906_v36 = vmax.f32 %v11494_v63, %v2784_v34  ;;  %v8888_v30 = vpop.permute.xlu1 %8887  ;;  %v3878_v3 = vrot.slane %v12283_v9, 2 }
 0x2b1   : > { %3400 = vmatmul.mubr.bf16.gmra.mxu1 %v3068_v20  ;;  %v3071_v57 = vrot.slane %v12288_v21, 1  ;;  %v4389_v5 = vrot.slane %v12288_v21, 3  ;;  %v8890_v55 = vunpack.i.h.bf16 %v8888_v30  ;;  %v8889_v20 = vunpack.i.l.bf16 %v8888_v30 }
 0x2b2   : > { %v3074_v10 = vsel %vm993_vm3, %v3069_v45, %v3073_v25  ;;  %v12306_v31 = vsel %vm4342_vm9, %v4387_v6, %v4391_v37  ;;  %v12314_v23 = vsel %vm1749_vm4, %v3874_v39, %v3878_v3  ;;  %v14412_v0 = vrot.slane %v12288_v21, 2 }
 0x2b3   : > { %8205 = vmatprep.mubr.msk.bf16.mxu1 %vm3208_vm8, %v3074_v10  ;;  %v3072_v63 = vsel %vm993_vm3, %v3067_v58, %v3071_v57  ;;  %v12311_v44 = vsel %vm4342_vm9, %v4385_v51, %v4389_v5  ;;  %v2909_v43 = vmax.f32 %v11511_v14, %v8890_v55  ;;  %v2785_v62 = vsel %vm2757_vm7, %v8889_v20, %v8890_v55  ;;  %v8893_v45 = vpop.permute.xlu0 %8892 }
 0x2b4   : > { %v14411_v6 = vrot.slane %v12283_v9, 4  ;;  %v14410_v34 = vrot.slane %v12288_v21, 4  ;;  %v2908_v58 = vmax.f32 %v11507_v53, %v2785_v62  ;;  %v8895_v30 = vunpack.i.h.bf16 %v8893_v45 }
 0x2b5   : > { %3770 = vmatmul.mubr.bf16.gmra.mxu0 %v12288_v21  ;;  %v8894_v51 = vunpack.i.l.bf16 %v8893_v45  ;;  %v12325_v39 = vsel %vm1749_vm4, %v3872_v46, %v14412_v0  ;;  %v12327_v10 = vpack.c.bf16 %v2909_v43, %v2907_v17 }
 0x2b6   : > { %v12332_v14 = vsel %vm3258_vm6, %v4900_v19, %v14411_v6  ;;  %v12337_v55 = vsel %vm3258_vm6, %v4898_v61, %v14410_v34  ;;  %v12339_v53 = vpack.c.bf16 %v2908_v58, %v2906_v36  ;;  %v2911_v46 = vmax.f32 %v11521_v54, %v8895_v30 }
 0x2b7   : > { %14716 = vst [vmem:[#allocation67_spill] sm:$0xff] %v12332_v14  ;;  %14717 = vst [vmem:[#allocation18_spill] sm:$0xff] %v12337_v55  ;;  %v2786_v20 = vsel %vm2757_vm7, %v8894_v51, %v8895_v30  ;;  %8245 = vmatprep.mubr.msk.bf16.mxu0 %vm3208_vm8, %v12327_v10  ;;  %v3077_v19 = vrot.slane %v12327_v10, 1  ;;  %v4395_v61 = vrot.slane %v12327_v10, 3  ;;  %v3882_v45 = vrot.slane %v12327_v10, 2 }
 0x2b8   : > { %v3075_v62 = vrot.slane %v12339_v53, 1  ;;  %v4393_v36 = vrot.slane %v12339_v53, 3  ;;  %v2910_v58 = vmax.f32 %v11518_v50, %v2786_v20 }
 0x2b9   : > { %3410 = vmatmul.mubr.bf16.gmra.mxu1 %v3072_v63  ;;  %v8898_v63 = vpop.permute.xlu1 %8897  ;;  %v3078_v51 = vsel %vm993_vm3, %v3073_v25, %v3077_v19  ;;  %v8903_v0 = vpop.permute.xlu0 %8902  ;;  %v12359_v55 = vsel %vm4342_vm9, %v4391_v37, %v4395_v61 }
 0x2ba   : > { %v8900_v17 = vunpack.i.h.bf16 %v8898_v63  ;;  %v8899_v43 = vunpack.i.l.bf16 %v8898_v63  ;;  %8206 = vmatprep.mubr.msk.bf16.mxu1 %vm3208_vm8, %v3078_v51  ;;  %v3076_v34 = vsel %vm993_vm3, %v3071_v57, %v3075_v62  ;;  %v12362_v14 = vsel %vm4342_vm9, %v4389_v5, %v4393_v36 }
 0x2bc   : > { %v2913_v54 = vmax.f32 %v11530_v56, %v8900_v17  ;;  %v2787_v30 = vsel %vm2757_vm7, %v8899_v43, %v8900_v17  ;;  %v8905_v17 = vunpack.i.h.bf16 %v8903_v0  ;;  %v8904_v43 = vunpack.i.l.bf16 %v8903_v0 }
 0x2bd   : > { %3780 = vmatmul.mubr.bf16.gmra.mxu0 %v12339_v53  ;;  %v2912_v63 = vmax.f32 %v11528_v28, %v2787_v30  ;;  %v8908_v6 = vpop.permute.xlu1 %8907  ;;  %v12365_v28 = vsel %vm1749_vm4, %v3878_v3, %v3882_v45 }
 0x2be   : > { %v2947_v50 = vpack.c.bf16 %v2913_v54, %v2911_v46  ;;  %v8910_v56 = vunpack.i.h.bf16 %v8908_v6  ;;  %v8909_v20 = vunpack.i.l.bf16 %v8908_v6  ;;  %v2915_v37 = vmax.f32 %v11544_v33, %v8905_v17 }
 0x2bf   : > { %v2946_v25 = vpack.c.bf16 %v2912_v63, %v2910_v58 }
 0x2c0   : > { %v2917_v57 = vmax.f32 %v11540_v26, %v8910_v56  ;;  %v2789_v30 = vsel %vm2757_vm7, %v8909_v20, %v8910_v56  ;;  %8246 = vmatprep.mubr.msk.bf16.mxu0 %vm3208_vm8, %v2947_v50  ;;  %v3081_v5 = vrot.slane %v2947_v50, 1  ;;  %v4399_v54 = vrot.slane %v2947_v50, 3 }
 0x2c1   : > { %3420 = vmatmul.mubr.bf16.gmra.mxu1 %v3076_v34  ;;  %v2916_v46 = vmax.f32 %v11538_v29, %v2789_v30  ;;  %v2788_v34 = vsel %vm2757_vm7, %v8904_v43, %v8905_v17  ;;  %v3079_v6 = vrot.slane %v2946_v25, 1  ;;  %v4397_v26 = vrot.slane %v2946_v25, 3 }
 0x2c2   : > { %v12373_v58 = vpack.c.bf16 %v2917_v57, %v2915_v37  ;;  %v2914_v3 = vmax.f32 %v11536_v35, %v2788_v34  ;;  %v3082_v0 = vsel %vm993_vm3, %v3077_v19, %v3081_v5  ;;  %v12380_v51 = vsel %vm4342_vm9, %v4395_v61, %v4399_v54 }
 0x2c3   : > { %8207 = vmatprep.mubr.msk.bf16.mxu1 %vm3208_vm8, %v3082_v0  ;;  %v3080_v33 = vsel %vm993_vm3, %v3075_v62, %v3079_v6  ;;  %v3880_v29 = vrot.slane %v12339_v53, 2  ;;  %v12389_v19 = vsel %vm4342_vm9, %v4393_v36, %v4397_v26  ;;  %v14718_v20 = vrot.slane %v12288_v21, 2 }
 0x2c4   : > { %v12383_v63 = vpack.c.bf16 %v2916_v46, %v2914_v3  ;;  %v3085_v35 = vrot.slane %v12373_v58, 1  ;;  %v4403_v56 = vrot.slane %v12373_v58, 3  ;;  %v3886_v61 = vrot.slane %v2947_v50, 2 }
 0x2c5   : > { %3790 = vmatmul.mubr.bf16.gmra.mxu0 %v2946_v25  ;;  %v12395_v62 = vsel %vm1749_vm4, %v14718_v20, %v3880_v29  ;;  %v3884_v17 = vrot.slane %v2946_v25, 2  ;;  %v14413_v46 = vrot.slane %v12373_v58, 2  ;;  %v4908_v3 = vrot.slane %v12327_v10, 4 }
 0x2c6   : > { %8247 = vmatprep.mubr.msk.bf16.mxu0 %vm3208_vm8, %v12373_v58  ;;  %v3086_v43 = vsel %vm993_vm3, %v3081_v5, %v3085_v35  ;;  %v12401_v57 = vsel %vm4342_vm9, %v4399_v54, %v4403_v56  ;;  %v4401_v36 = vrot.slane %v12383_v63, 3  ;;  %v12406_v30 = vsel %vm1749_vm4, %v3882_v45, %v3886_v61 }
 0x2c7   : > { %v12409_v37 = vsel %vm1749_vm4, %v3880_v29, %v3884_v17  ;;  %v3888_v34 = vrot.slane %v12383_v63, 2  ;;  %v3083_v5 = vrot.slane %v12383_v63, 1  ;;  %v4906_v0 = vrot.slane %v12339_v53, 4 }
 0x2c8   : > { %v12417_v54 = vsel %vm4342_vm9, %v4397_v26, %v4401_v36  ;;  %v12424_v45 = vsel %vm1749_vm4, %v3886_v61, %v14413_v46  ;;  %v4912_v29 = vrot.slane %v2947_v50, 4  ;;  %v4910_v20 = vrot.slane %v2946_v25, 4 }
 0x2c9   : > { %3430 = vmatmul.mubr.bf16.gmra.mxu1 %v3080_v33  ;;  %v12429_v33 = vsel %vm1749_vm4, %v3884_v17, %v3888_v34  ;;  %v14720_v10 = vrot.slane %v12288_v21, 4  ;;  %v14415_v61 = vrot.slane %v12373_v58, 4  ;;  %v14414_v46 = vrot.slane %v12383_v63, 4 }
 0x2ca   : > { %8208 = vmatprep.mubr.msk.bf16.mxu1 %vm3208_vm8, %v3086_v43  ;;  %v14719_v43 = vrot.slane %v12283_v9, 4  ;;  %v12445_v17 = vsel %vm3258_vm6, %v4908_v3, %v4912_v29  ;;  %v12448_v50 = vsel %vm3258_vm6, %v4906_v0, %v4910_v20  ;;  %v3084_v25 = vsel %vm993_vm3, %v3079_v6, %v3083_v5  ;;  %v14723_v6 = vld [vmem:[#allocation50_spill] sm:$0xff] }
 0x2cb   : > { %v12439_v53 = vsel %vm3258_vm6, %v14720_v10, %v4906_v0  ;;  %v12455_v9 = vsel %vm3258_vm6, %v4912_v29, %v14415_v61  ;;  %v12460_v21 = vsel %vm3258_vm6, %v4910_v20, %v14414_v46  ;;  %v9241_v0 = vld [vmem:[%s14344_s2 + $0x2c4] ss:$8 sps:$4 sm:$0xff]   ;;  %v14725_v29 = vld [vmem:[#allocation26_spill] sm:$0xff]  ;;  %v14756_v46 = vld [vmem:[#allocation49_spill] sm:$0xff] }
 0x2cc   : > { %v12434_v26 = vsel %vm3258_vm6, %v14719_v43, %v4908_v3  ;;  %v9236_v3 = vld [vmem:[%s14344_s2 + $0x2d0] ss:$8 sps:$4 sm:$0xff]   ;;  %v14726_v20 = vld [vmem:[#allocation55_spill] sm:$0xff] }
 0x2cd   : > { %3800 = vmatmul.mubr.bf16.gmra.mxu0 %v12383_v63  ;;  %v9239_v43 = vld [vmem:[%s14344_s2 + $0x2c0] ss:$8 sps:$4 sm:$0xff]  }
 0x2ce   : > { %8350 = vmatprep.mubr.msk.bf16.mxu0 %vm3208_vm8, %v11625_v24  ;;  %v9224_v24 = vld [vmem:[%s14344_s2 + $0x310] ss:$8 sps:$4 sm:$0xff]   ;;  %v8386_v10 = vld [vmem:[%s14344_s2 + $0x340] sm:$0xff] }
 0x2d1   : > { %3440 = vmatmul.mubr.bf16.gmra.mxu1 %v3084_v25  ;;  %v9242_v25 = vld [vmem:[%s14344_s2 + $0x2b0] ss:$8 sps:$4 sm:$0xff]  }
 0x2d2   : > { %8209 = vmatprep.mubr.msk.bf16.mxu1 %vm3208_vm8, %v3085_v35  ;;  %v9238_v35 = vld [vmem:[%s14344_s2 + $0x2d4] ss:$8 sps:$4 sm:$0xff]  }
 0x2d5   : > { %4613 = vmatmul.mubr.bf16.vlgmr.msra.gmra.mxu0 %v11637_v48  ;;  %v9229_v48 = vld [vmem:[%s14344_s2 + $0x304] ss:$8 sps:$4 sm:$0xff]  }
 0x2d6   : > { %8351 = vmatprep.mubr.msk.bf16.mxu0 %vm3208_vm8, %v11719_v15  ;;  %v9232_v15 = vld [vmem:[%s14344_s2 + $0x2f4] ss:$8 sps:$4 sm:$0xff]  }
 0x2d9   : > { %3450 = vmatmul.mubr.bf16.gmra.mxu1 %v3083_v5  ;;  %v14724_v5 = vld [vmem:[#allocation56_spill] sm:$0xff] }
 0x2da   : > { %8291 = vmatprep.mubr.msk.bf16.mxu1 %vm3208_vm8, %v11642_v4  ;;  %v9227_v4 = vld [vmem:[%s14344_s2 + $0x300] ss:$8 sps:$4 sm:$0xff]  }
 0x2dd   : > { %4623 = vmatmul.mubr.bf16.gmra.mxu0 %v11735_v49  ;;  %v14721_v49 = vld [vmem:[#allocation54_spill] sm:$0xff] }
 0x2de   : > { %8352 = vmatprep.mubr.msk.bf16.mxu0 %vm3208_vm8, %v11820_v7  ;;  %v14722_v7 = vld [vmem:[#allocation48_spill] sm:$0xff] }
 0x2e1   : > { %4100 = vmatmul.mubr.bf16.vlgmr.msra.gmra.mxu1 %v11662_v13  ;;  %v9230_v13 = vld [vmem:[%s14344_s2 + $0x2f0] ss:$8 sps:$4 sm:$0xff]  }
 0x2e2   : > { %5094 = vmatpush1.bf16.msra.mxu1 %v9224_v24  ;;  %8292 = vmatprep.mubr.msk.bf16.mxu1 %vm3208_vm8, %v11742_v42  ;;  %v9235_v42 = vld [vmem:[%s14344_s2 + $0x2e4] ss:$8 sps:$4 sm:$0xff]  }
 0x2e3   : > { %5095 = vmatprep.subr.bf16.mxu1 %v9229_v48  ;;  %v9247_v24 = vld [vmem:[%s14344_s2 + $0x2a4] ss:$8 sps:$4 sm:$0xff]   ;;  %v8408_v48 = vcombine.high %v8386_v10, %v8386_v10 }
 0x2e5   : > { %4633 = vmatmul.mubr.bf16.gmra.mxu0 %v11833_v11  ;;  %v9233_v11 = vld [vmem:[%s14344_s2 + $0x2e0] ss:$8 sps:$4 sm:$0xff]  }
 0x2e6   : > { %5096 = vmatpush1.bf16.msra.mxu1 %v9227_v4  ;;  %8353 = vmatprep.mubr.msk.bf16.mxu0 %vm3208_vm8, %v14721_v49  ;;  %v8407_v4 = vcombine.low %v8386_v10, %v8386_v10 }
 0x2e7   : > { %5097 = vmatprep.subr.bf16.mxu1 %v9232_v15  ;;  %v14727_v15 = vld [vmem:[#allocation71_spill] sm:$0xff] }
 0x2e8   : > { %v5088_v49 = vand.u32 %v8407_v4, %v14727_v15 }
 0x2e9   : > { %4110 = vmatmul.mubr.bf16.gmra.mxu1 %v14722_v7  ;;  %v9250_v7 = vld [vmem:[%s14344_s2 + $0x330] ss:$8 sps:$4 sm:$0xff]  }
 0x2ea   : > { %8293 = vmatprep.mubr.msk.bf16.mxu1 %vm3208_vm8, %v14723_v6  ;;  %5098 = vmatpush1.bf16.msra.mxu1 %v9230_v13  ;;  %v14728_v13 = vld [vmem:[#allocation59_spill] sm:$0xff] }
 0x2eb   : > { %5099 = vmatprep.subr.bf16.mxu1 %v9235_v42  ;;  %v14730_v42 = vld [vmem:[#allocation6_spill] sm:$0xff]  ;;  %v9253_v6 = vld [vmem:[%s14344_s2 + $0x320] ss:$8 sps:$4 sm:$0xff]  }
 0x2ed   : > { %4643 = vmatmul.mubr.bf16.gmra.mxu0 %v14724_v5  ;;  %v14734_v5 = vld [vmem:[#allocation42_spill] sm:$0xff] }
 0x2ee   : > { %5100 = vmatpush1.bf16.msra.mxu1 %v9233_v11  ;;  %8354 = vmatprep.mubr.msk.bf16.mxu0 %vm3208_vm8, %v11996_v27  ;;  %v9244_v27 = vld [vmem:[%s14344_s2 + $0x2b4] ss:$8 sps:$4 sm:$0xff]  }
 0x2ef   : > { %5101 = vmatprep.subr.bf16.mxu1 %v9238_v35  ;;  %v14731_v11 = vld [vmem:[#allocation62_spill] sm:$0xff]  ;;  %v14732_v35 = vmov 0  }
 0x2f1   : > { %4120 = vmatmul.mubr.bf16.gmra.mxu1 %v14725_v29 }
 0x2f2   : > { %8294 = vmatprep.mubr.msk.bf16.mxu1 %vm3208_vm8, %v14726_v20  ;;  %5102 = vmatpush1.bf16.msra.mxu1 %v9236_v3  ;;  %v14737_v20 = vld [vmem:[#allocation9_spill] sm:$0xff] }
 0x2f3   : > { %5103 = vmatprep.subr.bf16.mxu1 %v9241_v0  ;;  %v14736_v0 = vld [vmem:[#allocation7_spill] sm:$0xff] }
 0x2f5   : > { %4653 = vmatmul.mubr.bf16.gmra.mxu0 %v12003_v40  ;;  %v9245_v40 = vld [vmem:[%s14344_s2 + $0x2a0] ss:$8 sps:$4 sm:$0xff]  }
 0x2f6   : > { %5104 = vmatpush1.bf16.msra.mxu1 %v9239_v43  ;;  %8355 = vmatprep.mubr.msk.bf16.mxu0 %vm3208_vm8, %v12053_v8  ;;  %v5091_v8 = vand.u32 %v8408_v48, %v14727_v15  ;;  %v14738_v43 = vld [vmem:[#allocation66_spill] sm:$0xff]  ;;  %v14740_v48 = vld [vmem:[#allocation13_spill] sm:$0xff] }
 0x2f7   : > { %5105 = vmatprep.subr.bf16.mxu1 %v9244_v27 }
 0x2f9   : > { %4130 = vmatmul.mubr.bf16.gmra.mxu1 %v11957_v41  ;;  %v9252_v41 = vld [vmem:[%s14344_s2 + $0x334] ss:$8 sps:$4 sm:$0xff]  }
 0x2fa   : > { %8295 = vmatprep.mubr.msk.bf16.mxu1 %vm3208_vm8, %v12006_v18  ;;  %5106 = vmatpush1.bf16.msra.mxu1 %v9242_v25  ;;  %v14729_v18 = vld [vmem:[#allocation57_spill] sm:$0xff] }
 0x2fb   : > { %5107 = vmatprep.subr.bf16.mxu1 %v9247_v24 }
 0x2fd   : > { %4663 = vmatmul.mubr.bf16.gmra.mxu0 %v14728_v13 }
 0x2fe   : > { %5108 = vmatpush1.bf16.msra.mxu1 %v9245_v40  ;;  %8356 = vmatprep.mubr.msk.bf16.mxu0 %vm3208_vm8, %v12095_v59  ;;  %v9255_v59 = vld [vmem:[%s14344_s2 + $0x324] ss:$8 sps:$4 sm:$0xff]  }
 0x2ff   : > { %5119 = vmatprep.subr.bf16.mxu1 %v5091_v8 }
 0x301   : > { %4140 = vmatmul.mubr.bf16.gmra.mxu1 %v14729_v18 }
 0x302   : > { %8296 = vmatprep.mubr.msk.bf16.mxu1 %vm3208_vm8, %v14730_v42  ;;  %5120 = vmatpush2.bf16.msra.mxu1 %v5088_v49 }
 0x303   : > { %5121 = vmatprep.subr.bf16.mxu1 %v9252_v41  ;;  %v14741_v41 = vld [vmem:[#allocation17_spill] sm:$0xff] }
 0x305   : > { %4673 = vmatmul.mubr.bf16.gmra.mxu0 %v12100_v1  ;;  %v14733_v1 = vld [vmem:[#allocation64_spill] sm:$0xff] }
 0x306   : > { %5122 = vmatpush2.bf16.msra.mxu1 %v9250_v7  ;;  %8357 = vmatprep.mubr.msk.bf16.mxu0 %vm3208_vm8, %v12137_v16 }
 0x307   : > { %5123 = vmatprep.subr.bf16.mxu1 %v9255_v59  ;;  %v14742_v59 = vld [vmem:[#allocation19_spill] sm:$0xff] }
 0x309   : > { %4150 = vmatmul.mubr.bf16.gmra.mxu1 %v12071_v52  ;;  %v14735_v52 = vld [vmem:[#allocation12_spill] sm:$0xff] }
 0x30a   : > { %8297 = vmatprep.mubr.msk.bf16.mxu1 %vm3208_vm8, %v14731_v11  ;;  %5124 = vmatpush2.bf16.msra.mxu1 %v9253_v6 }
 0x30b   : > { %6658 = vmatprep.subr.bf16.mxu1 %v14732_v35 }
 0x30d   : > { %4683 = vmatmul.mubr.bf16.gmra.mxu0 %v12142_v2 }
 0x30e   : > { %8358 = vmatprep.mubr.msk.bf16.mxu0 %vm3208_vm8, %v12179_v12 }
 0x311   : > { %4160 = vmatmul.mubr.bf16.gmra.mxu1 %v14733_v1  ;;  %v3651_v16 = vpop.f32.mrf.mxu0  ;;  %v14743_v1 = vld [vmem:[#allocation68_spill] sm:$0xff] }
 0x312   : > { %8298 = vmatprep.mubr.msk.bf16.mxu1 %vm3208_vm8, %v14734_v5 }
 0x313   : > { %v3653_v3 = vpop.f32.mrf.mxu0 }
 0x315   : > { %4693 = vmatmul.mubr.bf16.gmra.mxu0 %v12184_v47  ;;  %v3655_v29 = vpop.f32.mrf.mxu0  ;;  %v14739_v47 = vld [vmem:[#allocation14_spill] sm:$0xff] }
 0x316   : > { %8359 = vmatprep.mubr.msk.bf16.mxu0 %vm3208_vm8, %v14735_v52 }
 0x317   : > { %v3657_v2 = vpop.f32.mrf.mxu0 }
 0x319   : > { %4170 = vmatmul.mubr.bf16.gmra.mxu1 %v14736_v0  ;;  %v3661_v12 = vpop.f32.mrf.mxu0 }
 0x31a   : > { %8299 = vmatprep.mubr.msk.bf16.mxu1 %vm3208_vm8, %v14737_v20 }
 0x31b   : > { %v3663_v27 = vpop.f32.mrf.mxu0 }
 0x31c   : > { %v3301_v10 = vpop.f32.mrf.mxu1 }
 0x31d   : > { %4703 = vmatmul.mubr.bf16.gmra.mxu0 %v14738_v43  ;;  %v12584_v25 = vadd.f32 %v3651_v16, %v3301_v10  ;;  %v3665_v24 = vpop.f32.mrf.mxu0 }
 0x31e   : > { %8360 = vmatprep.mubr.msk.bf16.mxu0 %vm3208_vm8, %v12263_v22  ;;  %v3303_v40 = vpop.f32.mrf.mxu1 }
 0x31f   : > { %v12588_v4 = vadd.f32 %v3653_v3, %v3303_v40  ;;  %v3667_v15 = vpop.f32.mrf.mxu0 }
 0x320   : > { %v3305_v8 = vpop.f32.mrf.mxu1 }
 0x321   : > { %4180 = vmatmul.mubr.bf16.gmra.mxu1 %v14739_v47  ;;  %v12590_v13 = vadd.f32 %v3655_v29, %v3305_v8  ;;  %v3671_v49 = vpop.f32.mrf.mxu0 }
 0x322   : > { %8300 = vmatprep.mubr.msk.bf16.mxu1 %vm3208_vm8, %v14740_v48  ;;  %v3307_v22 = vpop.f32.mrf.mxu1 }
 0x323   : > { %v12595_v18 = vadd.f32 %v3657_v2, %v3307_v22  ;;  %v3673_v42 = vpop.f32.mrf.mxu0 }
 0x324   : > { %v3311_v7 = vpop.f32.mrf.mxu1 }
 0x325   : > { %4713 = vmatmul.mubr.bf16.gmra.mxu0 %v14741_v41  ;;  %v12598_v6 = vadd.f32 %v3661_v12, %v3311_v7  ;;  %v3675_v11 = vpop.f32.mrf.mxu0 }
 0x326   : > { %8361 = vmatprep.mubr.msk.bf16.mxu0 %vm3208_vm8, %v12306_v31  ;;  %v3313_v5 = vpop.f32.mrf.mxu1 }
 0x327   : > { %v12602_v16 = vadd.f32 %v3663_v27, %v3313_v5  ;;  %v3677_v52 = vpop.f32.mrf.mxu0 }
 0x328   : > { %v3315_v3 = vpop.f32.mrf.mxu1 }
 0x329   : > { %4190 = vmatmul.mubr.bf16.gmra.mxu1 %v14742_v59  ;;  %v12604_v0 = vadd.f32 %v3665_v24, %v3315_v3  ;;  %v3681_v31 = vpop.f32.mrf.mxu0 }
 0x32a   : > { %8301 = vmatprep.mubr.msk.bf16.mxu1 %vm3208_vm8, %v14743_v1  ;;  %v3317_v29 = vpop.f32.mrf.mxu1 }
 0x32b   : > { %v12609_v20 = vadd.f32 %v3667_v15, %v3317_v29  ;;  %v3683_v2 = vpop.f32.mrf.mxu0 }
 0x32d   : > { %4723 = vmatmul.mubr.bf16.gmra.mxu0 %v12311_v44  ;;  %v3685_v27 = vpop.f32.mrf.mxu0 }
 0x32e   : > { %8362 = vmatprep.mubr.msk.bf16.mxu0 %vm3208_vm8, %v12359_v55  ;;  %v3321_v12 = vpop.f32.mrf.mxu1 }
 0x32f   : > { %v12612_v43 = vadd.f32 %v3671_v49, %v3321_v12  ;;  %v3687_v44 = vpop.f32.mrf.mxu0 }
 0x330   : > { %v3323_v10 = vpop.f32.mrf.mxu1 }
 0x331   : > { %4200 = vmatmul.mubr.bf16.gmra.mxu1 %v12281_v32  ;;  %v12616_v47 = vadd.f32 %v3673_v42, %v3323_v10 }
 0x332   : > { %8302 = vmatprep.mubr.msk.bf16.mxu1 %vm3208_vm8, %v12314_v23  ;;  %v3325_v24 = vpop.f32.mrf.mxu1  ;;  %v3691_v55 = vpop.f32.mrf.mxu0 }
 0x333   : > { %v12618_v48 = vadd.f32 %v3675_v11, %v3325_v24 }
 0x334   : > { %v3327_v40 = vpop.f32.mrf.mxu1  ;;  %v3693_v15 = vpop.f32.mrf.mxu0 }
 0x335   : > { %4733 = vmatmul.mubr.bf16.gmra.mxu0 %v12362_v14  ;;  %v12623_v32 = vadd.f32 %v3677_v52, %v3327_v40 }
 0x336   : > { %8363 = vmatprep.mubr.msk.bf16.mxu0 %vm3208_vm8, %v12380_v51  ;;  %v3695_v49 = vpop.f32.mrf.mxu0 }
 0x338   : > { %v3331_v8 = vpop.f32.mrf.mxu1  ;;  %v12632_v14 = vpop.f32.mrf.mxu0 }
 0x339   : > { %4210 = vmatmul.mubr.bf16.gmra.mxu1 %v12325_v39  ;;  %v12626_v23 = vadd.f32 %v3681_v31, %v3331_v8  ;;  %14744 = vst [vmem:[#allocation25_spill] sm:$0xff] %v12632_v14 }
 0x33a   : > { %8303 = vmatprep.mubr.msk.bf16.mxu1 %vm3208_vm8, %v12365_v28  ;;  %v3333_v41 = vpop.f32.mrf.mxu1 }
 0x33b   : > { %v12630_v22 = vadd.f32 %v3683_v2, %v3333_v41  ;;  %v3701_v51 = vpop.f32.mrf.mxu0 }
 0x33c   : > { %v3335_v42 = vpop.f32.mrf.mxu1 }
 0x33d   : > { %v12634_v7 = vadd.f32 %v3685_v27, %v3335_v42  ;;  %4743 = vmatmul.mubr.bf16.gmra.mxu0 %v12389_v19  ;;  %v3703_v11 = vpop.f32.mrf.mxu0 }
 0x33e   : > { %v3337_v59 = vpop.f32.mrf.mxu1  ;;  %8364 = vmatprep.mubr.msk.bf16.mxu0 %vm3208_vm8, %v12401_v57 }
 0x33f   : > { %v12639_v39 = vadd.f32 %v3687_v44, %v3337_v59  ;;  %v3705_v5 = vpop.f32.mrf.mxu0 }
 0x341   : > { %v3341_v1 = vpop.f32.mrf.mxu1  ;;  %4220 = vmatmul.mubr.bf16.gmra.mxu1 %v12395_v62  ;;  %v12648_v19 = vpop.f32.mrf.mxu0 }
 0x342   : > { %v12642_v28 = vadd.f32 %v3691_v55, %v3341_v1  ;;  %8304 = vmatprep.mubr.msk.bf16.mxu1 %vm3208_vm8, %v12406_v30  ;;  %14745 = vst [vmem:[#allocation21_spill] sm:$0xff] %v12648_v19 }
 0x343   : > { %v3343_v52 = vpop.f32.mrf.mxu1 }
 0x344   : > { %v12646_v3 = vadd.f32 %v3693_v15, %v3343_v52 }
 0x345   : > { %v3345_v31 = vpop.f32.mrf.mxu1  ;;  %v3711_v57 = vpop.f32.mrf.mxu0  ;;  %4753 = vmatmul.mubr.bf16.gmra.mxu0 %v12417_v54 }
 0x346   : > { %v12650_v29 = vadd.f32 %v3695_v49, %v3345_v31  ;;  %8365 = vmatprep.mubr.msk.bf16.mxu0 %vm3208_vm8, %v4403_v56  ;;  %v14749_v49 = vrot.slane %v12373_v58, 2 }
 0x347   : > { %v12653_v2 = vpop.f32.mrf.mxu1  ;;  %v3713_v62 = vpop.f32.mrf.mxu0 }
 0x348   : > { %14746 = vst [vmem:[#allocation20_spill] sm:$0xff] %v12653_v2 }
 0x349   : > { %v3351_v12 = vpop.f32.mrf.mxu1  ;;  %4230 = vmatmul.mubr.bf16.gmra.mxu1 %v12409_v37  ;;  %v3715_v27 = vpop.f32.mrf.mxu0 }
 0x34a   : > { %v12659_v30 = vadd.f32 %v3701_v51, %v3351_v12  ;;  %8305 = vmatprep.mubr.msk.bf16.mxu1 %vm3208_vm8, %v12424_v45 }
 0x34b   : > { %v3353_v10 = vpop.f32.mrf.mxu1  ;;  %v12665_v54 = vpop.f32.mrf.mxu0 }
 0x34c   : > { %v12663_v44 = vadd.f32 %v3703_v11, %v3353_v10  ;;  %14747 = vst [vmem:[#allocation27_spill] sm:$0xff] %v12665_v54  ;;  %v14760_v54 = vld [vmem:[#allocation31_spill] sm:$0xff] }
 0x34d   : > { %v3355_v24 = vpop.f32.mrf.mxu1  ;;  %v3721_v40 = vpop.f32.mrf.mxu0  ;;  %4763 = vmatmul.mubr.bf16.gmra.mxu0 %v4401_v36 }
 0x34e   : > { %v12667_v55 = vadd.f32 %v3705_v5, %v3355_v24 }
 0x34f   : > { %v12671_v56 = vpop.f32.mrf.mxu1  ;;  %v3723_v37 = vpop.f32.mrf.mxu0 }
 0x350   : > { %14748 = vst [vmem:[#allocation34_spill] sm:$0xff] %v12671_v56  ;;  %v14766_v56 = vld [vmem:[#allocation5_spill] sm:$0xff] }
 0x351   : > { %v3361_v15 = vpop.f32.mrf.mxu1  ;;  %4240 = vmatmul.mubr.bf16.gmra.mxu1 %v12429_v33  ;;  %v3725_v45 = vpop.f32.mrf.mxu0 }
 0x352   : > { %v12674_v8 = vadd.f32 %v3711_v57, %v3361_v15  ;;  %8306 = vmatprep.mubr.msk.bf16.mxu1 %vm3208_vm8, %v14749_v49  ;;  %v14752_v57 = vld [vmem:[#allocation24_spill] sm:$0xff] }
 0x353   : > { %v3363_v41 = vpop.f32.mrf.mxu1  ;;  %v12681_v51 = vpop.f32.mrf.mxu0 }
 0x354   : > { %v12679_v42 = vadd.f32 %v3713_v62, %v3363_v41  ;;  %14750 = vst [vmem:[#allocation33_spill] sm:$0xff] %v12681_v51 }
 0x355   : > { %v3365_v59 = vpop.f32.mrf.mxu1  ;;  %v3731_v11 = vpop.f32.mrf.mxu0 }
 0x356   : > { %v12683_v36 = vadd.f32 %v3715_v27, %v3365_v59 }
 0x357   : > { %v12685_v1 = vpop.f32.mrf.mxu1  ;;  %v3733_v5 = vpop.f32.mrf.mxu0 }
 0x358   : > { %14751 = vst [vmem:[#allocation69_spill] sm:$0xff] %v12685_v1 }
 0x359   : > { %v3371_v33 = vpop.f32.mrf.mxu1  ;;  %4250 = vmatmul.mubr.bf16.gmra.mxu1 %v3888_v34  ;;  %v3735_v31 = vpop.f32.mrf.mxu0  ;;  %v14755_v34 = vld [vmem:[#allocation30_spill] sm:$0xff] }
 0x35a   : > { %v12689_v52 = vadd.f32 %v3721_v40, %v3371_v33  ;;  %8409 = vmatprep.mubr.msk.bf16.mxu1 %vm3208_vm8, %v14752_v57 }
 0x35b   : > { %v3373_v62 = vpop.f32.mrf.mxu1  ;;  %v12695_v10 = vpop.f32.mrf.mxu0 }
 0x35c   : > { %v12693_v12 = vadd.f32 %v3723_v37, %v3373_v62  ;;  %14753 = vst [vmem:[#allocation70_spill] sm:$0xff] %v12695_v10 }
 0x35d   : > { %v3375_v27 = vpop.f32.mrf.mxu1  ;;  %v3741_v15 = vpop.f32.mrf.mxu0 }
 0x35e   : > { %v12697_v24 = vadd.f32 %v3725_v45, %v3375_v27 }
 0x35f   : > { %v12699_v49 = vpop.f32.mrf.mxu1  ;;  %v3743_v41 = vpop.f32.mrf.mxu0 }
 0x360   : > { %14754 = vst [vmem:[#allocation36_spill] sm:$0xff] %v12699_v49 }
 0x361   : > { %v3381_v59 = vpop.f32.mrf.mxu1  ;;  %5126 = vmatmul.mubr.bf16.vlgmr.msra.gmra.mxu1 %v14755_v34  ;;  %v3745_v33 = vpop.f32.mrf.mxu0  ;;  %v14759_v34 = vld [vmem:[#allocation51_spill] sm:$0xff] }
 0x362   : > { %v12702_v40 = vadd.f32 %v3731_v11, %v3381_v59  ;;  %8410 = vmatprep.mubr.msk.bf16.mxu1 %vm3208_vm8, %v14756_v46 }
 0x363   : > { %v3383_v37 = vpop.f32.mrf.mxu1  ;;  %v12708_v62 = vpop.f32.mrf.mxu0 }
 0x364   : > { %v12706_v57 = vadd.f32 %v3733_v5, %v3383_v37  ;;  %14757 = vst [vmem:[#allocation35_spill] sm:$0xff] %v12708_v62 }
 0x365   : > { %v3385_v45 = vpop.f32.mrf.mxu1  ;;  %v3751_v61 = vpop.f32.mrf.mxu0 }
 0x366   : > { %v12710_v27 = vadd.f32 %v3735_v31, %v3385_v45 }
 0x367   : > { %v12712_v10 = vpop.f32.mrf.mxu1  ;;  %v3753_v51 = vpop.f32.mrf.mxu0 }
 0x368   : > { %14758 = vst [vmem:[#allocation22_spill] sm:$0xff] %v12712_v10 }
 0x369   : > { %v3391_v49 = vpop.f32.mrf.mxu1  ;;  %5136 = vmatmul.mubr.bf16.gmra.mxu1 %v14759_v34  ;;  %v3755_v59 = vpop.f32.mrf.mxu0  ;;  %v14764_v34 = vld [vmem:[#allocation53_spill] sm:$0xff] }
 0x36a   : > { %v12715_v11 = vadd.f32 %v3741_v15, %v3391_v49  ;;  %8411 = vmatprep.mubr.msk.bf16.mxu1 %vm3208_vm8, %v14760_v54 }
 0x36b   : > { %v3393_v46 = vpop.f32.mrf.mxu1  ;;  %v12721_v37 = vpop.f32.mrf.mxu0 }
 0x36c   : > { %v12719_v5 = vadd.f32 %v3743_v41, %v3393_v46  ;;  %14761 = vst [vmem:[#allocation28_spill] sm:$0xff] %v12721_v37 }
 0x36d   : > { %v3395_v31 = vpop.f32.mrf.mxu1  ;;  %v3761_v62 = vpop.f32.mrf.mxu0 }
 0x36e   : > { %v12723_v45 = vadd.f32 %v3745_v33, %v3395_v31 }
 0x36f   : > { %v12725_v10 = vpop.f32.mrf.mxu1  ;;  %v3763_v1 = vpop.f32.mrf.mxu0 }
 0x370   : > { %14762 = vst [vmem:[#allocation38_spill] sm:$0xff] %v12723_v45  ;;  %14763 = vst [vmem:[#allocation39_spill] sm:$0xff] %v12725_v10  ;;  %v14798_v45 = vld [vmem:[#allocation65_spill] sm:$0xff] }
 0x371   : > { %v3401_v19 = vpop.f32.mrf.mxu1  ;;  %5146 = vmatmul.mubr.bf16.gmra.mxu1 %v14764_v34  ;;  %v3765_v49 = vpop.f32.mrf.mxu0  ;;  %v14771_v34 = vld [vmem:[#allocation32_spill] sm:$0xff] }
 0x372   : > { %v12728_v15 = vadd.f32 %v3751_v61, %v3401_v19  ;;  %8412 = vmatprep.mubr.msk.bf16.mxu1 %vm3208_vm8, %v14766_v56 }
 0x373   : > { %v3403_v54 = vpop.f32.mrf.mxu1  ;;  %v12734_v46 = vpop.f32.mrf.mxu0 }
 0x374   : > { %14765 = vst [vmem:[#allocation41_spill] sm:$0xff] %v12728_v15  ;;  %v12732_v41 = vadd.f32 %v3753_v51, %v3403_v54  ;;  %14768 = vst [vmem:[#allocation72_spill] sm:$0xff] %v12734_v46  ;;  %v14773_v15 = vld [vmem:[#allocation58_spill] sm:$0xff] }
 0x375   : > { %v3405_v33 = vpop.f32.mrf.mxu1  ;;  %v3771_v37 = vpop.f32.mrf.mxu0 }
 0x376   : > { %14767 = vst [vmem:[#allocation40_spill] sm:$0xff] %v12732_v41  ;;  %v12736_v31 = vadd.f32 %v3755_v59, %v3405_v33 }
 0x377   : > { %v12738_v10 = vpop.f32.mrf.mxu1  ;;  %v3773_v14 = vpop.f32.mrf.mxu0 }
 0x378   : > { %14769 = vst [vmem:[#allocation23_spill] sm:$0xff] %v12736_v31  ;;  %14770 = vst [vmem:[#allocation43_spill] sm:$0xff] %v12738_v10 }
 0x379   : > { %v3411_v2 = vpop.f32.mrf.mxu1  ;;  %5156 = vmatmul.mubr.bf16.gmra.mxu1 %v14771_v34  ;;  %v3775_v19 = vpop.f32.mrf.mxu0  ;;  %v14778_v34 = vld [vmem:[#allocation60_spill] sm:$0xff] }
 0x37a   : > { %v12741_v61 = vadd.f32 %v3761_v62, %v3411_v2  ;;  %8413 = vmatprep.mubr.msk.bf16.mxu1 %vm3208_vm8, %v14773_v15 }
 0x37b   : > { %v3413_v56 = vpop.f32.mrf.mxu1  ;;  %v12747_v54 = vpop.f32.mrf.mxu0 }
 0x37c   : > { %14772 = vst [vmem:[#allocation73_spill] sm:$0xff] %v12741_v61  ;;  %v12745_v51 = vadd.f32 %v3763_v1, %v3413_v56  ;;  %14775 = vst [vmem:[#allocation45_spill] sm:$0xff] %v12747_v54  ;;  %v14780_v61 = vld [vmem:[#allocation37_spill] sm:$0xff] }
 0x37d   : > { %v3415_v59 = vpop.f32.mrf.mxu1  ;;  %v3781_v46 = vpop.f32.mrf.mxu0 }
 0x37e   : > { %14774 = vst [vmem:[#allocation29_spill] sm:$0xff] %v12745_v51  ;;  %v12749_v33 = vadd.f32 %v3765_v49, %v3415_v59 }
 0x37f   : > { %v12751_v10 = vpop.f32.mrf.mxu1  ;;  %v3783_v31 = vpop.f32.mrf.mxu0 }
 0x380   : > { %14776 = vst [vmem:[#allocation44_spill] sm:$0xff] %v12749_v33  ;;  %14777 = vst [vmem:[#allocation46_spill] sm:$0xff] %v12751_v10 }
 0x381   : > { %v3421_v41 = vpop.f32.mrf.mxu1  ;;  %5166 = vmatmul.mubr.bf16.gmra.mxu1 %v14778_v34  ;;  %v3785_v62 = vpop.f32.mrf.mxu0  ;;  %v14785_v34 = vld [vmem:[#allocation61_spill] sm:$0xff] }
 0x382   : > { %v12754_v2 = vadd.f32 %v3771_v37, %v3421_v41  ;;  %8414 = vmatprep.mubr.msk.bf16.mxu1 %vm3208_vm8, %v14780_v61 }
 0x383   : > { %v3423_v1 = vpop.f32.mrf.mxu1  ;;  %v12760_v56 = vpop.f32.mrf.mxu0 }
 0x384   : > { %14779 = vst [vmem:[#allocation54_spill] sm:$0xff] %v12754_v2  ;;  %v12758_v15 = vadd.f32 %v3773_v14, %v3423_v1  ;;  %14782 = vst [vmem:[#allocation50_spill] sm:$0xff] %v12760_v56  ;;  %v14787_v2 = vld [vmem:[#allocation63_spill] sm:$0xff] }
 0x385   : > { %v3425_v49 = vpop.f32.mrf.mxu1  ;;  %v3791_v54 = vpop.f32.mrf.mxu0 }
 0x386   : > { %14781 = vst [vmem:[#allocation48_spill] sm:$0xff] %v12758_v15  ;;  %v12762_v59 = vadd.f32 %v3775_v19, %v3425_v49 }
 0x387   : > { %v12764_v10 = vpop.f32.mrf.mxu1  ;;  %v3793_v33 = vpop.f32.mrf.mxu0 }
 0x388   : > { %14783 = vst [vmem:[#allocation56_spill] sm:$0xff] %v12762_v59  ;;  %14784 = vst [vmem:[#allocation26_spill] sm:$0xff] %v12764_v10 }
 0x389   : > { %v3431_v51 = vpop.f32.mrf.mxu1  ;;  %5176 = vmatmul.mubr.bf16.gmra.mxu1 %v14785_v34  ;;  %v3795_v41 = vpop.f32.mrf.mxu0  ;;  %v14792_v34 = vld [vmem:[#allocation10_spill] sm:$0xff] }
 0x38a   : > { %v12767_v37 = vadd.f32 %v3781_v46, %v3431_v51  ;;  %8415 = vmatprep.mubr.msk.bf16.mxu1 %vm3208_vm8, %v14787_v2 }
 0x38b   : > { %v3433_v14 = vpop.f32.mrf.mxu1  ;;  %v12773_v1 = vpop.f32.mrf.mxu0 }
 0x38c   : > { %14786 = vst [vmem:[#allocation55_spill] sm:$0xff] %v12767_v37  ;;  %v12771_v61 = vadd.f32 %v3783_v31, %v3433_v14  ;;  %14789 = vst [vmem:[#allocation59_spill] sm:$0xff] %v12773_v1  ;;  %v14794_v37 = vld [vmem:[#allocation8_spill] sm:$0xff] }
 0x38d   : > { %v3435_v19 = vpop.f32.mrf.mxu1  ;;  %v3801_v56 = vpop.f32.mrf.mxu0 }
 0x38e   : > { %14788 = vst [vmem:[#allocation71_spill] sm:$0xff] %v12771_v61  ;;  %v12775_v49 = vadd.f32 %v3785_v62, %v3435_v19 }
 0x38f   : > { %v12777_v10 = vpop.f32.mrf.mxu1  ;;  %v3803_v59 = vpop.f32.mrf.mxu0 }
 0x390   : > { %14790 = vst [vmem:[#allocation57_spill] sm:$0xff] %v12775_v49  ;;  %14791 = vst [vmem:[#allocation6_spill] sm:$0xff] %v12777_v10 }
 0x391   : > { %v3441_v15 = vpop.f32.mrf.mxu1  ;;  %5186 = vmatmul.mubr.bf16.gmra.mxu1 %v14792_v34  ;;  %v3805_v51 = vpop.f32.mrf.mxu0  ;;  %v14800_v34 = vld [vmem:[#allocation47_spill] sm:$0xff] }
 0x392   : > { %v12780_v46 = vadd.f32 %v3791_v54, %v3441_v15  ;;  %8416 = vmatprep.mubr.msk.bf16.mxu1 %vm3208_vm8, %v14794_v37 }
 0x393   : > { %v3443_v31 = vpop.f32.mrf.mxu1  ;;  %v3806_v14 = vpop.f32.mrf.mxu0 }
 0x394   : > { %14793 = vst [vmem:[#allocation62_spill] sm:$0xff] %v12780_v46  ;;  %v12784_v2 = vadd.f32 %v3793_v33, %v3443_v31  ;;  %v14805_v46 = vld [vmem:[#allocation16_spill] sm:$0xff] }
 0x395   : > { %v3445_v1 = vpop.f32.mrf.mxu1  ;;  %v4614_v19 = vpop.f32.mrf.mxu0 }
 0x396   : > { %14795 = vst [vmem:[#allocation64_spill] sm:$0xff] %v12784_v2  ;;  %v12786_v62 = vadd.f32 %v3795_v41, %v3445_v1 }
 0x397   : > { %v12788_v49 = vpop.f32.mrf.mxu1  ;;  %v4616_v10 = vpop.f32.mrf.mxu0 }
 0x398   : > { %14796 = vst [vmem:[#allocation42_spill] sm:$0xff] %v12786_v62  ;;  %14797 = vst [vmem:[#allocation12_spill] sm:$0xff] %v12788_v49  ;;  %v14803_v62 = vld [vmem:[#allocation11_spill] sm:$0xff] }
 0x399   : > { %v3451_v61 = vpop.f32.mrf.mxu1  ;;  %5196 = vmatmul.mubr.bf16.gmra.mxu1 %v14798_v45  ;;  %v4618_v15 = vpop.f32.mrf.mxu0 }
 0x39a   : > { %v12791_v54 = vadd.f32 %v3801_v56, %v3451_v61  ;;  %8417 = vmatprep.mubr.msk.bf16.mxu1 %vm3208_vm8, %v14800_v34  ;;  %v14804_v61 = vld [vmem:[#allocation52_spill] sm:$0xff] }
 0x39b   : > { %v3453_v37 = vpop.f32.mrf.mxu1  ;;  %v12797_v51 = vpop.f32.mrf.mxu0 }
 0x39c   : > { %14799 = vst [vmem:[#allocation7_spill] sm:$0xff] %v12791_v54  ;;  %v12795_v33 = vadd.f32 %v3803_v59, %v3453_v37  ;;  %14802 = vst [vmem:[#allocation66_spill] sm:$0xff] %v12797_v51 }
 0x39d   : > { %v3455_v41 = vpop.f32.mrf.mxu1  ;;  %v4624_v1 = vpop.f32.mrf.mxu0 }
 0x39e   : > { %14801 = vst [vmem:[#allocation9_spill] sm:$0xff] %v12795_v33 }
 0x39f   : > { %v3456_v31 = vpop.f32.mrf.mxu1  ;;  %v4626_v14 = vpop.f32.mrf.mxu0 }
 0x3a1   : > { %v4101_v49 = vpop.f32.mrf.mxu1  ;;  %5206 = vmatmul.mubr.bf16.gmra.mxu1 %v14803_v62  ;;  %v4628_v56 = vpop.f32.mrf.mxu0 }
 0x3a2   : > { %v4258_v45 = vadd.f32 %v4101_v49, %v12584_v25  ;;  %8418 = vmatprep.mubr.msk.bf16.mxu1 %vm3208_vm8, %v14804_v61 }
 0x3a3   : > { %v4103_v54 = vpop.f32.mrf.mxu1  ;;  %v12804_v59 = vpop.f32.mrf.mxu0 }
 0x3a4   : > { %v4259_v34 = vadd.f32 %v4103_v54, %v12588_v4  ;;  %v12806_v37 = vadd.f32 %v4614_v19, %v4258_v45 }
 0x3a5   : > { %v4105_v41 = vpop.f32.mrf.mxu1  ;;  %v4634_v51 = vpop.f32.mrf.mxu0 }
 0x3a6   : > { %v4260_v31 = vadd.f32 %v4105_v41, %v12590_v13  ;;  %v12809_v33 = vadd.f32 %v4616_v10, %v4259_v34 }
 0x3a7   : > { %v4107_v62 = vpop.f32.mrf.mxu1  ;;  %v4636_v49 = vpop.f32.mrf.mxu0 }
 0x3a8   : > { %v12812_v25 = vadd.f32 %v4107_v62, %v12595_v18  ;;  %v12814_v2 = vadd.f32 %v4618_v15, %v4260_v31 }
 0x3a9   : > { %v4111_v61 = vpop.f32.mrf.mxu1  ;;  %5216 = vmatmul.mubr.bf16.gmra.mxu1 %v14805_v46  ;;  %v4638_v19 = vpop.f32.mrf.mxu0 }
 0x3aa   : > { %v4262_v4 = vadd.f32 %v4111_v61, %v12598_v6  ;;  %8419 = vmatprep.mubr.msk.bf16.mxu1 %vm3208_vm8, %v12286_v60  ;;  %v14806_v61 = vld [vmem:[#allocation67_spill] sm:$0xff] }
 0x3ab   : > { %v4113_v13 = vpop.f32.mrf.mxu1  ;;  %v12821_v54 = vpop.f32.mrf.mxu0 }
 0x3ac   : > { %v4263_v10 = vadd.f32 %v4113_v13, %v12602_v16  ;;  %v12823_v45 = vadd.f32 %v4624_v1, %v4262_v4 }
 0x3ad   : > { %v4115_v18 = vpop.f32.mrf.mxu1  ;;  %v4644_v34 = vpop.f32.mrf.mxu0 }
 0x3ae   : > { %v4264_v15 = vadd.f32 %v4115_v18, %v12604_v0  ;;  %v12826_v41 = vadd.f32 %v4626_v14, %v4263_v10 }
 0x3af   : > { %v4117_v46 = vpop.f32.mrf.mxu1  ;;  %v4646_v31 = vpop.f32.mrf.mxu0 }
 0x3b0   : > { %v12829_v6 = vadd.f32 %v4117_v46, %v12609_v20  ;;  %v12831_v62 = vadd.f32 %v4628_v56, %v4264_v15 }
 0x3b1   : > { %v4121_v60 = vpop.f32.mrf.mxu1  ;;  %5226 = vmatmul.mubr.bf16.gmra.mxu1 %v12291_v38  ;;  %v4648_v1 = vpop.f32.mrf.mxu0 }
 0x3b2   : > { %v4266_v16 = vadd.f32 %v4121_v60, %v12612_v43  ;;  %8420 = vmatprep.mubr.msk.bf16.mxu1 %vm3208_vm8, %v14806_v61  ;;  %v14807_v61 = vld [vmem:[#allocation18_spill] sm:$0xff] }
 0x3b3   : > { %v4123_v0 = vpop.f32.mrf.mxu1  ;;  %v12838_v4 = vpop.f32.mrf.mxu0 }
 0x3b4   : > { %v4267_v14 = vadd.f32 %v4123_v0, %v12616_v47  ;;  %v12840_v13 = vadd.f32 %v4634_v51, %v4266_v16 }
 0x3b5   : > { %v4125_v20 = vpop.f32.mrf.mxu1  ;;  %v4654_v10 = vpop.f32.mrf.mxu0 }
 0x3b6   : > { %v4268_v56 = vadd.f32 %v4125_v20, %v12618_v48  ;;  %v12843_v18 = vadd.f32 %v4636_v49, %v4267_v14 }
 0x3b7   : > { %v4127_v38 = vpop.f32.mrf.mxu1  ;;  %v4656_v15 = vpop.f32.mrf.mxu0 }
 0x3b8   : > { %v12846_v43 = vadd.f32 %v4127_v38, %v12623_v32  ;;  %v12848_v46 = vadd.f32 %v4638_v19, %v4268_v56 }
 0x3b9   : > { %v4131_v60 = vpop.f32.mrf.mxu1  ;;  %5236 = vmatmul.mubr.bf16.gmra.mxu1 %v14807_v61  ;;  %v4658_v51 = vpop.f32.mrf.mxu0 }
 0x3ba   : > { %v4270_v47 = vadd.f32 %v4131_v60, %v12626_v23  ;;  %8421 = vmatprep.mubr.msk.bf16.mxu1 %vm3208_vm8, %v12434_v26 }
 0x3bb   : > { %v4133_v48 = vpop.f32.mrf.mxu1  ;;  %v12855_v16 = vpop.f32.mrf.mxu0 }
 0x3bc   : > { %v4271_v49 = vadd.f32 %v4133_v48, %v12630_v22  ;;  %v12857_v0 = vadd.f32 %v4644_v34, %v4270_v47 }
 0x3bd   : > { %v4135_v32 = vpop.f32.mrf.mxu1  ;;  %v4664_v14 = vpop.f32.mrf.mxu0 }
 0x3be   : > { %v4272_v19 = vadd.f32 %v4135_v32, %v12634_v7  ;;  %v12860_v20 = vadd.f32 %v4646_v31, %v4271_v49 }
 0x3bf   : > { %v4137_v56 = vpop.f32.mrf.mxu1  ;;  %v4666_v38 = vpop.f32.mrf.mxu0 }
 0x3c0   : > { %v12863_v23 = vadd.f32 %v4137_v56, %v12639_v39  ;;  %v12865_v60 = vadd.f32 %v4648_v1, %v4272_v19  ;;  %v9256_v39 = vld [vmem:[%s14345_s3 + $0x88] sm:$0xff]  }
 0x3c1   : > { %v4141_v26 = vpop.f32.mrf.mxu1  ;;  %5246 = vmatmul.mubr.bf16.gmra.mxu1 %v12439_v53  ;;  %v4668_v34 = vpop.f32.mrf.mxu0  ;;  %6421 = vmatpush1.bf16.msra.mxu0 %v9256_v39 }
 0x3c2   : > { %v4274_v22 = vadd.f32 %v4141_v26, %v12642_v28  ;;  %8422 = vmatprep.mubr.msk.bf16.mxu1 %vm3208_vm8, %v12445_v17  ;;  %6422 = vmatprep.subr.bf16.mxu0 %v14732_v35 }
 0x3c3   : > { %v4143_v7 = vpop.f32.mrf.mxu1  ;;  %v12872_v61 = vpop.f32.mrf.mxu0 }
 0x3c4   : > { %v4275_v31 = vadd.f32 %v4143_v7, %v12646_v3  ;;  %v12877_v1 = vadd.f32 %v4654_v10, %v4274_v22 }
 0x3c5   : > { %v4145_v47 = vpop.f32.mrf.mxu1  ;;  %v4674_v48 = vpop.f32.mrf.mxu0 }
 0x3c6   : > { %v4276_v53 = vadd.f32 %v4145_v47, %v12650_v29  ;;  %v12880_v28 = vadd.f32 %v4656_v15, %v4275_v31 }
 0x3c7   : > { %v12882_v49 = vpop.f32.mrf.mxu1  ;;  %v4676_v17 = vpop.f32.mrf.mxu0 }
 0x3c8   : > { %v12885_v3 = vadd.f32 %v4658_v51, %v4276_v53 }
 0x3c9   : > { %v4151_v32 = vpop.f32.mrf.mxu1  ;;  %5256 = vmatmul.mubr.bf16.gmra.mxu1 %v12448_v50  ;;  %v4678_v19 = vpop.f32.mrf.mxu0 }
 0x3ca   : > { %v4278_v10 = vadd.f32 %v4151_v32, %v12659_v30  ;;  %8423 = vmatprep.mubr.msk.bf16.mxu1 %vm3208_vm8, %v12455_v9 }
 0x3cb   : > { %v4153_v29 = vpop.f32.mrf.mxu1  ;;  %v12892_v56 = vpop.f32.mrf.mxu0 }
 0x3cc   : > { %v4279_v15 = vadd.f32 %v4153_v29, %v12663_v44  ;;  %v12894_v26 = vadd.f32 %v4664_v14, %v4278_v10  ;;  %v14808_v14 = vrot.slane %v12373_v58, 4 }
 0x3cd   : > { %v4155_v22 = vpop.f32.mrf.mxu1  ;;  %v4684_v7 = vpop.f32.mrf.mxu0 }
 0x3ce   : > { %v4280_v51 = vadd.f32 %v4155_v22, %v12667_v55  ;;  %v12897_v31 = vadd.f32 %v4666_v38, %v4279_v15  ;;  %v9257_v55 = vld [vmem:[%s14345_s3 + $0x80] sm:$0xff]  }
 0x3cf   : > { %v12899_v50 = vpop.f32.mrf.mxu1  ;;  %v4686_v30 = vpop.f32.mrf.mxu0  ;;  %6423 = vmatpush1.bf16.msra.mxu0 %v9257_v55 }
 0x3d0   : > { %v12901_v39 = vadd.f32 %v4668_v34, %v4280_v51  ;;  %6424 = vmatprep.subr.bf16.mxu0 %v14732_v35 }
 0x3d1   : > { %v4161_v47 = vpop.f32.mrf.mxu1  ;;  %5266 = vmatmul.mubr.bf16.gmra.mxu1 %v12460_v21  ;;  %v4688_v44 = vpop.f32.mrf.mxu0 }
 0x3d2   : > { %v4282_v9 = vadd.f32 %v4161_v47, %v12674_v8  ;;  %8424 = vmatprep.mubr.msk.bf16.mxu1 %vm3208_vm8, %v14808_v14 }
 0x3d3   : > { %v4163_v38 = vpop.f32.mrf.mxu1  ;;  %v12912_v32 = vpop.f32.mrf.mxu0 }
 0x3d4   : > { %v4283_v53 = vadd.f32 %v4163_v38, %v12679_v42  ;;  %v12914_v34 = vadd.f32 %v4674_v48, %v4282_v9  ;;  %v14809_v42 = vrot.slane %v12383_v63, 4 }
 0x3d5   : > { %v4165_v21 = vpop.f32.mrf.mxu1  ;;  %v4694_v58 = vpop.f32.mrf.mxu0 }
 0x3d6   : > { %v4284_v8 = vadd.f32 %v4165_v21, %v12683_v36  ;;  %v12918_v10 = vadd.f32 %v4676_v17, %v4283_v53 }
 0x3d7   : > { %v12920_v29 = vpop.f32.mrf.mxu1  ;;  %v4696_v15 = vpop.f32.mrf.mxu0 }
 0x3d8   : > { %v12922_v22 = vadd.f32 %v4678_v19, %v4284_v8  ;;  %v9258_v19 = vld [vmem:[%s14345_s3 + $0x78] sm:$0xff]  }
 0x3d9   : > { %v4171_v51 = vpop.f32.mrf.mxu1  ;;  %5276 = vmatmul.mubr.bf16.gmra.mxu1 %v14809_v42  ;;  %v4698_v47 = vpop.f32.mrf.mxu0  ;;  %6425 = vmatpush1.bf16.msra.mxu0 %v9258_v19 }
 0x3da   : > { %v4286_v48 = vadd.f32 %v4171_v51, %v12689_v52  ;;  %6426 = vmatprep.subr.bf16.mxu0 %v14732_v35 }
 0x3db   : > { %v4173_v9 = vpop.f32.mrf.mxu1  ;;  %v12928_v55 = vpop.f32.mrf.mxu0 }
 0x3dc   : > { %v4287_v14 = vadd.f32 %v4173_v9, %v12693_v12  ;;  %14810 = vst [vmem:[#allocation14_spill] sm:$0xff] %v12928_v55  ;;  %v12930_v36 = vadd.f32 %v4684_v7, %v4286_v48 }
 0x3dd   : > { %v4175_v17 = vpop.f32.mrf.mxu1  ;;  %v4704_v53 = vpop.f32.mrf.mxu0 }
 0x3de   : > { %v4288_v38 = vadd.f32 %v4175_v17, %v12697_v24  ;;  %v12936_v63 = vadd.f32 %v4686_v30, %v4287_v14 }
 0x3df   : > { %v12938_v21 = vpop.f32.mrf.mxu1  ;;  %v4706_v52 = vpop.f32.mrf.mxu0 }
 0x3e0   : > { %v12940_v8 = vadd.f32 %v4688_v44, %v4288_v38 }
 0x3e1   : > { %v4181_v12 = vpop.f32.mrf.mxu1  ;;  %v4708_v51 = vpop.f32.mrf.mxu0 }
 0x3e2   : > { %14811 = vst [vmem:[#allocation13_spill] sm:$0xff] %v12940_v8  ;;  %v4290_v7 = vadd.f32 %v4181_v12, %v12702_v40 }
 0x3e3   : > { %v4183_v24 = vpop.f32.mrf.mxu1  ;;  %v12945_v48 = vpop.f32.mrf.mxu0 }
 0x3e4   : > { %v4291_v42 = vadd.f32 %v4183_v24, %v12706_v57  ;;  %14812 = vst [vmem:[#allocation17_spill] sm:$0xff] %v12945_v48  ;;  %v12947_v9 = vadd.f32 %v4694_v58, %v4290_v7  ;;  %v9259_v57 = vld [vmem:[%s14345_s3 + $0x70] sm:$0xff]  }
 0x3e5   : > { %v4185_v30 = vpop.f32.mrf.mxu1  ;;  %v4714_v17 = vpop.f32.mrf.mxu0  ;;  %6427 = vmatpush1.bf16.msra.mxu0 %v9259_v57 }
 0x3e6   : > { %14813 = vst [vmem:[#allocation19_spill] sm:$0xff] %v12947_v9  ;;  %v4292_v14 = vadd.f32 %v4185_v30, %v12710_v27  ;;  %v12950_v19 = vadd.f32 %v4696_v15, %v4291_v42  ;;  %6428 = vmatprep.subr.bf16.mxu0 %v14732_v35 }
 0x3e7   : > { %v12952_v44 = vpop.f32.mrf.mxu1  ;;  %v4716_v38 = vpop.f32.mrf.mxu0 }
 0x3e8   : > { %14814 = vst [vmem:[#allocation68_spill] sm:$0xff] %v12950_v19  ;;  %v12954_v55 = vadd.f32 %v4698_v47, %v4292_v14  ;;  %v14818_v47 = vld [vmem:[#allocation38_spill] sm:$0xff] }
 0x3e9   : > { %v4191_v40 = vpop.f32.mrf.mxu1  ;;  %v4718_v8 = vpop.f32.mrf.mxu0 }
 0x3ea   : > { %14815 = vst [vmem:[#allocation24_spill] sm:$0xff] %v12954_v55  ;;  %v4294_v12 = vadd.f32 %v4191_v40, %v12715_v11 }
 0x3eb   : > { %v4193_v58 = vpop.f32.mrf.mxu1  ;;  %v12961_v27 = vpop.f32.mrf.mxu0 }
 0x3ec   : > { %v4295_v7 = vadd.f32 %v4193_v58, %v12719_v5  ;;  %14816 = vst [vmem:[#allocation30_spill] sm:$0xff] %v12961_v27  ;;  %v12963_v15 = vadd.f32 %v4704_v53, %v4294_v12  ;;  %v14822_v5 = vld [vmem:[#allocation41_spill] sm:$0xff]  ;;  %v14823_v53 = vld [vmem:[#allocation40_spill] sm:$0xff] }
 0x3ed   : > { %v4195_v24 = vpop.f32.mrf.mxu1  ;;  %v4724_v30 = vpop.f32.mrf.mxu0 }
 0x3ee   : > { %14817 = vst [vmem:[#allocation49_spill] sm:$0xff] %v12963_v15  ;;  %v4296_v42 = vadd.f32 %v4195_v24, %v14818_v47  ;;  %v12967_v11 = vadd.f32 %v4706_v52, %v4295_v7  ;;  %v14826_v47 = vld [vmem:[#allocation23_spill] sm:$0xff] }
 0x3ef   : > { %v12969_v14 = vpop.f32.mrf.mxu1  ;;  %v4726_v40 = vpop.f32.mrf.mxu0 }
 0x3f0   : > { %14819 = vst [vmem:[#allocation51_spill] sm:$0xff] %v12967_v11  ;;  %14820 = vst [vmem:[#allocation31_spill] sm:$0xff] %v12969_v14  ;;  %v12971_v48 = vadd.f32 %v4708_v51, %v4296_v42 }
 0x3f1   : > { %v4201_v55 = vpop.f32.mrf.mxu1  ;;  %v4728_v27 = vpop.f32.mrf.mxu0 }
 0x3f2   : > { %14821 = vst [vmem:[#allocation53_spill] sm:$0xff] %v12971_v48  ;;  %v4298_v58 = vadd.f32 %v4201_v55, %v14822_v5  ;;  %v9260_v55 = vld [vmem:[%s14345_s3 + $0x68] sm:$0xff]  }
 0x3f3   : > { %v4203_v57 = vpop.f32.mrf.mxu1  ;;  %v12975_v15 = vpop.f32.mrf.mxu0  ;;  %6429 = vmatpush1.bf16.msra.mxu0 %v9260_v55 }
 0x3f4   : > { %v4299_v12 = vadd.f32 %v4203_v57, %v14823_v53  ;;  %14824 = vst [vmem:[#allocation5_spill] sm:$0xff] %v12975_v15  ;;  %v12977_v19 = vadd.f32 %v4714_v17, %v4298_v58  ;;  %v14830_v57 = vld [vmem:[#allocation73_spill] sm:$0xff]  ;;  %6430 = vmatprep.subr.bf16.mxu0 %v14732_v35 }
 0x3f5   : > { %v4205_v24 = vpop.f32.mrf.mxu1  ;;  %v4734_v7 = vpop.f32.mrf.mxu0 }
 0x3f6   : > { %14825 = vst [vmem:[#allocation32_spill] sm:$0xff] %v12977_v19  ;;  %v4300_v52 = vadd.f32 %v4205_v24, %v14826_v47  ;;  %v12980_v11 = vadd.f32 %v4716_v38, %v4299_v12  ;;  %v14831_v24 = vld [vmem:[#allocation29_spill] sm:$0xff] }
 0x3f7   : > { %v12982_v14 = vpop.f32.mrf.mxu1  ;;  %v4736_v51 = vpop.f32.mrf.mxu0 }
 0x3f8   : > { %14827 = vst [vmem:[#allocation58_spill] sm:$0xff] %v12980_v11  ;;  %14828 = vst [vmem:[#allocation60_spill] sm:$0xff] %v12982_v14  ;;  %v12987_v42 = vadd.f32 %v4718_v8, %v4300_v52  ;;  %v14834_v11 = vld [vmem:[#allocation44_spill] sm:$0xff] }
 0x3f9   : > { %v4211_v5 = vpop.f32.mrf.mxu1  ;;  %v4738_v17 = vpop.f32.mrf.mxu0 }
 0x3fa   : > { %14829 = vst [vmem:[#allocation37_spill] sm:$0xff] %v12987_v42  ;;  %v4302_v53 = vadd.f32 %v4211_v5, %v14830_v57  ;;  %v14838_v42 = vld [vmem:[#allocation54_spill] sm:$0xff] }
 0x3fb   : > { %v4213_v58 = vpop.f32.mrf.mxu1  ;;  %v12992_v12 = vpop.f32.mrf.mxu0 }
 0x3fc   : > { %v4303_v38 = vadd.f32 %v4213_v58, %v14831_v24  ;;  %14832 = vst [vmem:[#allocation61_spill] sm:$0xff] %v12992_v12  ;;  %v12994_v47 = vadd.f32 %v4724_v30, %v4302_v53  ;;  %v14839_v24 = vld [vmem:[#allocation48_spill] sm:$0xff] }
 0x3fd   : > { %v4215_v15 = vpop.f32.mrf.mxu1  ;;  %v4744_v14 = vpop.f32.mrf.mxu0  ;;  %v14842_v53 = vld [vmem:[#allocation56_spill] sm:$0xff] }
 0x3fe   : > { %14833 = vst [vmem:[#allocation63_spill] sm:$0xff] %v12994_v47  ;;  %v4304_v19 = vadd.f32 %v4215_v15, %v14834_v11  ;;  %v12997_v8 = vadd.f32 %v4726_v40, %v4303_v38  ;;  %v9261_v15 = vld [vmem:[%s14345_s3 + $0x60] sm:$0xff]  }
 0x3ff   : > { %v12999_v52 = vpop.f32.mrf.mxu1  ;;  %v4746_v5 = vpop.f32.mrf.mxu0  ;;  %6431 = vmatpush1.bf16.msra.mxu0 %v9261_v15 }
 0x400   : > { %14835 = vst [vmem:[#allocation10_spill] sm:$0xff] %v12997_v8  ;;  %14836 = vst [vmem:[#allocation8_spill] sm:$0xff] %v12999_v52  ;;  %v13001_v57 = vadd.f32 %v4728_v27, %v4304_v19  ;;  %6432 = vmatprep.subr.bf16.mxu0 %v14732_v35 }
 0x401   : > { %v4221_v55 = vpop.f32.mrf.mxu1  ;;  %v4748_v9 = vpop.f32.mrf.mxu0 }
 0x402   : > { %14837 = vst [vmem:[#allocation65_spill] sm:$0xff] %v13001_v57  ;;  %v4306_v48 = vadd.f32 %v4221_v55, %v14838_v42 }
 0x403   : > { %v4223_v58 = vpop.f32.mrf.mxu1  ;;  %v13005_v30 = vpop.f32.mrf.mxu0 }
 0x404   : > { %v4307_v12 = vadd.f32 %v4223_v58, %v14839_v24  ;;  %14840 = vst [vmem:[#allocation47_spill] sm:$0xff] %v13005_v30  ;;  %v13010_v11 = vadd.f32 %v4734_v7, %v4306_v48  ;;  %v14846_v30 = vld [vmem:[#allocation55_spill] sm:$0xff] }
 0x405   : > { %v4225_v40 = vpop.f32.mrf.mxu1  ;;  %v4754_v19 = vpop.f32.mrf.mxu0  ;;  %v14847_v7 = vld [vmem:[#allocation71_spill] sm:$0xff] }
 0x406   : > { %14841 = vst [vmem:[#allocation11_spill] sm:$0xff] %v13010_v11  ;;  %v4308_v38 = vadd.f32 %v4225_v40, %v14842_v53  ;;  %v13013_v27 = vadd.f32 %v4736_v51, %v4307_v12  ;;  %v14849_v12 = vld [vmem:[#allocation57_spill] sm:$0xff] }
 0x407   : > { %v13015_v42 = vpop.f32.mrf.mxu1  ;;  %v4756_v55 = vpop.f32.mrf.mxu0 }
 0x408   : > { %14843 = vst [vmem:[#allocation52_spill] sm:$0xff] %v13013_v27  ;;  %14844 = vst [vmem:[#allocation16_spill] sm:$0xff] %v13015_v42  ;;  %v13018_v58 = vadd.f32 %v4738_v17, %v4308_v38 }
 0x409   : > { %v4231_v24 = vpop.f32.mrf.mxu1  ;;  %v4758_v8 = vpop.f32.mrf.mxu0 }
 0x40a   : > { %14845 = vst [vmem:[#allocation67_spill] sm:$0xff] %v13018_v58  ;;  %v4310_v57 = vadd.f32 %v4231_v24, %v14846_v30  ;;  %v14850_v24 = vld [vmem:[#allocation62_spill] sm:$0xff] }
 0x40b   : > { %v4233_v48 = vpop.f32.mrf.mxu1  ;;  %v13022_v47 = vpop.f32.mrf.mxu0 }
 0x40c   : > { %v4311_v11 = vadd.f32 %v4233_v48, %v14847_v7  ;;  %14848 = vst [vmem:[#allocation18_spill] sm:$0xff] %v13022_v47  ;;  %v13024_v40 = vadd.f32 %v4744_v14, %v4310_v57  ;;  %v9262_v14 = vld [vmem:[%s14345_s3 + $0x58] sm:$0xff]  }
 0x40d   : > { %v4235_v51 = vpop.f32.mrf.mxu1  ;;  %v4764_v53 = vpop.f32.mrf.mxu0  ;;  %v9263_v57 = vld [vmem:[%s14345_s3 + $0x38] sm:$0xff]   ;;  %6433 = vmatpush1.bf16.msra.mxu0 %v9262_v14 }
 0x40e   : > { %v4312_v15 = vadd.f32 %v4235_v51, %v14849_v12  ;;  %v13027_v27 = vadd.f32 %v4746_v5, %v4311_v11  ;;  %v14851_v5 = vld [vmem:[#allocation64_spill] sm:$0xff]  ;;  %6659 = vmatpush1.bf16.msra.mxu1 %v9263_v57  ;;  %6434 = vmatprep.subr.bf16.mxu0 %v14732_v35 }
 0x40f   : > { %v13029_v42 = vpop.f32.mrf.mxu1  ;;  %v4766_v17 = vpop.f32.mrf.mxu0  ;;  %6660 = vmatprep.subr.bf16.mxu1 %v14732_v35 }
 0x410   : > { %v13031_v38 = vadd.f32 %v4748_v9, %v4312_v15  ;;  %v9264_v15 = vld [vmem:[%s14345_s3 + $0x30] sm:$0xff]  }
 0x411   : > { %v4241_v30 = vpop.f32.mrf.mxu1  ;;  %v4768_v52 = vpop.f32.mrf.mxu0 }
 0x412   : > { %v4314_v58 = vadd.f32 %v4241_v30, %v14850_v24  ;;  %v14853_v52 = vld [vmem:[#allocation42_spill] sm:$0xff]  ;;  %6661 = vmatpush1.bf16.msra.mxu1 %v9264_v15 }
 0x413   : > { %v4243_v48 = vpop.f32.mrf.mxu1  ;;  %v4769_v7 = vpop.f32.mrf.mxu0  ;;  %6662 = vmatprep.subr.bf16.mxu1 %v14732_v35 }
 0x414   : > { %v4315_v11 = vadd.f32 %v4243_v48, %v14851_v5  ;;  %v13041_v9 = vadd.f32 %v4754_v19, %v4314_v58  ;;  %v14857_v58 = vld [vmem:[#allocation7_spill] sm:$0xff]  ;;  %v9265_v48 = vld [vmem:[%s14345_s3 + $0x28] sm:$0xff]   ;;  %v14858_v7 = vld [vmem:[#allocation9_spill] sm:$0xff] }
 0x415   : > { %v4245_v51 = vpop.f32.mrf.mxu1 }
 0x416   : > { %14852 = vst [vmem:[#allocation38_spill] sm:$0xff] %v13041_v9  ;;  %v4316_v12 = vadd.f32 %v4245_v51, %v14853_v52  ;;  %v13049_v30 = vadd.f32 %v4756_v55, %v4315_v11  ;;  %6663 = vmatpush1.bf16.msra.mxu1 %v9265_v48  ;;  %v9266_v52 = vld [vmem:[%s14345_s3 + $0x50] sm:$0xff]  }
 0x417   : > { %v13051_v24 = vpop.f32.mrf.mxu1  ;;  %6664 = vmatprep.subr.bf16.mxu1 %v14732_v35  ;;  %6435 = vmatpush1.bf16.msra.mxu0 %v9266_v52  ;;  %v14864_v52 = vmov 65535  }
 0x418   : > { %14854 = vst [vmem:[#allocation41_spill] sm:$0xff] %v13049_v30  ;;  %14855 = vst [vmem:[#allocation40_spill] sm:$0xff] %v13051_v24  ;;  %v13053_v14 = vadd.f32 %v4758_v8, %v4316_v12  ;;  %v8425_v8 = vld [vmem:[%s14348_s6 + $0x1] ss:$8 sm:$0x3]  ;;  %6448 = vmatprep.subr.bf16.mxu0 %v14732_v35 }
 0x419   : > { %v4251_v19 = vpop.f32.mrf.mxu1  ;;  %v9267_v12 = vld [vmem:[%s14345_s3 + $0x20] sm:$0xff]  }
 0x41a   : > { %14856 = vst [vmem:[#allocation23_spill] sm:$0xff] %v13053_v14  ;;  %v4318_v57 = vadd.f32 %v4251_v19, %v14857_v58  ;;  %6665 = vmatpush1.bf16.msra.mxu1 %v9267_v12  ;;  %v14861_v58 = vld [vmem:[#allocation15_spill] sm:$0xff]  ;;  %v6415_v12 = vsel %vm993_vm3, 4294967295, %v14864_v52 }
 0x41b   : > { %v4253_v5 = vpop.f32.mrf.mxu1  ;;  %6666 = vmatprep.subr.bf16.mxu1 %v14732_v35 }
 0x41c   : > { %v4319_v51 = vadd.f32 %v4253_v5, %v14858_v7  ;;  %v13061_v55 = vadd.f32 %v4764_v53, %v4318_v57  ;;  %v14862_v57 = vsub.s32 0, %v14861_v58 }
 0x41d   : > { %v4255_v11 = vpop.f32.mrf.mxu1 }
 0x41e   : > { %14859 = vst [vmem:[#allocation73_spill] sm:$0xff] %v13061_v55  ;;  %v13073_v15 = vadd.f32 %v4766_v17, %v4319_v51  ;;  %v13077_v48 = vrot.slane %v8425_v8, %v14862_v57  ;;  %v14863_v11 = vsub.s32 1, %v14861_v58  ;;  %v9268_v51 = vld [vmem:[%s14345_s3 + $0x18] sm:$0xff]   ;;  %v9269_v58 = vld [vmem:[%s14345_s3 + $0x10] sm:$0xff]  }
 0x41f   : > { %v4256_v19 = vpop.f32.mrf.mxu1  ;;  %6667 = vmatpush1.bf16.msra.mxu1 %v9268_v51 }
 0x420   : > { %14860 = vst [vmem:[#allocation29_spill] sm:$0xff] %v13073_v15  ;;  %v13084_v55 = vrot.slane %v8425_v8, %v14863_v11  ;;  %6668 = vmatprep.subr.bf16.mxu1 %v14732_v35 }
 0x421   : > { %v5127_v53 = vpop.f32.mrf.mxu1 }
 0x422   : > { %v5284_v5 = vadd.f32 %v5127_v53, %v12806_v37  ;;  %v9271_v37 = vld [vmem:[%s14345_s3 + $0x98] sm:$0xff]  }
 0x423   : > { %v5129_v7 = vpop.f32.mrf.mxu1  ;;  %v14865_v53 = vld [vmem:[#allocation66_spill] sm:$0xff]  ;;  %6669 = vmatpush1.bf16.msra.mxu1 %v9269_v58 }
 0x424   : > { %v5285_v17 = vadd.f32 %v5129_v7, %v12809_v33  ;;  %v5359_v19 = vadd.f32 %v13077_v48, %v5284_v5  ;;  %v4774_v33 = vadd.f32 %v14865_v53, %v12812_v25  ;;  %v13102_v7 = vsel %vm6414_vm10, %v6415_v12, 0  ;;  %6670 = vmatprep.subr.bf16.mxu1 %v14732_v35 }
 0x425   : > { %v5131_v57 = vpop.f32.mrf.mxu1  ;;  %v6418_v52 = vand.u32 %v9271_v37, %v13102_v7 }
 0x426   : > { %v5286_v8 = vadd.f32 %v5131_v57, %v12814_v2  ;;  %v5360_v11 = vadd.f32 %v13084_v55, %v5285_v17  ;;  %v5421_v57 = vmax.f32 %v5359_v19, 0.0  ;;  %v9270_v17 = vld [vmem:[%s14345_s3 + $0x8] sm:$0xff]  }
 0x427   : > { %v5133_v5 = vpop.f32.mrf.mxu1  ;;  %6449 = vmatpush2.bf16.msra.mxu0 %v6418_v52  ;;  %6671 = vmatpush1.bf16.msra.mxu1 %v9270_v17 }
 0x428   : > { %v5361_v15 = vadd.f32 %v13077_v48, %v5286_v8  ;;  %v5287_v2 = vadd.f32 %v5133_v5, %v4774_v33  ;;  %6450 = vmatprep.subr.bf16.mxu0 %v14732_v35  ;;  %v5422_v12 = vmax.f32 %v5360_v11, 0.0  ;;  %v5546_v5 = vrot.slane %v5421_v57, 2  ;;  %6672 = vmatprep.subr.bf16.mxu1 %v14732_v35 }
 0x429   : > { %v5137_v14 = vpop.f32.mrf.mxu1 }
 0x42a   : > { %v5423_v25 = vmax.f32 %v5361_v15, 0.0  ;;  %v5362_v51 = vadd.f32 %v13084_v55, %v5287_v2  ;;  %v5288_v53 = vadd.f32 %v5137_v14, %v12823_v45  ;;  %v4778_v14 = vadd.f32 %v12804_v59, %v12829_v6 }
 0x42b   : > { %v5139_v37 = vpop.f32.mrf.mxu1 }
 0x42c   : > { %v5547_v8 = vrot.slane %v5423_v25, 2  ;;  %v5424_v19 = vmax.f32 %v5362_v51, 0.0  ;;  %v13116_v33 = vadd.f32 %v13077_v48, %v5288_v53  ;;  %v5289_v15 = vadd.f32 %v5139_v37, %v12826_v41  ;;  %v9272_v51 = vld [vmem:[%s14345_s3] sm:$0xff]  }
 0x42d   : > { %v5141_v45 = vpop.f32.mrf.mxu1  ;;  %v5549_v53 = vrot.slane %v5422_v12, 2  ;;  %6673 = vmatpush1.bf16.msra.mxu1 %v9272_v51 }
 0x42e   : > { %v5550_v58 = vrot.slane %v5424_v19, 2  ;;  %v5425_v52 = vmax.f32 %v13116_v33, 0.0  ;;  %v13123_v11 = vadd.f32 %v13084_v55, %v5289_v15  ;;  %v5290_v2 = vadd.f32 %v5141_v45, %v12831_v62  ;;  %6686 = vmatprep.subr.bf16.mxu1 %v14732_v35 }
 0x42f   : > { %v5143_v41 = vpop.f32.mrf.mxu1  ;;  %v5548_v37 = vsel %vm1749_vm4, %v5546_v5, %v5547_v8 }
 0x430   : > { %v5552_v59 = vrot.slane %v5425_v52, 2  ;;  %v5426_v6 = vmax.f32 %v13123_v11, 0.0  ;;  %v13133_v33 = vadd.f32 %v13077_v48, %v5290_v2  ;;  %v5291_v15 = vadd.f32 %v5143_v41, %v4778_v14 }
 0x431   : > { %v5147_v47 = vpop.f32.mrf.mxu1  ;;  %v5551_v62 = vsel %vm1749_vm4, %v5549_v53, %v5550_v58  ;;  %v13136_v17 = vmax.f32 %v5421_v57, %v5548_v37  ;;  %v4782_v14 = vadd.f32 %v12821_v54, %v12846_v43  ;;  %v9273_v57 = vld [vmem:[%s14345_s3 + $0x48] sm:$0xff]   ;;  %v9275_v37 = vld [vmem:[%s14345_s3 + $0x90] sm:$0xff]  }
 0x432   : > { %v5554_v45 = vrot.slane %v5426_v6, 2  ;;  %v5427_v30 = vmax.f32 %v13133_v33, 0.0  ;;  %v13140_v9 = vadd.f32 %v13084_v55, %v5291_v15  ;;  %v5292_v5 = vadd.f32 %v5147_v47, %v12840_v13  ;;  %6451 = vmatpush2.bf16.msra.mxu0 %v9275_v37 }
 0x433   : > { %v5149_v24 = vpop.f32.mrf.mxu1  ;;  %v13143_v11 = vmax.f32 %v5422_v12, %v5551_v62  ;;  %v5553_v2 = vsel %vm1749_vm4, %v5547_v8, %v5552_v59  ;;  %v6656_v51 = vand.u32 %v9273_v57, %v13102_v7  ;;  %v9274_v62 = vld [vmem:[%s14345_s3 + $0x40] sm:$0xff]   ;;  %6990 = vmatprep.subr.bf16.mxu0 %v14732_v35 }
 0x434   : > { %v5556_v53 = vrot.slane %v5427_v30, 2  ;;  %v5428_v41 = vmax.f32 %v13140_v9, 0.0  ;;  %v13154_v13 = vadd.f32 %v13077_v48, %v5292_v5  ;;  %v5293_v47 = vadd.f32 %v5149_v24, %v12843_v18 }
 0x435   : > { %v8911_v12 = vpack.i.bf16 %v13143_v11, %v13136_v17  ;;  %v5151_v54 = vpop.f32.mrf.mxu1  ;;  %v5555_v43 = vsel %vm1749_vm4, %v5550_v58, %v5554_v45  ;;  %v13160_v8 = vmax.f32 %v5423_v25, %v5553_v2  ;;  %6687 = vmatpush2.bf16.msra.mxu1 %v6656_v51 }
 0x436   : > { %v5558_v9 = vrot.slane %v5428_v41, 2  ;;  %v5429_v33 = vmax.f32 %v13154_v13, 0.0  ;;  %v13168_v15 = vadd.f32 %v13084_v55, %v5293_v47  ;;  %v5294_v18 = vadd.f32 %v5151_v54, %v12848_v46  ;;  %6688 = vmatprep.subr.bf16.mxu1 %v14732_v35 }
 0x437   : > { %8912 = vrot.lane.b32.xlu0 %v8911_v12, %s9388_s19  ;;  %v5153_v24 = vpop.f32.mrf.mxu1  ;;  %v13172_v58 = vmax.f32 %v5424_v19, %v5555_v43  ;;  %v5557_v25 = vsel %vm1749_vm4, %v5552_v59, %v5556_v53 }
 0x438   : > { %v5560_v5 = vrot.slane %v5429_v33, 2  ;;  %v5430_v2 = vmax.f32 %v13168_v15, 0.0  ;;  %v13180_v57 = vadd.f32 %v13077_v48, %v5294_v18  ;;  %v5295_v13 = vadd.f32 %v5153_v24, %v4782_v14 }
 0x439   : > { %v8916_v46 = vpack.i.bf16 %v13172_v58, %v13160_v8  ;;  %v5157_v19 = vpop.f32.mrf.mxu1  ;;  %v5559_v59 = vsel %vm1749_vm4, %v5554_v45, %v5558_v9  ;;  %v13186_v47 = vmax.f32 %v5425_v52, %v5557_v25  ;;  %6689 = vmatpush2.bf16.msra.mxu1 %v9274_v62 }
 0x43a   : > { %v5562_v12 = vrot.slane %v5430_v2, 2  ;;  %v5431_v54 = vmax.f32 %v13180_v57, 0.0  ;;  %v5370_v43 = vadd.f32 %v13084_v55, %v5295_v13  ;;  %v5296_v14 = vadd.f32 %v5157_v19, %v12857_v0  ;;  %7331 = vmatprep.subr.bf16.mxu1 %v14732_v35 }
 0x43b   : > { %8917 = vrot.lane.b32.xlu1 %v8916_v46, %s9388_s19  ;;  %v5159_v51 = vpop.f32.mrf.mxu1  ;;  %v13193_v37 = vmax.f32 %v5426_v6, %v5559_v59  ;;  %v5561_v15 = vsel %vm1749_vm4, %v5556_v53, %v5560_v5  ;;  %v4786_v57 = vadd.f32 %v12838_v4, %v12863_v23  ;;  %v14867_v59 = vld [vmem:[#allocation25_spill] sm:$0xff] }
 0x43c   : > { %v5564_v45 = vrot.slane %v5431_v54, 2  ;;  %v5432_v52 = vmax.f32 %v5370_v43, 0.0  ;;  %v5371_v18 = vadd.f32 %v13077_v48, %v5296_v14  ;;  %v5297_v24 = vadd.f32 %v5159_v51, %v12860_v20  ;;  %v14866_v20 = vld [vmem:[#allocation20_spill] sm:$0xff] }
 0x43d   : > { %v8921_v25 = vpack.i.bf16 %v13193_v37, %v13186_v47  ;;  %v5161_v0 = vpop.f32.mrf.mxu1  ;;  %v5563_v6 = vsel %vm1749_vm4, %v5558_v9, %v5562_v12  ;;  %v13204_v13 = vmax.f32 %v5427_v30, %v5561_v15  ;;  %v3698_v43 = vadd.f32 %v14867_v59, %v14866_v20 }
 0x43e   : > { %v5566_v53 = vrot.slane %v5432_v52, 2  ;;  %v5433_v62 = vmax.f32 %v5371_v18, 0.0  ;;  %v5372_v46 = vadd.f32 %v13084_v55, %v5297_v24  ;;  %v5298_v19 = vadd.f32 %v5161_v0, %v12865_v60 }
 0x43f   : > { %8922 = vrot.lane.b32.xlu0 %v8921_v25, %s9388_s19  ;;  %v5163_v14 = vpop.f32.mrf.mxu1  ;;  %v13211_v51 = vmax.f32 %v5428_v41, %v5563_v6  ;;  %v5565_v4 = vsel %vm1749_vm4, %v5560_v5, %v5564_v45  ;;  %v4277_v18 = vadd.f32 %v12882_v49, %v3698_v43 }
 0x440   : > { %v5568_v23 = vrot.slane %v5433_v62, 2  ;;  %v5434_v9 = vmax.f32 %v5372_v46, 0.0  ;;  %v5373_v30 = vadd.f32 %v13077_v48, %v5298_v19  ;;  %v5299_v15 = vadd.f32 %v5163_v14, %v4786_v57 }
 0x441   : > { %v8926_v60 = vpack.i.bf16 %v13211_v51, %v13204_v13  ;;  %v5167_v24 = vpop.f32.mrf.mxu1  ;;  %v5567_v0 = vsel %vm1749_vm4, %v5562_v12, %v5566_v53  ;;  %v13219_v20 = vmax.f32 %v5429_v33, %v5565_v4  ;;  %v4790_v4 = vadd.f32 %v12855_v16, %v4277_v18 }
 0x442   : > { %v5570_v25 = vrot.slane %v5434_v9, 2  ;;  %v5435_v41 = vmax.f32 %v5373_v30, 0.0  ;;  %v5374_v6 = vadd.f32 %v13084_v55, %v5299_v15  ;;  %v5300_v5 = vadd.f32 %v5167_v24, %v12877_v1  ;;  %v14868_v24 = vld [vmem:[#allocation34_spill] sm:$0xff] }
 0x443   : > { %8927 = vrot.lane.b32.xlu1 %v8926_v60, %s9388_s19  ;;  %v5169_v46 = vpop.f32.mrf.mxu1  ;;  %v13224_v57 = vmax.f32 %v5430_v2, %v5567_v0  ;;  %v5569_v49 = vsel %vm1749_vm4, %v5564_v45, %v5568_v23  ;;  %v14869_v0 = vld [vmem:[#allocation21_spill] sm:$0xff] }
 0x444   : > { %v5572_v19 = vrot.slane %v5435_v41, 2  ;;  %v5436_v59 = vmax.f32 %v5374_v6, 0.0  ;;  %v5375_v43 = vadd.f32 %v13077_v48, %v5300_v5  ;;  %v5301_v33 = vadd.f32 %v5169_v46, %v12880_v28 }
 0x445   : > { %v8931_v12 = vpack.i.bf16 %v13224_v57, %v13219_v20  ;;  %v5171_v14 = vpop.f32.mrf.mxu1  ;;  %v5571_v1 = vsel %vm1749_vm4, %v5566_v53, %v5570_v25  ;;  %v13233_v30 = vmax.f32 %v5431_v54, %v5569_v49  ;;  %v3708_v6 = vadd.f32 %v14869_v0, %v14868_v24 }
 0x446   : > { %v5574_v2 = vrot.slane %v5436_v59, 2  ;;  %v5437_v15 = vmax.f32 %v5375_v43, 0.0  ;;  %v5376_v45 = vadd.f32 %v13084_v55, %v5301_v33  ;;  %v5302_v60 = vadd.f32 %v5171_v14, %v12885_v3 }
 0x447   : > { %8932 = vrot.lane.b32.xlu0 %v8931_v12, %s9388_s19  ;;  %v5173_v28 = vpop.f32.mrf.mxu1  ;;  %v13240_v5 = vmax.f32 %v5432_v52, %v5571_v1  ;;  %v5573_v16 = vsel %vm1749_vm4, %v5568_v23, %v5572_v19  ;;  %v4281_v49 = vadd.f32 %v12899_v50, %v3708_v6 }
 0x448   : > { %v5576_v18 = vrot.slane %v5437_v15, 2  ;;  %v5438_v53 = vmax.f32 %v5376_v45, 0.0  ;;  %v5377_v54 = vadd.f32 %v13077_v48, %v5302_v60  ;;  %v5303_v46 = vadd.f32 %v5173_v28, %v4790_v4 }
 0x449   : > { %v8936_v3 = vpack.i.bf16 %v13240_v5, %v13233_v30  ;;  %v5177_v43 = vpop.f32.mrf.mxu1  ;;  %v5575_v33 = vsel %vm1749_vm4, %v5570_v25, %v5574_v2  ;;  %v13248_v14 = vmax.f32 %v5433_v62, %v5573_v16  ;;  %v4794_v28 = vadd.f32 %v12872_v61, %v4281_v49 }
 0x44a   : > { %v5578_v12 = vrot.slane %v5438_v53, 2  ;;  %v5439_v52 = vmax.f32 %v5377_v54, 0.0  ;;  %v5378_v1 = vadd.f32 %v13084_v55, %v5303_v46  ;;  %v5304_v23 = vadd.f32 %v5177_v43, %v12894_v26  ;;  %v14871_v43 = vld [vmem:[#allocation27_spill] sm:$0xff] }
 0x44b   : > { %8937 = vrot.lane.b32.xlu1 %v8936_v3, %s9388_s19  ;;  %v5179_v45 = vpop.f32.mrf.mxu1  ;;  %v13253_v4 = vmax.f32 %v5434_v9, %v5575_v33  ;;  %v5577_v50 = vsel %vm1749_vm4, %v5572_v19, %v5576_v18  ;;  %v14870_v3 = vld [vmem:[#allocation69_spill] sm:$0xff] }
 0x44c   : > { %v5580_v60 = vrot.slane %v5439_v52, 2  ;;  %v5440_v24 = vmax.f32 %v5378_v1, 0.0  ;;  %v5379_v0 = vadd.f32 %v13077_v48, %v5304_v23  ;;  %v5305_v62 = vadd.f32 %v5179_v45, %v12897_v31 }
 0x44d   : > { %v8941_v25 = vpack.i.bf16 %v13253_v4, %v13248_v14  ;;  %v5181_v6 = vpop.f32.mrf.mxu1  ;;  %v5579_v26 = vsel %vm1749_vm4, %v5574_v2, %v5578_v12  ;;  %v13262_v16 = vmax.f32 %v5435_v41, %v5577_v50  ;;  %v3718_v33 = vadd.f32 %v14871_v43, %v14870_v3 }
 0x44e   : > { %v5582_v9 = vrot.slane %v5440_v24, 2  ;;  %v5441_v54 = vmax.f32 %v5379_v0, 0.0  ;;  %v5380_v19 = vadd.f32 %v13084_v55, %v5305_v62  ;;  %v5306_v46 = vadd.f32 %v5181_v6, %v12901_v39 }
 0x44f   : > { %8942 = vrot.lane.b32.xlu0 %v8941_v25, %s9388_s19  ;;  %v5183_v31 = vpop.f32.mrf.mxu1  ;;  %v13269_v1 = vmax.f32 %v5436_v59, %v5579_v26  ;;  %v5581_v61 = vsel %vm1749_vm4, %v5576_v18, %v5580_v60  ;;  %v4285_v45 = vadd.f32 %v12920_v29, %v3718_v33 }
 0x450   : > { %v5584_v49 = vrot.slane %v5441_v54, 2  ;;  %v5442_v2 = vmax.f32 %v5380_v19, 0.0  ;;  %v5381_v41 = vadd.f32 %v13077_v48, %v5306_v46  ;;  %v5307_v23 = vadd.f32 %v5183_v31, %v4794_v28 }
 0x451   : > { %v8946_v39 = vpack.i.bf16 %v13269_v1, %v13262_v16  ;;  %v5187_v50 = vpop.f32.mrf.mxu1  ;;  %v5583_v0 = vsel %vm1749_vm4, %v5578_v12, %v5582_v9  ;;  %v13277_v62 = vmax.f32 %v5437_v15, %v5581_v61  ;;  %v4798_v33 = vadd.f32 %v12892_v56, %v4285_v45 }
 0x452   : > { %v5586_v25 = vrot.slane %v5442_v2, 2  ;;  %v5443_v59 = vmax.f32 %v5381_v41, 0.0  ;;  %v5382_v6 = vadd.f32 %v13084_v55, %v5307_v23  ;;  %v5308_v18 = vadd.f32 %v5187_v50, %v12914_v34  ;;  %v14872_v23 = vld [vmem:[#allocation36_spill] sm:$0xff] }
 0x453   : > { %8947 = vrot.lane.b32.xlu1 %v8946_v39, %s9388_s19  ;;  %v5189_v26 = vpop.f32.mrf.mxu1  ;;  %v13282_v28 = vmax.f32 %v5438_v53, %v5583_v0  ;;  %v5585_v29 = vsel %vm1749_vm4, %v5580_v60, %v5584_v49  ;;  %v14873_v39 = vld [vmem:[#allocation33_spill] sm:$0xff] }
 0x454   : > { %v5588_v19 = vrot.slane %v5443_v59, 2  ;;  %v5444_v46 = vmax.f32 %v5382_v6, 0.0  ;;  %v5383_v3 = vadd.f32 %v13077_v48, %v5308_v18  ;;  %v5309_v15 = vadd.f32 %v5189_v26, %v12918_v10 }
 0x455   : > { %v8951_v12 = vpack.i.bf16 %v13282_v28, %v13277_v62  ;;  %v5191_v43 = vpop.f32.mrf.mxu1  ;;  %v5587_v34 = vsel %vm1749_vm4, %v5582_v9, %v5586_v25  ;;  %v13291_v31 = vmax.f32 %v5439_v52, %v5585_v29  ;;  %v3728_v50 = vadd.f32 %v14873_v39, %v14872_v23 }
 0x456   : > { %v5590_v53 = vrot.slane %v5444_v46, 2  ;;  %v5445_v61 = vmax.f32 %v5383_v3, 0.0  ;;  %v5384_v60 = vadd.f32 %v13084_v55, %v5309_v15  ;;  %v5310_v41 = vadd.f32 %v5191_v43, %v12922_v22 }
 0x457   : > { %8952 = vrot.lane.b32.xlu0 %v8951_v12, %s9388_s19  ;;  %v5193_v10 = vpop.f32.mrf.mxu1  ;;  %v13298_v0 = vmax.f32 %v5440_v24, %v5587_v34  ;;  %v5589_v56 = vsel %vm1749_vm4, %v5584_v49, %v5588_v19  ;;  %v4289_v18 = vadd.f32 %v12938_v21, %v3728_v50 }
 0x458   : > { %v5592_v45 = vrot.slane %v5445_v61, 2  ;;  %v5446_v9 = vmax.f32 %v5384_v60, 0.0  ;;  %v5385_v52 = vadd.f32 %v13077_v48, %v5310_v41  ;;  %v5311_v6 = vadd.f32 %v5193_v10, %v4798_v33 }
 0x459   : > { %v8956_v22 = vpack.i.bf16 %v13298_v0, %v13291_v31  ;;  %v5197_v26 = vpop.f32.mrf.mxu1  ;;  %v5591_v29 = vsel %vm1749_vm4, %v5586_v25, %v5590_v53  ;;  %v13306_v3 = vmax.f32 %v5441_v54, %v5589_v56  ;;  %v4802_v39 = vadd.f32 %v12912_v32, %v4289_v18  ;;  %v14874_v56 = vld [vmem:[#allocation13_spill] sm:$0xff] }
 0x45a   : > { %v5594_v15 = vrot.slane %v5446_v9, 2  ;;  %v5447_v24 = vmax.f32 %v5385_v52, 0.0  ;;  %v5386_v12 = vadd.f32 %v13084_v55, %v5311_v6  ;;  %v5312_v49 = vadd.f32 %v5197_v26, %v12930_v36  ;;  %v14875_v6 = vld [vmem:[#allocation22_spill] sm:$0xff] }
 0x45b   : > { %8957 = vrot.lane.b32.xlu1 %v8956_v22, %s9388_s19  ;;  %v5199_v43 = vpop.f32.mrf.mxu1  ;;  %v13311_v33 = vmax.f32 %v5442_v2, %v5591_v29  ;;  %v5593_v21 = vsel %vm1749_vm4, %v5588_v19, %v5592_v45  ;;  %v14876_v22 = vld [vmem:[#allocation70_spill] sm:$0xff] }
 0x45c   : > { %v5596_v34 = vrot.slane %v5447_v24, 2  ;;  %v5448_v60 = vmax.f32 %v5386_v12, 0.0  ;;  %v5387_v41 = vadd.f32 %v13077_v48, %v5312_v49  ;;  %v5313_v54 = vadd.f32 %v5199_v43, %v12936_v63 }
 0x45d   : > { %v8961_v25 = vpack.i.bf16 %v13311_v33, %v13306_v3  ;;  %v5201_v23 = vpop.f32.mrf.mxu1  ;;  %v5595_v36 = vsel %vm1749_vm4, %v5590_v53, %v5594_v15  ;;  %v13320_v50 = vmax.f32 %v5443_v59, %v5593_v21  ;;  %v3738_v26 = vadd.f32 %v14876_v22, %v14875_v6 }
 0x45e   : > { %v5598_v2 = vrot.slane %v5448_v60, 2  ;;  %v5449_v10 = vmax.f32 %v5387_v41, 0.0  ;;  %v5388_v19 = vadd.f32 %v13084_v55, %v5313_v54  ;;  %v5314_v52 = vadd.f32 %v5201_v23, %v14874_v56 }
 0x45f   : > { %8962 = vrot.lane.b32.xlu0 %v8961_v25, %s9388_s19  ;;  %v5203_v63 = vpop.f32.mrf.mxu1  ;;  %v13327_v29 = vmax.f32 %v5444_v46, %v5595_v36  ;;  %v5597_v32 = vsel %vm1749_vm4, %v5592_v45, %v5596_v34  ;;  %v4293_v49 = vadd.f32 %v12952_v44, %v3738_v26  ;;  %v14878_v45 = vld [vmem:[#allocation19_spill] sm:$0xff] }
 0x460   : > { %v5600_v18 = vrot.slane %v5449_v10, 2  ;;  %v5450_v53 = vmax.f32 %v5388_v19, 0.0  ;;  %v5389_v59 = vadd.f32 %v13077_v48, %v5314_v52  ;;  %v5315_v12 = vadd.f32 %v5203_v63, %v4802_v39  ;;  %v14881_v63 = vld [vmem:[#allocation14_spill] sm:$0xff] }
 0x461   : > { %v8966_v43 = vpack.i.bf16 %v13327_v29, %v13320_v50  ;;  %v5207_v21 = vpop.f32.mrf.mxu1  ;;  %v5599_v41 = vsel %vm1749_vm4, %v5594_v15, %v5598_v2  ;;  %v13335_v54 = vmax.f32 %v5445_v61, %v5597_v32  ;;  %v14880_v15 = vld [vmem:[#allocation68_spill] sm:$0xff]  ;;  %v4806_v32 = vadd.f32 %v14881_v63, %v4293_v49 }
 0x462   : > { %v5602_v25 = vrot.slane %v5450_v53, 2  ;;  %v5451_v46 = vmax.f32 %v5389_v59, 0.0  ;;  %v5390_v23 = vadd.f32 %v13084_v55, %v5315_v12  ;;  %v5316_v36 = vadd.f32 %v5207_v21, %v14878_v45  ;;  %v14883_v21 = vld [vmem:[#allocation24_spill] sm:$0xff]  ;;  %v14885_v45 = vld [vmem:[#allocation35_spill] sm:$0xff] }
 0x463   : > { %14877 = vst [vmem:[#allocation44_spill] sm:$0xff] %v13335_v54  ;;  %8967 = vrot.lane.b32.xlu1 %v8966_v43, %s9388_s19  ;;  %v5209_v19 = vpop.f32.mrf.mxu1  ;;  %v13340_v39 = vmax.f32 %v5446_v9, %v5599_v41  ;;  %v5601_v44 = vsel %vm1749_vm4, %v5596_v34, %v5600_v18 }
 0x464   : > { %v5604_v56 = vrot.slane %v5451_v46, 2  ;;  %v5452_v52 = vmax.f32 %v5390_v23, 0.0  ;;  %v5391_v6 = vadd.f32 %v13077_v48, %v5316_v36  ;;  %v5317_v61 = vadd.f32 %v5209_v19, %v14880_v15  ;;  %v14884_v23 = vld [vmem:[#allocation39_spill] sm:$0xff] }
 0x465   : > { %14879 = vst [vmem:[#allocation54_spill] sm:$0xff] %v13340_v39  ;;  %v8971_v22 = vpack.i.bf16 %v13340_v39, %v13335_v54  ;;  %v5211_v26 = vpop.f32.mrf.mxu1  ;;  %v5603_v59 = vsel %vm1749_vm4, %v5598_v2, %v5602_v25  ;;  %v13349_v12 = vmax.f32 %v5447_v24, %v5601_v44  ;;  %v3748_v36 = vadd.f32 %v14885_v45, %v14884_v23 }
 0x466   : > { %v5606_v9 = vrot.slane %v5452_v52, 2  ;;  %v5453_v43 = vmax.f32 %v5391_v6, 0.0  ;;  %v5392_v34 = vadd.f32 %v13084_v55, %v5317_v61  ;;  %v5318_v41 = vadd.f32 %v5211_v26, %v14883_v21  ;;  %v14887_v6 = vld [vmem:[#allocation31_spill] sm:$0xff] }
 0x467   : > { %14882 = vst [vmem:[#allocation48_spill] sm:$0xff] %v13349_v12  ;;  %8972 = vrot.lane.b32.xlu0 %v8971_v22, %s9388_s19  ;;  %v5213_v19 = vpop.f32.mrf.mxu1  ;;  %v13356_v15 = vmax.f32 %v5448_v60, %v5603_v59  ;;  %v5605_v49 = vsel %vm1749_vm4, %v5600_v18, %v5604_v56  ;;  %v4297_v54 = vadd.f32 %v14887_v6, %v3748_v36  ;;  %v14889_v18 = vld [vmem:[#allocation49_spill] sm:$0xff] }
 0x468   : > { %v5608_v63 = vrot.slane %v5453_v43, 2  ;;  %v5454_v2 = vmax.f32 %v5392_v34, 0.0  ;;  %v5393_v24 = vadd.f32 %v13077_v48, %v5318_v41  ;;  %v5319_v44 = vadd.f32 %v5213_v19, %v4806_v32 }
 0x469   : > { %14886 = vst [vmem:[#allocation56_spill] sm:$0xff] %v13356_v15  ;;  %v8976_v61 = vpack.i.bf16 %v13356_v15, %v13349_v12  ;;  %v5217_v26 = vpop.f32.mrf.mxu1  ;;  %v5607_v21 = vsel %vm1749_vm4, %v5602_v25, %v5606_v9  ;;  %v13364_v23 = vmax.f32 %v5449_v10, %v5605_v49  ;;  %v14891_v25 = vld [vmem:[#allocation51_spill] sm:$0xff] }
 0x46a   : > { %v5610_v22 = vrot.slane %v5454_v2, 2  ;;  %v5455_v60 = vmax.f32 %v5393_v24, 0.0  ;;  %v5394_v59 = vadd.f32 %v13084_v55, %v5319_v44  ;;  %v5320_v45 = vadd.f32 %v5217_v26, %v14889_v18  ;;  %v14892_v44 = vld [vmem:[#allocation17_spill] sm:$0xff]  ;;  %v14895_v15 = vld [vmem:[#allocation43_spill] sm:$0xff] }
 0x46b   : > { %14888 = vst [vmem:[#allocation55_spill] sm:$0xff] %v13364_v23  ;;  %8977 = vrot.lane.b32.xlu1 %v8976_v61, %s9388_s19  ;;  %v5219_v34 = vpop.f32.mrf.mxu1  ;;  %v13369_v32 = vmax.f32 %v5450_v53, %v5607_v21  ;;  %v5609_v41 = vsel %vm1749_vm4, %v5604_v56, %v5608_v63  ;;  %v4810_v12 = vadd.f32 %v14892_v44, %v4297_v54  ;;  %v14894_v18 = vld [vmem:[#allocation53_spill] sm:$0xff] }
 0x46c   : > { %v5612_v36 = vrot.slane %v5455_v60, 2  ;;  %v5456_v19 = vmax.f32 %v5394_v59, 0.0  ;;  %v5395_v6 = vadd.f32 %v13077_v48, %v5320_v45  ;;  %v5321_v10 = vadd.f32 %v5219_v34, %v14891_v25  ;;  %v14896_v45 = vld [vmem:[#allocation28_spill] sm:$0xff] }
 0x46d   : > { %14890 = vst [vmem:[#allocation71_spill] sm:$0xff] %v13369_v32  ;;  %v8981_v49 = vpack.i.bf16 %v13369_v32, %v13364_v23  ;;  %v5221_v24 = vpop.f32.mrf.mxu1  ;;  %v5611_v26 = vsel %vm1749_vm4, %v5606_v9, %v5610_v22  ;;  %v13378_v61 = vmax.f32 %v5451_v46, %v5609_v41  ;;  %v3758_v39 = vadd.f32 %v14896_v45, %v14895_v15 }
 0x46e   : > { %v5614_v53 = vrot.slane %v5456_v19, 2  ;;  %v5457_v21 = vmax.f32 %v5395_v6, 0.0  ;;  %v5396_v56 = vadd.f32 %v13084_v55, %v5321_v10  ;;  %v5322_v59 = vadd.f32 %v5221_v24, %v14894_v18  ;;  %v14898_v6 = vld [vmem:[#allocation60_spill] sm:$0xff] }
 0x46f   : > { %14893 = vst [vmem:[#allocation57_spill] sm:$0xff] %v13378_v61  ;;  %8982 = vrot.lane.b32.xlu0 %v8981_v49, %s9388_s19  ;;  %v5223_v34 = vpop.f32.mrf.mxu1  ;;  %v13385_v25 = vmax.f32 %v5452_v52, %v5611_v26  ;;  %v5613_v54 = vsel %vm1749_vm4, %v5608_v63, %v5612_v36  ;;  %v4301_v23 = vadd.f32 %v14898_v6, %v3758_v39  ;;  %v14900_v63 = vld [vmem:[#allocation32_spill] sm:$0xff] }
 0x470   : > { %v5616_v44 = vrot.slane %v5457_v21, 2  ;;  %v5458_v9 = vmax.f32 %v5396_v56, 0.0  ;;  %v5397_v46 = vadd.f32 %v13077_v48, %v5322_v59  ;;  %v5323_v41 = vadd.f32 %v5223_v34, %v4810_v12 }
 0x471   : > { %14897 = vst [vmem:[#allocation62_spill] sm:$0xff] %v13385_v25  ;;  %v8986_v10 = vpack.i.bf16 %v13385_v25, %v13378_v61  ;;  %v5227_v24 = vpop.f32.mrf.mxu1  ;;  %v5615_v15 = vsel %vm1749_vm4, %v5610_v22, %v5614_v53  ;;  %v13393_v18 = vmax.f32 %v5453_v43, %v5613_v54  ;;  %v14902_v22 = vld [vmem:[#allocation58_spill] sm:$0xff] }
 0x472   : > { %v5618_v49 = vrot.slane %v5458_v9, 2  ;;  %v5459_v52 = vmax.f32 %v5397_v46, 0.0  ;;  %v5398_v26 = vadd.f32 %v13084_v55, %v5323_v41  ;;  %v5324_v45 = vadd.f32 %v5227_v24, %v14900_v63  ;;  %v14903_v41 = vld [vmem:[#allocation30_spill] sm:$0xff]  ;;  %v14905_v63 = vld [vmem:[#allocation37_spill] sm:$0xff] }
 0x473   : > { %14899 = vst [vmem:[#allocation64_spill] sm:$0xff] %v13393_v18  ;;  %8987 = vrot.lane.b32.xlu1 %v8986_v10, %s9388_s19  ;;  %v5229_v56 = vpop.f32.mrf.mxu1  ;;  %v13398_v12 = vmax.f32 %v5454_v2, %v5615_v15  ;;  %v5617_v39 = vsel %vm1749_vm4, %v5612_v36, %v5616_v44  ;;  %v4814_v61 = vadd.f32 %v14903_v41, %v4301_v23  ;;  %v14906_v25 = vld [vmem:[#allocation46_spill] sm:$0xff] }
 0x474   : > { %v5620_v59 = vrot.slane %v5459_v52, 2  ;;  %v5460_v34 = vmax.f32 %v5398_v26, 0.0  ;;  %v5399_v6 = vadd.f32 %v13077_v48, %v5324_v45  ;;  %v5325_v43 = vadd.f32 %v5229_v56, %v14902_v22  ;;  %v14907_v45 = vld [vmem:[#allocation72_spill] sm:$0xff] }
 0x475   : > { %14901 = vst [vmem:[#allocation42_spill] sm:$0xff] %v13398_v12  ;;  %v8991_v54 = vpack.i.bf16 %v13398_v12, %v13393_v18  ;;  %v5231_v46 = vpop.f32.mrf.mxu1  ;;  %v5619_v24 = vsel %vm1749_vm4, %v5614_v53, %v5618_v49  ;;  %v13407_v10 = vmax.f32 %v5455_v60, %v5617_v39  ;;  %v3768_v32 = vadd.f32 %v14907_v45, %v14906_v25 }
 0x476   : > { %v5622_v2 = vrot.slane %v5460_v34, 2  ;;  %v5461_v15 = vmax.f32 %v5399_v6, 0.0  ;;  %v5400_v36 = vadd.f32 %v13084_v55, %v5325_v43  ;;  %v5326_v26 = vadd.f32 %v5231_v46, %v14905_v63  ;;  %v14909_v6 = vld [vmem:[#allocation8_spill] sm:$0xff] }
 0x477   : > { %14904 = vst [vmem:[#allocation7_spill] sm:$0xff] %v13407_v10  ;;  %8992 = vrot.lane.b32.xlu0 %v8991_v54, %s9388_s19  ;;  %v5233_v56 = vpop.f32.mrf.mxu1  ;;  %v13414_v22 = vmax.f32 %v5456_v19, %v5619_v24  ;;  %v5621_v23 = vsel %vm1749_vm4, %v5616_v44, %v5620_v59  ;;  %v4305_v18 = vadd.f32 %v14909_v6, %v3768_v32  ;;  %v14911_v44 = vld [vmem:[#allocation63_spill] sm:$0xff] }
 0x478   : > { %v5624_v41 = vrot.slane %v5461_v15, 2  ;;  %v5462_v53 = vmax.f32 %v5400_v36, 0.0  ;;  %v5401_v60 = vadd.f32 %v13077_v48, %v5326_v26  ;;  %v5327_v39 = vadd.f32 %v5233_v56, %v4814_v61 }
 0x479   : > { %14908 = vst [vmem:[#allocation9_spill] sm:$0xff] %v13414_v22  ;;  %v8996_v43 = vpack.i.bf16 %v13414_v22, %v13407_v10  ;;  %v5237_v46 = vpop.f32.mrf.mxu1  ;;  %v5623_v25 = vsel %vm1749_vm4, %v5618_v49, %v5622_v2  ;;  %v13422_v63 = vmax.f32 %v5457_v21, %v5621_v23  ;;  %v14913_v49 = vld [vmem:[#allocation10_spill] sm:$0xff] }
 0x47a   : > { %v5626_v54 = vrot.slane %v5462_v53, 2  ;;  %v5463_v19 = vmax.f32 %v5401_v60, 0.0  ;;  %v5402_v24 = vadd.f32 %v13084_v55, %v5327_v39  ;;  %v5328_v45 = vadd.f32 %v5237_v46, %v14911_v44  ;;  %v14914_v39 = vld [vmem:[#allocation5_spill] sm:$0xff]  ;;  %v14917_v22 = vld [vmem:[#allocation26_spill] sm:$0xff] }
 0x47b   : > { %14910 = vst [vmem:[#allocation15_spill] sm:$0xff] %v13422_v63  ;;  %8997 = vrot.lane.b32.xlu1 %v8996_v43, %s9388_s19  ;;  %v5239_v36 = vpop.f32.mrf.mxu1  ;;  %v13427_v61 = vmax.f32 %v5458_v9, %v5623_v25  ;;  %v5625_v32 = vsel %vm1749_vm4, %v5620_v59, %v5624_v41  ;;  %v4818_v10 = vadd.f32 %v14914_v39, %v4305_v18  ;;  %v14916_v44 = vld [vmem:[#allocation65_spill] sm:$0xff] }
 0x47c   : > { %v5628_v26 = vrot.slane %v5463_v19, 2  ;;  %v5464_v56 = vmax.f32 %v5402_v24, 0.0  ;;  %v5403_v6 = vadd.f32 %v13077_v48, %v5328_v45  ;;  %v5329_v21 = vadd.f32 %v5239_v36, %v14913_v49  ;;  %v14918_v45 = vld [vmem:[#allocation45_spill] sm:$0xff] }
 0x47d   : > { %14912 = vst [vmem:[#allocation66_spill] sm:$0xff] %v13427_v61  ;;  %v9001_v23 = vpack.i.bf16 %v13427_v61, %v13422_v63  ;;  %v5241_v60 = vpop.f32.mrf.mxu1  ;;  %v5627_v46 = vsel %vm1749_vm4, %v5622_v2, %v5626_v54  ;;  %v13436_v43 = vmax.f32 %v5459_v52, %v5625_v32  ;;  %v3778_v12 = vadd.f32 %v14918_v45, %v14917_v22 }
 0x47e   : > { %v5630_v9 = vrot.slane %v5464_v56, 2  ;;  %v5465_v25 = vmax.f32 %v5403_v6, 0.0  ;;  %v5404_v59 = vadd.f32 %v13084_v55, %v5329_v21  ;;  %v5330_v24 = vadd.f32 %v5241_v60, %v14916_v44  ;;  %v14920_v6 = vld [vmem:[#allocation16_spill] sm:$0xff] }
 0x47f   : > { %14915 = vst [vmem:[#allocation20_spill] sm:$0xff] %v13436_v43  ;;  %9002 = vrot.lane.b32.xlu0 %v9001_v23, %s9388_s19  ;;  %v5243_v36 = vpop.f32.mrf.mxu1  ;;  %v13443_v49 = vmax.f32 %v5460_v34, %v5627_v46  ;;  %v5629_v18 = vsel %vm1749_vm4, %v5624_v41, %v5628_v26  ;;  %v4309_v63 = vadd.f32 %v14920_v6, %v3778_v12  ;;  %v14921_v41 = vld [vmem:[#allocation11_spill] sm:$0xff] }
 0x480   : > { %v5632_v39 = vrot.slane %v5465_v25, 2  ;;  %v5466_v2 = vmax.f32 %v5404_v59, 0.0  ;;  %v5405_v52 = vadd.f32 %v13077_v48, %v5330_v24  ;;  %v5331_v32 = vadd.f32 %v5243_v36, %v4818_v10 }
 0x481   : > { %14919 = vst [vmem:[#allocation25_spill] sm:$0xff] %v13443_v49  ;;  %v9006_v21 = vpack.i.bf16 %v13443_v49, %v13436_v43  ;;  %v5247_v60 = vpop.f32.mrf.mxu1  ;;  %v5631_v22 = vsel %vm1749_vm4, %v5626_v54, %v5630_v9  ;;  %v13451_v44 = vmax.f32 %v5461_v15, %v5629_v18  ;;  %v14922_v54 = vld [vmem:[#allocation52_spill] sm:$0xff]  ;;  %v14925_v49 = vld [vmem:[#allocation6_spill] sm:$0xff] }
 0x482   : > { %v5634_v23 = vrot.slane %v5466_v2, 2  ;;  %v5467_v34 = vmax.f32 %v5405_v52, 0.0  ;;  %v5406_v46 = vadd.f32 %v13084_v55, %v5331_v32  ;;  %v5332_v45 = vadd.f32 %v5247_v60, %v14921_v41  ;;  %v14923_v32 = vld [vmem:[#allocation61_spill] sm:$0xff]  ;;  %v14924_v41 = vld [vmem:[#allocation67_spill] sm:$0xff] }
 0x483   : > { %9007 = vrot.lane.b32.xlu1 %v9006_v21, %s9388_s19  ;;  %v5249_v59 = vpop.f32.mrf.mxu1  ;;  %v13456_v10 = vmax.f32 %v5462_v53, %v5631_v22  ;;  %v5633_v12 = vsel %vm1749_vm4, %v5628_v26, %v5632_v39  ;;  %v4822_v43 = vadd.f32 %v14923_v32, %v4309_v63 }
 0x484   : > { %v5636_v24 = vrot.slane %v5467_v34, 2  ;;  %v5468_v36 = vmax.f32 %v5406_v46, 0.0  ;;  %v5407_v6 = vadd.f32 %v13077_v48, %v5332_v45  ;;  %v5333_v15 = vadd.f32 %v5249_v59, %v14922_v54  ;;  %v14926_v45 = vld [vmem:[#allocation50_spill] sm:$0xff] }
 0x485   : > { %v9011_v18 = vpack.i.bf16 %v13456_v10, %v13451_v44  ;;  %v5251_v52 = vpop.f32.mrf.mxu1  ;;  %v5635_v60 = vsel %vm1749_vm4, %v5630_v9, %v5634_v23  ;;  %v13465_v21 = vmax.f32 %v5463_v19, %v5633_v12  ;;  %v3788_v61 = vadd.f32 %v14926_v45, %v14925_v49 }
 0x486   : > { %v5638_v53 = vrot.slane %v5468_v36, 2  ;;  %v5469_v22 = vmax.f32 %v5407_v6, 0.0  ;;  %v5408_v26 = vadd.f32 %v13084_v55, %v5333_v15  ;;  %v5334_v46 = vadd.f32 %v5251_v52, %v14924_v41 }
 0x487   : > { %9012 = vrot.lane.b32.xlu0 %v9011_v18, %s9388_s19  ;;  %v5253_v59 = vpop.f32.mrf.mxu1  ;;  %v13472_v54 = vmax.f32 %v5464_v56, %v5635_v60  ;;  %v5637_v63 = vsel %vm1749_vm4, %v5632_v39, %v5636_v24  ;;  %v4313_v6 = vadd.f32 %v13029_v42, %v3788_v61 }
 0x488   : > { %v5640_v32 = vrot.slane %v5469_v22, 2  ;;  %v5470_v9 = vmax.f32 %v5408_v26, 0.0  ;;  %v5409_v19 = vadd.f32 %v13077_v48, %v5334_v46  ;;  %v5335_v12 = vadd.f32 %v5253_v59, %v4822_v43 }
 0x489   : > { %v9016_v15 = vpack.i.bf16 %v13472_v54, %v13465_v21  ;;  %v5257_v52 = vpop.f32.mrf.mxu1  ;;  %v5639_v49 = vsel %vm1749_vm4, %v5634_v23, %v5638_v53  ;;  %v13480_v41 = vmax.f32 %v5465_v25, %v5637_v63  ;;  %v14928_v63 = vld [vmem:[#allocation47_spill] sm:$0xff] }
 0x48a   : > { %v5642_v18 = vrot.slane %v5470_v9, 2  ;;  %v5471_v56 = vmax.f32 %v5409_v19, 0.0  ;;  %v5410_v60 = vadd.f32 %v13084_v55, %v5335_v12  ;;  %v5336_v39 = vadd.f32 %v5257_v52, %v13024_v40 }
 0x48b   : > { %14927 = vst [vmem:[#allocation34_spill] sm:$0xff] %v13480_v41  ;;  %9017 = vrot.lane.b32.xlu1 %v9016_v15, %s9388_s19  ;;  %v5259_v26 = vpop.f32.mrf.mxu1  ;;  %v13485_v43 = vmax.f32 %v5466_v2, %v5639_v49  ;;  %v5641_v42 = vsel %vm1749_vm4, %v5636_v24, %v5640_v32  ;;  %v4826_v19 = vadd.f32 %v14928_v63, %v4313_v6  ;;  %v14930_v49 = vld [vmem:[#allocation12_spill] sm:$0xff] }
 0x48c   : > { %v5644_v61 = vrot.slane %v5471_v56, 2  ;;  %v5472_v46 = vmax.f32 %v5410_v60, 0.0  ;;  %v5411_v45 = vadd.f32 %v13077_v48, %v5336_v39  ;;  %v5337_v25 = vadd.f32 %v5259_v26, %v13027_v27  ;;  %v14931_v60 = vld [vmem:[#allocation59_spill] sm:$0xff] }
 0x48d   : > { %v9021_v23 = vpack.i.bf16 %v13485_v43, %v13480_v41  ;;  %v5261_v59 = vpop.f32.mrf.mxu1  ;;  %v5643_v40 = vsel %vm1749_vm4, %v5638_v53, %v5642_v18  ;;  %v13494_v12 = vmax.f32 %v5467_v34, %v5641_v42  ;;  %v3798_v39 = vadd.f32 %v14931_v60, %v14930_v49 }
 0x48e   : > { %v5646_v2 = vrot.slane %v5472_v46, 2  ;;  %v5473_v15 = vmax.f32 %v5411_v45, 0.0  ;;  %v5412_v24 = vadd.f32 %v13084_v55, %v5337_v25  ;;  %v5338_v52 = vadd.f32 %v5261_v59, %v13031_v38  ;;  %v14932_v45 = vld [vmem:[#allocation40_spill] sm:$0xff] }
 0x48f   : > { %14929 = vst [vmem:[#allocation21_spill] sm:$0xff] %v13494_v12  ;;  %9022 = vrot.lane.b32.xlu0 %v9021_v23, %s9388_s19  ;;  %v5263_v27 = vpop.f32.mrf.mxu1  ;;  %v13501_v26 = vmax.f32 %v5468_v36, %v5643_v40  ;;  %v5645_v6 = vsel %vm1749_vm4, %v5640_v32, %v5644_v61  ;;  %v4317_v41 = vadd.f32 %v14932_v45, %v3798_v39  ;;  %v14934_v32 = vld [vmem:[#allocation38_spill] sm:$0xff] }
 0x490   : > { %v5648_v63 = vrot.slane %v5473_v15, 2  ;;  %v5474_v53 = vmax.f32 %v5412_v24, 0.0  ;;  %v5413_v34 = vadd.f32 %v13077_v48, %v5338_v52  ;;  %v5339_v42 = vadd.f32 %v5263_v27, %v4826_v19 }
 0x491   : > { %v9026_v38 = vpack.i.bf16 %v13501_v26, %v13494_v12  ;;  %v5267_v25 = vpop.f32.mrf.mxu1  ;;  %v5647_v59 = vsel %vm1749_vm4, %v5642_v18, %v5646_v2  ;;  %v13509_v49 = vmax.f32 %v5469_v22, %v5645_v6  ;;  %v14936_v18 = vld [vmem:[#allocation41_spill] sm:$0xff] }
 0x492   : > { %v5650_v23 = vrot.slane %v5474_v53, 2  ;;  %v5475_v36 = vmax.f32 %v5413_v34, 0.0  ;;  %v5414_v40 = vadd.f32 %v13084_v55, %v5339_v42  ;;  %v5340_v60 = vadd.f32 %v5267_v25, %v14934_v32  ;;  %v14937_v42 = vld [vmem:[#allocation18_spill] sm:$0xff]  ;;  %v14938_v32 = vld [vmem:[#allocation23_spill] sm:$0xff] }
 0x493   : > { %14933 = vst [vmem:[#allocation69_spill] sm:$0xff] %v13509_v49  ;;  %9027 = vrot.lane.b32.xlu1 %v9026_v38, %s9388_s19  ;;  %v5269_v24 = vpop.f32.mrf.mxu1  ;;  %v13514_v19 = vmax.f32 %v5470_v9, %v5647_v59  ;;  %v5649_v52 = vsel %vm1749_vm4, %v5644_v61, %v5648_v63  ;;  %v4830_v12 = vadd.f32 %v14937_v42, %v4317_v41  ;;  %v14939_v42 = vld [vmem:[#allocation73_spill] sm:$0xff] }
 0x494   : > { %v5652_v39 = vrot.slane %v5475_v36, 2  ;;  %v5476_v27 = vmax.f32 %v5414_v40, 0.0  ;;  %v5415_v45 = vadd.f32 %v13077_v48, %v5340_v60  ;;  %v5341_v22 = vadd.f32 %v5269_v24, %v14936_v18 }
 0x495   : > { %14935 = vst [vmem:[#allocation27_spill] sm:$0xff] %v13514_v19  ;;  %v9031_v6 = vpack.i.bf16 %v13514_v19, %v13509_v49  ;;  %v5271_v34 = vpop.f32.mrf.mxu1  ;;  %v5651_v25 = vsel %vm1749_vm4, %v5646_v2, %v5650_v23  ;;  %v13523_v38 = vmax.f32 %v5471_v56, %v5649_v52 }
 0x496   : > { %v5654_v9 = vrot.slane %v5476_v27, 2  ;;  %v5477_v59 = vmax.f32 %v5415_v45, 0.0  ;;  %v5416_v61 = vadd.f32 %v13084_v55, %v5341_v22  ;;  %v5342_v40 = vadd.f32 %v5271_v34, %v14938_v32 }
 0x497   : > { %9032 = vrot.lane.b32.xlu0 %v9031_v6, %s9388_s19  ;;  %v5273_v60 = vpop.f32.mrf.mxu1  ;;  %v13528_v24 = vmax.f32 %v5472_v46, %v5651_v25  ;;  %v5653_v18 = vsel %vm1749_vm4, %v5648_v63, %v5652_v39 }
 0x498   : > { %v5656_v49 = vrot.slane %v5477_v59, 2  ;;  %v5478_v19 = vmax.f32 %v5416_v61, 0.0  ;;  %v5417_v41 = vadd.f32 %v13077_v48, %v5342_v40  ;;  %v5343_v2 = vadd.f32 %v5273_v60, %v4830_v12 }
 0x499   : > { %v9036_v56 = vpack.i.bf16 %v13528_v24, %v13523_v38  ;;  %v5277_v52 = vpop.f32.mrf.mxu1  ;;  %v5655_v45 = vsel %vm1749_vm4, %v5650_v23, %v5654_v9  ;;  %v13535_v22 = vmax.f32 %v5473_v15, %v5653_v18  ;;  %v14940_v23 = vld [vmem:[#allocation29_spill] sm:$0xff] }
 0x49a   : > { %v5658_v34 = vrot.slane %v5478_v19, 2  ;;  %v5479_v6 = vmax.f32 %v5417_v41, 0.0  ;;  %v5418_v46 = vadd.f32 %v13084_v55, %v5343_v2  ;;  %v5344_v25 = vadd.f32 %v5277_v52, %v14939_v42 }
 0x49b   : > { %9037 = vrot.lane.b32.xlu1 %v9036_v56, %s9388_s19  ;;  %v5279_v63 = vpop.f32.mrf.mxu1  ;;  %v13540_v61 = vmax.f32 %v5474_v53, %v5655_v45  ;;  %v5657_v12 = vsel %vm1749_vm4, %v5652_v39, %v5656_v49 }
 0x49c   : > { %v5660_v32 = vrot.slane %v5479_v6, 2  ;;  %v5480_v40 = vmax.f32 %v5418_v46, 0.0  ;;  %v5419_v60 = vadd.f32 %v13077_v48, %v5344_v25  ;;  %v5345_v15 = vadd.f32 %v5279_v63, %v14940_v23 }
 0x49d   : > { %v9041_v18 = vpack.i.bf16 %v13540_v61, %v13535_v22  ;;  %v5281_v41 = vpop.f32.mrf.mxu1  ;;  %v5659_v2 = vsel %vm1749_vm4, %v5654_v9, %v5658_v34  ;;  %v13548_v52 = vmax.f32 %v5475_v36, %v5657_v12 }
 0x49e   : > { %v5662_v56 = vrot.slane %v5480_v40, 2  ;;  %v5481_v42 = vmax.f32 %v5419_v60, 0.0  ;;  %v5420_v53 = vadd.f32 %v13084_v55, %v5345_v15  ;;  %v13551_v45 = vmax.f32 %v5476_v27, %v5659_v2 }
 0x49f   : > { %9042 = vrot.lane.b32.xlu0 %v9041_v18, %s9388_s19  ;;  %v5282_v39 = vpop.f32.mrf.mxu1  ;;  %v5661_v48 = vsel %vm1749_vm4, %v5656_v49, %v5660_v32 }
 0x4a0   : > { %v5664_v46 = vrot.slane %v5481_v42, 2  ;;  %v5482_v25 = vmax.f32 %v5420_v53, 0.0  ;;  %v9046_v63 = vpack.i.bf16 %v13551_v45, %v13548_v52  ;;  %v5663_v9 = vsel %vm1749_vm4, %v5658_v34, %v5662_v56 }
 0x4a1   : > { %v13558_v36 = vmax.f32 %v5477_v59, %v5661_v48  ;;  %v13560_v12 = vmax.f32 %v5478_v19, %v5663_v9 }
 0x4a2   : > { %v5666_v60 = vrot.slane %v5482_v25, 2  ;;  %9047 = vrot.lane.b32.xlu1 %v9046_v63, %s9388_s19  ;;  %v5665_v55 = vsel %vm1749_vm4, %v5660_v32, %v5664_v46  ;;  %v13568_v23 = vmax.f32 %v5481_v42, %v5664_v46 }
 0x4a3   : > { %v9051_v27 = vpack.i.bf16 %v13560_v12, %v13558_v36  ;;  %v13566_v49 = vmax.f32 %v5479_v6, %v5665_v55 }
 0x4a4   : > { %v13570_v15 = vmax.f32 %v5482_v25, %v5666_v60  ;;  %v5667_v34 = vsel %vm1749_vm4, %v5662_v56, %v5666_v60 }
 0x4a5   : > { %9052 = vrot.lane.b32.xlu0 %v9051_v27, %s9388_s19  ;;  %v13574_v19 = vmax.f32 %v5480_v40, %v5667_v34  ;;  %v9282_v27 = vld [vmem:[%s14345_s3 + $0x128] sm:$0xff]  }
 0x4a6   : > { %v9061_v59 = vpack.i.bf16 %v13570_v15, %v13568_v23 }
 0x4a7   : > { %v9056_v32 = vpack.i.bf16 %v13574_v19, %v13566_v49 }
 0x4a9   : > { %v8913_v18 = vpop.permute.xlu0 %8912  ;;  %9062 = vrot.lane.b32.xlu0 %v9061_v59, %s9388_s19  ;;  %9057 = vrot.lane.b32.xlu1 %v9056_v32, %s9388_s19  ;;  %v9284_v59 = vld [vmem:[%s14345_s3 + $0x120] sm:$0xff]   ;;  %s7969_s19 = sshll.u32 %s272_s17, 4  ;;  %s7970_s19 = int_to_ptr.vmem [resolvable:$true] %s7969_s19 }
 0x4aa   : > { %v8915_v6 = vunpack.i.h.bf16 %v8913_v18  ;;  %v8914_v41 = vunpack.i.l.bf16 %v8913_v18  ;;  %s9324_s16 = scalar_lea.vmem %s7970_s19, 128  ;;  %p9331_p0 = scmp.lt.s32.totalorder %s7970_s19, %s9329_s28 }
 0x4ab   : > { %p9325_p11 = scmp.ne.s32.totalorder %s7970_s19, %s9324_s16  ;;  %p9332_p1 = scmp.lt.s32.totalorder %s9330_s29, %s9324_s16 }
 0x4ac   : > { %v5978_v56 = vsel %vm2757_vm7, %v8914_v41, %v8915_v6  ;;  %v6072_v40 = vmax.f32 %v13143_v11, %v8915_v6 }
 0x4ad   : > { %v8918_v2 = vpop.permute.xlu1 %8917  ;;  %v6071_v46 = vmax.f32 %v13136_v17, %v5978_v56  ;;  %p9326_p12 = pnand %p9325_p11, %p9470_p5  ;;  %p9333_p2 = por %p9332_p1, %p9331_p0 }
 0x4ae   : > { %v8920_v42 = vunpack.i.h.bf16 %v8918_v2  ;;  %v8919_v53 = vunpack.i.l.bf16 %v8918_v2 }
 0x4af   : > { %p9327_p13 = pneg %p9326_p12 }
 0x4b0   : > { %v6074_v39 = vmax.f32 %v13172_v58, %v8920_v42  ;;  %v5979_v48 = vsel %vm2757_vm7, %v8919_v53, %v8920_v42 }
 0x4b1   : > { %v6073_v25 = vmax.f32 %v13160_v8, %v5979_v48  ;;  %v8923_v63 = vpop.permute.xlu0 %8922  ;;  %p9334_p3 = pnand %p9333_p2, %p9327_p13 }
 0x4b2   : > { %v13588_v9 = vpack.c.bf16 %v6074_v39, %v6072_v40  ;;  %v8925_v60 = vunpack.i.h.bf16 %v8923_v63  ;;  %v8924_v55 = vunpack.i.l.bf16 %v8923_v63  ;;  %v9285_v39 = vld [vmem:[%s14345_s3 + $0x118] sm:$0xff]  }
 0x4b3   : > { %v13593_v34 = vpack.c.bf16 %v6073_v25, %v6071_v46  ;;  %v9276_v25 = vld [vmem:[%s14345_s3 + $0xd8] sm:$0xff]  }
 0x4b4   : > { %8481 = vmatprep.mubr.msk.bf16.mxu1 %vm6368_vm11, %v13588_v9  ;;  %v5980_v11 = vsel %vm2757_vm7, %v8924_v55, %v8925_v60  ;;  %v6076_v32 = vmax.f32 %v13193_v37, %v8925_v60 }
 0x4b5   : > { %6691 = vmatmul.mubr.bf16.vlgmr.msra.gmra.mxu1 %v13593_v34  ;;  %v8928_v17 = vpop.permute.xlu1 %8927  ;;  %v6075_v41 = vmax.f32 %v13186_v47, %v5980_v11  ;;  %v6239_v47 = vrot.slane %v13588_v9, 2 }
 0x4b6   : > { %v8930_v8 = vunpack.i.h.bf16 %v8928_v17  ;;  %v8929_v58 = vunpack.i.l.bf16 %v8928_v17  ;;  %7332 = vmatpush1.bf16.msra.mxu1 %v9282_v27  ;;  %v9286_v17 = vld [vmem:[%s14345_s3 + $0x110] sm:$0xff]  }
 0x4b7   : > { %7333 = vmatprep.subr.bf16.mxu1 %v14732_v35 }
 0x4b8   : > { %v6078_v18 = vmax.f32 %v13211_v51, %v8930_v8  ;;  %v5981_v6 = vsel %vm2757_vm7, %v8929_v58, %v8930_v8  ;;  %v6236_v51 = vrot.slane %v13593_v34, 2 }
 0x4b9   : > { %v6077_v2 = vmax.f32 %v13204_v13, %v5981_v6  ;;  %v8933_v56 = vpop.permute.xlu0 %8932 }
 0x4ba   : > { %v13608_v42 = vpack.c.bf16 %v6078_v18, %v6076_v32  ;;  %v8935_v53 = vunpack.i.h.bf16 %v8933_v56  ;;  %v8934_v40 = vunpack.i.l.bf16 %v8933_v56  ;;  %7334 = vmatpush1.bf16.msra.mxu1 %v9284_v59 }
 0x4bb   : > { %v13613_v48 = vpack.c.bf16 %v6077_v2, %v6075_v41  ;;  %7335 = vmatprep.subr.bf16.mxu1 %v14732_v35  ;;  %v9277_v41 = vld [vmem:[%s14345_s3 + $0xd0] sm:$0xff]  }
 0x4bc   : > { %8482 = vmatprep.mubr.msk.bf16.mxu1 %vm6368_vm11, %v13608_v42  ;;  %v6240_v37 = vrot.slane %v13608_v42, 2  ;;  %v5982_v63 = vsel %vm2757_vm7, %v8934_v40, %v8935_v53  ;;  %v6080_v8 = vmax.f32 %v13224_v57, %v8935_v53  ;;  %v9288_v57 = vld [vmem:[%s14345_s3 + $0x108] sm:$0xff]  }
 0x4bd   : > { %6698 = vmatmul.mubr.bf16.gmra.mxu1 %v13613_v48  ;;  %v8938_v13 = vpop.permute.xlu1 %8937  ;;  %v6237_v46 = vrot.slane %v13613_v48, 2  ;;  %v6079_v32 = vmax.f32 %v13219_v20, %v5982_v63  ;;  %v9289_v63 = vld [vmem:[%s14345_s3 + $0x100] sm:$0xff]  }
 0x4be   : > { %v8940_v60 = vunpack.i.h.bf16 %v8938_v13  ;;  %v8939_v55 = vunpack.i.l.bf16 %v8938_v13  ;;  %v6241_v27 = vsel %vm1749_vm4, %v6239_v47, %v6240_v37  ;;  %7336 = vmatpush1.bf16.msra.mxu1 %v9285_v39  ;;  %v9278_v39 = vld [vmem:[%s14345_s3 + $0xc8] sm:$0xff]  }
 0x4bf   : > { %8456 = vmatprep.mubr.msk.bf16.mxu0 %vm6368_vm11, %v6241_v27  ;;  %v6238_v11 = vsel %vm1749_vm4, %v6236_v51, %v6237_v46  ;;  %7337 = vmatprep.subr.bf16.mxu1 %v14732_v35 }
 0x4c0   : > { %v6082_v58 = vmax.f32 %v13240_v5, %v8940_v60  ;;  %v5983_v59 = vsel %vm2757_vm7, %v8939_v55, %v8940_v60  ;;  %6453 = vmatmul.mubr.bf16.vlgmr.msra.gmra.mxu0 %v6238_v11 }
 0x4c1   : > { %v6081_v18 = vmax.f32 %v13233_v30, %v5983_v59  ;;  %6991 = vmatpush1.bf16.msra.mxu0 %v9276_v25  ;;  %v8943_v6 = vpop.permute.xlu0 %8942 }
 0x4c2   : > { %v13642_v2 = vpack.c.bf16 %v6082_v58, %v6080_v8  ;;  %v8945_v56 = vunpack.i.h.bf16 %v8943_v6  ;;  %v8944_v40 = vunpack.i.l.bf16 %v8943_v6  ;;  %6992 = vmatprep.subr.bf16.mxu0 %v14732_v35  ;;  %7338 = vmatpush1.bf16.msra.mxu1 %v9286_v17  ;;  %v9279_v58 = vld [vmem:[%s14345_s3 + $0xc0] sm:$0xff]   ;;  %v9280_v6 = vld [vmem:[%s14345_s3 + $0xb8] sm:$0xff]  }
 0x4c3   : > { %v13648_v20 = vpack.c.bf16 %v6081_v18, %v6079_v32  ;;  %7339 = vmatprep.subr.bf16.mxu1 %v14732_v35 }
 0x4c4   : > { %8483 = vmatprep.mubr.msk.bf16.mxu1 %vm6368_vm11, %v13642_v2  ;;  %v6244_v30 = vrot.slane %v13642_v2, 2  ;;  %v5984_v47 = vsel %vm2757_vm7, %v8944_v40, %v8945_v56  ;;  %v6084_v55 = vmax.f32 %v13253_v4, %v8945_v56  ;;  %v9290_v4 = vld [vmem:[%s14345_s3 + $0xf8] sm:$0xff]  }
 0x4c5   : > { %6704 = vmatmul.mubr.bf16.gmra.mxu1 %v13648_v20  ;;  %v8948_v5 = vpop.permute.xlu1 %8947  ;;  %v6242_v53 = vrot.slane %v13648_v20, 2  ;;  %6993 = vmatpush1.bf16.msra.mxu0 %v9277_v41 }
 0x4c6   : > { %v8950_v13 = vunpack.i.h.bf16 %v8948_v5  ;;  %v8949_v51 = vunpack.i.l.bf16 %v8948_v5  ;;  %v6245_v25 = vsel %vm1749_vm4, %v6240_v37, %v6244_v30  ;;  %6994 = vmatprep.subr.bf16.mxu0 %v14732_v35  ;;  %7340 = vmatpush1.bf16.msra.mxu1 %v9288_v57  ;;  %v6083_v37 = vmax.f32 %v13248_v14, %v5984_v47  ;;  %v9292_v5 = vld [vmem:[%s14345_s3 + $0xf0] sm:$0xff]  }
 0x4c7   : > { %8457 = vmatprep.mubr.msk.bf16.mxu0 %vm6368_vm11, %v6245_v25  ;;  %v6243_v60 = vsel %vm1749_vm4, %v6237_v46, %v6242_v53  ;;  %7341 = vmatprep.subr.bf16.mxu1 %v14732_v35 }
 0x4c8   : > { %v6086_v27 = vmax.f32 %v13269_v1, %v8950_v13  ;;  %v5985_v17 = vsel %vm2757_vm7, %v8949_v51, %v8950_v13  ;;  %6460 = vmatmul.mubr.bf16.gmra.mxu0 %v6243_v60 }
 0x4c9   : > { %v6085_v11 = vmax.f32 %v13262_v16, %v5985_v17  ;;  %v8953_v8 = vpop.permute.xlu0 %8952  ;;  %6995 = vmatpush1.bf16.msra.mxu0 %v9278_v39  ;;  %v9293_v39 = vld [vmem:[%s14345_s3 + $0x138] sm:$0xff]  }
 0x4ca   : > { %v13676_v46 = vpack.c.bf16 %v6086_v27, %v6084_v55  ;;  %v8955_v59 = vunpack.i.h.bf16 %v8953_v8  ;;  %v8954_v32 = vunpack.i.l.bf16 %v8953_v8  ;;  %6996 = vmatprep.subr.bf16.mxu0 %v14732_v35  ;;  %7342 = vmatpush1.bf16.msra.mxu1 %v9289_v63  ;;  %v9281_v55 = vld [vmem:[%s14345_s3 + $0xb0] sm:$0xff]  }
 0x4cb   : > { %v13682_v14 = vpack.c.bf16 %v6085_v11, %v6083_v37  ;;  %7343 = vmatprep.subr.bf16.mxu1 %v14732_v35  ;;  %v9283_v11 = vld [vmem:[%s14345_s3 + $0xa8] sm:$0xff]  }
 0x4cc   : > { %8484 = vmatprep.mubr.msk.bf16.mxu1 %vm6368_vm11, %v13676_v46  ;;  %v6248_v16 = vrot.slane %v13676_v46, 2  ;;  %v5986_v41 = vsel %vm2757_vm7, %v8954_v32, %v8955_v59  ;;  %v6088_v13 = vmax.f32 %v13282_v28, %v8955_v59  ;;  %v7329_v28 = vand.u32 %v9293_v39, %v13102_v7 }
 0x4cd   : > { %6711 = vmatmul.mubr.bf16.gmra.mxu1 %v13682_v14  ;;  %v8958_v1 = vpop.permute.xlu1 %8957  ;;  %v6246_v18 = vrot.slane %v13682_v14, 2  ;;  %6997 = vmatpush1.bf16.msra.mxu0 %v9279_v58  ;;  %v6087_v25 = vmax.f32 %v13277_v62, %v5986_v41 }
 0x4ce   : > { %v8960_v56 = vunpack.i.h.bf16 %v8958_v1  ;;  %v8959_v40 = vunpack.i.l.bf16 %v8958_v1  ;;  %v6249_v57 = vsel %vm1749_vm4, %v6244_v30, %v6248_v16  ;;  %6998 = vmatprep.subr.bf16.mxu0 %v14732_v35  ;;  %7344 = vmatpush1.bf16.msra.mxu1 %v9290_v4  ;;  %v9294_v4 = vld [vmem:[%s14345_s3 + $0x130] sm:$0xff]  }
 0x4cf   : > { %8458 = vmatprep.mubr.msk.bf16.mxu0 %vm6368_vm11, %v6249_v57  ;;  %v6247_v47 = vsel %vm1749_vm4, %v6242_v53, %v6246_v18  ;;  %7345 = vmatprep.subr.bf16.mxu1 %v14732_v35 }
 0x4d0   : > { %v6090_v30 = vmax.f32 %v13298_v0, %v8960_v56  ;;  %v5987_v51 = vsel %vm2757_vm7, %v8959_v40, %v8960_v56  ;;  %6466 = vmatmul.mubr.bf16.gmra.mxu0 %v6247_v47 }
 0x4d1   : > { %v6089_v63 = vmax.f32 %v13291_v31, %v5987_v51  ;;  %v8963_v60 = vpop.permute.xlu0 %8962  ;;  %6999 = vmatpush1.bf16.msra.mxu0 %v9280_v6 }
 0x4d2   : > { %v13713_v53 = vpack.c.bf16 %v6090_v30, %v6088_v13  ;;  %v8965_v27 = vunpack.i.h.bf16 %v8963_v60  ;;  %v8964_v17 = vunpack.i.l.bf16 %v8963_v60  ;;  %7000 = vmatprep.subr.bf16.mxu0 %v14732_v35  ;;  %7346 = vmatpush1.bf16.msra.mxu1 %v9292_v5  ;;  %v9287_v5 = vld [vmem:[%s14345_s3 + $0xa0] sm:$0xff]  }
 0x4d3   : > { %v13717_v0 = vpack.c.bf16 %v6089_v63, %v6087_v25  ;;  %7359 = vmatprep.subr.bf16.mxu1 %v14732_v35 }
 0x4d4   : > { %8485 = vmatprep.mubr.msk.bf16.mxu1 %vm6368_vm11, %v13713_v53  ;;  %v6252_v62 = vrot.slane %v13713_v53, 2  ;;  %v5988_v8 = vsel %vm2757_vm7, %v8964_v17, %v8965_v27  ;;  %v6092_v6 = vmax.f32 %v13311_v33, %v8965_v27  ;;  %v14941_v27 = vld [vmem:[#allocation54_spill] sm:$0xff] }
 0x4d5   : > { %6717 = vmatmul.mubr.bf16.gmra.mxu1 %v13717_v0  ;;  %v8968_v31 = vpop.permute.xlu1 %8967  ;;  %v6250_v37 = vrot.slane %v13717_v0, 2  ;;  %7001 = vmatpush1.bf16.msra.mxu0 %v9281_v55 }
 0x4d6   : > { %v8970_v58 = vunpack.i.h.bf16 %v8968_v31  ;;  %v8969_v59 = vunpack.i.l.bf16 %v8968_v31  ;;  %v6253_v32 = vsel %vm1749_vm4, %v6248_v16, %v6252_v62  ;;  %7002 = vmatprep.subr.bf16.mxu0 %v14732_v35  ;;  %7360 = vmatpush2.bf16.msra.mxu1 %v7329_v28  ;;  %v6091_v16 = vmax.f32 %v13306_v3, %v5988_v8  ;;  %v14942_v28 = vld [vmem:[#allocation56_spill] sm:$0xff] }
 0x4d7   : > { %8459 = vmatprep.mubr.msk.bf16.mxu0 %vm6368_vm11, %v6253_v32  ;;  %v6251_v1 = vsel %vm1749_vm4, %v6246_v18, %v6250_v37  ;;  %7361 = vmatprep.subr.bf16.mxu1 %v14732_v35  ;;  %v9291_v18 = vld [vmem:[%s14345_s3 + $0xe8] sm:$0xff]  }
 0x4d8   : > { %v6094_v41 = vmax.f32 %v13327_v29, %v8970_v58  ;;  %v5989_v56 = vsel %vm2757_vm7, %v8969_v59, %v8970_v58  ;;  %6473 = vmatmul.mubr.bf16.gmra.mxu0 %v6251_v1  ;;  %v6988_v30 = vand.u32 %v9291_v18, %v13102_v7  ;;  %v14943_v8 = vld [vmem:[#allocation44_spill] sm:$0xff] }
 0x4d9   : > { %v6093_v40 = vmax.f32 %v13320_v50, %v5989_v56  ;;  %v8973_v57 = vpop.permute.xlu0 %8972  ;;  %7003 = vmatpush1.bf16.msra.mxu0 %v9283_v11  ;;  %v14944_v59 = vld [vmem:[#allocation48_spill] sm:$0xff] }
 0x4da   : > { %v13748_v33 = vpack.c.bf16 %v6094_v41, %v6092_v6  ;;  %v8975_v29 = vunpack.i.h.bf16 %v8973_v57  ;;  %v8974_v39 = vunpack.i.l.bf16 %v8973_v57  ;;  %7004 = vmatprep.subr.bf16.mxu0 %v14732_v35  ;;  %7362 = vmatpush2.bf16.msra.mxu1 %v9294_v4 }
 0x4db   : > { %v13751_v3 = vpack.c.bf16 %v6093_v40, %v6091_v16 }
 0x4dc   : > { %8486 = vmatprep.mubr.msk.bf16.mxu1 %vm6368_vm11, %v13748_v33  ;;  %v6256_v50 = vrot.slane %v13748_v33, 2  ;;  %v5990_v51 = vsel %vm2757_vm7, %v8974_v39, %v8975_v29  ;;  %v6096_v17 = vmax.f32 %v14941_v27, %v8975_v29  ;;  %v14948_v27 = vld [vmem:[#allocation57_spill] sm:$0xff] }
 0x4dd   : > { %6724 = vmatmul.mubr.bf16.gmra.mxu1 %v13751_v3  ;;  %v8978_v47 = vpop.permute.xlu1 %8977  ;;  %v6254_v13 = vrot.slane %v13751_v3, 2  ;;  %7005 = vmatpush1.bf16.msra.mxu0 %v9287_v5  ;;  %v6095_v58 = vmax.f32 %v14943_v8, %v5990_v51  ;;  %v14946_v51 = vld [vmem:[#allocation62_spill] sm:$0xff] }
 0x4de   : > { %v8980_v25 = vunpack.i.h.bf16 %v8978_v47  ;;  %v8979_v63 = vunpack.i.l.bf16 %v8978_v47  ;;  %v6257_v60 = vsel %vm1749_vm4, %v6252_v62, %v6256_v50  ;;  %7018 = vmatprep.subr.bf16.mxu0 %v14732_v35  ;;  %v9295_v62 = vld [vmem:[%s14345_s3 + $0xe0] sm:$0xff]  }
 0x4df   : > { %8460 = vmatprep.mubr.msk.bf16.mxu0 %vm6368_vm11, %v6257_v60  ;;  %v6255_v55 = vsel %vm1749_vm4, %v6250_v37, %v6254_v13  ;;  %v14945_v47 = vld [vmem:[#allocation71_spill] sm:$0xff] }
 0x4e0   : > { %v6098_v31 = vmax.f32 %v14942_v28, %v8980_v25  ;;  %v5991_v11 = vsel %vm2757_vm7, %v8979_v63, %v8980_v25  ;;  %6479 = vmatmul.mubr.bf16.gmra.mxu0 %v6255_v55  ;;  %v14947_v60 = vld [vmem:[#allocation55_spill] sm:$0xff] }
 0x4e1   : > { %v6097_v32 = vmax.f32 %v14944_v59, %v5991_v11  ;;  %v8983_v4 = vpop.permute.xlu0 %8982  ;;  %7019 = vmatpush2.bf16.msra.mxu0 %v6988_v30 }
 0x4e2   : > { %v13772_v1 = vpack.c.bf16 %v6098_v31, %v6096_v17  ;;  %v8985_v37 = vunpack.i.h.bf16 %v8983_v4  ;;  %v8984_v6 = vunpack.i.l.bf16 %v8983_v4  ;;  %7020 = vmatprep.subr.bf16.mxu0 %v14732_v35 }
 0x4e3   : > { %v13775_v41 = vpack.c.bf16 %v6097_v32, %v6095_v58 }
 0x4e4   : > { %8487 = vmatprep.mubr.msk.bf16.mxu1 %vm6368_vm11, %v13772_v1  ;;  %v6260_v56 = vrot.slane %v13772_v1, 2  ;;  %v5992_v57 = vsel %vm2757_vm7, %v8984_v6, %v8985_v37  ;;  %v6100_v30 = vmax.f32 %v14945_v47, %v8985_v37 }
 0x4e5   : > { %6730 = vmatmul.mubr.bf16.gmra.mxu1 %v13775_v41  ;;  %v8988_v16 = vpop.permute.xlu1 %8987  ;;  %v6258_v40 = vrot.slane %v13775_v41, 2  ;;  %7021 = vmatpush2.bf16.msra.mxu0 %v9295_v62  ;;  %v6099_v55 = vmax.f32 %v14947_v60, %v5992_v57 }
 0x4e6   : > { %v8990_v5 = vunpack.i.h.bf16 %v8988_v16  ;;  %v8989_v18 = vunpack.i.l.bf16 %v8988_v16  ;;  %v6261_v29 = vsel %vm1749_vm4, %v6256_v50, %v6260_v56  ;;  %7556 = vmatprep.subr.bf16.mxu0 %v14732_v35  ;;  %v14949_v16 = vld [vmem:[#allocation42_spill] sm:$0xff] }
 0x4e7   : > { %8461 = vmatprep.mubr.msk.bf16.mxu0 %vm6368_vm11, %v6261_v29  ;;  %v6259_v39 = vsel %vm1749_vm4, %v6254_v13, %v6258_v40 }
 0x4e8   : > { %v6102_v25 = vmax.f32 %v14946_v51, %v8990_v5  ;;  %v5993_v63 = vsel %vm2757_vm7, %v8989_v18, %v8990_v5  ;;  %6486 = vmatmul.mubr.bf16.gmra.mxu0 %v6259_v39  ;;  %v14950_v5 = vld [vmem:[#allocation9_spill] sm:$0xff]  ;;  %v14951_v39 = vld [vmem:[#allocation64_spill] sm:$0xff] }
 0x4e9   : > { %v6101_v17 = vmax.f32 %v14948_v27, %v5993_v63  ;;  %v8993_v28 = vpop.permute.xlu0 %8992 }
 0x4ea   : > { %v13792_v31 = vpack.c.bf16 %v6102_v25, %v6100_v30  ;;  %v8995_v50 = vunpack.i.h.bf16 %v8993_v28  ;;  %v8994_v11 = vunpack.i.l.bf16 %v8993_v28  ;;  %v14952_v30 = vld [vmem:[#allocation7_spill] sm:$0xff] }
 0x4eb   : > { %v13794_v8 = vpack.c.bf16 %v6101_v17, %v6099_v55 }
 0x4ec   : > { %8488 = vmatprep.mubr.msk.bf16.mxu1 %vm6368_vm11, %v13792_v31  ;;  %v6264_v13 = vrot.slane %v13792_v31, 2  ;;  %v5994_v32 = vsel %vm2757_vm7, %v8994_v11, %v8995_v50  ;;  %v6104_v57 = vmax.f32 %v14949_v16, %v8995_v50 }
 0x4ed   : > { %6737 = vmatmul.mubr.bf16.gmra.mxu1 %v13794_v8  ;;  %v8998_v58 = vpop.permute.xlu1 %8997  ;;  %v6262_v59 = vrot.slane %v13794_v8, 2  ;;  %v6103_v47 = vmax.f32 %v14951_v39, %v5994_v32 }
 0x4ee   : > { %v9000_v4 = vunpack.i.h.bf16 %v8998_v58  ;;  %v8999_v62 = vunpack.i.l.bf16 %v8998_v58  ;;  %v6265_v37 = vsel %vm1749_vm4, %v6260_v56, %v6264_v13 }
 0x4ef   : > { %8462 = vmatprep.mubr.msk.bf16.mxu0 %vm6368_vm11, %v6265_v37  ;;  %v6263_v6 = vsel %vm1749_vm4, %v6258_v40, %v6262_v59  ;;  %v14954_v37 = vld [vmem:[#allocation25_spill] sm:$0xff] }
 0x4f0   : > { %v6106_v18 = vmax.f32 %v14950_v5, %v9000_v4  ;;  %v5995_v29 = vsel %vm2757_vm7, %v8999_v62, %v9000_v4  ;;  %6492 = vmatmul.mubr.bf16.gmra.mxu0 %v6263_v6  ;;  %v14953_v4 = vld [vmem:[#allocation66_spill] sm:$0xff] }
 0x4f1   : > { %v6105_v51 = vmax.f32 %v14952_v30, %v5995_v29  ;;  %v9003_v25 = vpop.permute.xlu0 %9002 }
 0x4f2   : > { %v13810_v63 = vpack.c.bf16 %v6106_v18, %v6104_v57  ;;  %v9005_v60 = vunpack.i.h.bf16 %v9003_v25  ;;  %v9004_v56 = vunpack.i.l.bf16 %v9003_v25  ;;  %v14955_v57 = vld [vmem:[#allocation15_spill] sm:$0xff]  ;;  %v14956_v18 = vld [vmem:[#allocation20_spill] sm:$0xff] }
 0x4f3   : > { %v13812_v55 = vpack.c.bf16 %v6105_v51, %v6103_v47 }
 0x4f4   : > { %8489 = vmatprep.mubr.msk.bf16.mxu1 %vm6368_vm11, %v13810_v63  ;;  %v6268_v40 = vrot.slane %v13810_v63, 2  ;;  %v5996_v28 = vsel %vm2757_vm7, %v9004_v56, %v9005_v60  ;;  %v6108_v62 = vmax.f32 %v14953_v4, %v9005_v60 }
 0x4f5   : > { %6743 = vmatmul.mubr.bf16.gmra.mxu1 %v13812_v55  ;;  %v9008_v27 = vpop.permute.xlu1 %9007  ;;  %v6266_v17 = vrot.slane %v13812_v55, 2  ;;  %v6107_v5 = vmax.f32 %v14955_v57, %v5996_v28 }
 0x4f6   : > { %v9010_v50 = vunpack.i.h.bf16 %v9008_v27  ;;  %v9009_v11 = vunpack.i.l.bf16 %v9008_v27  ;;  %v6269_v58 = vsel %vm1749_vm4, %v6264_v13, %v6268_v40 }
 0x4f7   : > { %8463 = vmatprep.mubr.msk.bf16.mxu0 %vm6368_vm11, %v6269_v58  ;;  %v6267_v32 = vsel %vm1749_vm4, %v6262_v59, %v6266_v17 }
 0x4f8   : > { %v6110_v6 = vmax.f32 %v14954_v37, %v9010_v50  ;;  %v5997_v16 = vsel %vm2757_vm7, %v9009_v11, %v9010_v50  ;;  %6499 = vmatmul.mubr.bf16.gmra.mxu0 %v6267_v32 }
 0x4f9   : > { %v6109_v29 = vmax.f32 %v14956_v18, %v5997_v16  ;;  %v9013_v39 = vpop.permute.xlu0 %9012 }
 0x4fa   : > { %v13828_v47 = vpack.c.bf16 %v6110_v6, %v6108_v62  ;;  %v9015_v30 = vunpack.i.h.bf16 %v9013_v39  ;;  %v9014_v13 = vunpack.i.l.bf16 %v9013_v39 }
 0x4fb   : > { %v13830_v51 = vpack.c.bf16 %v6109_v29, %v6107_v5 }
 0x4fc   : > { %8490 = vmatprep.mubr.msk.bf16.mxu1 %vm6368_vm11, %v13828_v47  ;;  %v6272_v59 = vrot.slane %v13828_v47, 2  ;;  %v5998_v56 = vsel %vm2757_vm7, %v9014_v13, %v9015_v30  ;;  %v6112_v58 = vmax.f32 %v13456_v10, %v9015_v30 }
 0x4fd   : > { %6750 = vmatmul.mubr.bf16.gmra.mxu1 %v13830_v51  ;;  %v9018_v25 = vpop.permute.xlu1 %9017  ;;  %v6270_v60 = vrot.slane %v13830_v51, 2  ;;  %v6111_v62 = vmax.f32 %v13451_v44, %v5998_v56  ;;  %v14957_v56 = vld [vmem:[#allocation34_spill] sm:$0xff] }
 0x4fe   : > { %v9020_v27 = vunpack.i.h.bf16 %v9018_v25  ;;  %v9019_v28 = vunpack.i.l.bf16 %v9018_v25  ;;  %v6273_v50 = vsel %vm1749_vm4, %v6268_v40, %v6272_v59 }
 0x4ff   : > { %8464 = vmatprep.mubr.msk.bf16.mxu0 %vm6368_vm11, %v6273_v50  ;;  %v6271_v11 = vsel %vm1749_vm4, %v6266_v17, %v6270_v60 }
 0x500   : > { %v6114_v32 = vmax.f32 %v13472_v54, %v9020_v27  ;;  %v5999_v4 = vsel %vm2757_vm7, %v9019_v28, %v9020_v27  ;;  %6505 = vmatmul.mubr.bf16.gmra.mxu0 %v6271_v11  ;;  %v14958_v28 = vld [vmem:[#allocation21_spill] sm:$0xff] }
 0x501   : > { %v6113_v37 = vmax.f32 %v13465_v21, %v5999_v4  ;;  %v9023_v6 = vpop.permute.xlu0 %9022 }
 0x502   : > { %v13846_v16 = vpack.c.bf16 %v6114_v32, %v6112_v58  ;;  %v9025_v57 = vunpack.i.h.bf16 %v9023_v6  ;;  %v9024_v40 = vunpack.i.l.bf16 %v9023_v6 }
 0x503   : > { %v13848_v5 = vpack.c.bf16 %v6113_v37, %v6111_v62 }
 0x504   : > { %8491 = vmatprep.mubr.msk.bf16.mxu1 %vm6368_vm11, %v13846_v16  ;;  %v6276_v10 = vrot.slane %v13846_v16, 2  ;;  %v6000_v44 = vsel %vm2757_vm7, %v9024_v40, %v9025_v57  ;;  %v6116_v30 = vmax.f32 %v13485_v43, %v9025_v57 }
 0x505   : > { %6756 = vmatmul.mubr.bf16.gmra.mxu1 %v13848_v5  ;;  %v9028_v54 = vpop.permute.xlu1 %9027  ;;  %v6274_v17 = vrot.slane %v13848_v5, 2  ;;  %v6115_v27 = vmax.f32 %v14957_v56, %v6000_v44 }
 0x506   : > { %v9030_v21 = vunpack.i.h.bf16 %v9028_v54  ;;  %v9029_v18 = vunpack.i.l.bf16 %v9028_v54  ;;  %v6277_v29 = vsel %vm1749_vm4, %v6272_v59, %v6276_v10  ;;  %v14959_v54 = vld [vmem:[#allocation27_spill] sm:$0xff] }
 0x507   : > { %8465 = vmatprep.mubr.msk.bf16.mxu0 %vm6368_vm11, %v6277_v29  ;;  %v6275_v39 = vsel %vm1749_vm4, %v6270_v60, %v6274_v17  ;;  %v14960_v29 = vld [vmem:[#allocation69_spill] sm:$0xff] }
 0x508   : > { %v6118_v13 = vmax.f32 %v13501_v26, %v9030_v21  ;;  %v6001_v25 = vsel %vm2757_vm7, %v9029_v18, %v9030_v21  ;;  %6512 = vmatmul.mubr.bf16.gmra.mxu0 %v6275_v39 }
 0x509   : > { %v6117_v50 = vmax.f32 %v14958_v28, %v6001_v25  ;;  %v9033_v11 = vpop.permute.xlu0 %9032 }
 0x50a   : > { %v13864_v58 = vpack.c.bf16 %v6118_v13, %v6116_v30  ;;  %v9035_v32 = vunpack.i.h.bf16 %v9033_v11  ;;  %v9034_v59 = vunpack.i.l.bf16 %v9033_v11 }
 0x50b   : > { %v13866_v4 = vpack.c.bf16 %v6117_v50, %v6115_v27 }
 0x50c   : > { %8492 = vmatprep.mubr.msk.bf16.mxu1 %vm6368_vm11, %v13864_v58  ;;  %v6280_v43 = vrot.slane %v13864_v58, 2  ;;  %v6002_v62 = vsel %vm2757_vm7, %v9034_v59, %v9035_v32  ;;  %v6120_v44 = vmax.f32 %v14959_v54, %v9035_v32 }
 0x50d   : > { %6763 = vmatmul.mubr.bf16.gmra.mxu1 %v13866_v4  ;;  %v9038_v26 = vpop.permute.xlu1 %9037  ;;  %v6278_v60 = vrot.slane %v13866_v4, 2  ;;  %v6119_v39 = vmax.f32 %v14960_v29, %v6002_v62 }
 0x50e   : > { %v9040_v37 = vunpack.i.h.bf16 %v9038_v26  ;;  %v9039_v6 = vunpack.i.l.bf16 %v9038_v26  ;;  %v6281_v57 = vsel %vm1749_vm4, %v6276_v10, %v6280_v43 }
 0x50f   : > { %8466 = vmatprep.mubr.msk.bf16.mxu0 %vm6368_vm11, %v6281_v57  ;;  %v6279_v40 = vsel %vm1749_vm4, %v6274_v17, %v6278_v60 }
 0x510   : > { %v6122_v21 = vmax.f32 %v13528_v24, %v9040_v37  ;;  %v6003_v18 = vsel %vm2757_vm7, %v9039_v6, %v9040_v37  ;;  %6518 = vmatmul.mubr.bf16.gmra.mxu0 %v6279_v40 }
 0x511   : > { %v6121_v30 = vmax.f32 %v13523_v38, %v6003_v18  ;;  %v9043_v13 = vpop.permute.xlu0 %9042 }
 0x512   : > { %v13882_v25 = vpack.c.bf16 %v6122_v21, %v6120_v44  ;;  %v9045_v56 = vunpack.i.h.bf16 %v9043_v13  ;;  %v9044_v10 = vunpack.i.l.bf16 %v9043_v13 }
 0x513   : > { %v13884_v27 = vpack.c.bf16 %v6121_v30, %v6119_v39 }
 0x514   : > { %8493 = vmatprep.mubr.msk.bf16.mxu1 %vm6368_vm11, %v13882_v25  ;;  %v9048_v17 = vpop.permute.xlu1 %9047  ;;  %v6284_v24 = vrot.slane %v13882_v25, 2  ;;  %v6004_v28 = vsel %vm2757_vm7, %v9044_v10, %v9045_v56  ;;  %v6124_v59 = vmax.f32 %v13540_v61, %v9045_v56 }
 0x515   : > { %6769 = vmatmul.mubr.bf16.gmra.mxu1 %v13884_v27  ;;  %v9050_v50 = vunpack.i.h.bf16 %v9048_v17  ;;  %v9049_v11 = vunpack.i.l.bf16 %v9048_v17  ;;  %v6282_v38 = vrot.slane %v13884_v27, 2  ;;  %v6123_v57 = vmax.f32 %v13535_v22, %v6004_v28 }
 0x516   : > { %v6285_v32 = vsel %vm1749_vm4, %v6280_v43, %v6284_v24 }
 0x517   : > { %v6126_v26 = vmax.f32 %v13551_v45, %v9050_v50  ;;  %v6005_v62 = vsel %vm2757_vm7, %v9049_v11, %v9050_v50  ;;  %8467 = vmatprep.mubr.msk.bf16.mxu0 %vm6368_vm11, %v6285_v32  ;;  %v6283_v37 = vsel %vm1749_vm4, %v6278_v60, %v6282_v38  ;;  %v9053_v6 = vpop.permute.xlu0 %9052  ;;  %v7155_v50 = vrot.slane %v13608_v42, 6 }
 0x518   : > { %v6125_v40 = vmax.f32 %v13548_v52, %v6005_v62  ;;  %6525 = vmatmul.mubr.bf16.gmra.mxu0 %v6283_v37  ;;  %v9055_v54 = vunpack.i.h.bf16 %v9053_v6  ;;  %v9054_v44 = vunpack.i.l.bf16 %v9053_v6  ;;  %v7152_v32 = vrot.slane %v13613_v48, 6 }
 0x519   : > { %v13900_v21 = vpack.c.bf16 %v6126_v26, %v6124_v59  ;;  %v7159_v59 = vrot.slane %v13642_v2, 6  ;;  %v7151_v26 = vrot.slane %v13593_v34, 6  ;;  %v6814_v37 = vrot.slane %v13608_v42, 4 }
 0x51a   : > { %v13902_v43 = vpack.c.bf16 %v6125_v40, %v6123_v57  ;;  %v6006_v60 = vsel %vm2757_vm7, %v9054_v44, %v9055_v54  ;;  %v6128_v39 = vmax.f32 %v13560_v12, %v9055_v54  ;;  %v6813_v57 = vrot.slane %v13588_v9, 4 }
 0x51b   : > { %8494 = vmatprep.mubr.msk.bf16.mxu1 %vm6368_vm11, %v13900_v21  ;;  %v9058_v61 = vpop.permute.xlu1 %9057  ;;  %v6288_v45 = vrot.slane %v13900_v21, 2  ;;  %v6127_v56 = vmax.f32 %v13558_v36, %v6006_v60  ;;  %v7153_v62 = vsel %vm7150_vm12, %v7151_v26, %v7152_v32  ;;  %v7160_v6 = vsel %vm7150_vm12, %v7155_v50, %v7159_v59 }
 0x51c   : > { %v9060_v18 = vunpack.i.h.bf16 %v9058_v61  ;;  %v9059_v29 = vunpack.i.l.bf16 %v9058_v61  ;;  %v6286_v52 = vrot.slane %v13902_v43, 2  ;;  %v6815_v40 = vsel %vm3258_vm6, %v6813_v57, %v6814_v37 }
 0x51d   : > { %6776 = vmatmul.mubr.bf16.gmra.mxu1 %v13902_v43  ;;  %v6289_v22 = vsel %vm1749_vm4, %v6284_v24, %v6288_v45  ;;  %v7157_v54 = vrot.slane %v13648_v20, 6  ;;  %v7163_v44 = vrot.slane %v13676_v46, 6  ;;  %v6811_v61 = vrot.slane %v13613_v48, 4 }
 0x51e   : > { %v6130_v30 = vmax.f32 %v13574_v19, %v9060_v18  ;;  %v6007_v13 = vsel %vm2757_vm7, %v9059_v29, %v9060_v18  ;;  %8468 = vmatprep.mubr.msk.bf16.mxu0 %vm6368_vm11, %v6289_v22  ;;  %v6287_v17 = vsel %vm1749_vm4, %v6282_v38, %v6286_v52  ;;  %v7154_v19 = vrot.slane %v13588_v9, 6  ;;  %v9296_v29 = vld [vmem:[%s14345_s3 + $0x178] sm:$0xff]  }
 0x51f   : > { %v6129_v10 = vmax.f32 %v13566_v49, %v6007_v13  ;;  %v6818_v60 = vrot.slane %v13642_v2, 4  ;;  %v7164_v18 = vsel %vm7150_vm12, %v7159_v59, %v7163_v44  ;;  %v6810_v9 = vrot.slane %v13593_v34, 4  ;;  %v9297_v34 = vld [vmem:[%s14345_s3 + $0x170] sm:$0xff]  }
 0x520   : > { %v13918_v28 = vpack.c.bf16 %v6130_v30, %v6128_v39  ;;  %6531 = vmatmul.mubr.bf16.gmra.mxu0 %v6287_v17  ;;  %v7156_v11 = vsel %vm7150_vm12, %v7154_v19, %v7155_v50  ;;  %v7161_v39 = vrot.slane %v13682_v14, 6  ;;  %v7167_v30 = vrot.slane %v13713_v53, 6  ;;  %v9298_v50 = vld [vmem:[%s14345_s3 + $0x168] sm:$0xff]  }
 0x521   : > { %v13920_v24 = vpack.c.bf16 %v6129_v10, %v6127_v56  ;;  %v6812_v22 = vsel %vm3258_vm6, %v6810_v9, %v6811_v61  ;;  %v6816_v13 = vrot.slane %v13648_v20, 4  ;;  %v6822_v10 = vrot.slane %v13676_v46, 4 }
 0x522   : > { %8495 = vmatprep.mubr.msk.bf16.mxu1 %vm6368_vm11, %v13918_v28  ;;  %v6292_v12 = vrot.slane %v13918_v28, 2  ;;  %v7162_v56 = vsel %vm7150_vm12, %v7157_v54, %v7161_v39  ;;  %v7168_v17 = vsel %vm7150_vm12, %v7163_v44, %v7167_v30  ;;  %v6826_v59 = vrot.slane %v13713_v53, 4 }
 0x523   : > { %v6290_v36 = vrot.slane %v13920_v24, 2  ;;  %v6823_v19 = vsel %vm3258_vm6, %v6818_v60, %v6822_v10  ;;  %v7169_v57 = vrot.slane %v13751_v3, 6  ;;  %v6824_v44 = vrot.slane %v13717_v0, 4 }
 0x524   : > { %v6293_v49 = vsel %vm1749_vm4, %v6288_v45, %v6292_v12  ;;  %v7158_v45 = vsel %vm7150_vm12, %v7152_v32, %v7157_v54  ;;  %v9301_v54 = vld [vmem:[%s14345_s3 + $0x150] sm:$0xff]  }
 0x525   : > { %6782 = vmatmul.mubr.bf16.gmra.mxu1 %v13920_v24  ;;  %8469 = vmatprep.mubr.msk.bf16.mxu0 %vm6368_vm11, %v6293_v49  ;;  %v6291_v38 = vsel %vm1749_vm4, %v6286_v52, %v6290_v36  ;;  %v6819_v52 = vsel %vm3258_vm6, %v6814_v37, %v6818_v60  ;;  %v7171_v49 = vrot.slane %v13748_v33, 6 }
 0x526   : > { %8571 = vmatprep.mubr.msk.bf16.mxu1 %vm6368_vm11, %v7156_v11  ;;  %v9299_v11 = vld [vmem:[%s14345_s3 + $0x160] sm:$0xff]  }
 0x527   : > { %v7172_v26 = vsel %vm7150_vm12, %v7167_v30, %v7171_v49  ;;  %v9304_v30 = vld [vmem:[%s14345_s3 + $0x188] sm:$0xff]  }
 0x528   : > { %6538 = vmatmul.mubr.bf16.gmra.mxu0 %v6291_v38  ;;  %v6820_v38 = vrot.slane %v13682_v14, 4 }
 0x529   : > { %8470 = vmatprep.mubr.msk.bf16.mxu0 %vm6368_vm11, %v6292_v12  ;;  %v6817_v12 = vsel %vm3258_vm6, %v6811_v61, %v6816_v13 }
 0x52a   : > { %v6821_v37 = vsel %vm3258_vm6, %v6816_v13, %v6820_v38  ;;  %v6825_v9 = vsel %vm3258_vm6, %v6820_v38, %v6824_v44  ;;  %v6838_v38 = vrot.slane %v13792_v31, 4 }
 0x52d   : > { %7364 = vmatmul.mubr.bf16.vlgmr.msra.gmra.mxu1 %v7153_v62  ;;  %v9300_v62 = vld [vmem:[%s14345_s3 + $0x158] sm:$0xff]  }
 0x52e   : > { %8572 = vmatprep.mubr.msk.bf16.mxu1 %vm6368_vm11, %v7160_v6  ;;  %v6827_v6 = vsel %vm3258_vm6, %v6822_v10, %v6826_v59 }
 0x530   : > { %6544 = vmatmul.mubr.bf16.gmra.mxu0 %v6290_v36  ;;  %v7165_v36 = vrot.slane %v13717_v0, 6 }
 0x531   : > { %8526 = vmatprep.mubr.msk.bf16.mxu0 %vm6368_vm11, %v6815_v40  ;;  %v7175_v40 = vrot.slane %v13772_v1, 6 }
 0x532   : > { %v7166_v32 = vsel %vm7150_vm12, %v7161_v39, %v7165_v36  ;;  %v7170_v61 = vsel %vm7150_vm12, %v7165_v36, %v7169_v57  ;;  %v9303_v39 = vld [vmem:[%s14345_s3 + $0x140] sm:$0xff]   ;;  %v7183_v36 = vrot.slane %v13810_v63, 6 }
 0x533   : > { %v7176_v60 = vsel %vm7150_vm12, %v7171_v49, %v7175_v40  ;;  %v6832_v49 = vrot.slane %v13775_v41, 4 }
 0x535   : > { %7371 = vmatmul.mubr.bf16.gmra.mxu1 %v7158_v45  ;;  %v6830_v45 = vrot.slane %v13748_v33, 4 }
 0x536   : > { %8573 = vmatprep.mubr.msk.bf16.mxu1 %vm6368_vm11, %v7164_v18  ;;  %v9302_v18 = vld [vmem:[%s14345_s3 + $0x148] sm:$0xff]  }
 0x538   : > { %7023 = vmatmul.mubr.bf16.vlgmr.msra.gmra.mxu0 %v6812_v22  ;;  %v7173_v22 = vrot.slane %v13775_v41, 6 }
 0x539   : > { %7557 = vmatpush1.bf16.msra.mxu0 %v9296_v29  ;;  %8527 = vmatprep.mubr.msk.bf16.mxu0 %vm6368_vm11, %v6819_v52  ;;  %v6831_v29 = vsel %vm3258_vm6, %v6826_v59, %v6830_v45  ;;  %v7179_v52 = vrot.slane %v13792_v31, 6 }
 0x53a   : > { %7558 = vmatprep.subr.bf16.mxu0 %v14732_v35  ;;  %v7174_v13 = vsel %vm7150_vm12, %v7169_v57, %v7173_v22  ;;  %v6842_v57 = vrot.slane %v13810_v63, 4 }
 0x53b   : > { %v7180_v10 = vsel %vm7150_vm12, %v7175_v40, %v7179_v52 }
 0x53d   : > { %7377 = vmatmul.mubr.bf16.gmra.mxu1 %v7162_v56  ;;  %7559 = vmatpush1.bf16.msra.mxu0 %v9297_v34  ;;  %v6828_v34 = vrot.slane %v13751_v3, 4  ;;  %v6834_v56 = vrot.slane %v13772_v1, 4 }
 0x53e   : > { %8574 = vmatprep.mubr.msk.bf16.mxu1 %vm6368_vm11, %v7168_v17  ;;  %7560 = vmatprep.subr.bf16.mxu0 %v14732_v35  ;;  %v7554_v17 = vand.u32 %v9304_v30, %v13102_v7  ;;  %v9305_v7 = vld [vmem:[%s14345_s3 + $0x180] sm:$0xff]   ;;  %v7195_v30 = vrot.slane %v13864_v58, 6 }
 0x53f   : > { %v6833_v59 = vsel %vm3258_vm6, %v6828_v34, %v6832_v49 }
 0x540   : > { %7030 = vmatmul.mubr.bf16.gmra.mxu0 %v6817_v12  ;;  %v6835_v12 = vsel %vm3258_vm6, %v6830_v45, %v6834_v56  ;;  %v7191_v45 = vrot.slane %v13846_v16, 6 }
 0x541   : > { %8528 = vmatprep.mubr.msk.bf16.mxu0 %vm6368_vm11, %v6823_v19  ;;  %7561 = vmatpush1.bf16.msra.mxu0 %v9298_v50  ;;  %v6829_v50 = vsel %vm3258_vm6, %v6824_v44, %v6828_v34  ;;  %v7177_v19 = vrot.slane %v13794_v8, 6  ;;  %v6843_v44 = vsel %vm3258_vm6, %v6838_v38, %v6842_v57  ;;  %v6844_v34 = vrot.slane %v13830_v51, 4 }
 0x542   : > { %7562 = vmatprep.subr.bf16.mxu0 %v14732_v35 }
 0x545   : > { %7384 = vmatmul.mubr.bf16.gmra.mxu1 %v7166_v32  ;;  %7563 = vmatpush1.bf16.msra.mxu0 %v9299_v11  ;;  %v7178_v11 = vsel %vm7150_vm12, %v7173_v22, %v7177_v19  ;;  %v7184_v32 = vsel %vm7150_vm12, %v7179_v52, %v7183_v36 }
 0x546   : > { %8575 = vmatprep.mubr.msk.bf16.mxu1 %vm6368_vm11, %v7172_v26  ;;  %7564 = vmatprep.subr.bf16.mxu0 %v14732_v35  ;;  %v6839_v26 = vsel %vm3258_vm6, %v6834_v56, %v6838_v38  ;;  %v6850_v56 = vrot.slane %v13846_v16, 4  ;;  %v6848_v38 = vrot.slane %v13848_v5, 4 }
 0x548   : > { %7036 = vmatmul.mubr.bf16.gmra.mxu0 %v6821_v37  ;;  %v6836_v37 = vrot.slane %v13794_v8, 4 }
 0x549   : > { %8529 = vmatprep.mubr.msk.bf16.mxu0 %vm6368_vm11, %v6827_v6  ;;  %7565 = vmatpush1.bf16.msra.mxu0 %v9300_v62  ;;  %v7181_v62 = vrot.slane %v13812_v55, 6 }
 0x54a   : > { %7566 = vmatprep.subr.bf16.mxu0 %v14732_v35 }
 0x54b   : > { %v7182_v6 = vsel %vm7150_vm12, %v7177_v19, %v7181_v62 }
 0x54d   : > { %7390 = vmatmul.mubr.bf16.gmra.mxu1 %v7170_v61  ;;  %7567 = vmatpush1.bf16.msra.mxu0 %v9301_v54  ;;  %v6837_v54 = vsel %vm3258_vm6, %v6832_v49, %v6836_v37  ;;  %v7185_v61 = vrot.slane %v13830_v51, 6  ;;  %v7199_v49 = vrot.slane %v13882_v25, 6 }
 0x54e   : > { %8576 = vmatprep.mubr.msk.bf16.mxu1 %vm6368_vm11, %v7176_v60  ;;  %7568 = vmatprep.subr.bf16.mxu0 %v14732_v35  ;;  %v6840_v60 = vrot.slane %v13812_v55, 4 }
 0x550   : > { %7043 = vmatmul.mubr.bf16.gmra.mxu0 %v6825_v9  ;;  %v6846_v9 = vrot.slane %v13828_v47, 4  ;;  %v6841_v22 = vsel %vm3258_vm6, %v6836_v37, %v6840_v60  ;;  %v6849_v37 = vsel %vm3258_vm6, %v6844_v34, %v6848_v38 }
 0x551   : > { %8530 = vmatprep.mubr.msk.bf16.mxu0 %vm6368_vm11, %v6831_v29  ;;  %7569 = vmatpush1.bf16.msra.mxu0 %v9302_v18  ;;  %v7186_v18 = vsel %vm7150_vm12, %v7181_v62, %v7185_v61  ;;  %v7200_v62 = vsel %vm7150_vm12, %v7195_v30, %v7199_v49 }
 0x552   : > { %7570 = vmatprep.subr.bf16.mxu0 %v14732_v35  ;;  %v6847_v52 = vsel %vm3258_vm6, %v6842_v57, %v6846_v9  ;;  %v6851_v19 = vsel %vm3258_vm6, %v6846_v9, %v6850_v56 }
 0x555   : > { %7397 = vmatmul.mubr.bf16.gmra.mxu1 %v7174_v13  ;;  %7571 = vmatpush1.bf16.msra.mxu0 %v9303_v39  ;;  %v7189_v39 = vrot.slane %v13848_v5, 6 }
 0x556   : > { %8577 = vmatprep.mubr.msk.bf16.mxu1 %vm6368_vm11, %v7180_v10  ;;  %7584 = vmatprep.subr.bf16.mxu0 %v14732_v35 }
 0x557   : > { %v7190_v13 = vsel %vm7150_vm12, %v7185_v61, %v7189_v39  ;;  %v7203_v61 = vrot.slane %v13900_v21, 6 }
 0x558   : > { %7049 = vmatmul.mubr.bf16.gmra.mxu0 %v6829_v50 }
 0x559   : > { %8531 = vmatprep.mubr.msk.bf16.mxu0 %vm6368_vm11, %v6835_v12  ;;  %7585 = vmatpush2.bf16.msra.mxu0 %v7554_v17  ;;  %v7196_v17 = vsel %vm7150_vm12, %v7191_v45, %v7195_v30  ;;  %v6845_v12 = vsel %vm3258_vm6, %v6840_v60, %v6844_v34 }
 0x55a   : > { %7586 = vmatprep.subr.bf16.mxu0 %v14732_v35  ;;  %v7187_v35 = vrot.slane %v13828_v47, 6 }
 0x55c   : > { %v7188_v40 = vsel %vm7150_vm12, %v7183_v36, %v7187_v35  ;;  %v7192_v29 = vsel %vm7150_vm12, %v7187_v35, %v7191_v45  ;;  %v7193_v36 = vrot.slane %v13866_v4, 6 }
 0x55d   : > { %7403 = vmatmul.mubr.bf16.gmra.mxu1 %v7178_v11  ;;  %7587 = vmatpush2.bf16.msra.mxu0 %v9305_v7 }
 0x55e   : > { %8578 = vmatprep.mubr.msk.bf16.mxu1 %vm6368_vm11, %v7184_v32  ;;  %v7194_v32 = vsel %vm7150_vm12, %v7189_v39, %v7193_v36  ;;  %v7204_v39 = vsel %vm7150_vm12, %v7199_v49, %v7203_v61 }
 0x560   : > { %7056 = vmatmul.mubr.bf16.gmra.mxu0 %v6833_v59  ;;  %v6854_v59 = vrot.slane %v13864_v58, 4 }
 0x561   : > { %8532 = vmatprep.mubr.msk.bf16.mxu0 %vm6368_vm11, %v6839_v26 }
 0x562   : > { %v6855_v57 = vsel %vm3258_vm6, %v6850_v56, %v6854_v59 }
 0x565   : > { %7410 = vmatmul.mubr.bf16.gmra.mxu1 %v7182_v6 }
 0x566   : > { %8579 = vmatprep.mubr.msk.bf16.mxu1 %vm6368_vm11, %v7188_v40  ;;  %v7197_v40 = vrot.slane %v13884_v27, 6 }
 0x568   : > { %7062 = vmatmul.mubr.bf16.gmra.mxu0 %v6837_v54 }
 0x569   : > { %8533 = vmatprep.mubr.msk.bf16.mxu0 %vm6368_vm11, %v6843_v44 }
 0x56d   : > { %7416 = vmatmul.mubr.bf16.gmra.mxu1 %v7186_v18  ;;  %v6852_v18 = vrot.slane %v13866_v4, 4 }
 0x56e   : > { %8580 = vmatprep.mubr.msk.bf16.mxu1 %vm6368_vm11, %v7192_v29  ;;  %v7198_v29 = vsel %vm7150_vm12, %v7193_v36, %v7197_v40 }
 0x570   : > { %7069 = vmatmul.mubr.bf16.gmra.mxu0 %v6841_v22  ;;  %v6858_v22 = vrot.slane %v13882_v25, 4 }
 0x571   : > { %8534 = vmatprep.mubr.msk.bf16.mxu0 %vm6368_vm11, %v6847_v52 }
 0x575   : > { %v6692_v10 = vpop.f32.mrf.mxu1  ;;  %7423 = vmatmul.mubr.bf16.gmra.mxu1 %v7190_v13  ;;  %v6853_v13 = vsel %vm3258_vm6, %v6848_v38, %v6852_v18  ;;  %v6862_v38 = vrot.slane %v13900_v21, 4 }
 0x576   : > { %8581 = vmatprep.mubr.msk.bf16.mxu1 %vm6368_vm11, %v7196_v17  ;;  %v7201_v17 = vrot.slane %v13902_v43, 6 }
 0x577   : > { %v6694_v50 = vpop.f32.mrf.mxu1 }
 0x578   : > { %7075 = vmatmul.mubr.bf16.gmra.mxu0 %v6845_v12  ;;  %v7207_v12 = vrot.slane %v13918_v28, 6 }
 0x579   : > { %v6695_v7 = vpop.f32.mrf.mxu1  ;;  %8535 = vmatprep.mubr.msk.bf16.mxu0 %vm6368_vm11, %v6851_v19 }
 0x57a   : > { %v6856_v7 = vrot.slane %v13884_v27, 4 }
 0x57b   : > { %v6696_v11 = vpop.f32.mrf.mxu1 }
 0x57c   : > { %v7202_v11 = vsel %vm7150_vm12, %v7197_v40, %v7201_v17 }
 0x57d   : > { %v6699_v26 = vpop.f32.mrf.mxu1  ;;  %7429 = vmatmul.mubr.bf16.gmra.mxu1 %v7194_v32 }
 0x57e   : > { %8582 = vmatprep.mubr.msk.bf16.mxu1 %vm6368_vm11, %v7200_v62 }
 0x57f   : > { %v6700_v35 = vpop.f32.mrf.mxu1 }
 0x580   : > { %v6454_v6 = vpop.f32.mrf.mxu0  ;;  %7082 = vmatmul.mubr.bf16.gmra.mxu0 %v6849_v37  ;;  %v6857_v35 = vsel %vm3258_vm6, %v6852_v18, %v6856_v7  ;;  %v6866_v18 = vrot.slane %v13918_v28, 4 }
 0x581   : > { %v14086_v54 = vadd.f32 %v6692_v10, %v6454_v6  ;;  %v6701_v44 = vpop.f32.mrf.mxu1  ;;  %8536 = vmatprep.mubr.msk.bf16.mxu0 %vm6368_vm11, %v6855_v57  ;;  %v6859_v10 = vsel %vm3258_vm6, %v6854_v59, %v6858_v22  ;;  %v7208_v59 = vsel %vm7150_vm12, %v7203_v61, %v7207_v12  ;;  %v6863_v6 = vsel %vm3258_vm6, %v6858_v22, %v6862_v38 }
 0x582   : > { %v6456_v45 = vpop.f32.mrf.mxu0  ;;  %v7205_v57 = vrot.slane %v13920_v24, 6  ;;  %v6860_v61 = vrot.slane %v13902_v43, 4 }
 0x583   : > { %v6702_v60 = vpop.f32.mrf.mxu1 }
 0x584   : > { %v6457_v9 = vpop.f32.mrf.mxu0 }
 0x585   : > { %v6705_v52 = vpop.f32.mrf.mxu1  ;;  %7436 = vmatmul.mubr.bf16.gmra.mxu1 %v7198_v29  ;;  %v7206_v29 = vsel %vm7150_vm12, %v7201_v17, %v7205_v57  ;;  %v6864_v17 = vrot.slane %v13920_v24, 4 }
 0x586   : > { %v6458_v30 = vpop.f32.mrf.mxu0  ;;  %8583 = vmatprep.mubr.msk.bf16.mxu1 %vm6368_vm11, %v7204_v39 }
 0x587   : > { %v6707_v34 = vpop.f32.mrf.mxu1 }
 0x588   : > { %v6461_v56 = vpop.f32.mrf.mxu0  ;;  %7088 = vmatmul.mubr.bf16.gmra.mxu0 %v6853_v13  ;;  %v6867_v13 = vsel %vm3258_vm6, %v6862_v38, %v6866_v18 }
 0x589   : > { %v6708_v50 = vpop.f32.mrf.mxu1  ;;  %8537 = vmatprep.mubr.msk.bf16.mxu0 %vm6368_vm11, %v6859_v10 }
 0x58a   : > { %v6462_v19 = vpop.f32.mrf.mxu0 }
 0x58b   : > { %v6709_v36 = vpop.f32.mrf.mxu1 }
 0x58c   : > { %v6463_v49 = vpop.f32.mrf.mxu0 }
 0x58d   : > { %v6712_v32 = vpop.f32.mrf.mxu1  ;;  %7442 = vmatmul.mubr.bf16.gmra.mxu1 %v7202_v11 }
 0x58e   : > { %v6464_v26 = vpop.f32.mrf.mxu0  ;;  %8584 = vmatprep.mubr.msk.bf16.mxu1 %vm6368_vm11, %v7208_v59 }
 0x58f   : > { %v6713_v62 = vpop.f32.mrf.mxu1 }
 0x590   : > { %v6467_v37 = vpop.f32.mrf.mxu0  ;;  %7095 = vmatmul.mubr.bf16.gmra.mxu0 %v6857_v35 }
 0x591   : > { %v14108_v44 = vadd.f32 %v6705_v52, %v6467_v37  ;;  %v6714_v40 = vpop.f32.mrf.mxu1  ;;  %8538 = vmatprep.mubr.msk.bf16.mxu0 %vm6368_vm11, %v6863_v6  ;;  %v6861_v52 = vsel %vm3258_vm6, %v6856_v7, %v6860_v61 }
 0x592   : > { %v6469_v45 = vpop.f32.mrf.mxu0 }
 0x593   : > { %v6715_v60 = vpop.f32.mrf.mxu1 }
 0x594   : > { %v6470_v9 = vpop.f32.mrf.mxu0 }
 0x595   : > { %v6718_v39 = vpop.f32.mrf.mxu1  ;;  %7449 = vmatmul.mubr.bf16.gmra.mxu1 %v7206_v29 }
 0x596   : > { %v6471_v30 = vpop.f32.mrf.mxu0  ;;  %8585 = vmatprep.mubr.msk.bf16.mxu1 %vm6368_vm11, %v7207_v12  ;;  %v6865_v12 = vsel %vm3258_vm6, %v6860_v61, %v6864_v17 }
 0x597   : > { %v6720_v22 = vpop.f32.mrf.mxu1 }
 0x598   : > { %v6474_v34 = vpop.f32.mrf.mxu0  ;;  %7101 = vmatmul.mubr.bf16.gmra.mxu0 %v6861_v52 }
 0x599   : > { %v6721_v56 = vpop.f32.mrf.mxu1  ;;  %8539 = vmatprep.mubr.msk.bf16.mxu0 %vm6368_vm11, %v6867_v13 }
 0x59a   : > { %v6475_v10 = vpop.f32.mrf.mxu0 }
 0x59b   : > { %v6722_v50 = vpop.f32.mrf.mxu1 }
 0x59c   : > { %v6476_v19 = vpop.f32.mrf.mxu0 }
 0x59d   : > { %v6725_v36 = vpop.f32.mrf.mxu1  ;;  %7455 = vmatmul.mubr.bf16.gmra.mxu1 %v7205_v57 }
 0x59e   : > { %v6477_v49 = vpop.f32.mrf.mxu0 }
 0x59f   : > { %v6726_v11 = vpop.f32.mrf.mxu1 }
 0x5a0   : > { %v6480_v32 = vpop.f32.mrf.mxu0  ;;  %7108 = vmatmul.mubr.bf16.gmra.mxu0 %v6865_v12 }
 0x5a1   : > { %v14120_v7 = vadd.f32 %v6718_v39, %v6480_v32  ;;  %v6727_v59 = vpop.f32.mrf.mxu1  ;;  %8540 = vmatprep.mubr.msk.bf16.mxu0 %vm6368_vm11, %v6866_v18 }
 0x5a2   : > { %v6482_v38 = vpop.f32.mrf.mxu0 }
 0x5a3   : > { %v6728_v26 = vpop.f32.mrf.mxu1 }
 0x5a4   : > { %v6483_v62 = vpop.f32.mrf.mxu0 }
 0x5a5   : > { %v6731_v35 = vpop.f32.mrf.mxu1 }
 0x5a6   : > { %v6484_v37 = vpop.f32.mrf.mxu0 }
 0x5a7   : > { %v6733_v6 = vpop.f32.mrf.mxu1 }
 0x5a8   : > { %v6487_v40 = vpop.f32.mrf.mxu0  ;;  %7114 = vmatmul.mubr.bf16.gmra.mxu0 %v6864_v17 }
 0x5a9   : > { %v6734_v57 = vpop.f32.mrf.mxu1  ;;  %8616 = vmatprep.mubr.msk.bf16.mxu0 %vm6368_vm11, %v13608_v42 }
 0x5aa   : > { %v6488_v45 = vpop.f32.mrf.mxu0 }
 0x5ab   : > { %v6735_v60 = vpop.f32.mrf.mxu1 }
 0x5ac   : > { %v6489_v61 = vpop.f32.mrf.mxu0 }
 0x5ad   : > { %v6738_v9 = vpop.f32.mrf.mxu1 }
 0x5ae   : > { %v6490_v29 = vpop.f32.mrf.mxu0 }
 0x5af   : > { %v6739_v39 = vpop.f32.mrf.mxu1 }
 0x5b0   : > { %v6493_v30 = vpop.f32.mrf.mxu0  ;;  %7589 = vmatmul.mubr.bf16.vlgmr.msra.gmra.mxu0 %v13613_v48 }
 0x5b1   : > { %v14126_v18 = vadd.f32 %v6731_v35, %v6493_v30  ;;  %v6740_v22 = vpop.f32.mrf.mxu1  ;;  %8617 = vmatprep.mubr.msk.bf16.mxu0 %vm6368_vm11, %v13642_v2 }
 0x5b2   : > { %v6495_v52 = vpop.f32.mrf.mxu0 }
 0x5b3   : > { %v6741_v34 = vpop.f32.mrf.mxu1 }
 0x5b4   : > { %v6496_v13 = vpop.f32.mrf.mxu0 }
 0x5b5   : > { %v6744_v56 = vpop.f32.mrf.mxu1 }
 0x5b6   : > { %v6497_v42 = vpop.f32.mrf.mxu0 }
 0x5b7   : > { %v6746_v10 = vpop.f32.mrf.mxu1 }
 0x5b8   : > { %v6500_v50 = vpop.f32.mrf.mxu0  ;;  %7596 = vmatmul.mubr.bf16.gmra.mxu0 %v13648_v20 }
 0x5b9   : > { %v6747_v17 = vpop.f32.mrf.mxu1  ;;  %8618 = vmatprep.mubr.msk.bf16.mxu0 %vm6368_vm11, %v13676_v46 }
 0x5ba   : > { %v6501_v48 = vpop.f32.mrf.mxu0 }
 0x5bb   : > { %v6748_v19 = vpop.f32.mrf.mxu1 }
 0x5bc   : > { %v6502_v36 = vpop.f32.mrf.mxu0 }
 0x5bd   : > { %v6751_v49 = vpop.f32.mrf.mxu1 }
 0x5be   : > { %v6503_v11 = vpop.f32.mrf.mxu0 }
 0x5bf   : > { %v6752_v12 = vpop.f32.mrf.mxu1 }
 0x5c0   : > { %v6506_v2 = vpop.f32.mrf.mxu0  ;;  %7602 = vmatmul.mubr.bf16.gmra.mxu0 %v13682_v14 }
 0x5c1   : > { %v14134_v32 = vadd.f32 %v6744_v56, %v6506_v2  ;;  %v6753_v59 = vpop.f32.mrf.mxu1  ;;  %8619 = vmatprep.mubr.msk.bf16.mxu0 %vm6368_vm11, %v13713_v53 }
 0x5c2   : > { %v6508_v20 = vpop.f32.mrf.mxu0 }
 0x5c3   : > { %v6754_v38 = vpop.f32.mrf.mxu1 }
 0x5c4   : > { %v6509_v26 = vpop.f32.mrf.mxu0 }
 0x5c5   : > { %v6757_v62 = vpop.f32.mrf.mxu1 }
 0x5c6   : > { %v6510_v46 = vpop.f32.mrf.mxu0 }
 0x5c7   : > { %v6759_v35 = vpop.f32.mrf.mxu1 }
 0x5c8   : > { %v6513_v37 = vpop.f32.mrf.mxu0  ;;  %7609 = vmatmul.mubr.bf16.gmra.mxu0 %v13717_v0 }
 0x5c9   : > { %v6760_v6 = vpop.f32.mrf.mxu1  ;;  %8620 = vmatprep.mubr.msk.bf16.mxu0 %vm6368_vm11, %v13748_v33 }
 0x5ca   : > { %v6514_v14 = vpop.f32.mrf.mxu0 }
 0x5cb   : > { %v6761_v40 = vpop.f32.mrf.mxu1 }
 0x5cc   : > { %v6515_v57 = vpop.f32.mrf.mxu0  ;;  %v9389_v40 = vmov 0.0  }
 0x5cd   : > { %v6764_v45 = vpop.f32.mrf.mxu1  ;;  %8667 = vmatprep.subr.bf16.mxu1 %v9389_v40  ;;  %8683 = vmatprep.mubr.msk.bf16.mxu1 %vm9390_vm13, %v9389_v40 }
 0x5ce   : > { %v6516_v60 = vpop.f32.mrf.mxu0 }
 0x5cf   : > { %v6765_v61 = vpop.f32.mrf.mxu1 }
 0x5d0   : > { %v6519_v53 = vpop.f32.mrf.mxu0  ;;  %7615 = vmatmul.mubr.bf16.gmra.mxu0 %v13751_v3 }
 0x5d1   : > { %v14142_v9 = vadd.f32 %v6757_v62, %v6519_v53  ;;  %v6766_v29 = vpop.f32.mrf.mxu1  ;;  %8621 = vmatprep.mubr.msk.bf16.mxu0 %vm6368_vm11, %v13772_v1 }
 0x5d2   : > { %v6521_v0 = vpop.f32.mrf.mxu0 }
 0x5d3   : > { %v6767_v39 = vpop.f32.mrf.mxu1 }
 0x5d4   : > { %v6522_v30 = vpop.f32.mrf.mxu0 }
 0x5d5   : > { %v6770_v22 = vpop.f32.mrf.mxu1 }
 0x5d6   : > { %v6523_v33 = vpop.f32.mrf.mxu0 }
 0x5d7   : > { %v6772_v52 = vpop.f32.mrf.mxu1 }
 0x5d8   : > { %v6526_v34 = vpop.f32.mrf.mxu0  ;;  %7622 = vmatmul.mubr.bf16.gmra.mxu0 %v13775_v41 }
 0x5d9   : > { %v6773_v13 = vpop.f32.mrf.mxu1  ;;  %8622 = vmatprep.mubr.msk.bf16.mxu0 %vm6368_vm11, %v13792_v31 }
 0x5da   : > { %v6527_v3 = vpop.f32.mrf.mxu0 }
 0x5db   : > { %v6774_v56 = vpop.f32.mrf.mxu1 }
 0x5dc   : > { %v6528_v42 = vpop.f32.mrf.mxu0 }
 0x5dd   : > { %v6777_v10 = vpop.f32.mrf.mxu1 }
 0x5de   : > { %v6529_v50 = vpop.f32.mrf.mxu0  ;;  %v9307_v10 = vld [vmem:[%s14346_s4 + $0x30] sm:$0xff]  }
 0x5df   : > { %v6778_v17 = vpop.f32.mrf.mxu1 }
 0x5e0   : > { %v6532_v1 = vpop.f32.mrf.mxu0  ;;  %7628 = vmatmul.mubr.bf16.gmra.mxu0 %v13794_v8 }
 0x5e1   : > { %v14150_v48 = vadd.f32 %v6770_v22, %v6532_v1  ;;  %v6779_v19 = vpop.f32.mrf.mxu1  ;;  %8623 = vmatprep.mubr.msk.bf16.mxu0 %vm6368_vm11, %v13810_v63 }
 0x5e2   : > { %v6534_v41 = vpop.f32.mrf.mxu0 }
 0x5e3   : > { %v6780_v36 = vpop.f32.mrf.mxu1  ;;  %v9063_v41 = vpop.permute.xlu0 %9062 }
 0x5e4   : > { %v6535_v49 = vpop.f32.mrf.mxu0 }
 0x5e5   : > { %v6783_v11 = vpop.f32.mrf.mxu1 }
 0x5e6   : > { %v6536_v31 = vpop.f32.mrf.mxu0 }
 0x5e7   : > { %v6785_v12 = vpop.f32.mrf.mxu1  ;;  %v9065_v31 = vunpack.i.h.bf16 %v9063_v41 }
 0x5e8   : > { %v6539_v2 = vpop.f32.mrf.mxu0  ;;  %7635 = vmatmul.mubr.bf16.gmra.mxu0 %v13812_v55 }
 0x5e9   : > { %v6786_v59 = vpop.f32.mrf.mxu1  ;;  %8624 = vmatprep.mubr.msk.bf16.mxu0 %vm6368_vm11, %v13828_v47  ;;  %v9306_v47 = vld [vmem:[%s14346_s4 + $0x38] ss:$0 sps:$4 sm:$0xff]   ;;  %v6132_v2 = vmax.f32 %v13570_v15, %v9065_v31 }
 0x5ea   : > { %v6540_v8 = vpop.f32.mrf.mxu0  ;;  %v7802_v45 = vsel %vm3258_vm6, %v9306_v47, 0  ;;  %v9064_v59 = vunpack.i.l.bf16 %v9063_v41 }
 0x5eb   : > { %v6787_v20 = vpop.f32.mrf.mxu1  ;;  %8668 = vmatpush3.bf16.msra.mxu1 %v7802_v45 }
 0x5ec   : > { %v6541_v38 = vpop.f32.mrf.mxu0  ;;  %8669 = vmatprep.subr.bf16.mxu1 %v9389_v40 }
 0x5ed   : > { %v7365_v26 = vpop.f32.mrf.mxu1 }
 0x5ee   : > { %v6542_v62 = vpop.f32.mrf.mxu0 }
 0x5ef   : > { %v7367_v46 = vpop.f32.mrf.mxu1  ;;  %8670 = vmatpush3.bf16.msra.mxu1 %v9307_v10  ;;  %v6164_v62 = vpack.c.bf16 %v6132_v2, %v6132_v2  ;;  %v9311_v2 = vld [vmem:[%s14346_s4 + $0x10] sm:$0xff]  }
 0x5f0   : > { %v6545_v63 = vpop.f32.mrf.mxu0  ;;  %7641 = vmatmul.mubr.bf16.gmra.mxu0 %v13830_v51  ;;  %8671 = vmatprep.subr.bf16.mxu1 %v9389_v40  ;;  %v6008_v46 = vsel %vm2757_vm7, %v9064_v59, %v9065_v31 }
 0x5f1   : > { %v14158_v35 = vadd.f32 %v6783_v11, %v6545_v63  ;;  %v7368_v37 = vpop.f32.mrf.mxu1  ;;  %8625 = vmatprep.mubr.msk.bf16.mxu0 %vm6368_vm11, %v13846_v16  ;;  %v6131_v15 = vmax.f32 %v13568_v23, %v6008_v46 }
 0x5f2   : > { %v6547_v55 = vpop.f32.mrf.mxu0 }
 0x5f3   : > { %v7369_v6 = vpop.f32.mrf.mxu1 }
 0x5f4   : > { %v6548_v14 = vpop.f32.mrf.mxu0 }
 0x5f5   : > { %v7372_v57 = vpop.f32.mrf.mxu1 }
 0x5f6   : > { %v6549_v51 = vpop.f32.mrf.mxu0 }
 0x5f7   : > { %v7373_v60 = vpop.f32.mrf.mxu1 }
 0x5f8   : > { %v7024_v61 = vpop.f32.mrf.mxu0  ;;  %7648 = vmatmul.mubr.bf16.gmra.mxu0 %v13848_v5  ;;  %v6163_v60 = vpack.c.bf16 %v6131_v15, %v6131_v15 }
 0x5f9   : > { %v7121_v16 = vadd.f32 %v7024_v61, %v14086_v54  ;;  %v7374_v53 = vpop.f32.mrf.mxu1  ;;  %8626 = vmatprep.mubr.msk.bf16.mxu0 %vm6368_vm11, %v13864_v58 }
 0x5fa   : > { %v7026_v29 = vpop.f32.mrf.mxu0 }
 0x5fb   : > { %v7375_v0 = vpop.f32.mrf.mxu1  ;;  %v14172_v39 = vadd.f32 %v7365_v26, %v7121_v16 }
 0x5fc   : > { %v7027_v30 = vpop.f32.mrf.mxu0 }
 0x5fd   : > { %v7378_v22 = vpop.f32.mrf.mxu1 }
 0x5fe   : > { %v7028_v33 = vpop.f32.mrf.mxu0 }
 0x5ff   : > { %v7380_v52 = vpop.f32.mrf.mxu1 }
 0x600   : > { %v7031_v34 = vpop.f32.mrf.mxu0  ;;  %7654 = vmatmul.mubr.bf16.gmra.mxu0 %v13866_v4 }
 0x601   : > { %v7381_v13 = vpop.f32.mrf.mxu1  ;;  %8627 = vmatprep.mubr.msk.bf16.mxu0 %vm6368_vm11, %v13882_v25 }
 0x602   : > { %v7032_v5 = vpop.f32.mrf.mxu0 }
 0x603   : > { %v7382_v54 = vpop.f32.mrf.mxu1 }
 0x604   : > { %v7033_v3 = vpop.f32.mrf.mxu0 }
 0x605   : > { %v7385_v56 = vpop.f32.mrf.mxu1 }
 0x606   : > { %v7034_v58 = vpop.f32.mrf.mxu0 }
 0x607   : > { %v7386_v42 = vpop.f32.mrf.mxu1 }
 0x608   : > { %v7037_v50 = vpop.f32.mrf.mxu0  ;;  %7661 = vmatmul.mubr.bf16.gmra.mxu0 %v13884_v27  ;;  %v9310_v42 = vld [vmem:[%s14346_s4 + $0x18] sm:$0xff]  }
 0x609   : > { %v7122_v17 = vadd.f32 %v7037_v50, %v14108_v44  ;;  %v7387_v4 = vpop.f32.mrf.mxu1  ;;  %8628 = vmatprep.mubr.msk.bf16.mxu0 %vm6368_vm11, %v13900_v21 }
 0x60a   : > { %v7039_v25 = vpop.f32.mrf.mxu0 }
 0x60b   : > { %v7388_v1 = vpop.f32.mrf.mxu1  ;;  %v14185_v19 = vadd.f32 %v7378_v22, %v7122_v17 }
 0x60c   : > { %v7040_v36 = vpop.f32.mrf.mxu0 }
 0x60d   : > { %v7391_v49 = vpop.f32.mrf.mxu1 }
 0x60e   : > { %v7041_v11 = vpop.f32.mrf.mxu0 }
 0x60f   : > { %v7393_v12 = vpop.f32.mrf.mxu1 }
 0x610   : > { %v7044_v27 = vpop.f32.mrf.mxu0  ;;  %7667 = vmatmul.mubr.bf16.gmra.mxu0 %v13902_v43  ;;  %v9308_v43 = vld [vmem:[%s14346_s4 + $0x28] sm:$0xff]  }
 0x611   : > { %v7394_v44 = vpop.f32.mrf.mxu1  ;;  %8629 = vmatprep.mubr.msk.bf16.mxu0 %vm6368_vm11, %v13918_v28  ;;  %8672 = vmatpush3.bf16.msra.mxu1 %v9308_v43 }
 0x612   : > { %v7045_v21 = vpop.f32.mrf.mxu0  ;;  %8673 = vmatprep.subr.bf16.mxu1 %v9389_v40 }
 0x613   : > { %v7395_v8 = vpop.f32.mrf.mxu1 }
 0x614   : > { %v7046_v20 = vpop.f32.mrf.mxu0 }
 0x615   : > { %v7398_v38 = vpop.f32.mrf.mxu1 }
 0x616   : > { %v7047_v26 = vpop.f32.mrf.mxu0 }
 0x617   : > { %v7399_v63 = vpop.f32.mrf.mxu1 }
 0x618   : > { %v7050_v37 = vpop.f32.mrf.mxu0  ;;  %7674 = vmatmul.mubr.bf16.gmra.mxu0 %v13920_v24  ;;  %v9309_v24 = vld [vmem:[%s14346_s4 + $0x20] sm:$0xff]  }
 0x619   : > { %v7123_v28 = vadd.f32 %v7050_v37, %v14120_v7  ;;  %v7400_v55 = vpop.f32.mrf.mxu1  ;;  %8630 = vmatprep.mubr.msk.bf16.mxu0 %vm6368_vm11, %v6164_v62  ;;  %8674 = vmatpush3.bf16.msra.mxu1 %v9309_v24 }
 0x61a   : > { %v7052_v6 = vpop.f32.mrf.mxu0  ;;  %8675 = vmatprep.subr.bf16.mxu1 %v9389_v40 }
 0x61b   : > { %v7401_v47 = vpop.f32.mrf.mxu1  ;;  %v14200_v14 = vadd.f32 %v7391_v49, %v7123_v28 }
 0x61c   : > { %v7053_v57 = vpop.f32.mrf.mxu0 }
 0x61d   : > { %v7404_v45 = vpop.f32.mrf.mxu1  ;;  %8676 = vmatpush3.bf16.msra.mxu1 %v9310_v42 }
 0x61e   : > { %v7054_v51 = vpop.f32.mrf.mxu0  ;;  %8677 = vmatprep.subr.bf16.mxu1 %v9389_v40 }
 0x61f   : > { %v7406_v7 = vpop.f32.mrf.mxu1  ;;  %v9312_v51 = vld [vmem:[%s14346_s4 + $0x8] sm:$0xff]  }
 0x620   : > { %v7057_v61 = vpop.f32.mrf.mxu0  ;;  %7680 = vmatmul.mubr.bf16.gmra.mxu0 %v6163_v60 }
 0x621   : > { %v7407_v16 = vpop.f32.mrf.mxu1  ;;  %8678 = vmatpush3.bf16.msra.mxu1 %v9311_v2 }
 0x622   : > { %v7058_v23 = vpop.f32.mrf.mxu0  ;;  %8679 = vmatprep.subr.bf16.mxu1 %v9389_v40 }
 0x623   : > { %v7408_v53 = vpop.f32.mrf.mxu1 }
 0x624   : > { %v7059_v29 = vpop.f32.mrf.mxu0 }
 0x625   : > { %v7411_v0 = vpop.f32.mrf.mxu1  ;;  %8680 = vmatpush3.bf16.msra.mxu1 %v9312_v51 }
 0x626   : > { %v7060_v30 = vpop.f32.mrf.mxu0  ;;  %8681 = vmatprep.subr.bf16.mxu1 %v9389_v40 }
 0x627   : > { %v7412_v22 = vpop.f32.mrf.mxu1 }
 0x628   : > { %v7063_v33 = vpop.f32.mrf.mxu0 }
 0x629   : > { %v7124_v52 = vadd.f32 %v7063_v33, %v14126_v18  ;;  %v7413_v34 = vpop.f32.mrf.mxu1 }
 0x62a   : > { %v7065_v13 = vpop.f32.mrf.mxu0 }
 0x62b   : > { %v7414_v5 = vpop.f32.mrf.mxu1  ;;  %v14207_v54 = vadd.f32 %v7404_v45, %v7124_v52  ;;  %v9313_v13 = vld [vmem:[%s14346_s4] sm:$0xff]  }
 0x62c   : > { %v7066_v3 = vpop.f32.mrf.mxu0  ;;  %8682 = vmatpush3.bf16.msra.mxu1 %v9313_v13 }
 0x62d   : > { %v7417_v56 = vpop.f32.mrf.mxu1  ;;  %8687 = vmatprep.subr.bf16.mxu1 %v9389_v40 }
 0x62e   : > { %v7067_v58 = vpop.f32.mrf.mxu0 }
 0x62f   : > { %v7419_v10 = vpop.f32.mrf.mxu1 }
 0x630   : > { %v7070_v50 = vpop.f32.mrf.mxu0 }
 0x631   : > { %v7420_v17 = vpop.f32.mrf.mxu1 }
 0x632   : > { %v7071_v4 = vpop.f32.mrf.mxu0 }
 0x633   : > { %v7421_v18 = vpop.f32.mrf.mxu1 }
 0x634   : > { %v7072_v25 = vpop.f32.mrf.mxu0 }
 0x635   : > { %v7424_v1 = vpop.f32.mrf.mxu1 }
 0x636   : > { %v7073_v41 = vpop.f32.mrf.mxu0 }
 0x637   : > { %v7425_v36 = vpop.f32.mrf.mxu1 }
 0x638   : > { %v7076_v49 = vpop.f32.mrf.mxu0 }
 0x639   : > { %v7125_v11 = vadd.f32 %v7076_v49, %v14134_v32  ;;  %v7426_v31 = vpop.f32.mrf.mxu1 }
 0x63a   : > { %v7078_v12 = vpop.f32.mrf.mxu0 }
 0x63b   : > { %v7427_v27 = vpop.f32.mrf.mxu1  ;;  %v14214_v44 = vadd.f32 %v7417_v56, %v7125_v11 }
 0x63c   : > { %v7079_v21 = vpop.f32.mrf.mxu0 }
 0x63d   : > { %v7430_v59 = vpop.f32.mrf.mxu1 }
 0x63e   : > { %v7080_v8 = vpop.f32.mrf.mxu0 }
 0x63f   : > { %v7432_v20 = vpop.f32.mrf.mxu1 }
 0x640   : > { %v7083_v38 = vpop.f32.mrf.mxu0 }
 0x641   : > { %v7433_v26 = vpop.f32.mrf.mxu1 }
 0x642   : > { %v7084_v62 = vpop.f32.mrf.mxu0 }
 0x643   : > { %v7434_v32 = vpop.f32.mrf.mxu1 }
 0x644   : > { %v7085_v46 = vpop.f32.mrf.mxu0  ;;  %v14244_v32 = vld [vmem:[%s14348_s6 + $0x2] ss:$0 sm:$0xff] }
 0x645   : > { %v7437_v63 = vpop.f32.mrf.mxu1 }
 0x646   : > { %v7086_v43 = vpop.f32.mrf.mxu0 }
 0x647   : > { %v7438_v37 = vpop.f32.mrf.mxu1 }
 0x648   : > { %v7089_v28 = vpop.f32.mrf.mxu0 }
 0x649   : > { %v7126_v55 = vadd.f32 %v7089_v28, %v14142_v9  ;;  %v7439_v15 = vpop.f32.mrf.mxu1 }
 0x64a   : > { %v7091_v6 = vpop.f32.mrf.mxu0 }
 0x64b   : > { %v7440_v47 = vpop.f32.mrf.mxu1  ;;  %v14221_v57 = vadd.f32 %v7430_v59, %v7126_v55 }
 0x64c   : > { %v7092_v45 = vpop.f32.mrf.mxu0 }
 0x64d   : > { %v7443_v60 = vpop.f32.mrf.mxu1 }
 0x64e   : > { %v7093_v24 = vpop.f32.mrf.mxu0 }
 0x64f   : > { %v7445_v7 = vpop.f32.mrf.mxu1 }
 0x650   : > { %v7096_v61 = vpop.f32.mrf.mxu0 }
 0x651   : > { %v7446_v16 = vpop.f32.mrf.mxu1 }
 0x652   : > { %v7097_v23 = vpop.f32.mrf.mxu0 }
 0x653   : > { %v7447_v9 = vpop.f32.mrf.mxu1 }
 0x654   : > { %v7098_v53 = vpop.f32.mrf.mxu0 }
 0x655   : > { %v7450_v29 = vpop.f32.mrf.mxu1 }
 0x656   : > { %v7099_v0 = vpop.f32.mrf.mxu0 }
 0x657   : > { %v7451_v30 = vpop.f32.mrf.mxu1 }
 0x658   : > { %v7102_v22 = vpop.f32.mrf.mxu0 }
 0x659   : > { %v7127_v33 = vadd.f32 %v7102_v22, %v14150_v48  ;;  %v7452_v52 = vpop.f32.mrf.mxu1 }
 0x65a   : > { %v7104_v34 = vpop.f32.mrf.mxu0 }
 0x65b   : > { %v7453_v5 = vpop.f32.mrf.mxu1  ;;  %v14231_v3 = vadd.f32 %v7443_v60, %v7127_v33 }
 0x65c   : > { %v7105_v56 = vpop.f32.mrf.mxu0 }
 0x65d   : > { %v7456_v58 = vpop.f32.mrf.mxu1 }
 0x65e   : > { %v7106_v42 = vpop.f32.mrf.mxu0 }
 0x65f   : > { %v7458_v10 = vpop.f32.mrf.mxu1 }
 0x660   : > { %v7109_v50 = vpop.f32.mrf.mxu0 }
 0x661   : > { %v7459_v17 = vpop.f32.mrf.mxu1 }
 0x662   : > { %v7110_v4 = vpop.f32.mrf.mxu0 }
 0x663   : > { %v7460_v48 = vpop.f32.mrf.mxu1 }
 0x664   : > { %v7111_v18 = vpop.f32.mrf.mxu0 }
 0x666   : > { %v7112_v25 = vpop.f32.mrf.mxu0 }
 0x668   : > { %v7115_v1 = vpop.f32.mrf.mxu0 }
 0x669   : > { %v7128_v41 = vadd.f32 %v7115_v1, %v14158_v35 }
 0x66a   : > { %v7117_v36 = vpop.f32.mrf.mxu0 }
 0x66b   : > { %v14237_v49 = vadd.f32 %v7456_v58, %v7128_v41 }
 0x66c   : > { %v7118_v11 = vpop.f32.mrf.mxu0 }
 0x66e   : > { %v7119_v31 = vpop.f32.mrf.mxu0 }
 0x670   : > { %v7590_v12 = vpop.f32.mrf.mxu0 }
 0x671   : > { %v7687_v27 = vadd.f32 %v7590_v12, %v14172_v39 }
 0x672   : > { %v7592_v21 = vpop.f32.mrf.mxu0 }
 0x673   : > { %v7696_v43 = vadd.f32 %v14244_v32, %v7687_v27 }
 0x674   : > { %v7593_v2 = vpop.f32.mrf.mxu0 }
 0x676   : > { %v7594_v59 = vpop.f32.mrf.mxu0 }
 0x678   : > { %v7597_v8 = vpop.f32.mrf.mxu0 }
 0x67a   : > { %v7598_v20 = vpop.f32.mrf.mxu0 }
 0x67c   : > { %v7599_v38 = vpop.f32.mrf.mxu0 }
 0x67e   : > { %v7600_v26 = vpop.f32.mrf.mxu0 }
 0x680   : > { %v7603_v35 = vpop.f32.mrf.mxu0 }
 0x681   : > { %v7688_v62 = vadd.f32 %v7603_v35, %v14185_v19 }
 0x682   : > { %v7605_v46 = vpop.f32.mrf.mxu0 }
 0x683   : > { %v7697_v63 = vadd.f32 %v14244_v32, %v7688_v62 }
 0x684   : > { %v7606_v39 = vpop.f32.mrf.mxu0 }
 0x685   : > { %v7705_v37 = vrot.slane %v7697_v63, 7 }
 0x686   : > { %v7607_v28 = vpop.f32.mrf.mxu0 }
 0x687   : > { %v7726_v55 = vsel %vm7725_vm14, %v7696_v43, %v7705_v37 }
 0x688   : > { %v7610_v15 = vpop.f32.mrf.mxu0 }
 0x68a   : > { %v7611_v6 = vpop.f32.mrf.mxu0 }
 0x68c   : > { %v7612_v47 = vpop.f32.mrf.mxu0 }
 0x68e   : > { %v7613_v45 = vpop.f32.mrf.mxu0 }
 0x690   : > { %v7616_v19 = vpop.f32.mrf.mxu0 }
 0x691   : > { %v7689_v51 = vadd.f32 %v7616_v19, %v14200_v14 }
 0x692   : > { %v7618_v60 = vpop.f32.mrf.mxu0 }
 0x693   : > { %v7698_v24 = vadd.f32 %v14244_v32, %v7689_v51 }
 0x694   : > { %v7619_v7 = vpop.f32.mrf.mxu0 }
 0x695   : > { %v7708_v61 = vrot.slane %v7698_v24, 6 }
 0x696   : > { %v7620_v16 = vpop.f32.mrf.mxu0 }
 0x697   : > { %v7728_v23 = vsel %vm7150_vm12, %v7726_v55, %v7708_v61 }
 0x698   : > { %v7623_v9 = vpop.f32.mrf.mxu0 }
 0x69a   : > { %v7624_v53 = vpop.f32.mrf.mxu0 }
 0x69c   : > { %v7625_v29 = vpop.f32.mrf.mxu0 }
 0x69d   : > { %v9317_v29 = vld [vmem:[%s14347_s5 + $0x10] sm:$0xff]  }
 0x69e   : > { %v7626_v0 = vpop.f32.mrf.mxu0 }
 0x69f   : > { %v9318_v0 = vld [vmem:[%s14347_s5 + $0x8] sm:$0xff]  }
 0x6a0   : > { %v7629_v30 = vpop.f32.mrf.mxu0 }
 0x6a1   : > { %v7690_v22 = vadd.f32 %v7629_v30, %v14207_v54  ;;  %v9319_v30 = vld [vmem:[%s14347_s5] sm:$0xff]  }
 0x6a2   : > { %v7631_v33 = vpop.f32.mrf.mxu0 }
 0x6a3   : > { %v7699_v52 = vadd.f32 %v14244_v32, %v7690_v22  ;;  %v7751_v22 = vld [vmem:[%s14348_s6 + $0x3] ss:$0 sm:$0xff] }
 0x6a4   : > { %v7632_v34 = vpop.f32.mrf.mxu0 }
 0x6a5   : > { %v7711_v14 = vrot.slane %v7699_v52, 5 }
 0x6a6   : > { %v7633_v13 = vpop.f32.mrf.mxu0 }
 0x6a7   : > { %v7729_v5 = vsel %vm3257_vm5, %v7728_v23, %v7711_v14 }
 0x6a8   : > { %v7636_v56 = vpop.f32.mrf.mxu0 }
 0x6aa   : > { %v7637_v58 = vpop.f32.mrf.mxu0 }
 0x6ab   : > { %v14961_v58 = vlaneseq }
 0x6ac   : > { %v7638_v42 = vpop.f32.mrf.mxu0 }
 0x6ad   : > { %v7939_v42 = vand.u32 127, %v14961_v58 }
 0x6ae   : > { %v7639_v10 = vpop.f32.mrf.mxu0 }
 0x6af   : > { %vm7940_vm1 = vcmp.lt.s32.totalorder %v7939_v42, 10 }
 0x6b0   : > { %v7642_v50 = vpop.f32.mrf.mxu0 }
 0x6b1   : > { %v7691_v17 = vadd.f32 %v7642_v50, %v14214_v44 }
 0x6b2   : > { %v7644_v4 = vpop.f32.mrf.mxu0 }
 0x6b3   : > { %v7700_v48 = vadd.f32 %v14244_v32, %v7691_v17 }
 0x6b4   : > { %v7645_v18 = vpop.f32.mrf.mxu0 }
 0x6b5   : > { %v7714_v54 = vrot.slane %v7700_v48, 4 }
 0x6b6   : > { %v7646_v25 = vpop.f32.mrf.mxu0 }
 0x6b7   : > { %v7730_v1 = vsel %vm3258_vm6, %v7729_v5, %v7714_v54 }
 0x6b8   : > { %v7649_v41 = vpop.f32.mrf.mxu0 }
 0x6ba   : > { %v7650_v36 = vpop.f32.mrf.mxu0 }
 0x6bc   : > { %v7651_v11 = vpop.f32.mrf.mxu0 }
 0x6be   : > { %v7652_v31 = vpop.f32.mrf.mxu0 }
 0x6c0   : > { %v7655_v12 = vpop.f32.mrf.mxu0 }
 0x6c1   : > { %v7692_v27 = vadd.f32 %v7655_v12, %v14221_v57 }
 0x6c2   : > { %v7657_v21 = vpop.f32.mrf.mxu0 }
 0x6c3   : > { %v7701_v2 = vadd.f32 %v14244_v32, %v7692_v27 }
 0x6c4   : > { %v7658_v59 = vpop.f32.mrf.mxu0 }
 0x6c5   : > { %v7717_v44 = vrot.slane %v7701_v2, 3 }
 0x6c6   : > { %v7659_v8 = vpop.f32.mrf.mxu0 }
 0x6c7   : > { %v7732_v20 = vsel %vm4342_vm9, %v7730_v1, %v7717_v44 }
 0x6c8   : > { %v7662_v38 = vpop.f32.mrf.mxu0 }
 0x6ca   : > { %v7663_v26 = vpop.f32.mrf.mxu0 }
 0x6cc   : > { %v7664_v35 = vpop.f32.mrf.mxu0 }
 0x6ce   : > { %v7665_v62 = vpop.f32.mrf.mxu0 }
 0x6d0   : > { %v7668_v46 = vpop.f32.mrf.mxu0 }
 0x6d1   : > { %v7693_v63 = vadd.f32 %v7668_v46, %v14231_v3  ;;  %v9314_v3 = vld [vmem:[%s14347_s5 + $0x28] ss:$0 sps:$4 sm:$0x33]  }
 0x6d2   : > { %v7670_v39 = vpop.f32.mrf.mxu0  ;;  %v7896_v53 = vsel %vm7150_vm12, %v9314_v3, 0 }
 0x6d3   : > { %v7702_v43 = vadd.f32 %v14244_v32, %v7693_v63 }
 0x6d4   : > { %v7671_v37 = vpop.f32.mrf.mxu0 }
 0x6d5   : > { %v7720_v57 = vrot.slane %v7702_v43, 2 }
 0x6d6   : > { %v7672_v28 = vpop.f32.mrf.mxu0 }
 0x6d7   : > { %v7733_v55 = vsel %vm1749_vm4, %v7732_v20, %v7720_v57 }
 0x6d8   : > { %v7675_v15 = vpop.f32.mrf.mxu0 }
 0x6da   : > { %v7676_v6 = vpop.f32.mrf.mxu0 }
 0x6dc   : > { %v7677_v47 = vpop.f32.mrf.mxu0 }
 0x6de   : > { %v7678_v45 = vpop.f32.mrf.mxu0 }
 0x6e0   : > { %v7681_v19 = vpop.f32.mrf.mxu0 }
 0x6e1   : > { %v7694_v51 = vadd.f32 %v7681_v19, %v14237_v49  ;;  %v9315_v49 = vld [vmem:[%s14347_s5 + $0x20] sm:$0xff]  }
 0x6e2   : > { %v7683_v60 = vpop.f32.mrf.mxu0 }
 0x6e3   : > { %v7703_v24 = vadd.f32 %v14244_v32, %v7694_v51  ;;  %v9316_v32 = vld [vmem:[%s14347_s5 + $0x18] sm:$0xff]  }
 0x6e4   : > { %v7684_v7 = vpop.f32.mrf.mxu0 }
 0x6e5   : > { %v7723_v61 = vrot.slane %v7703_v24, 1 }
 0x6e6   : > { %v7685_v16 = vpop.f32.mrf.mxu0 }
 0x6e7   : > { %v7734_v23 = vsel %vm993_vm3, %v7733_v55, %v7723_v61 }
 0x6e8   : > { %v7735_v9 = vpack.c.bf16 %v7734_v23, %v7734_v23 }
 0x6ea   : > { %8684 = vmatmul.mubr.msk.bf16.vlgmr.msra.gmra.mxu1 %vm7797_vm15, %v7735_v9 }
 0x6eb   : > { %8688 = vmatpush3.bf16.msra.mxu1 %v7896_v53  ;;  %8699 = vmatprep.mubr.msk.bf16.mxu1 %vm9390_vm13, %v9389_v40 }
 0x6ec   : > { %8689 = vmatprep.subr.bf16.mxu1 %v9389_v40 }
 0x6ef   : > { %8690 = vmatpush3.bf16.msra.mxu1 %v9315_v49 }
 0x6f0   : > { %8691 = vmatprep.subr.bf16.mxu1 %v9389_v40 }
 0x6f3   : > { %8692 = vmatpush3.bf16.msra.mxu1 %v9316_v32 }
 0x6f4   : > { %8693 = vmatprep.subr.bf16.mxu1 %v9389_v40 }
 0x6f7   : > { %8694 = vmatpush3.bf16.msra.mxu1 %v9317_v29 }
 0x6f8   : > { %8695 = vmatprep.subr.bf16.mxu1 %v9389_v40 }
 0x6fb   : > { %8696 = vmatpush3.bf16.msra.mxu1 %v9318_v0 }
 0x6fc   : > { %8697 = vmatprep.subr.bf16.mxu1 %v9389_v40  ;;  %v7857_v40 = vld [vmem:[%s14348_s6 + $0x4] ss:$0 sm:$0xff] }
 0x6ff   : > { %8698 = vmatpush3.bf16.msra.mxu1 %v9319_v30 }
 0x7aa   : > { %v7838_v33 = vpop.f32.mrf.mxu1 }
 0x7ab   : > { %v7839_v52 = vadd.f32 %v7838_v33, %v7751_v22 }
 0x7ac   : > { %v8685_v34 = vpop.f32.mrf.mxu1 }
 0x7ad   : > { %v7844_v14 = vmax.f32 %v7839_v52, 0.0 }
 0x7ae   : > { %v7841_v13 = vpop.f32.mrf.mxu1 }
 0x7af   : > { %v7845_v5 = vpack.c.bf16 %v7844_v14, %v7844_v14 }
 0x7b0   : > { %v8686_v56 = vpop.f32.mrf.mxu1 }
 0x7b1   : > { %8700 = vmatmul.mubr.msk.bf16.vlgmr.msra.gmra.mxu1 %vm7891_vm0, %v7845_v5 }
 0x871   : > { %v7932_v10 = vpop.f32.mrf.mxu1 }
 0x872   : > { %v7933_v50 = vadd.f32 %v7932_v10, %v7857_v40 }
 0x873   : > { %v8701_v17 = vpop.f32.mrf.mxu1 }
 0x874   : > { %v7941_v4 = vsel %vm7940_vm1, %v7933_v50, -inf }
 0x875   : > { %7942 = vmax.xlane.f32.xlu1 %v7941_v4  ;;  %v7935_v48 = vpop.f32.mrf.mxu1 }
 0x877   : > { %v8702_v18 = vpop.f32.mrf.mxu1 }
 0x8fe   : > { %v7943_v54 = vpop.xlane.xlu1 %7942 }
 0x8ff   : > { %v7944_v25 = vsub.f32 %v7941_v4, %v7943_v54 }
 0x901   : > { %v7945_v1 = vmul.f32 1.442695, %v7944_v25 }
 0x903   : > { %9320 = vpow2.f32 %v7945_v1 }
 0x910   : > { %v9321_v41 = vpop.eup %9320 }
 0x911   : > { %v7947_v36 = vsel %vm7940_vm1, %v9321_v41, 0.0 }
 0x912   : > { %7948 = vadd.xlane.f32.xlu0 %v7947_v36 }
 0x99b   : > { %v7949_v11 = vpop.xlane.xlu0 %7948 }
 0x99c   : > { %9322 = vlog2.f32 %v7949_v11 }
 0x9a9   : > { %v9323_v31 = vpop.eup %9322 }
 0x9aa   : > { %v7951_v12 = vmul.f32 0.6931472, %v9323_v31 }
 0x9ac   : > { %v7952_v27 = vsub.f32 %v7944_v25, %v7951_v12 }
 0x9ae   : > { %v7953_v21 = vsel %vm7940_vm1, %v7952_v27, 0.0 }
 0x9af   : > { %7954 = vst [vmem:[%s272_s17] sm:$0xff] %v7953_v21 }
 0x9b0   : > { %9337 = shalt.err (!%p9334_p3)
}
 0x9b1   : > { %s9338_s8 = scalar_lea.hbm %s14306_s21, 128  ;;  %s9342_s14 = scalar_lea.hbm %s14349_s7, 256 }
 0x9b2   : > { %p9339_p4 = scmp.ne.s32.totalorder %s14306_s21, %s9338_s8  ;;  %p9343_p9 = scmp.lt.s32.totalorder %s14306_s21, %s14349_s7 }
 0x9b3   : > { %p9344_p10 = scmp.lt.s32.totalorder %s9342_s14, %s9338_s8 }
 0x9b4   : > { %p9340_p7 = pnand %p9339_p4, %p9470_p5 }
 0x9b5   : > { %p9345_p11 = por %p9344_p10, %p9343_p9 }
 0x9b6   : > { %p9341_p8 = pneg %p9340_p7 }
 0x9b8   : > { %p9346_p12 = pnand %p9345_p11, %p9341_p8 }
 0x9ba   : > { %9349 = shalt.err (!%p9346_p12)
}
 0x9bb   : > { %8707 = dma.vmem_to_hbm [thread:$0]  (%p9470_p5), %s7970_s19, 128, %s14306_s21, %s7956_s22  }
 0x9bc PF: > { %p8713_p13 = scmp.ge.s32.totalorder %s9384_s27, 2  ;;  %s7981_s18 = sand.u32 1, %s9372_s24  }
 0x9bd   : > { %s7982_s20 = scalar_lea.sflag [#allocation3], %s7981_s18 }
 0x9be   : > { %p8710_p0 = pnand %p8713_p13, %p9474_p6 }
 0x9c0   : > { %p8711_p1 = pneg %p8710_p0 }
 0x9c2   : > { %9367 = dma.done.wait (%p8711_p1), %s7982_s20, 128  }
 0x9c3   : > { %9369 = vsyncadd (%p8711_p1), %s7982_s20, 4294967168  ;;  %p17_p2 = scmp.ge.s32.totalorder %s9457_s30, 4   ;;  %s14962_s24 = smov %s9376_s25 }
 0x9c4   : > { %s14963_s25 = smov %s9380_s26  ;;  %s14964_s26 = smov %s9468_s10 }
 0x9c5   : > { %s14965_s27 = smov %s9457_s30  ;;  %19 = sbr.rel (!%p17_p2) target bundleno = 3 (0x3), region = 96 }
 0x9ca   :  { %7987 = vsyncpa [#allocation3], 1 }
 0x9cb   :  { %7989 = vsyncpa [#allocation3 + $0x1], 1 }

</bundles_post_ra>
